<compile_context>
chip_gen: v6e
topology: v6e:2x2x1
jax: 0.10.0
libtpu: 0.0.40
codegen_flags: <defaults>
</compile_context>

<pallas_src>
import functools
import math

import jax
import jax.numpy as jnp
from jax import lax
from jax.experimental import pallas as pl
from jax.experimental.pallas import tpu as pltpu

_LRELU_SLOPE = 0.2
_VQ_ROW_CHUNK = 512          # row-chunk for the (rows, Kp) VQ temporaries (v7x)


# ----------------------------------------------------------------------------
# Fused kernel: one grid step = `bt` batch elements, everything VMEM resident.
# ----------------------------------------------------------------------------
def _fused_vqvae_kernel(x_ref, w_ref, b_ref, cb2_ref, cbT_ref, esq_ref,
                        out_ref, stats_ref,
                        *, bt, T, Din, C, Kp, Dout, vae_layer, slope, vq_chunk):
    """Refs:
      x_ref    : (bt, T, Din)     unpadded f32 input block
      w_ref    : (n_conv, C, 3C)  bf16 conv weights, columns grouped by tap
      b_ref    : (n_conv, 1, C)   f32 biases (zero padded)
      cb2_ref  : (2, Kp, C)       bf16 hi/lo split of the f32 codebook
      cbT_ref  : (C, Kp)          bf16 transposed codebook (distance matmul)
      esq_ref  : (1, Kp)          f32 ||e_k||^2, 1e30 for padded codes
      out_ref  : (bt, T, C)       f32 slab: lanes [0,Dout)=rec, [Dout,Dout+L)=z_q
      stats_ref: (1, 2, Kp)       row 0 = code counts, row 1 = broadcast sq-err
    """
    M = bt * T
    row = lax.broadcasted_iota(jnp.int32, (M, 1), 0)
    first_row = (row % T) == 0            # t == 0     within each batch element
    last_row = (row % T) == (T - 1)       # t == T - 1 within each batch element

    state = {"ci": 0}                      # static (trace-time) conv counter

    def conv(h, leaky):
        # y = h @ [w_tap0 | w_tap1 | w_tap2]   (single bf16 MXU matmul, (M,3C))
        # out[t] = y_tap0[t-1] + y_tap1[t] + y_tap2[t+1] + bias
        # shifts are XLU sublane rolls; halo rows (incl. batch boundaries in the
        # flattened bt*T layout) are zeroed by the precomputed row masks.
        i = state["ci"]
        state["ci"] = i + 1
        y = jnp.dot(h.astype(jnp.bfloat16), w_ref[i],
                    preferred_element_type=jnp.float32)              # (M, 3C)
        dn = jnp.where(first_row, 0.0, pltpu.roll(y[:, :C], shift=1, axis=0))
        up = jnp.where(last_row, 0.0,
                       pltpu.roll(y[:, 2 * C:], shift=M - 1, axis=0))
        acc = dn + y[:, C:2 * C] + up + b_ref[i]
        if leaky:
            acc = jnp.where(acc >= 0, acc, slope * acc)
        return acc

    def resblock(h):
        r = conv(h, True)
        r = conv(r, False)
        return h + r

    # ---- input: (bt, T, Din) -> (M, C); lane zero-pad once, in VMEM ----------
    x2 = x_ref[...].reshape(M, Din)
    if Din < C:
        h = jnp.concatenate(
            [x2, jnp.zeros((M, C - Din), jnp.float32)], axis=1)
    else:
        h = x2

    # ---- encoder --------------------------------------------------------------
    for _ in range(vae_layer):
        h = conv(h, True)
        h = resblock(h)
    z = h                                                            # (M, C) f32

    # ---- vector quantizer (row-chunked so (rows, Kp) temps stay small) --------
    counts = jnp.zeros((1, Kp), jnp.float32)
    sqsum = jnp.zeros((), jnp.float32)
    zq_parts = []
    for s in range(0, M, vq_chunk):
        e = min(s + vq_chunk, M)
        zc = z[s:e]
        cross = jnp.dot(zc.astype(jnp.bfloat16), cbT_ref[...],
                        preferred_element_type=jnp.float32)          # (m, Kp)
        # argmin_k ||z - e_k||^2 == argmin_k (||e_k||^2 - 2 z.e_k); padded codes
        # carry ||e||^2 = 1e30 so they never win.  First-min tie break like torch.
        d = esq_ref[...] - 2.0 * cross
        iota_k = lax.broadcasted_iota(jnp.int32, d.shape, 1)
        min_d = jnp.min(d, axis=1, keepdims=True)
        idx = jnp.min(jnp.where(d == min_d, iota_k, Kp), axis=1, keepdims=True)
        one_hot = (iota_k == idx).astype(jnp.float32)
        oh_b = one_hot.astype(jnp.bfloat16)
        # bf16 MXU gather; hi+lo codebook split keeps code values near-f32 exact.
        zq_c = (jnp.dot(oh_b, cb2_ref[0], preferred_element_type=jnp.float32)
                + jnp.dot(oh_b, cb2_ref[1], preferred_element_type=jnp.float32))
        diff = zq_c - zc
        sqsum = sqsum + jnp.sum(diff * diff)
        counts = counts + jnp.sum(one_hot, axis=0, keepdims=True)
        zq_parts.append(zq_c)
    z_q = zq_parts[0] if len(zq_parts) == 1 else jnp.concatenate(zq_parts, 0)

    stats_ref[0] = jnp.concatenate(
        [counts, jnp.full((1, Kp), sqsum, jnp.float32)], axis=0)     # (2, Kp)

    # ---- decoder ---------------------------------------------------------------
    h = z_q
    h = resblock(h)
    h = resblock(h)
    for _ in range(vae_layer):
        h = conv(h, True)
    rec = conv(h, False)
    assert state["ci"] == w_ref.shape[0]          # all packed convs consumed

    # ---- pack rec (lanes [0,Dout)) and z_q (lanes [Dout,Dout+L)) into ONE
    # lane-dense f32 slab.  Both are exactly zero outside their real channel
    # range, so a lane roll + add suffices; halves HBM writeback vs two slabs.
    out_ref[...] = (rec + pltpu.roll(z_q, shift=Dout, axis=1)).reshape(bt, T, C)


# ----------------------------------------------------------------------------
# Wrapper: one pallas_call for the whole forward; tiny boundary ops in jnp.
# ----------------------------------------------------------------------------
def _vmem_limit_bytes():
    # ~3/4 of physical VMEM, capped at 100 MiB (v5e/v6e -> 96 MiB, v7x -> 48 MiB);
    # conservative 32 MiB fallback if the query is unavailable.
    try:
        cap = int(pltpu.get_tpu_info().vmem_capacity_bytes)
        return max(32 * 1024 * 1024, min((cap * 3) // 4, 100 * 1024 * 1024))
    except Exception:
        return 32 * 1024 * 1024


def _pick_block_batch(B, T, target_rows=512):
    # Process several batch elements per grid step so the MXU M dim is filled and
    # the ~0.35us/step pipeline overhead is amortized (biggest lever for small T).
    bt = 1
    for cand in range(1, B + 1):
        if B % cand == 0 and cand * T <= target_rows:
            bt = cand
    return bt


def vqvae_forward(x, arrays, *, cfg, beta, single_buffer_consts=True):
    B, T, Din = x.shape
    C, Kp, L, Dout, layer = cfg["C"], cfg["Kp"], cfg["L"], cfg["Dout"], cfg["layer"]
    assert Din == cfg["Din"]
    # TODO(synk): if Dout + L > C, emit two separate padded slabs instead.
    assert Dout + L <= C
    n_conv = arrays["w"].shape[0]

    bt = _pick_block_batch(B, T)
    G = B // bt
    M = bt * T
    vq_chunk = min(M, _VQ_ROW_CHUNK)

    kernel = functools.partial(
        _fused_vqvae_kernel, bt=bt, T=T, Din=Din, C=C, Kp=Kp, Dout=Dout,
        vae_layer=layer, slope=_LRELU_SLOPE, vq_chunk=vq_chunk)

    # Constant-index operands are DMA'd once; request single buffering so the
    # pipeline doesn't allocate a useless second VMEM buffer for them.
    const = {"pipeline_mode": pl.Buffered(1)} if single_buffer_consts else {}

    slab, stats = pl.pallas_call(
        kernel,
        out_shape=(
            jax.ShapeDtypeStruct((B, T, C), jnp.float32),    # packed rec | z_q slab
            jax.ShapeDtypeStruct((G, 2, Kp), jnp.float32),   # per-block counts / sq-err
        ),
        grid=(G,),
        in_specs=[
            pl.BlockSpec((bt, T, Din), lambda g: (g, 0, 0)),
            pl.BlockSpec((n_conv, C, 3 * C), lambda g: (0, 0, 0), **const),
            pl.BlockSpec((n_conv, 1, C), lambda g: (0, 0, 0), **const),
            pl.BlockSpec((2, Kp, C), lambda g: (0, 0, 0), **const),
            pl.BlockSpec((C, Kp), lambda g: (0, 0), **const),
            pl.BlockSpec((1, Kp), lambda g: (0, 0), **const),
        ],
        out_specs=(
            pl.BlockSpec((bt, T, C), lambda g: (g, 0, 0)),
            pl.BlockSpec((1, 2, Kp), lambda g: (g, 0, 0)),
        ),
        compiler_params=pltpu.CompilerParams(
            dimension_semantics=("parallel",),      # megacore-shardable grid
            vmem_limit_bytes=_vmem_limit_bytes(),
        ),
    )(x, arrays["w"], arrays["b"], arrays["cb2"], arrays["cbT"], arrays["esq"])

    N = B * T
    rec_pose = slab[:, :, :Dout]
    vq_latent = slab[:, :, Dout:Dout + L]
    # forward value of mean((zq.detach()-z)^2) + beta * mean((zq - z.detach())^2)
    embedding_loss = (1.0 + beta) * jnp.sum(stats[:, 1, 0]) / (N * L)
    e_mean = jnp.sum(stats[:, 0, :], axis=0) / N       # padded codes stay 0
    perplexity = jnp.exp(-jnp.sum(e_mean * jnp.log(e_mean + 1e-10)))
    return {
        "poses_feat": vq_latent,
        "embedding_loss": embedding_loss,
        "perplexity": perplexity,
        "rec_pose": rec_pose,
    }


# ----------------------------------------------------------------------------
# Deterministic parameter init (shapes follow the module's __init__) + packing
# into the padded / bf16 / tap-major layouts consumed by the fused kernel.
# ----------------------------------------------------------------------------
def _init_conv(key, cin, cout, k=3):
    wkey, bkey = jax.random.split(key)
    bound = 1.0 / math.sqrt(cin * k)
    # layout (k, cin, cout): w[j] multiplies x[t + j - 1].  NOTE: PyTorch Conv1d
    # weights are (cout, cin, k) -> permute(2, 1, 0) when importing.
    w = jax.random.uniform(wkey, (k, cin, cout), jnp.float32, -bound, bound)
    b = jax.random.uniform(bkey, (cout,), jnp.float32, -bound, bound)
    return {"w": w, "b": b}


def _init_resblock(key, c):
    k1, k2 = jax.random.split(key)
    return {"c1": _init_conv(k1, c, c), "c2": _init_conv(k2, c, c)}


def init_params(key, *, vae_test_dim, vae_length, vae_layer, codebook_size):
    keys = jax.random.split(key, 3 * vae_layer + 8)
    ki = iter(keys)

    encoder = []
    cin = vae_test_dim
    for _ in range(vae_layer):
        encoder.append({
            "conv": _init_conv(next(ki), cin, vae_length),
            "res": _init_resblock(next(ki), vae_length),
        })
        cin = vae_length

    dec_channels = [vae_length] * vae_layer + [vae_test_dim]
    decoder = {
        "res": [_init_resblock(next(ki), vae_length) for _ in range(2)],
        "ups": [_init_conv(next(ki), dec_channels[i], dec_channels[i + 1])
                for i in range(vae_layer)],
        "final": _init_conv(next(ki), dec_channels[-1], dec_channels[-1]),
    }

    codebook = jax.random.uniform(
        next(ki), (codebook_size, vae_length), jnp.float32,
        -1.0 / codebook_size, 1.0 / codebook_size)

    return {"encoder": encoder, "decoder": decoder, "codebook": codebook}


def pack_params(params, *, vae_test_dim, vae_length, vae_layer):
    """Flatten to the fixed conv order of the fused kernel, zero-pad channels to a
    lane-dense width C, lay weights out tap-major in the output dim (C, 3C) for
    the shift-the-outputs conv, pad the codebook size to a lane-dense Kp, and
    build bf16 copies (hi/lo split for the gather) + per-code squared norms."""
    max_c = max(vae_test_dim, vae_length)
    C = max(128, -(-max_c // 128) * 128)

    convs = []
    for layer in params["encoder"]:
        convs += [layer["conv"], layer["res"]["c1"], layer["res"]["c2"]]
    for rp in params["decoder"]["res"]:
        convs += [rp["c1"], rp["c2"]]
    convs += list(params["decoder"]["ups"])
    convs.append(params["decoder"]["final"])
    assert len(convs) == 4 * vae_layer + 5

    w_stack, b_stack = [], []
    for p in convs:
        w, b = p["w"], p["b"]                       # (3, cin, cout), (cout,)
        _, cin, cout = w.shape
        wp = jnp.zeros((3, C, C), jnp.float32).at[:, :cin, :cout].set(w)
        # tap-major output columns: [w_tap0 | w_tap1 | w_tap2]  -> (C, 3C)
        w_stack.append(jnp.concatenate([wp[0], wp[1], wp[2]], axis=1))
        b_stack.append(jnp.zeros((1, C), jnp.float32).at[0, :cout].set(b))
    w_all = jnp.stack(w_stack).astype(jnp.bfloat16)      # (n_conv, C, 3C) bf16
    b_all = jnp.stack(b_stack)                           # (n_conv, 1, C)  f32

    cb = params["codebook"]                              # (K, L) f32
    K, L = cb.shape
    Kp = max(128, -(-K // 128) * 128)                    # lane-dense codebook size
    cb_pad = jnp.zeros((Kp, C), jnp.float32).at[:K, :L].set(cb)
    cb_hi = cb_pad.astype(jnp.bfloat16)
    cb_lo = (cb_pad - cb_hi.astype(jnp.float32)).astype(jnp.bfloat16)
    cb2 = jnp.stack([cb_hi, cb_lo])                      # (2, Kp, C) bf16
    cbT = cb_pad.T.astype(jnp.bfloat16)                  # (C, Kp) bf16
    esq = jnp.sum(cb_pad * cb_pad, axis=1)[None, :]      # (1, Kp) f32
    esq = jnp.where(jnp.arange(Kp)[None, :] < K, esq, 1e30)   # padded codes never win

    arrays = {"w": w_all, "b": b_all, "cb2": cb2, "cbT": cbT, "esq": esq}
    cfg = {"C": C, "Kp": Kp, "K": K, "L": L, "Din": vae_test_dim,
           "Dout": vae_test_dim, "layer": vae_layer}
    return arrays, cfg


if __name__ == "__main__":
    # small args consistent with the module
    B, T = 2, 8
    vae_test_dim = 16
    vae_length = 32
    vae_layer = 2
    vae_codebook_size = 64
    vae_quantizer_lambda = 0.25

    root = jax.random.PRNGKey(0)
    pkey, xkey = jax.random.split(root)
    params = init_params(pkey, vae_test_dim=vae_test_dim, vae_length=vae_length,
                         vae_layer=vae_layer, codebook_size=vae_codebook_size)
    arrays, cfg = pack_params(params, vae_test_dim=vae_test_dim,
                              vae_length=vae_length, vae_layer=vae_layer)
    x = jax.random.normal(xkey, (B, T, vae_test_dim), jnp.float32)

    def run(single_buffer_consts):
        fwd = jax.jit(functools.partial(
            vqvae_forward, cfg=cfg, beta=vae_quantizer_lambda,
            single_buffer_consts=single_buffer_consts))
        out = fwd(x, arrays)
        jax.block_until_ready(out)
        return out

    try:
        out = run(True)
    except Exception:
        # Fallback: drop the pl.Buffered(1) single-buffering hint if this jax
        # build rejects it (identical kernel, default double buffering).
        out = run(False)

    assert out["poses_feat"].shape == (B, T, vae_length)
    assert out["rec_pose"].shape == (B, T, vae_test_dim)
    assert out["embedding_loss"].shape == ()
    assert out["perplexity"].shape == ()
    assert bool(jnp.isfinite(out["embedding_loss"]))
    assert bool(jnp.isfinite(out["perplexity"]))
    assert bool(jnp.all(jnp.isfinite(out["rec_pose"])))
    print("KERNEL_OK")
</pallas_src>

<mosaic_0001>
module attributes {stable_mosaic.version = 11 : i64} {
  func.func @_fused_vqvae_kernel(%arg0: i32, %arg1: memref<2x8x16xf32, #tpu.memory_space<vmem>>, %arg2: memref<13x128x384xbf16, #tpu.memory_space<vmem>>, %arg3: memref<13x1x128xf32, #tpu.memory_space<vmem>>, %arg4: memref<2x128x128xbf16, #tpu.memory_space<vmem>>, %arg5: memref<128x128xbf16, #tpu.memory_space<vmem>>, %arg6: memref<1x128xf32, #tpu.memory_space<vmem>>, %arg7: memref<2x8x128xf32, #tpu.memory_space<vmem>>, %arg8: memref<1x2x128xf32, #tpu.memory_space<vmem>>) attributes {dimension_semantics = [#tpu.dimension_semantics<parallel>], iteration_bounds = array<i64: 1>, scalar_prefetch = 0 : i64, scratch_operands = 0 : i64, tpu.core_type = #tpu.core_type<tc>, window_params = [{transform_indices = @transform_0, window_bounds = array<i64: 2, 8, 16>}, {pipeline_mode = #tpu.pipeline_mode<synchronous>, transform_indices = @transform_1, window_bounds = array<i64: 13, 128, 384>}, {pipeline_mode = #tpu.pipeline_mode<synchronous>, transform_indices = @transform_2, window_bounds = array<i64: 13, 1, 128>}, {pipeline_mode = #tpu.pipeline_mode<synchronous>, transform_indices = @transform_3, window_bounds = array<i64: 2, 128, 128>}, {pipeline_mode = #tpu.pipeline_mode<synchronous>, transform_indices = @transform_4, window_bounds = array<i64: 128, 128>}, {pipeline_mode = #tpu.pipeline_mode<synchronous>, transform_indices = @transform_5, window_bounds = array<i64: 1, 128>}, {transform_indices = @transform_6, window_bounds = array<i64: 2, 8, 128>}, {transform_indices = @transform_7, window_bounds = array<i64: 1, 2, 128>}]} {
    %0 = tpu.iota {dimensions = array<i32: 0>} : vector<16x1xi32>
    %c8_i32 = arith.constant 8 : i32
    %c0_i32 = arith.constant 0 : i32
    %1 = arith.cmpi eq, %c8_i32, %c0_i32 : i32
    %c1_i32 = arith.constant 1 : i32
    %2 = arith.select %1, %c1_i32, %c8_i32 : i32
    %3 = vector.broadcast %2 : i32 to vector<16x1xi32>
    %4 = arith.remsi %0, %3 : vector<16x1xi32>
    %c0_i32_0 = arith.constant 0 : i32
    %5 = vector.broadcast %c0_i32_0 : i32 to vector<16x1xi32>
    %6 = arith.cmpi ne, %4, %5 : vector<16x1xi32>
    %c0_i32_1 = arith.constant 0 : i32
    %7 = vector.broadcast %c0_i32_1 : i32 to vector<16x1xi32>
    %8 = arith.cmpi slt, %4, %7 : vector<16x1xi32>
    %c0_i32_2 = arith.constant 0 : i32
    %9 = arith.cmpi slt, %2, %c0_i32_2 : i32
    %10 = vector.broadcast %9 : i1 to vector<16x1xi1>
    %11 = vector.broadcast %10 : vector<16x1xi1> to vector<16x1xi1>
    %12 = arith.xori %8, %11 : vector<16x1xi1>
    %13 = arith.andi %12, %6 : vector<16x1xi1>
    %14 = vector.broadcast %2 : i32 to vector<16x1xi32>
    %15 = arith.addi %4, %14 : vector<16x1xi32>
    %16 = arith.select %13, %15, %4 : vector<16x1xi1>, vector<16x1xi32>
    %c0_i32_3 = arith.constant 0 : i32
    %17 = vector.broadcast %c0_i32_3 : i32 to vector<16x1xi32>
    %18 = arith.cmpi eq, %16, %17 : vector<16x1xi32>
    %c8_i32_4 = arith.constant 8 : i32
    %c0_i32_5 = arith.constant 0 : i32
    %19 = arith.cmpi eq, %c8_i32_4, %c0_i32_5 : i32
    %c1_i32_6 = arith.constant 1 : i32
    %20 = arith.select %19, %c1_i32_6, %c8_i32_4 : i32
    %21 = vector.broadcast %20 : i32 to vector<16x1xi32>
    %22 = arith.remsi %0, %21 : vector<16x1xi32>
    %c0_i32_7 = arith.constant 0 : i32
    %23 = vector.broadcast %c0_i32_7 : i32 to vector<16x1xi32>
    %24 = arith.cmpi ne, %22, %23 : vector<16x1xi32>
    %c0_i32_8 = arith.constant 0 : i32
    %25 = vector.broadcast %c0_i32_8 : i32 to vector<16x1xi32>
    %26 = arith.cmpi slt, %22, %25 : vector<16x1xi32>
    %c0_i32_9 = arith.constant 0 : i32
    %27 = arith.cmpi slt, %20, %c0_i32_9 : i32
    %28 = vector.broadcast %27 : i1 to vector<16x1xi1>
    %29 = vector.broadcast %28 : vector<16x1xi1> to vector<16x1xi1>
    %30 = arith.xori %26, %29 : vector<16x1xi1>
    %31 = arith.andi %30, %24 : vector<16x1xi1>
    %32 = vector.broadcast %20 : i32 to vector<16x1xi32>
    %33 = arith.addi %22, %32 : vector<16x1xi32>
    %34 = arith.select %31, %33, %22 : vector<16x1xi1>, vector<16x1xi32>
    %c7_i32 = arith.constant 7 : i32
    %35 = vector.broadcast %c7_i32 : i32 to vector<16x1xi32>
    %36 = arith.cmpi eq, %34, %35 : vector<16x1xi32>
    %c0 = arith.constant 0 : index
    %c0_10 = arith.constant 0 : index
    %c0_11 = arith.constant 0 : index
    %37 = vector.load %arg1[%c0, %c0_10, %c0_11] : memref<2x8x16xf32, #tpu.memory_space<vmem>>, vector<2x8x16xf32>
    %38 = vector.shape_cast %37 : vector<2x8x16xf32> to vector<16x16xf32>
    %cst = arith.constant 0.000000e+00 : f32
    %39 = vector.broadcast %cst : f32 to vector<16x112xf32>
    %40 = tpu.concatenate %38, %39 in 1 : vector<16x16xf32>, vector<16x112xf32> -> vector<16x128xf32>
    %41 = arith.truncf %40 : vector<16x128xf32> to vector<16x128xbf16>
    %c0_12 = arith.constant 0 : index
    %c0_13 = arith.constant 0 : index
    %c0_14 = arith.constant 0 : index
    %42 = vector.load %arg2[%c0_12, %c0_13, %c0_14] : memref<13x128x384xbf16, #tpu.memory_space<vmem>>, vector<1x128x384xbf16>
    %43 = vector.shape_cast %42 : vector<1x128x384xbf16> to vector<128x384xbf16>
    %cst_15 = arith.constant dense<0.000000e+00> : vector<16x384xf32>
    %44 = tpu.matmul %41, %43, %cst_15 {dimension_numbers = #tpu.dot_dimension_numbers<[1], [0], [0], [1], [0, 0, 1, 1], [], []>} : vector<16x128xbf16>, vector<128x384xbf16>, vector<16x384xf32> -> vector<16x384xf32>
    %45 = vector.extract_strided_slice %44 {offsets = [0, 0], sizes = [16, 128], strides = [1, 1]} : vector<16x384xf32> to vector<16x128xf32>
    %c1_i32_16 = arith.constant 1 : i32
    %46 = tpu.dynamic_rotate %45 by %c1_i32_16 dim 0 : vector<16x128xf32>, i32 -> vector<16x128xf32>
    %cst_17 = arith.constant 0.000000e+00 : f32
    %47 = vector.shape_cast %18 : vector<16x1xi1> to vector<16x1xi1>
    %48 = vector.broadcast %47 : vector<16x1xi1> to vector<16x128xi1>
    %49 = vector.broadcast %cst_17 : f32 to vector<16x128xf32>
    %50 = arith.select %48, %49, %46 : vector<16x128xi1>, vector<16x128xf32>
    %51 = vector.extract_strided_slice %44 {offsets = [0, 256], sizes = [16, 128], strides = [1, 1]} : vector<16x384xf32> to vector<16x128xf32>
    %c15_i32 = arith.constant 15 : i32
    %52 = tpu.dynamic_rotate %51 by %c15_i32 dim 0 : vector<16x128xf32>, i32 -> vector<16x128xf32>
    %cst_18 = arith.constant 0.000000e+00 : f32
    %53 = vector.shape_cast %36 : vector<16x1xi1> to vector<16x1xi1>
    %54 = vector.broadcast %53 : vector<16x1xi1> to vector<16x128xi1>
    %55 = vector.broadcast %cst_18 : f32 to vector<16x128xf32>
    %56 = arith.select %54, %55, %52 : vector<16x128xi1>, vector<16x128xf32>
    %57 = vector.extract_strided_slice %44 {offsets = [0, 128], sizes = [16, 128], strides = [1, 1]} : vector<16x384xf32> to vector<16x128xf32>
    %58 = arith.addf %50, %57 : vector<16x128xf32>
    %59 = arith.addf %58, %56 : vector<16x128xf32>
    %c0_19 = arith.constant 0 : index
    %c0_20 = arith.constant 0 : index
    %c0_21 = arith.constant 0 : index
    %60 = vector.load %arg3[%c0_19, %c0_20, %c0_21] : memref<13x1x128xf32, #tpu.memory_space<vmem>>, vector<1x1x128xf32>
    %61 = vector.shape_cast %60 : vector<1x1x128xf32> to vector<1x128xf32>
    %62 = vector.broadcast %61 : vector<1x128xf32> to vector<16x128xf32>
    %63 = arith.addf %59, %62 : vector<16x128xf32>
    %cst_22 = arith.constant 0.000000e+00 : f32
    %64 = vector.broadcast %cst_22 : f32 to vector<16x128xf32>
    %65 = arith.cmpf oge, %63, %64 : vector<16x128xf32>
    %cst_23 = arith.constant 2.000000e-01 : f32
    %66 = vector.broadcast %cst_23 : f32 to vector<16x128xf32>
    %67 = arith.mulf %66, %63 : vector<16x128xf32>
    %68 = arith.select %65, %63, %67 : vector<16x128xi1>, vector<16x128xf32>
    %69 = arith.truncf %68 : vector<16x128xf32> to vector<16x128xbf16>
    %c1 = arith.constant 1 : index
    %c0_24 = arith.constant 0 : index
    %c0_25 = arith.constant 0 : index
    %70 = vector.load %arg2[%c1, %c0_24, %c0_25] : memref<13x128x384xbf16, #tpu.memory_space<vmem>>, vector<1x128x384xbf16>
    %71 = vector.shape_cast %70 : vector<1x128x384xbf16> to vector<128x384xbf16>
    %cst_26 = arith.constant dense<0.000000e+00> : vector<16x384xf32>
    %72 = tpu.matmul %69, %71, %cst_26 {dimension_numbers = #tpu.dot_dimension_numbers<[1], [0], [0], [1], [0, 0, 1, 1], [], []>} : vector<16x128xbf16>, vector<128x384xbf16>, vector<16x384xf32> -> vector<16x384xf32>
    %73 = vector.extract_strided_slice %72 {offsets = [0, 0], sizes = [16, 128], strides = [1, 1]} : vector<16x384xf32> to vector<16x128xf32>
    %c1_i32_27 = arith.constant 1 : i32
    %74 = tpu.dynamic_rotate %73 by %c1_i32_27 dim 0 : vector<16x128xf32>, i32 -> vector<16x128xf32>
    %cst_28 = arith.constant 0.000000e+00 : f32
    %75 = vector.shape_cast %18 : vector<16x1xi1> to vector<16x1xi1>
    %76 = vector.broadcast %75 : vector<16x1xi1> to vector<16x128xi1>
    %77 = vector.broadcast %cst_28 : f32 to vector<16x128xf32>
    %78 = arith.select %76, %77, %74 : vector<16x128xi1>, vector<16x128xf32>
    %79 = vector.extract_strided_slice %72 {offsets = [0, 256], sizes = [16, 128], strides = [1, 1]} : vector<16x384xf32> to vector<16x128xf32>
    %c15_i32_29 = arith.constant 15 : i32
    %80 = tpu.dynamic_rotate %79 by %c15_i32_29 dim 0 : vector<16x128xf32>, i32 -> vector<16x128xf32>
    %cst_30 = arith.constant 0.000000e+00 : f32
    %81 = vector.shape_cast %36 : vector<16x1xi1> to vector<16x1xi1>
    %82 = vector.broadcast %81 : vector<16x1xi1> to vector<16x128xi1>
    %83 = vector.broadcast %cst_30 : f32 to vector<16x128xf32>
    %84 = arith.select %82, %83, %80 : vector<16x128xi1>, vector<16x128xf32>
    %85 = vector.extract_strided_slice %72 {offsets = [0, 128], sizes = [16, 128], strides = [1, 1]} : vector<16x384xf32> to vector<16x128xf32>
    %86 = arith.addf %78, %85 : vector<16x128xf32>
    %87 = arith.addf %86, %84 : vector<16x128xf32>
    %c1_31 = arith.constant 1 : index
    %c0_32 = arith.constant 0 : index
    %c0_33 = arith.constant 0 : index
    %88 = vector.load %arg3[%c1_31, %c0_32, %c0_33] : memref<13x1x128xf32, #tpu.memory_space<vmem>>, vector<1x1x128xf32>
    %89 = vector.shape_cast %88 : vector<1x1x128xf32> to vector<1x128xf32>
    %90 = vector.broadcast %89 : vector<1x128xf32> to vector<16x128xf32>
    %91 = arith.addf %87, %90 : vector<16x128xf32>
    %cst_34 = arith.constant 0.000000e+00 : f32
    %92 = vector.broadcast %cst_34 : f32 to vector<16x128xf32>
    %93 = arith.cmpf oge, %91, %92 : vector<16x128xf32>
    %cst_35 = arith.constant 2.000000e-01 : f32
    %94 = vector.broadcast %cst_35 : f32 to vector<16x128xf32>
    %95 = arith.mulf %94, %91 : vector<16x128xf32>
    %96 = arith.select %93, %91, %95 : vector<16x128xi1>, vector<16x128xf32>
    %97 = arith.truncf %96 : vector<16x128xf32> to vector<16x128xbf16>
    %c2 = arith.constant 2 : index
    %c0_36 = arith.constant 0 : index
    %c0_37 = arith.constant 0 : index
    %98 = vector.load %arg2[%c2, %c0_36, %c0_37] : memref<13x128x384xbf16, #tpu.memory_space<vmem>>, vector<1x128x384xbf16>
    %99 = vector.shape_cast %98 : vector<1x128x384xbf16> to vector<128x384xbf16>
    %cst_38 = arith.constant dense<0.000000e+00> : vector<16x384xf32>
    %100 = tpu.matmul %97, %99, %cst_38 {dimension_numbers = #tpu.dot_dimension_numbers<[1], [0], [0], [1], [0, 0, 1, 1], [], []>} : vector<16x128xbf16>, vector<128x384xbf16>, vector<16x384xf32> -> vector<16x384xf32>
    %101 = vector.extract_strided_slice %100 {offsets = [0, 0], sizes = [16, 128], strides = [1, 1]} : vector<16x384xf32> to vector<16x128xf32>
    %c1_i32_39 = arith.constant 1 : i32
    %102 = tpu.dynamic_rotate %101 by %c1_i32_39 dim 0 : vector<16x128xf32>, i32 -> vector<16x128xf32>
    %cst_40 = arith.constant 0.000000e+00 : f32
    %103 = vector.shape_cast %18 : vector<16x1xi1> to vector<16x1xi1>
    %104 = vector.broadcast %103 : vector<16x1xi1> to vector<16x128xi1>
    %105 = vector.broadcast %cst_40 : f32 to vector<16x128xf32>
    %106 = arith.select %104, %105, %102 : vector<16x128xi1>, vector<16x128xf32>
    %107 = vector.extract_strided_slice %100 {offsets = [0, 256], sizes = [16, 128], strides = [1, 1]} : vector<16x384xf32> to vector<16x128xf32>
    %c15_i32_41 = arith.constant 15 : i32
    %108 = tpu.dynamic_rotate %107 by %c15_i32_41 dim 0 : vector<16x128xf32>, i32 -> vector<16x128xf32>
    %cst_42 = arith.constant 0.000000e+00 : f32
    %109 = vector.shape_cast %36 : vector<16x1xi1> to vector<16x1xi1>
    %110 = vector.broadcast %109 : vector<16x1xi1> to vector<16x128xi1>
    %111 = vector.broadcast %cst_42 : f32 to vector<16x128xf32>
    %112 = arith.select %110, %111, %108 : vector<16x128xi1>, vector<16x128xf32>
    %113 = vector.extract_strided_slice %100 {offsets = [0, 128], sizes = [16, 128], strides = [1, 1]} : vector<16x384xf32> to vector<16x128xf32>
    %114 = arith.addf %106, %113 : vector<16x128xf32>
    %115 = arith.addf %114, %112 : vector<16x128xf32>
    %c2_43 = arith.constant 2 : index
    %c0_44 = arith.constant 0 : index
    %c0_45 = arith.constant 0 : index
    %116 = vector.load %arg3[%c2_43, %c0_44, %c0_45] : memref<13x1x128xf32, #tpu.memory_space<vmem>>, vector<1x1x128xf32>
    %117 = vector.shape_cast %116 : vector<1x1x128xf32> to vector<1x128xf32>
    %118 = vector.broadcast %117 : vector<1x128xf32> to vector<16x128xf32>
    %119 = arith.addf %115, %118 : vector<16x128xf32>
    %120 = arith.addf %68, %119 : vector<16x128xf32>
    %121 = arith.truncf %120 : vector<16x128xf32> to vector<16x128xbf16>
    %c3 = arith.constant 3 : index
    %c0_46 = arith.constant 0 : index
    %c0_47 = arith.constant 0 : index
    %122 = vector.load %arg2[%c3, %c0_46, %c0_47] : memref<13x128x384xbf16, #tpu.memory_space<vmem>>, vector<1x128x384xbf16>
    %123 = vector.shape_cast %122 : vector<1x128x384xbf16> to vector<128x384xbf16>
    %cst_48 = arith.constant dense<0.000000e+00> : vector<16x384xf32>
    %124 = tpu.matmul %121, %123, %cst_48 {dimension_numbers = #tpu.dot_dimension_numbers<[1], [0], [0], [1], [0, 0, 1, 1], [], []>} : vector<16x128xbf16>, vector<128x384xbf16>, vector<16x384xf32> -> vector<16x384xf32>
    %125 = vector.extract_strided_slice %124 {offsets = [0, 0], sizes = [16, 128], strides = [1, 1]} : vector<16x384xf32> to vector<16x128xf32>
    %c1_i32_49 = arith.constant 1 : i32
    %126 = tpu.dynamic_rotate %125 by %c1_i32_49 dim 0 : vector<16x128xf32>, i32 -> vector<16x128xf32>
    %cst_50 = arith.constant 0.000000e+00 : f32
    %127 = vector.shape_cast %18 : vector<16x1xi1> to vector<16x1xi1>
    %128 = vector.broadcast %127 : vector<16x1xi1> to vector<16x128xi1>
    %129 = vector.broadcast %cst_50 : f32 to vector<16x128xf32>
    %130 = arith.select %128, %129, %126 : vector<16x128xi1>, vector<16x128xf32>
    %131 = vector.extract_strided_slice %124 {offsets = [0, 256], sizes = [16, 128], strides = [1, 1]} : vector<16x384xf32> to vector<16x128xf32>
    %c15_i32_51 = arith.constant 15 : i32
    %132 = tpu.dynamic_rotate %131 by %c15_i32_51 dim 0 : vector<16x128xf32>, i32 -> vector<16x128xf32>
    %cst_52 = arith.constant 0.000000e+00 : f32
    %133 = vector.shape_cast %36 : vector<16x1xi1> to vector<16x1xi1>
    %134 = vector.broadcast %133 : vector<16x1xi1> to vector<16x128xi1>
    %135 = vector.broadcast %cst_52 : f32 to vector<16x128xf32>
    %136 = arith.select %134, %135, %132 : vector<16x128xi1>, vector<16x128xf32>
    %137 = vector.extract_strided_slice %124 {offsets = [0, 128], sizes = [16, 128], strides = [1, 1]} : vector<16x384xf32> to vector<16x128xf32>
    %138 = arith.addf %130, %137 : vector<16x128xf32>
    %139 = arith.addf %138, %136 : vector<16x128xf32>
    %c3_53 = arith.constant 3 : index
    %c0_54 = arith.constant 0 : index
    %c0_55 = arith.constant 0 : index
    %140 = vector.load %arg3[%c3_53, %c0_54, %c0_55] : memref<13x1x128xf32, #tpu.memory_space<vmem>>, vector<1x1x128xf32>
    %141 = vector.shape_cast %140 : vector<1x1x128xf32> to vector<1x128xf32>
    %142 = vector.broadcast %141 : vector<1x128xf32> to vector<16x128xf32>
    %143 = arith.addf %139, %142 : vector<16x128xf32>
    %cst_56 = arith.constant 0.000000e+00 : f32
    %144 = vector.broadcast %cst_56 : f32 to vector<16x128xf32>
    %145 = arith.cmpf oge, %143, %144 : vector<16x128xf32>
    %cst_57 = arith.constant 2.000000e-01 : f32
    %146 = vector.broadcast %cst_57 : f32 to vector<16x128xf32>
    %147 = arith.mulf %146, %143 : vector<16x128xf32>
    %148 = arith.select %145, %143, %147 : vector<16x128xi1>, vector<16x128xf32>
    %149 = arith.truncf %148 : vector<16x128xf32> to vector<16x128xbf16>
    %c4 = arith.constant 4 : index
    %c0_58 = arith.constant 0 : index
    %c0_59 = arith.constant 0 : index
    %150 = vector.load %arg2[%c4, %c0_58, %c0_59] : memref<13x128x384xbf16, #tpu.memory_space<vmem>>, vector<1x128x384xbf16>
    %151 = vector.shape_cast %150 : vector<1x128x384xbf16> to vector<128x384xbf16>
    %cst_60 = arith.constant dense<0.000000e+00> : vector<16x384xf32>
    %152 = tpu.matmul %149, %151, %cst_60 {dimension_numbers = #tpu.dot_dimension_numbers<[1], [0], [0], [1], [0, 0, 1, 1], [], []>} : vector<16x128xbf16>, vector<128x384xbf16>, vector<16x384xf32> -> vector<16x384xf32>
    %153 = vector.extract_strided_slice %152 {offsets = [0, 0], sizes = [16, 128], strides = [1, 1]} : vector<16x384xf32> to vector<16x128xf32>
    %c1_i32_61 = arith.constant 1 : i32
    %154 = tpu.dynamic_rotate %153 by %c1_i32_61 dim 0 : vector<16x128xf32>, i32 -> vector<16x128xf32>
    %cst_62 = arith.constant 0.000000e+00 : f32
    %155 = vector.shape_cast %18 : vector<16x1xi1> to vector<16x1xi1>
    %156 = vector.broadcast %155 : vector<16x1xi1> to vector<16x128xi1>
    %157 = vector.broadcast %cst_62 : f32 to vector<16x128xf32>
    %158 = arith.select %156, %157, %154 : vector<16x128xi1>, vector<16x128xf32>
    %159 = vector.extract_strided_slice %152 {offsets = [0, 256], sizes = [16, 128], strides = [1, 1]} : vector<16x384xf32> to vector<16x128xf32>
    %c15_i32_63 = arith.constant 15 : i32
    %160 = tpu.dynamic_rotate %159 by %c15_i32_63 dim 0 : vector<16x128xf32>, i32 -> vector<16x128xf32>
    %cst_64 = arith.constant 0.000000e+00 : f32
    %161 = vector.shape_cast %36 : vector<16x1xi1> to vector<16x1xi1>
    %162 = vector.broadcast %161 : vector<16x1xi1> to vector<16x128xi1>
    %163 = vector.broadcast %cst_64 : f32 to vector<16x128xf32>
    %164 = arith.select %162, %163, %160 : vector<16x128xi1>, vector<16x128xf32>
    %165 = vector.extract_strided_slice %152 {offsets = [0, 128], sizes = [16, 128], strides = [1, 1]} : vector<16x384xf32> to vector<16x128xf32>
    %166 = arith.addf %158, %165 : vector<16x128xf32>
    %167 = arith.addf %166, %164 : vector<16x128xf32>
    %c4_65 = arith.constant 4 : index
    %c0_66 = arith.constant 0 : index
    %c0_67 = arith.constant 0 : index
    %168 = vector.load %arg3[%c4_65, %c0_66, %c0_67] : memref<13x1x128xf32, #tpu.memory_space<vmem>>, vector<1x1x128xf32>
    %169 = vector.shape_cast %168 : vector<1x1x128xf32> to vector<1x128xf32>
    %170 = vector.broadcast %169 : vector<1x128xf32> to vector<16x128xf32>
    %171 = arith.addf %167, %170 : vector<16x128xf32>
    %cst_68 = arith.constant 0.000000e+00 : f32
    %172 = vector.broadcast %cst_68 : f32 to vector<16x128xf32>
    %173 = arith.cmpf oge, %171, %172 : vector<16x128xf32>
    %cst_69 = arith.constant 2.000000e-01 : f32
    %174 = vector.broadcast %cst_69 : f32 to vector<16x128xf32>
    %175 = arith.mulf %174, %171 : vector<16x128xf32>
    %176 = arith.select %173, %171, %175 : vector<16x128xi1>, vector<16x128xf32>
    %177 = arith.truncf %176 : vector<16x128xf32> to vector<16x128xbf16>
    %c5 = arith.constant 5 : index
    %c0_70 = arith.constant 0 : index
    %c0_71 = arith.constant 0 : index
    %178 = vector.load %arg2[%c5, %c0_70, %c0_71] : memref<13x128x384xbf16, #tpu.memory_space<vmem>>, vector<1x128x384xbf16>
    %179 = vector.shape_cast %178 : vector<1x128x384xbf16> to vector<128x384xbf16>
    %cst_72 = arith.constant dense<0.000000e+00> : vector<16x384xf32>
    %180 = tpu.matmul %177, %179, %cst_72 {dimension_numbers = #tpu.dot_dimension_numbers<[1], [0], [0], [1], [0, 0, 1, 1], [], []>} : vector<16x128xbf16>, vector<128x384xbf16>, vector<16x384xf32> -> vector<16x384xf32>
    %181 = vector.extract_strided_slice %180 {offsets = [0, 0], sizes = [16, 128], strides = [1, 1]} : vector<16x384xf32> to vector<16x128xf32>
    %c1_i32_73 = arith.constant 1 : i32
    %182 = tpu.dynamic_rotate %181 by %c1_i32_73 dim 0 : vector<16x128xf32>, i32 -> vector<16x128xf32>
    %cst_74 = arith.constant 0.000000e+00 : f32
    %183 = vector.shape_cast %18 : vector<16x1xi1> to vector<16x1xi1>
    %184 = vector.broadcast %183 : vector<16x1xi1> to vector<16x128xi1>
    %185 = vector.broadcast %cst_74 : f32 to vector<16x128xf32>
    %186 = arith.select %184, %185, %182 : vector<16x128xi1>, vector<16x128xf32>
    %187 = vector.extract_strided_slice %180 {offsets = [0, 256], sizes = [16, 128], strides = [1, 1]} : vector<16x384xf32> to vector<16x128xf32>
    %c15_i32_75 = arith.constant 15 : i32
    %188 = tpu.dynamic_rotate %187 by %c15_i32_75 dim 0 : vector<16x128xf32>, i32 -> vector<16x128xf32>
    %cst_76 = arith.constant 0.000000e+00 : f32
    %189 = vector.shape_cast %36 : vector<16x1xi1> to vector<16x1xi1>
    %190 = vector.broadcast %189 : vector<16x1xi1> to vector<16x128xi1>
    %191 = vector.broadcast %cst_76 : f32 to vector<16x128xf32>
    %192 = arith.select %190, %191, %188 : vector<16x128xi1>, vector<16x128xf32>
    %193 = vector.extract_strided_slice %180 {offsets = [0, 128], sizes = [16, 128], strides = [1, 1]} : vector<16x384xf32> to vector<16x128xf32>
    %194 = arith.addf %186, %193 : vector<16x128xf32>
    %195 = arith.addf %194, %192 : vector<16x128xf32>
    %c5_77 = arith.constant 5 : index
    %c0_78 = arith.constant 0 : index
    %c0_79 = arith.constant 0 : index
    %196 = vector.load %arg3[%c5_77, %c0_78, %c0_79] : memref<13x1x128xf32, #tpu.memory_space<vmem>>, vector<1x1x128xf32>
    %197 = vector.shape_cast %196 : vector<1x1x128xf32> to vector<1x128xf32>
    %198 = vector.broadcast %197 : vector<1x128xf32> to vector<16x128xf32>
    %199 = arith.addf %195, %198 : vector<16x128xf32>
    %200 = arith.addf %148, %199 : vector<16x128xf32>
    %cst_80 = arith.constant 0.000000e+00 : f32
    %201 = vector.broadcast %cst_80 : f32 to vector<1x128xf32>
    %202 = arith.truncf %200 : vector<16x128xf32> to vector<16x128xbf16>
    %c0_81 = arith.constant 0 : index
    %c0_82 = arith.constant 0 : index
    %203 = vector.load %arg5[%c0_81, %c0_82] : memref<128x128xbf16, #tpu.memory_space<vmem>>, vector<128x128xbf16>
    %cst_83 = arith.constant dense<0.000000e+00> : vector<16x128xf32>
    %204 = tpu.matmul %202, %203, %cst_83 {dimension_numbers = #tpu.dot_dimension_numbers<[1], [0], [0], [1], [0, 0, 1, 1], [], []>} : vector<16x128xbf16>, vector<128x128xbf16>, vector<16x128xf32> -> vector<16x128xf32>
    %c0_84 = arith.constant 0 : index
    %c0_85 = arith.constant 0 : index
    %205 = vector.load %arg6[%c0_84, %c0_85] : memref<1x128xf32, #tpu.memory_space<vmem>>, vector<1x128xf32>
    %cst_86 = arith.constant 2.000000e+00 : f32
    %206 = vector.broadcast %cst_86 : f32 to vector<16x128xf32>
    %207 = arith.mulf %206, %204 : vector<16x128xf32>
    %208 = vector.broadcast %205 : vector<1x128xf32> to vector<16x128xf32>
    %209 = arith.subf %208, %207 : vector<16x128xf32>
    %210 = tpu.iota {dimensions = array<i32: 1>} : vector<16x128xi32>
    %cst_87 = arith.constant dense<0x7F800000> : vector<16xf32>
    %211 = vector.multi_reduction <minimumf>, %209, %cst_87 [1] : vector<16x128xf32> to vector<16xf32>
    %212 = vector.shape_cast %211 : vector<16xf32> to vector<16x1xf32>
    %213 = vector.broadcast %212 : vector<16x1xf32> to vector<16x128xf32>
    %214 = arith.cmpf oeq, %209, %213 : vector<16x128xf32>
    %c128_i32 = arith.constant 128 : i32
    %215 = vector.broadcast %c128_i32 : i32 to vector<16x128xi32>
    %216 = arith.select %214, %210, %215 : vector<16x128xi1>, vector<16x128xi32>
    %cst_88 = arith.constant dense<2147483647> : vector<16xi32>
    %217 = vector.multi_reduction <minsi>, %216, %cst_88 [1] : vector<16x128xi32> to vector<16xi32>
    %218 = vector.shape_cast %217 : vector<16xi32> to vector<16x1xi32>
    %219 = vector.broadcast %218 : vector<16x1xi32> to vector<16x128xi32>
    %220 = arith.cmpi eq, %210, %219 : vector<16x128xi32>
    %221 = arith.extui %220 : vector<16x128xi1> to vector<16x128xi32>
    %222 = arith.sitofp %221 : vector<16x128xi32> to vector<16x128xf32>
    %223 = arith.truncf %222 : vector<16x128xf32> to vector<16x128xbf16>
    %c0_89 = arith.constant 0 : index
    %c0_90 = arith.constant 0 : index
    %c0_91 = arith.constant 0 : index
    %224 = vector.load %arg4[%c0_89, %c0_90, %c0_91] : memref<2x128x128xbf16, #tpu.memory_space<vmem>>, vector<1x128x128xbf16>
    %225 = vector.shape_cast %224 : vector<1x128x128xbf16> to vector<128x128xbf16>
    %cst_92 = arith.constant dense<0.000000e+00> : vector<16x128xf32>
    %226 = tpu.matmul %223, %225, %cst_92 {dimension_numbers = #tpu.dot_dimension_numbers<[1], [0], [0], [1], [0, 0, 1, 1], [], []>} : vector<16x128xbf16>, vector<128x128xbf16>, vector<16x128xf32> -> vector<16x128xf32>
    %c1_93 = arith.constant 1 : index
    %c0_94 = arith.constant 0 : index
    %c0_95 = arith.constant 0 : index
    %227 = vector.load %arg4[%c1_93, %c0_94, %c0_95] : memref<2x128x128xbf16, #tpu.memory_space<vmem>>, vector<1x128x128xbf16>
    %228 = vector.shape_cast %227 : vector<1x128x128xbf16> to vector<128x128xbf16>
    %cst_96 = arith.constant dense<0.000000e+00> : vector<16x128xf32>
    %229 = tpu.matmul %223, %228, %cst_96 {dimension_numbers = #tpu.dot_dimension_numbers<[1], [0], [0], [1], [0, 0, 1, 1], [], []>} : vector<16x128xbf16>, vector<128x128xbf16>, vector<16x128xf32> -> vector<16x128xf32>
    %230 = arith.addf %226, %229 : vector<16x128xf32>
    %231 = arith.subf %230, %200 : vector<16x128xf32>
    %232 = arith.mulf %231, %231 : vector<16x128xf32>
    %233 = vector.shape_cast %232 : vector<16x128xf32> to vector<1x16x128xf32>
    %cst_97 = arith.constant dense<0.000000e+00> : vector<1xf32>
    %234 = vector.multi_reduction <add>, %233, %cst_97 [1, 2] : vector<1x16x128xf32> to vector<1xf32>
    %235 = vector.shape_cast %234 : vector<1xf32> to vector<1x1x1xf32>
    %236 = vector.extract %235[0, 0, 0] : f32 from vector<1x1x1xf32>
    %cst_98 = arith.constant 0.000000e+00 : f32
    %237 = arith.addf %cst_98, %236 : f32
    %cst_99 = arith.constant dense<0.000000e+00> : vector<128xf32>
    %238 = vector.multi_reduction <add>, %222, %cst_99 [0] : vector<16x128xf32> to vector<128xf32>
    %239 = vector.shape_cast %238 : vector<128xf32> to vector<1x128xf32>
    %240 = arith.addf %201, %239 : vector<1x128xf32>
    %241 = vector.broadcast %237 : f32 to vector<1x128xf32>
    %242 = tpu.concatenate %240, %241 in 0 : vector<1x128xf32>, vector<1x128xf32> -> vector<2x128xf32>
    %c0_100 = arith.constant 0 : index
    %c0_101 = arith.constant 0 : index
    %c0_102 = arith.constant 0 : index
    %243 = vector.load %arg8[%c0_100, %c0_101, %c0_102] : memref<1x2x128xf32, #tpu.memory_space<vmem>>, vector<1x2x128xf32>
    %244 = vector.shape_cast %243 : vector<1x2x128xf32> to vector<2x128xf32>
    %245 = vector.shape_cast %242 : vector<2x128xf32> to vector<1x2x128xf32>
    tpu.vector_store %arg8[%c0_100, %c0_101, %c0_102], %245 {strides = array<i32>} : memref<1x2x128xf32, #tpu.memory_space<vmem>>, vector<1x2x128xf32>,
    %246 = arith.truncf %230 : vector<16x128xf32> to vector<16x128xbf16>
    %c6 = arith.constant 6 : index
    %c0_103 = arith.constant 0 : index
    %c0_104 = arith.constant 0 : index
    %247 = vector.load %arg2[%c6, %c0_103, %c0_104] : memref<13x128x384xbf16, #tpu.memory_space<vmem>>, vector<1x128x384xbf16>
    %248 = vector.shape_cast %247 : vector<1x128x384xbf16> to vector<128x384xbf16>
    %cst_105 = arith.constant dense<0.000000e+00> : vector<16x384xf32>
    %249 = tpu.matmul %246, %248, %cst_105 {dimension_numbers = #tpu.dot_dimension_numbers<[1], [0], [0], [1], [0, 0, 1, 1], [], []>} : vector<16x128xbf16>, vector<128x384xbf16>, vector<16x384xf32> -> vector<16x384xf32>
    %250 = vector.extract_strided_slice %249 {offsets = [0, 0], sizes = [16, 128], strides = [1, 1]} : vector<16x384xf32> to vector<16x128xf32>
    %c1_i32_106 = arith.constant 1 : i32
    %251 = tpu.dynamic_rotate %250 by %c1_i32_106 dim 0 : vector<16x128xf32>, i32 -> vector<16x128xf32>
    %cst_107 = arith.constant 0.000000e+00 : f32
    %252 = vector.shape_cast %18 : vector<16x1xi1> to vector<16x1xi1>
    %253 = vector.broadcast %252 : vector<16x1xi1> to vector<16x128xi1>
    %254 = vector.broadcast %cst_107 : f32 to vector<16x128xf32>
    %255 = arith.select %253, %254, %251 : vector<16x128xi1>, vector<16x128xf32>
    %256 = vector.extract_strided_slice %249 {offsets = [0, 256], sizes = [16, 128], strides = [1, 1]} : vector<16x384xf32> to vector<16x128xf32>
    %c15_i32_108 = arith.constant 15 : i32
    %257 = tpu.dynamic_rotate %256 by %c15_i32_108 dim 0 : vector<16x128xf32>, i32 -> vector<16x128xf32>
    %cst_109 = arith.constant 0.000000e+00 : f32
    %258 = vector.shape_cast %36 : vector<16x1xi1> to vector<16x1xi1>
    %259 = vector.broadcast %258 : vector<16x1xi1> to vector<16x128xi1>
    %260 = vector.broadcast %cst_109 : f32 to vector<16x128xf32>
    %261 = arith.select %259, %260, %257 : vector<16x128xi1>, vector<16x128xf32>
    %262 = vector.extract_strided_slice %249 {offsets = [0, 128], sizes = [16, 128], strides = [1, 1]} : vector<16x384xf32> to vector<16x128xf32>
    %263 = arith.addf %255, %262 : vector<16x128xf32>
    %264 = arith.addf %263, %261 : vector<16x128xf32>
    %c6_110 = arith.constant 6 : index
    %c0_111 = arith.constant 0 : index
    %c0_112 = arith.constant 0 : index
    %265 = vector.load %arg3[%c6_110, %c0_111, %c0_112] : memref<13x1x128xf32, #tpu.memory_space<vmem>>, vector<1x1x128xf32>
    %266 = vector.shape_cast %265 : vector<1x1x128xf32> to vector<1x128xf32>
    %267 = vector.broadcast %266 : vector<1x128xf32> to vector<16x128xf32>
    %268 = arith.addf %264, %267 : vector<16x128xf32>
    %cst_113 = arith.constant 0.000000e+00 : f32
    %269 = vector.broadcast %cst_113 : f32 to vector<16x128xf32>
    %270 = arith.cmpf oge, %268, %269 : vector<16x128xf32>
    %cst_114 = arith.constant 2.000000e-01 : f32
    %271 = vector.broadcast %cst_114 : f32 to vector<16x128xf32>
    %272 = arith.mulf %271, %268 : vector<16x128xf32>
    %273 = arith.select %270, %268, %272 : vector<16x128xi1>, vector<16x128xf32>
    %274 = arith.truncf %273 : vector<16x128xf32> to vector<16x128xbf16>
    %c7 = arith.constant 7 : index
    %c0_115 = arith.constant 0 : index
    %c0_116 = arith.constant 0 : index
    %275 = vector.load %arg2[%c7, %c0_115, %c0_116] : memref<13x128x384xbf16, #tpu.memory_space<vmem>>, vector<1x128x384xbf16>
    %276 = vector.shape_cast %275 : vector<1x128x384xbf16> to vector<128x384xbf16>
    %cst_117 = arith.constant dense<0.000000e+00> : vector<16x384xf32>
    %277 = tpu.matmul %274, %276, %cst_117 {dimension_numbers = #tpu.dot_dimension_numbers<[1], [0], [0], [1], [0, 0, 1, 1], [], []>} : vector<16x128xbf16>, vector<128x384xbf16>, vector<16x384xf32> -> vector<16x384xf32>
    %278 = vector.extract_strided_slice %277 {offsets = [0, 0], sizes = [16, 128], strides = [1, 1]} : vector<16x384xf32> to vector<16x128xf32>
    %c1_i32_118 = arith.constant 1 : i32
    %279 = tpu.dynamic_rotate %278 by %c1_i32_118 dim 0 : vector<16x128xf32>, i32 -> vector<16x128xf32>
    %cst_119 = arith.constant 0.000000e+00 : f32
    %280 = vector.shape_cast %18 : vector<16x1xi1> to vector<16x1xi1>
    %281 = vector.broadcast %280 : vector<16x1xi1> to vector<16x128xi1>
    %282 = vector.broadcast %cst_119 : f32 to vector<16x128xf32>
    %283 = arith.select %281, %282, %279 : vector<16x128xi1>, vector<16x128xf32>
    %284 = vector.extract_strided_slice %277 {offsets = [0, 256], sizes = [16, 128], strides = [1, 1]} : vector<16x384xf32> to vector<16x128xf32>
    %c15_i32_120 = arith.constant 15 : i32
    %285 = tpu.dynamic_rotate %284 by %c15_i32_120 dim 0 : vector<16x128xf32>, i32 -> vector<16x128xf32>
    %cst_121 = arith.constant 0.000000e+00 : f32
    %286 = vector.shape_cast %36 : vector<16x1xi1> to vector<16x1xi1>
    %287 = vector.broadcast %286 : vector<16x1xi1> to vector<16x128xi1>
    %288 = vector.broadcast %cst_121 : f32 to vector<16x128xf32>
    %289 = arith.select %287, %288, %285 : vector<16x128xi1>, vector<16x128xf32>
    %290 = vector.extract_strided_slice %277 {offsets = [0, 128], sizes = [16, 128], strides = [1, 1]} : vector<16x384xf32> to vector<16x128xf32>
    %291 = arith.addf %283, %290 : vector<16x128xf32>
    %292 = arith.addf %291, %289 : vector<16x128xf32>
    %c7_122 = arith.constant 7 : index
    %c0_123 = arith.constant 0 : index
    %c0_124 = arith.constant 0 : index
    %293 = vector.load %arg3[%c7_122, %c0_123, %c0_124] : memref<13x1x128xf32, #tpu.memory_space<vmem>>, vector<1x1x128xf32>
    %294 = vector.shape_cast %293 : vector<1x1x128xf32> to vector<1x128xf32>
    %295 = vector.broadcast %294 : vector<1x128xf32> to vector<16x128xf32>
    %296 = arith.addf %292, %295 : vector<16x128xf32>
    %297 = arith.addf %230, %296 : vector<16x128xf32>
    %298 = arith.truncf %297 : vector<16x128xf32> to vector<16x128xbf16>
    %c8 = arith.constant 8 : index
    %c0_125 = arith.constant 0 : index
    %c0_126 = arith.constant 0 : index
    %299 = vector.load %arg2[%c8, %c0_125, %c0_126] : memref<13x128x384xbf16, #tpu.memory_space<vmem>>, vector<1x128x384xbf16>
    %300 = vector.shape_cast %299 : vector<1x128x384xbf16> to vector<128x384xbf16>
    %cst_127 = arith.constant dense<0.000000e+00> : vector<16x384xf32>
    %301 = tpu.matmul %298, %300, %cst_127 {dimension_numbers = #tpu.dot_dimension_numbers<[1], [0], [0], [1], [0, 0, 1, 1], [], []>} : vector<16x128xbf16>, vector<128x384xbf16>, vector<16x384xf32> -> vector<16x384xf32>
    %302 = vector.extract_strided_slice %301 {offsets = [0, 0], sizes = [16, 128], strides = [1, 1]} : vector<16x384xf32> to vector<16x128xf32>
    %c1_i32_128 = arith.constant 1 : i32
    %303 = tpu.dynamic_rotate %302 by %c1_i32_128 dim 0 : vector<16x128xf32>, i32 -> vector<16x128xf32>
    %cst_129 = arith.constant 0.000000e+00 : f32
    %304 = vector.shape_cast %18 : vector<16x1xi1> to vector<16x1xi1>
    %305 = vector.broadcast %304 : vector<16x1xi1> to vector<16x128xi1>
    %306 = vector.broadcast %cst_129 : f32 to vector<16x128xf32>
    %307 = arith.select %305, %306, %303 : vector<16x128xi1>, vector<16x128xf32>
    %308 = vector.extract_strided_slice %301 {offsets = [0, 256], sizes = [16, 128], strides = [1, 1]} : vector<16x384xf32> to vector<16x128xf32>
    %c15_i32_130 = arith.constant 15 : i32
    %309 = tpu.dynamic_rotate %308 by %c15_i32_130 dim 0 : vector<16x128xf32>, i32 -> vector<16x128xf32>
    %cst_131 = arith.constant 0.000000e+00 : f32
    %310 = vector.shape_cast %36 : vector<16x1xi1> to vector<16x1xi1>
    %311 = vector.broadcast %310 : vector<16x1xi1> to vector<16x128xi1>
    %312 = vector.broadcast %cst_131 : f32 to vector<16x128xf32>
    %313 = arith.select %311, %312, %309 : vector<16x128xi1>, vector<16x128xf32>
    %314 = vector.extract_strided_slice %301 {offsets = [0, 128], sizes = [16, 128], strides = [1, 1]} : vector<16x384xf32> to vector<16x128xf32>
    %315 = arith.addf %307, %314 : vector<16x128xf32>
    %316 = arith.addf %315, %313 : vector<16x128xf32>
    %c8_132 = arith.constant 8 : index
    %c0_133 = arith.constant 0 : index
    %c0_134 = arith.constant 0 : index
    %317 = vector.load %arg3[%c8_132, %c0_133, %c0_134] : memref<13x1x128xf32, #tpu.memory_space<vmem>>, vector<1x1x128xf32>
    %318 = vector.shape_cast %317 : vector<1x1x128xf32> to vector<1x128xf32>
    %319 = vector.broadcast %318 : vector<1x128xf32> to vector<16x128xf32>
    %320 = arith.addf %316, %319 : vector<16x128xf32>
    %cst_135 = arith.constant 0.000000e+00 : f32
    %321 = vector.broadcast %cst_135 : f32 to vector<16x128xf32>
    %322 = arith.cmpf oge, %320, %321 : vector<16x128xf32>
    %cst_136 = arith.constant 2.000000e-01 : f32
    %323 = vector.broadcast %cst_136 : f32 to vector<16x128xf32>
    %324 = arith.mulf %323, %320 : vector<16x128xf32>
    %325 = arith.select %322, %320, %324 : vector<16x128xi1>, vector<16x128xf32>
    %326 = arith.truncf %325 : vector<16x128xf32> to vector<16x128xbf16>
    %c9 = arith.constant 9 : index
    %c0_137 = arith.constant 0 : index
    %c0_138 = arith.constant 0 : index
    %327 = vector.load %arg2[%c9, %c0_137, %c0_138] : memref<13x128x384xbf16, #tpu.memory_space<vmem>>, vector<1x128x384xbf16>
    %328 = vector.shape_cast %327 : vector<1x128x384xbf16> to vector<128x384xbf16>
    %cst_139 = arith.constant dense<0.000000e+00> : vector<16x384xf32>
    %329 = tpu.matmul %326, %328, %cst_139 {dimension_numbers = #tpu.dot_dimension_numbers<[1], [0], [0], [1], [0, 0, 1, 1], [], []>} : vector<16x128xbf16>, vector<128x384xbf16>, vector<16x384xf32> -> vector<16x384xf32>
    %330 = vector.extract_strided_slice %329 {offsets = [0, 0], sizes = [16, 128], strides = [1, 1]} : vector<16x384xf32> to vector<16x128xf32>
    %c1_i32_140 = arith.constant 1 : i32
    %331 = tpu.dynamic_rotate %330 by %c1_i32_140 dim 0 : vector<16x128xf32>, i32 -> vector<16x128xf32>
    %cst_141 = arith.constant 0.000000e+00 : f32
    %332 = vector.shape_cast %18 : vector<16x1xi1> to vector<16x1xi1>
    %333 = vector.broadcast %332 : vector<16x1xi1> to vector<16x128xi1>
    %334 = vector.broadcast %cst_141 : f32 to vector<16x128xf32>
    %335 = arith.select %333, %334, %331 : vector<16x128xi1>, vector<16x128xf32>
    %336 = vector.extract_strided_slice %329 {offsets = [0, 256], sizes = [16, 128], strides = [1, 1]} : vector<16x384xf32> to vector<16x128xf32>
    %c15_i32_142 = arith.constant 15 : i32
    %337 = tpu.dynamic_rotate %336 by %c15_i32_142 dim 0 : vector<16x128xf32>, i32 -> vector<16x128xf32>
    %cst_143 = arith.constant 0.000000e+00 : f32
    %338 = vector.shape_cast %36 : vector<16x1xi1> to vector<16x1xi1>
    %339 = vector.broadcast %338 : vector<16x1xi1> to vector<16x128xi1>
    %340 = vector.broadcast %cst_143 : f32 to vector<16x128xf32>
    %341 = arith.select %339, %340, %337 : vector<16x128xi1>, vector<16x128xf32>
    %342 = vector.extract_strided_slice %329 {offsets = [0, 128], sizes = [16, 128], strides = [1, 1]} : vector<16x384xf32> to vector<16x128xf32>
    %343 = arith.addf %335, %342 : vector<16x128xf32>
    %344 = arith.addf %343, %341 : vector<16x128xf32>
    %c9_144 = arith.constant 9 : index
    %c0_145 = arith.constant 0 : index
    %c0_146 = arith.constant 0 : index
    %345 = vector.load %arg3[%c9_144, %c0_145, %c0_146] : memref<13x1x128xf32, #tpu.memory_space<vmem>>, vector<1x1x128xf32>
    %346 = vector.shape_cast %345 : vector<1x1x128xf32> to vector<1x128xf32>
    %347 = vector.broadcast %346 : vector<1x128xf32> to vector<16x128xf32>
    %348 = arith.addf %344, %347 : vector<16x128xf32>
    %349 = arith.addf %297, %348 : vector<16x128xf32>
    %350 = arith.truncf %349 : vector<16x128xf32> to vector<16x128xbf16>
    %c10 = arith.constant 10 : index
    %c0_147 = arith.constant 0 : index
    %c0_148 = arith.constant 0 : index
    %351 = vector.load %arg2[%c10, %c0_147, %c0_148] : memref<13x128x384xbf16, #tpu.memory_space<vmem>>, vector<1x128x384xbf16>
    %352 = vector.shape_cast %351 : vector<1x128x384xbf16> to vector<128x384xbf16>
    %cst_149 = arith.constant dense<0.000000e+00> : vector<16x384xf32>
    %353 = tpu.matmul %350, %352, %cst_149 {dimension_numbers = #tpu.dot_dimension_numbers<[1], [0], [0], [1], [0, 0, 1, 1], [], []>} : vector<16x128xbf16>, vector<128x384xbf16>, vector<16x384xf32> -> vector<16x384xf32>
    %354 = vector.extract_strided_slice %353 {offsets = [0, 0], sizes = [16, 128], strides = [1, 1]} : vector<16x384xf32> to vector<16x128xf32>
    %c1_i32_150 = arith.constant 1 : i32
    %355 = tpu.dynamic_rotate %354 by %c1_i32_150 dim 0 : vector<16x128xf32>, i32 -> vector<16x128xf32>
    %cst_151 = arith.constant 0.000000e+00 : f32
    %356 = vector.shape_cast %18 : vector<16x1xi1> to vector<16x1xi1>
    %357 = vector.broadcast %356 : vector<16x1xi1> to vector<16x128xi1>
    %358 = vector.broadcast %cst_151 : f32 to vector<16x128xf32>
    %359 = arith.select %357, %358, %355 : vector<16x128xi1>, vector<16x128xf32>
    %360 = vector.extract_strided_slice %353 {offsets = [0, 256], sizes = [16, 128], strides = [1, 1]} : vector<16x384xf32> to vector<16x128xf32>
    %c15_i32_152 = arith.constant 15 : i32
    %361 = tpu.dynamic_rotate %360 by %c15_i32_152 dim 0 : vector<16x128xf32>, i32 -> vector<16x128xf32>
    %cst_153 = arith.constant 0.000000e+00 : f32
    %362 = vector.shape_cast %36 : vector<16x1xi1> to vector<16x1xi1>
    %363 = vector.broadcast %362 : vector<16x1xi1> to vector<16x128xi1>
    %364 = vector.broadcast %cst_153 : f32 to vector<16x128xf32>
    %365 = arith.select %363, %364, %361 : vector<16x128xi1>, vector<16x128xf32>
    %366 = vector.extract_strided_slice %353 {offsets = [0, 128], sizes = [16, 128], strides = [1, 1]} : vector<16x384xf32> to vector<16x128xf32>
    %367 = arith.addf %359, %366 : vector<16x128xf32>
    %368 = arith.addf %367, %365 : vector<16x128xf32>
    %c10_154 = arith.constant 10 : index
    %c0_155 = arith.constant 0 : index
    %c0_156 = arith.constant 0 : index
    %369 = vector.load %arg3[%c10_154, %c0_155, %c0_156] : memref<13x1x128xf32, #tpu.memory_space<vmem>>, vector<1x1x128xf32>
    %370 = vector.shape_cast %369 : vector<1x1x128xf32> to vector<1x128xf32>
    %371 = vector.broadcast %370 : vector<1x128xf32> to vector<16x128xf32>
    %372 = arith.addf %368, %371 : vector<16x128xf32>
    %cst_157 = arith.constant 0.000000e+00 : f32
    %373 = vector.broadcast %cst_157 : f32 to vector<16x128xf32>
    %374 = arith.cmpf oge, %372, %373 : vector<16x128xf32>
    %cst_158 = arith.constant 2.000000e-01 : f32
    %375 = vector.broadcast %cst_158 : f32 to vector<16x128xf32>
    %376 = arith.mulf %375, %372 : vector<16x128xf32>
    %377 = arith.select %374, %372, %376 : vector<16x128xi1>, vector<16x128xf32>
    %378 = arith.truncf %377 : vector<16x128xf32> to vector<16x128xbf16>
    %c11 = arith.constant 11 : index
    %c0_159 = arith.constant 0 : index
    %c0_160 = arith.constant 0 : index
    %379 = vector.load %arg2[%c11, %c0_159, %c0_160] : memref<13x128x384xbf16, #tpu.memory_space<vmem>>, vector<1x128x384xbf16>
    %380 = vector.shape_cast %379 : vector<1x128x384xbf16> to vector<128x384xbf16>
    %cst_161 = arith.constant dense<0.000000e+00> : vector<16x384xf32>
    %381 = tpu.matmul %378, %380, %cst_161 {dimension_numbers = #tpu.dot_dimension_numbers<[1], [0], [0], [1], [0, 0, 1, 1], [], []>} : vector<16x128xbf16>, vector<128x384xbf16>, vector<16x384xf32> -> vector<16x384xf32>
    %382 = vector.extract_strided_slice %381 {offsets = [0, 0], sizes = [16, 128], strides = [1, 1]} : vector<16x384xf32> to vector<16x128xf32>
    %c1_i32_162 = arith.constant 1 : i32
    %383 = tpu.dynamic_rotate %382 by %c1_i32_162 dim 0 : vector<16x128xf32>, i32 -> vector<16x128xf32>
    %cst_163 = arith.constant 0.000000e+00 : f32
    %384 = vector.shape_cast %18 : vector<16x1xi1> to vector<16x1xi1>
    %385 = vector.broadcast %384 : vector<16x1xi1> to vector<16x128xi1>
    %386 = vector.broadcast %cst_163 : f32 to vector<16x128xf32>
    %387 = arith.select %385, %386, %383 : vector<16x128xi1>, vector<16x128xf32>
    %388 = vector.extract_strided_slice %381 {offsets = [0, 256], sizes = [16, 128], strides = [1, 1]} : vector<16x384xf32> to vector<16x128xf32>
    %c15_i32_164 = arith.constant 15 : i32
    %389 = tpu.dynamic_rotate %388 by %c15_i32_164 dim 0 : vector<16x128xf32>, i32 -> vector<16x128xf32>
    %cst_165 = arith.constant 0.000000e+00 : f32
    %390 = vector.shape_cast %36 : vector<16x1xi1> to vector<16x1xi1>
    %391 = vector.broadcast %390 : vector<16x1xi1> to vector<16x128xi1>
    %392 = vector.broadcast %cst_165 : f32 to vector<16x128xf32>
    %393 = arith.select %391, %392, %389 : vector<16x128xi1>, vector<16x128xf32>
    %394 = vector.extract_strided_slice %381 {offsets = [0, 128], sizes = [16, 128], strides = [1, 1]} : vector<16x384xf32> to vector<16x128xf32>
    %395 = arith.addf %387, %394 : vector<16x128xf32>
    %396 = arith.addf %395, %393 : vector<16x128xf32>
    %c11_166 = arith.constant 11 : index
    %c0_167 = arith.constant 0 : index
    %c0_168 = arith.constant 0 : index
    %397 = vector.load %arg3[%c11_166, %c0_167, %c0_168] : memref<13x1x128xf32, #tpu.memory_space<vmem>>, vector<1x1x128xf32>
    %398 = vector.shape_cast %397 : vector<1x1x128xf32> to vector<1x128xf32>
    %399 = vector.broadcast %398 : vector<1x128xf32> to vector<16x128xf32>
    %400 = arith.addf %396, %399 : vector<16x128xf32>
    %cst_169 = arith.constant 0.000000e+00 : f32
    %401 = vector.broadcast %cst_169 : f32 to vector<16x128xf32>
    %402 = arith.cmpf oge, %400, %401 : vector<16x128xf32>
    %cst_170 = arith.constant 2.000000e-01 : f32
    %403 = vector.broadcast %cst_170 : f32 to vector<16x128xf32>
    %404 = arith.mulf %403, %400 : vector<16x128xf32>
    %405 = arith.select %402, %400, %404 : vector<16x128xi1>, vector<16x128xf32>
    %406 = arith.truncf %405 : vector<16x128xf32> to vector<16x128xbf16>
    %c12 = arith.constant 12 : index
    %c0_171 = arith.constant 0 : index
    %c0_172 = arith.constant 0 : index
    %407 = vector.load %arg2[%c12, %c0_171, %c0_172] : memref<13x128x384xbf16, #tpu.memory_space<vmem>>, vector<1x128x384xbf16>
    %408 = vector.shape_cast %407 : vector<1x128x384xbf16> to vector<128x384xbf16>
    %cst_173 = arith.constant dense<0.000000e+00> : vector<16x384xf32>
    %409 = tpu.matmul %406, %408, %cst_173 {dimension_numbers = #tpu.dot_dimension_numbers<[1], [0], [0], [1], [0, 0, 1, 1], [], []>} : vector<16x128xbf16>, vector<128x384xbf16>, vector<16x384xf32> -> vector<16x384xf32>
    %410 = vector.extract_strided_slice %409 {offsets = [0, 0], sizes = [16, 128], strides = [1, 1]} : vector<16x384xf32> to vector<16x128xf32>
    %c1_i32_174 = arith.constant 1 : i32
    %411 = tpu.dynamic_rotate %410 by %c1_i32_174 dim 0 : vector<16x128xf32>, i32 -> vector<16x128xf32>
    %cst_175 = arith.constant 0.000000e+00 : f32
    %412 = vector.shape_cast %18 : vector<16x1xi1> to vector<16x1xi1>
    %413 = vector.broadcast %412 : vector<16x1xi1> to vector<16x128xi1>
    %414 = vector.broadcast %cst_175 : f32 to vector<16x128xf32>
    %415 = arith.select %413, %414, %411 : vector<16x128xi1>, vector<16x128xf32>
    %416 = vector.extract_strided_slice %409 {offsets = [0, 256], sizes = [16, 128], strides = [1, 1]} : vector<16x384xf32> to vector<16x128xf32>
    %c15_i32_176 = arith.constant 15 : i32
    %417 = tpu.dynamic_rotate %416 by %c15_i32_176 dim 0 : vector<16x128xf32>, i32 -> vector<16x128xf32>
    %cst_177 = arith.constant 0.000000e+00 : f32
    %418 = vector.shape_cast %36 : vector<16x1xi1> to vector<16x1xi1>
    %419 = vector.broadcast %418 : vector<16x1xi1> to vector<16x128xi1>
    %420 = vector.broadcast %cst_177 : f32 to vector<16x128xf32>
    %421 = arith.select %419, %420, %417 : vector<16x128xi1>, vector<16x128xf32>
    %422 = vector.extract_strided_slice %409 {offsets = [0, 128], sizes = [16, 128], strides = [1, 1]} : vector<16x384xf32> to vector<16x128xf32>
    %423 = arith.addf %415, %422 : vector<16x128xf32>
    %424 = arith.addf %423, %421 : vector<16x128xf32>
    %c12_178 = arith.constant 12 : index
    %c0_179 = arith.constant 0 : index
    %c0_180 = arith.constant 0 : index
    %425 = vector.load %arg3[%c12_178, %c0_179, %c0_180] : memref<13x1x128xf32, #tpu.memory_space<vmem>>, vector<1x1x128xf32>
    %426 = vector.shape_cast %425 : vector<1x1x128xf32> to vector<1x128xf32>
    %427 = vector.broadcast %426 : vector<1x128xf32> to vector<16x128xf32>
    %428 = arith.addf %424, %427 : vector<16x128xf32>
    %c16_i32 = arith.constant 16 : i32
    %429 = tpu.dynamic_rotate %230 by %c16_i32 dim 1 : vector<16x128xf32>, i32 -> vector<16x128xf32>
    %430 = arith.addf %428, %429 : vector<16x128xf32>
    %431 = vector.shape_cast %430 : vector<16x128xf32> to vector<2x8x128xf32>
    %c0_181 = arith.constant 0 : index
    %c0_182 = arith.constant 0 : index
    %c0_183 = arith.constant 0 : index
    %432 = vector.load %arg7[%c0_181, %c0_182, %c0_183] : memref<2x8x128xf32, #tpu.memory_space<vmem>>, vector<2x8x128xf32>
    tpu.vector_store %arg7[%c0_181, %c0_182, %c0_183], %431 {strides = array<i32>} : memref<2x8x128xf32, #tpu.memory_space<vmem>>, vector<2x8x128xf32>,
    return
  }
  func.func @transform_0(%arg0: i32) -> (i32, i32, i32) {
    %c0_i32 = arith.constant 0 : i32
    %c0_i32_0 = arith.constant 0 : i32
    %c0_i32_1 = arith.constant 0 : i32
    return %arg0, %c0_i32, %c0_i32_0 : i32, i32, i32
  }
  func.func @transform_1(%arg0: i32) -> (i32, i32, i32) {
    %c0_i32 = arith.constant 0 : i32
    %c0_i32_0 = arith.constant 0 : i32
    %c0_i32_1 = arith.constant 0 : i32
    %c0_i32_2 = arith.constant 0 : i32
    return %c0_i32, %c0_i32_0, %c0_i32_1 : i32, i32, i32
  }
  func.func @transform_2(%arg0: i32) -> (i32, i32, i32) {
    %c0_i32 = arith.constant 0 : i32
    %c0_i32_0 = arith.constant 0 : i32
    %c0_i32_1 = arith.constant 0 : i32
    %c0_i32_2 = arith.constant 0 : i32
    return %c0_i32, %c0_i32_0, %c0_i32_1 : i32, i32, i32
  }
  func.func @transform_3(%arg0: i32) -> (i32, i32, i32) {
    %c0_i32 = arith.constant 0 : i32
    %c0_i32_0 = arith.constant 0 : i32
    %c0_i32_1 = arith.constant 0 : i32
    %c0_i32_2 = arith.constant 0 : i32
    return %c0_i32, %c0_i32_0, %c0_i32_1 : i32, i32, i32
  }
  func.func @transform_4(%arg0: i32) -> (i32, i32) {
    %c0_i32 = arith.constant 0 : i32
    %c0_i32_0 = arith.constant 0 : i32
    %c0_i32_1 = arith.constant 0 : i32
    return %c0_i32, %c0_i32_0 : i32, i32
  }
  func.func @transform_5(%arg0: i32) -> (i32, i32) {
    %c0_i32 = arith.constant 0 : i32
    %c0_i32_0 = arith.constant 0 : i32
    %c0_i32_1 = arith.constant 0 : i32
    return %c0_i32, %c0_i32_0 : i32, i32
  }
  func.func @transform_6(%arg0: i32) -> (i32, i32, i32) {
    %c0_i32 = arith.constant 0 : i32
    %c0_i32_0 = arith.constant 0 : i32
    %c0_i32_1 = arith.constant 0 : i32
    return %arg0, %c0_i32, %c0_i32_0 : i32, i32, i32
  }
  func.func @transform_7(%arg0: i32) -> (i32, i32, i32) {
    %c0_i32 = arith.constant 0 : i32
    %c0_i32_0 = arith.constant 0 : i32
    %c0_i32_1 = arith.constant 0 : i32
    return %arg0, %c0_i32, %c0_i32_0 : i32, i32, i32
  }
}

module attributes {stable_mosaic.version = 11 : i64} {
  func.func @_fused_vqvae_kernel(%arg0: i32, %arg1: memref<2x8x16xf32, #tpu.memory_space<vmem>>, %arg2: memref<13x128x384xbf16, #tpu.memory_space<vmem>>, %arg3: memref<13x1x128xf32, #tpu.memory_space<vmem>>, %arg4: memref<2x128x128xbf16, #tpu.memory_space<vmem>>, %arg5: memref<128x128xbf16, #tpu.memory_space<vmem>>, %arg6: memref<1x128xf32, #tpu.memory_space<vmem>>, %arg7: memref<2x8x128xf32, #tpu.memory_space<vmem>>, %arg8: memref<1x2x128xf32, #tpu.memory_space<vmem>>) attributes {dimension_semantics = [#tpu.dimension_semantics<parallel>], iteration_bounds = array<i64: 1>, scalar_prefetch = 0 : i64, scratch_operands = 0 : i64, tpu.core_type = #tpu.core_type<tc>, window_params = [{transform_indices = @transform_0, window_bounds = array<i64: 2, 8, 16>}, {pipeline_mode = #tpu.pipeline_mode<synchronous>, transform_indices = @transform_1, window_bounds = array<i64: 13, 128, 384>}, {pipeline_mode = #tpu.pipeline_mode<synchronous>, transform_indices = @transform_2, window_bounds = array<i64: 13, 1, 128>}, {pipeline_mode = #tpu.pipeline_mode<synchronous>, transform_indices = @transform_3, window_bounds = array<i64: 2, 128, 128>}, {pipeline_mode = #tpu.pipeline_mode<synchronous>, transform_indices = @transform_4, window_bounds = array<i64: 128, 128>}, {pipeline_mode = #tpu.pipeline_mode<synchronous>, transform_indices = @transform_5, window_bounds = array<i64: 1, 128>}, {transform_indices = @transform_6, window_bounds = array<i64: 2, 8, 128>}, {transform_indices = @transform_7, window_bounds = array<i64: 1, 2, 128>}]} {
    %0 = tpu.iota {dimensions = array<i32: 0>} : vector<16x1xi32>
    %c8_i32 = arith.constant 8 : i32
    %c0_i32 = arith.constant 0 : i32
    %1 = arith.cmpi eq, %c8_i32, %c0_i32 : i32
    %c1_i32 = arith.constant 1 : i32
    %2 = arith.select %1, %c1_i32, %c8_i32 : i32
    %3 = vector.broadcast %2 : i32 to vector<16x1xi32>
    %4 = arith.remsi %0, %3 : vector<16x1xi32>
    %c0_i32_0 = arith.constant 0 : i32
    %5 = vector.broadcast %c0_i32_0 : i32 to vector<16x1xi32>
    %6 = arith.cmpi ne, %4, %5 : vector<16x1xi32>
    %c0_i32_1 = arith.constant 0 : i32
    %7 = vector.broadcast %c0_i32_1 : i32 to vector<16x1xi32>
    %8 = arith.cmpi slt, %4, %7 : vector<16x1xi32>
    %c0_i32_2 = arith.constant 0 : i32
    %9 = arith.cmpi slt, %2, %c0_i32_2 : i32
    %10 = vector.broadcast %9 : i1 to vector<16x1xi1>
    %11 = vector.broadcast %10 : vector<16x1xi1> to vector<16x1xi1>
    %12 = arith.xori %8, %11 : vector<16x1xi1>
    %13 = arith.andi %12, %6 : vector<16x1xi1>
    %14 = vector.broadcast %2 : i32 to vector<16x1xi32>
    %15 = arith.addi %4, %14 : vector<16x1xi32>
    %16 = arith.select %13, %15, %4 : vector<16x1xi1>, vector<16x1xi32>
    %c0_i32_3 = arith.constant 0 : i32
    %17 = vector.broadcast %c0_i32_3 : i32 to vector<16x1xi32>
    %18 = arith.cmpi eq, %16, %17 : vector<16x1xi32>
    %c8_i32_4 = arith.constant 8 : i32
    %c0_i32_5 = arith.constant 0 : i32
    %19 = arith.cmpi eq, %c8_i32_4, %c0_i32_5 : i32
    %c1_i32_6 = arith.constant 1 : i32
    %20 = arith.select %19, %c1_i32_6, %c8_i32_4 : i32
    %21 = vector.broadcast %20 : i32 to vector<16x1xi32>
    %22 = arith.remsi %0, %21 : vector<16x1xi32>
    %c0_i32_7 = arith.constant 0 : i32
    %23 = vector.broadcast %c0_i32_7 : i32 to vector<16x1xi32>
    %24 = arith.cmpi ne, %22, %23 : vector<16x1xi32>
    %c0_i32_8 = arith.constant 0 : i32
    %25 = vector.broadcast %c0_i32_8 : i32 to vector<16x1xi32>
    %26 = arith.cmpi slt, %22, %25 : vector<16x1xi32>
    %c0_i32_9 = arith.constant 0 : i32
    %27 = arith.cmpi slt, %20, %c0_i32_9 : i32
    %28 = vector.broadcast %27 : i1 to vector<16x1xi1>
    %29 = vector.broadcast %28 : vector<16x1xi1> to vector<16x1xi1>
    %30 = arith.xori %26, %29 : vector<16x1xi1>
    %31 = arith.andi %30, %24 : vector<16x1xi1>
    %32 = vector.broadcast %20 : i32 to vector<16x1xi32>
    %33 = arith.addi %22, %32 : vector<16x1xi32>
    %34 = arith.select %31, %33, %22 : vector<16x1xi1>, vector<16x1xi32>
    %c7_i32 = arith.constant 7 : i32
    %35 = vector.broadcast %c7_i32 : i32 to vector<16x1xi32>
    %36 = arith.cmpi eq, %34, %35 : vector<16x1xi32>
    %c0 = arith.constant 0 : index
    %c0_10 = arith.constant 0 : index
    %c0_11 = arith.constant 0 : index
    %37 = vector.load %arg1[%c0, %c0_10, %c0_11] : memref<2x8x16xf32, #tpu.memory_space<vmem>>, vector<2x8x16xf32>
    %38 = vector.shape_cast %37 : vector<2x8x16xf32> to vector<16x16xf32>
    %cst = arith.constant 0.000000e+00 : f32
    %39 = vector.broadcast %cst : f32 to vector<16x112xf32>
    %40 = tpu.concatenate %38, %39 in 1 : vector<16x16xf32>, vector<16x112xf32> -> vector<16x128xf32>
    %41 = arith.truncf %40 : vector<16x128xf32> to vector<16x128xbf16>
    %c0_12 = arith.constant 0 : index
    %c0_13 = arith.constant 0 : index
    %c0_14 = arith.constant 0 : index
    %42 = vector.load %arg2[%c0_12, %c0_13, %c0_14] : memref<13x128x384xbf16, #tpu.memory_space<vmem>>, vector<1x128x384xbf16>
    %43 = vector.shape_cast %42 : vector<1x128x384xbf16> to vector<128x384xbf16>
    %cst_15 = arith.constant dense<0.000000e+00> : vector<16x384xf32>
    %44 = tpu.matmul %41, %43, %cst_15 {dimension_numbers = #tpu.dot_dimension_numbers<[1], [0], [0], [1], [0, 0, 1, 1], [], []>} : vector<16x128xbf16>, vector<128x384xbf16>, vector<16x384xf32> -> vector<16x384xf32>
    %45 = vector.extract_strided_slice %44 {offsets = [0, 0], sizes = [16, 128], strides = [1, 1]} : vector<16x384xf32> to vector<16x128xf32>
    %c1_i32_16 = arith.constant 1 : i32
    %46 = tpu.dynamic_rotate %45 by %c1_i32_16 dim 0 : vector<16x128xf32>, i32 -> vector<16x128xf32>
    %cst_17 = arith.constant 0.000000e+00 : f32
    %47 = vector.shape_cast %18 : vector<16x1xi1> to vector<16x1xi1>
    %48 = vector.broadcast %47 : vector<16x1xi1> to vector<16x128xi1>
    %49 = vector.broadcast %cst_17 : f32 to vector<16x128xf32>
    %50 = arith.select %48, %49, %46 : vector<16x128xi1>, vector<16x128xf32>
    %51 = vector.extract_strided_slice %44 {offsets = [0, 256], sizes = [16, 128], strides = [1, 1]} : vector<16x384xf32> to vector<16x128xf32>
    %c15_i32 = arith.constant 15 : i32
    %52 = tpu.dynamic_rotate %51 by %c15_i32 dim 0 : vector<16x128xf32>, i32 -> vector<16x128xf32>
    %cst_18 = arith.constant 0.000000e+00 : f32
    %53 = vector.shape_cast %36 : vector<16x1xi1> to vector<16x1xi1>
    %54 = vector.broadcast %53 : vector<16x1xi1> to vector<16x128xi1>
    %55 = vector.broadcast %cst_18 : f32 to vector<16x128xf32>
    %56 = arith.select %54, %55, %52 : vector<16x128xi1>, vector<16x128xf32>
    %57 = vector.extract_strided_slice %44 {offsets = [0, 128], sizes = [16, 128], strides = [1, 1]} : vector<16x384xf32> to vector<16x128xf32>
    %58 = arith.addf %50, %57 : vector<16x128xf32>
    %59 = arith.addf %58, %56 : vector<16x128xf32>
    %c0_19 = arith.constant 0 : index
    %c0_20 = arith.constant 0 : index
    %c0_21 = arith.constant 0 : index
    %60 = vector.load %arg3[%c0_19, %c0_20, %c0_21] : memref<13x1x128xf32, #tpu.memory_space<vmem>>, vector<1x1x128xf32>
    %61 = vector.shape_cast %60 : vector<1x1x128xf32> to vector<1x128xf32>
    %62 = vector.broadcast %61 : vector<1x128xf32> to vector<16x128xf32>
    %63 = arith.addf %59, %62 : vector<16x128xf32>
    %cst_22 = arith.constant 0.000000e+00 : f32
    %64 = vector.broadcast %cst_22 : f32 to vector<16x128xf32>
    %65 = arith.cmpf oge, %63, %64 : vector<16x128xf32>
    %cst_23 = arith.constant 2.000000e-01 : f32
    %66 = vector.broadcast %cst_23 : f32 to vector<16x128xf32>
    %67 = arith.mulf %66, %63 : vector<16x128xf32>
    %68 = arith.select %65, %63, %67 : vector<16x128xi1>, vector<16x128xf32>
    %69 = arith.truncf %68 : vector<16x128xf32> to vector<16x128xbf16>
    %c1 = arith.constant 1 : index
    %c0_24 = arith.constant 0 : index
    %c0_25 = arith.constant 0 : index
    %70 = vector.load %arg2[%c1, %c0_24, %c0_25] : memref<13x128x384xbf16, #tpu.memory_space<vmem>>, vector<1x128x384xbf16>
    %71 = vector.shape_cast %70 : vector<1x128x384xbf16> to vector<128x384xbf16>
    %cst_26 = arith.constant dense<0.000000e+00> : vector<16x384xf32>
    %72 = tpu.matmul %69, %71, %cst_26 {dimension_numbers = #tpu.dot_dimension_numbers<[1], [0], [0], [1], [0, 0, 1, 1], [], []>} : vector<16x128xbf16>, vector<128x384xbf16>, vector<16x384xf32> -> vector<16x384xf32>
    %73 = vector.extract_strided_slice %72 {offsets = [0, 0], sizes = [16, 128], strides = [1, 1]} : vector<16x384xf32> to vector<16x128xf32>
    %c1_i32_27 = arith.constant 1 : i32
    %74 = tpu.dynamic_rotate %73 by %c1_i32_27 dim 0 : vector<16x128xf32>, i32 -> vector<16x128xf32>
    %cst_28 = arith.constant 0.000000e+00 : f32
    %75 = vector.shape_cast %18 : vector<16x1xi1> to vector<16x1xi1>
    %76 = vector.broadcast %75 : vector<16x1xi1> to vector<16x128xi1>
    %77 = vector.broadcast %cst_28 : f32 to vector<16x128xf32>
    %78 = arith.select %76, %77, %74 : vector<16x128xi1>, vector<16x128xf32>
    %79 = vector.extract_strided_slice %72 {offsets = [0, 256], sizes = [16, 128], strides = [1, 1]} : vector<16x384xf32> to vector<16x128xf32>
    %c15_i32_29 = arith.constant 15 : i32
    %80 = tpu.dynamic_rotate %79 by %c15_i32_29 dim 0 : vector<16x128xf32>, i32 -> vector<16x128xf32>
    %cst_30 = arith.constant 0.000000e+00 : f32
    %81 = vector.shape_cast %36 : vector<16x1xi1> to vector<16x1xi1>
    %82 = vector.broadcast %81 : vector<16x1xi1> to vector<16x128xi1>
    %83 = vector.broadcast %cst_30 : f32 to vector<16x128xf32>
    %84 = arith.select %82, %83, %80 : vector<16x128xi1>, vector<16x128xf32>
    %85 = vector.extract_strided_slice %72 {offsets = [0, 128], sizes = [16, 128], strides = [1, 1]} : vector<16x384xf32> to vector<16x128xf32>
    %86 = arith.addf %78, %85 : vector<16x128xf32>
    %87 = arith.addf %86, %84 : vector<16x128xf32>
    %c1_31 = arith.constant 1 : index
    %c0_32 = arith.constant 0 : index
    %c0_33 = arith.constant 0 : index
    %88 = vector.load %arg3[%c1_31, %c0_32, %c0_33] : memref<13x1x128xf32, #tpu.memory_space<vmem>>, vector<1x1x128xf32>
    %89 = vector.shape_cast %88 : vector<1x1x128xf32> to vector<1x128xf32>
    %90 = vector.broadcast %89 : vector<1x128xf32> to vector<16x128xf32>
    %91 = arith.addf %87, %90 : vector<16x128xf32>
    %cst_34 = arith.constant 0.000000e+00 : f32
    %92 = vector.broadcast %cst_34 : f32 to vector<16x128xf32>
    %93 = arith.cmpf oge, %91, %92 : vector<16x128xf32>
    %cst_35 = arith.constant 2.000000e-01 : f32
    %94 = vector.broadcast %cst_35 : f32 to vector<16x128xf32>
    %95 = arith.mulf %94, %91 : vector<16x128xf32>
    %96 = arith.select %93, %91, %95 : vector<16x128xi1>, vector<16x128xf32>
    %97 = arith.truncf %96 : vector<16x128xf32> to vector<16x128xbf16>
    %c2 = arith.constant 2 : index
    %c0_36 = arith.constant 0 : index
    %c0_37 = arith.constant 0 : index
    %98 = vector.load %arg2[%c2, %c0_36, %c0_37] : memref<13x128x384xbf16, #tpu.memory_space<vmem>>, vector<1x128x384xbf16>
    %99 = vector.shape_cast %98 : vector<1x128x384xbf16> to vector<128x384xbf16>
    %cst_38 = arith.constant dense<0.000000e+00> : vector<16x384xf32>
    %100 = tpu.matmul %97, %99, %cst_38 {dimension_numbers = #tpu.dot_dimension_numbers<[1], [0], [0], [1], [0, 0, 1, 1], [], []>} : vector<16x128xbf16>, vector<128x384xbf16>, vector<16x384xf32> -> vector<16x384xf32>
    %101 = vector.extract_strided_slice %100 {offsets = [0, 0], sizes = [16, 128], strides = [1, 1]} : vector<16x384xf32> to vector<16x128xf32>
    %c1_i32_39 = arith.constant 1 : i32
    %102 = tpu.dynamic_rotate %101 by %c1_i32_39 dim 0 : vector<16x128xf32>, i32 -> vector<16x128xf32>
    %cst_40 = arith.constant 0.000000e+00 : f32
    %103 = vector.shape_cast %18 : vector<16x1xi1> to vector<16x1xi1>
    %104 = vector.broadcast %103 : vector<16x1xi1> to vector<16x128xi1>
    %105 = vector.broadcast %cst_40 : f32 to vector<16x128xf32>
    %106 = arith.select %104, %105, %102 : vector<16x128xi1>, vector<16x128xf32>
    %107 = vector.extract_strided_slice %100 {offsets = [0, 256], sizes = [16, 128], strides = [1, 1]} : vector<16x384xf32> to vector<16x128xf32>
    %c15_i32_41 = arith.constant 15 : i32
    %108 = tpu.dynamic_rotate %107 by %c15_i32_41 dim 0 : vector<16x128xf32>, i32 -> vector<16x128xf32>
    %cst_42 = arith.constant 0.000000e+00 : f32
    %109 = vector.shape_cast %36 : vector<16x1xi1> to vector<16x1xi1>
    %110 = vector.broadcast %109 : vector<16x1xi1> to vector<16x128xi1>
    %111 = vector.broadcast %cst_42 : f32 to vector<16x128xf32>
    %112 = arith.select %110, %111, %108 : vector<16x128xi1>, vector<16x128xf32>
    %113 = vector.extract_strided_slice %100 {offsets = [0, 128], sizes = [16, 128], strides = [1, 1]} : vector<16x384xf32> to vector<16x128xf32>
    %114 = arith.addf %106, %113 : vector<16x128xf32>
    %115 = arith.addf %114, %112 : vector<16x128xf32>
    %c2_43 = arith.constant 2 : index
    %c0_44 = arith.constant 0 : index
    %c0_45 = arith.constant 0 : index
    %116 = vector.load %arg3[%c2_43, %c0_44, %c0_45] : memref<13x1x128xf32, #tpu.memory_space<vmem>>, vector<1x1x128xf32>
    %117 = vector.shape_cast %116 : vector<1x1x128xf32> to vector<1x128xf32>
    %118 = vector.broadcast %117 : vector<1x128xf32> to vector<16x128xf32>
    %119 = arith.addf %115, %118 : vector<16x128xf32>
    %120 = arith.addf %68, %119 : vector<16x128xf32>
    %121 = arith.truncf %120 : vector<16x128xf32> to vector<16x128xbf16>
    %c3 = arith.constant 3 : index
    %c0_46 = arith.constant 0 : index
    %c0_47 = arith.constant 0 : index
    %122 = vector.load %arg2[%c3, %c0_46, %c0_47] : memref<13x128x384xbf16, #tpu.memory_space<vmem>>, vector<1x128x384xbf16>
    %123 = vector.shape_cast %122 : vector<1x128x384xbf16> to vector<128x384xbf16>
    %cst_48 = arith.constant dense<0.000000e+00> : vector<16x384xf32>
    %124 = tpu.matmul %121, %123, %cst_48 {dimension_numbers = #tpu.dot_dimension_numbers<[1], [0], [0], [1], [0, 0, 1, 1], [], []>} : vector<16x128xbf16>, vector<128x384xbf16>, vector<16x384xf32> -> vector<16x384xf32>
    %125 = vector.extract_strided_slice %124 {offsets = [0, 0], sizes = [16, 128], strides = [1, 1]} : vector<16x384xf32> to vector<16x128xf32>
    %c1_i32_49 = arith.constant 1 : i32
    %126 = tpu.dynamic_rotate %125 by %c1_i32_49 dim 0 : vector<16x128xf32>, i32 -> vector<16x128xf32>
    %cst_50 = arith.constant 0.000000e+00 : f32
    %127 = vector.shape_cast %18 : vector<16x1xi1> to vector<16x1xi1>
    %128 = vector.broadcast %127 : vector<16x1xi1> to vector<16x128xi1>
    %129 = vector.broadcast %cst_50 : f32 to vector<16x128xf32>
    %130 = arith.select %128, %129, %126 : vector<16x128xi1>, vector<16x128xf32>
    %131 = vector.extract_strided_slice %124 {offsets = [0, 256], sizes = [16, 128], strides = [1, 1]} : vector<16x384xf32> to vector<16x128xf32>
    %c15_i32_51 = arith.constant 15 : i32
    %132 = tpu.dynamic_rotate %131 by %c15_i32_51 dim 0 : vector<16x128xf32>, i32 -> vector<16x128xf32>
    %cst_52 = arith.constant 0.000000e+00 : f32
    %133 = vector.shape_cast %36 : vector<16x1xi1> to vector<16x1xi1>
    %134 = vector.broadcast %133 : vector<16x1xi1> to vector<16x128xi1>
    %135 = vector.broadcast %cst_52 : f32 to vector<16x128xf32>
    %136 = arith.select %134, %135, %132 : vector<16x128xi1>, vector<16x128xf32>
    %137 = vector.extract_strided_slice %124 {offsets = [0, 128], sizes = [16, 128], strides = [1, 1]} : vector<16x384xf32> to vector<16x128xf32>
    %138 = arith.addf %130, %137 : vector<16x128xf32>
    %139 = arith.addf %138, %136 : vector<16x128xf32>
    %c3_53 = arith.constant 3 : index
    %c0_54 = arith.constant 0 : index
    %c0_55 = arith.constant 0 : index
    %140 = vector.load %arg3[%c3_53, %c0_54, %c0_55] : memref<13x1x128xf32, #tpu.memory_space<vmem>>, vector<1x1x128xf32>
    %141 = vector.shape_cast %140 : vector<1x1x128xf32> to vector<1x128xf32>
    %142 = vector.broadcast %141 : vector<1x128xf32> to vector<16x128xf32>
    %143 = arith.addf %139, %142 : vector<16x128xf32>
    %cst_56 = arith.constant 0.000000e+00 : f32
    %144 = vector.broadcast %cst_56 : f32 to vector<16x128xf32>
    %145 = arith.cmpf oge, %143, %144 : vector<16x128xf32>
    %cst_57 = arith.constant 2.000000e-01 : f32
    %146 = vector.broadcast %cst_57 : f32 to vector<16x128xf32>
    %147 = arith.mulf %146, %143 : vector<16x128xf32>
    %148 = arith.select %145, %143, %147 : vector<16x128xi1>, vector<16x128xf32>
    %149 = arith.truncf %148 : vector<16x128xf32> to vector<16x128xbf16>
    %c4 = arith.constant 4 : index
    %c0_58 = arith.constant 0 : index
    %c0_59 = arith.constant 0 : index
    %150 = vector.load %arg2[%c4, %c0_58, %c0_59] : memref<13x128x384xbf16, #tpu.memory_space<vmem>>, vector<1x128x384xbf16>
    %151 = vector.shape_cast %150 : vector<1x128x384xbf16> to vector<128x384xbf16>
    %cst_60 = arith.constant dense<0.000000e+00> : vector<16x384xf32>
    %152 = tpu.matmul %149, %151, %cst_60 {dimension_numbers = #tpu.dot_dimension_numbers<[1], [0], [0], [1], [0, 0, 1, 1], [], []>} : vector<16x128xbf16>, vector<128x384xbf16>, vector<16x384xf32> -> vector<16x384xf32>
    %153 = vector.extract_strided_slice %152 {offsets = [0, 0], sizes = [16, 128], strides = [1, 1]} : vector<16x384xf32> to vector<16x128xf32>
    %c1_i32_61 = arith.constant 1 : i32
    %154 = tpu.dynamic_rotate %153 by %c1_i32_61 dim 0 : vector<16x128xf32>, i32 -> vector<16x128xf32>
    %cst_62 = arith.constant 0.000000e+00 : f32
    %155 = vector.shape_cast %18 : vector<16x1xi1> to vector<16x1xi1>
    %156 = vector.broadcast %155 : vector<16x1xi1> to vector<16x128xi1>
    %157 = vector.broadcast %cst_62 : f32 to vector<16x128xf32>
    %158 = arith.select %156, %157, %154 : vector<16x128xi1>, vector<16x128xf32>
    %159 = vector.extract_strided_slice %152 {offsets = [0, 256], sizes = [16, 128], strides = [1, 1]} : vector<16x384xf32> to vector<16x128xf32>
    %c15_i32_63 = arith.constant 15 : i32
    %160 = tpu.dynamic_rotate %159 by %c15_i32_63 dim 0 : vector<16x128xf32>, i32 -> vector<16x128xf32>
    %cst_64 = arith.constant 0.000000e+00 : f32
    %161 = vector.shape_cast %36 : vector<16x1xi1> to vector<16x1xi1>
    %162 = vector.broadcast %161 : vector<16x1xi1> to vector<16x128xi1>
    %163 = vector.broadcast %cst_64 : f32 to vector<16x128xf32>
    %164 = arith.select %162, %163, %160 : vector<16x128xi1>, vector<16x128xf32>
    %165 = vector.extract_strided_slice %152 {offsets = [0, 128], sizes = [16, 128], strides = [1, 1]} : vector<16x384xf32> to vector<16x128xf32>
    %166 = arith.addf %158, %165 : vector<16x128xf32>
    %167 = arith.addf %166, %164 : vector<16x128xf32>
    %c4_65 = arith.constant 4 : index
    %c0_66 = arith.constant 0 : index
    %c0_67 = arith.constant 0 : index
    %168 = vector.load %arg3[%c4_65, %c0_66, %c0_67] : memref<13x1x128xf32, #tpu.memory_space<vmem>>, vector<1x1x128xf32>
    %169 = vector.shape_cast %168 : vector<1x1x128xf32> to vector<1x128xf32>
    %170 = vector.broadcast %169 : vector<1x128xf32> to vector<16x128xf32>
    %171 = arith.addf %167, %170 : vector<16x128xf32>
    %cst_68 = arith.constant 0.000000e+00 : f32
    %172 = vector.broadcast %cst_68 : f32 to vector<16x128xf32>
    %173 = arith.cmpf oge, %171, %172 : vector<16x128xf32>
    %cst_69 = arith.constant 2.000000e-01 : f32
    %174 = vector.broadcast %cst_69 : f32 to vector<16x128xf32>
    %175 = arith.mulf %174, %171 : vector<16x128xf32>
    %176 = arith.select %173, %171, %175 : vector<16x128xi1>, vector<16x128xf32>
    %177 = arith.truncf %176 : vector<16x128xf32> to vector<16x128xbf16>
    %c5 = arith.constant 5 : index
    %c0_70 = arith.constant 0 : index
    %c0_71 = arith.constant 0 : index
    %178 = vector.load %arg2[%c5, %c0_70, %c0_71] : memref<13x128x384xbf16, #tpu.memory_space<vmem>>, vector<1x128x384xbf16>
    %179 = vector.shape_cast %178 : vector<1x128x384xbf16> to vector<128x384xbf16>
    %cst_72 = arith.constant dense<0.000000e+00> : vector<16x384xf32>
    %180 = tpu.matmul %177, %179, %cst_72 {dimension_numbers = #tpu.dot_dimension_numbers<[1], [0], [0], [1], [0, 0, 1, 1], [], []>} : vector<16x128xbf16>, vector<128x384xbf16>, vector<16x384xf32> -> vector<16x384xf32>
    %181 = vector.extract_strided_slice %180 {offsets = [0, 0], sizes = [16, 128], strides = [1, 1]} : vector<16x384xf32> to vector<16x128xf32>
    %c1_i32_73 = arith.constant 1 : i32
    %182 = tpu.dynamic_rotate %181 by %c1_i32_73 dim 0 : vector<16x128xf32>, i32 -> vector<16x128xf32>
    %cst_74 = arith.constant 0.000000e+00 : f32
    %183 = vector.shape_cast %18 : vector<16x1xi1> to vector<16x1xi1>
    %184 = vector.broadcast %183 : vector<16x1xi1> to vector<16x128xi1>
    %185 = vector.broadcast %cst_74 : f32 to vector<16x128xf32>
    %186 = arith.select %184, %185, %182 : vector<16x128xi1>, vector<16x128xf32>
    %187 = vector.extract_strided_slice %180 {offsets = [0, 256], sizes = [16, 128], strides = [1, 1]} : vector<16x384xf32> to vector<16x128xf32>
    %c15_i32_75 = arith.constant 15 : i32
    %188 = tpu.dynamic_rotate %187 by %c15_i32_75 dim 0 : vector<16x128xf32>, i32 -> vector<16x128xf32>
    %cst_76 = arith.constant 0.000000e+00 : f32
    %189 = vector.shape_cast %36 : vector<16x1xi1> to vector<16x1xi1>
    %190 = vector.broadcast %189 : vector<16x1xi1> to vector<16x128xi1>
    %191 = vector.broadcast %cst_76 : f32 to vector<16x128xf32>
    %192 = arith.select %190, %191, %188 : vector<16x128xi1>, vector<16x128xf32>
    %193 = vector.extract_strided_slice %180 {offsets = [0, 128], sizes = [16, 128], strides = [1, 1]} : vector<16x384xf32> to vector<16x128xf32>
    %194 = arith.addf %186, %193 : vector<16x128xf32>
    %195 = arith.addf %194, %192 : vector<16x128xf32>
    %c5_77 = arith.constant 5 : index
    %c0_78 = arith.constant 0 : index
    %c0_79 = arith.constant 0 : index
    %196 = vector.load %arg3[%c5_77, %c0_78, %c0_79] : memref<13x1x128xf32, #tpu.memory_space<vmem>>, vector<1x1x128xf32>
    %197 = vector.shape_cast %196 : vector<1x1x128xf32> to vector<1x128xf32>
    %198 = vector.broadcast %197 : vector<1x128xf32> to vector<16x128xf32>
    %199 = arith.addf %195, %198 : vector<16x128xf32>
    %200 = arith.addf %148, %199 : vector<16x128xf32>
    %cst_80 = arith.constant 0.000000e+00 : f32
    %201 = vector.broadcast %cst_80 : f32 to vector<1x128xf32>
    %202 = arith.truncf %200 : vector<16x128xf32> to vector<16x128xbf16>
    %c0_81 = arith.constant 0 : index
    %c0_82 = arith.constant 0 : index
    %203 = vector.load %arg5[%c0_81, %c0_82] : memref<128x128xbf16, #tpu.memory_space<vmem>>, vector<128x128xbf16>
    %cst_83 = arith.constant dense<0.000000e+00> : vector<16x128xf32>
    %204 = tpu.matmul %202, %203, %cst_83 {dimension_numbers = #tpu.dot_dimension_numbers<[1], [0], [0], [1], [0, 0, 1, 1], [], []>} : vector<16x128xbf16>, vector<128x128xbf16>, vector<16x128xf32> -> vector<16x128xf32>
    %c0_84 = arith.constant 0 : index
    %c0_85 = arith.constant 0 : index
    %205 = vector.load %arg6[%c0_84, %c0_85] : memref<1x128xf32, #tpu.memory_space<vmem>>, vector<1x128xf32>
    %cst_86 = arith.constant 2.000000e+00 : f32
    %206 = vector.broadcast %cst_86 : f32 to vector<16x128xf32>
    %207 = arith.mulf %206, %204 : vector<16x128xf32>
    %208 = vector.broadcast %205 : vector<1x128xf32> to vector<16x128xf32>
    %209 = arith.subf %208, %207 : vector<16x128xf32>
    %210 = tpu.iota {dimensions = array<i32: 1>} : vector<16x128xi32>
    %cst_87 = arith.constant dense<0x7F800000> : vector<16xf32>
    %211 = vector.multi_reduction <minimumf>, %209, %cst_87 [1] : vector<16x128xf32> to vector<16xf32>
    %212 = vector.shape_cast %211 : vector<16xf32> to vector<16x1xf32>
    %213 = vector.broadcast %212 : vector<16x1xf32> to vector<16x128xf32>
    %214 = arith.cmpf oeq, %209, %213 : vector<16x128xf32>
    %c128_i32 = arith.constant 128 : i32
    %215 = vector.broadcast %c128_i32 : i32 to vector<16x128xi32>
    %216 = arith.select %214, %210, %215 : vector<16x128xi1>, vector<16x128xi32>
    %cst_88 = arith.constant dense<2147483647> : vector<16xi32>
    %217 = vector.multi_reduction <minsi>, %216, %cst_88 [1] : vector<16x128xi32> to vector<16xi32>
    %218 = vector.shape_cast %217 : vector<16xi32> to vector<16x1xi32>
    %219 = vector.broadcast %218 : vector<16x1xi32> to vector<16x128xi32>
    %220 = arith.cmpi eq, %210, %219 : vector<16x128xi32>
    %221 = arith.extui %220 : vector<16x128xi1> to vector<16x128xi32>
    %222 = arith.sitofp %221 : vector<16x128xi32> to vector<16x128xf32>
    %223 = arith.truncf %222 : vector<16x128xf32> to vector<16x128xbf16>
    %c0_89 = arith.constant 0 : index
    %c0_90 = arith.constant 0 : index
    %c0_91 = arith.constant 0 : index
    %224 = vector.load %arg4[%c0_89, %c0_90, %c0_91] : memref<2x128x128xbf16, #tpu.memory_space<vmem>>, vector<1x128x128xbf16>
    %225 = vector.shape_cast %224 : vector<1x128x128xbf16> to vector<128x128xbf16>
    %cst_92 = arith.constant dense<0.000000e+00> : vector<16x128xf32>
    %226 = tpu.matmul %223, %225, %cst_92 {dimension_numbers = #tpu.dot_dimension_numbers<[1], [0], [0], [1], [0, 0, 1, 1], [], []>} : vector<16x128xbf16>, vector<128x128xbf16>, vector<16x128xf32> -> vector<16x128xf32>
    %c1_93 = arith.constant 1 : index
    %c0_94 = arith.constant 0 : index
    %c0_95 = arith.constant 0 : index
    %227 = vector.load %arg4[%c1_93, %c0_94, %c0_95] : memref<2x128x128xbf16, #tpu.memory_space<vmem>>, vector<1x128x128xbf16>
    %228 = vector.shape_cast %227 : vector<1x128x128xbf16> to vector<128x128xbf16>
    %cst_96 = arith.constant dense<0.000000e+00> : vector<16x128xf32>
    %229 = tpu.matmul %223, %228, %cst_96 {dimension_numbers = #tpu.dot_dimension_numbers<[1], [0], [0], [1], [0, 0, 1, 1], [], []>} : vector<16x128xbf16>, vector<128x128xbf16>, vector<16x128xf32> -> vector<16x128xf32>
    %230 = arith.addf %226, %229 : vector<16x128xf32>
    %231 = arith.subf %230, %200 : vector<16x128xf32>
    %232 = arith.mulf %231, %231 : vector<16x128xf32>
    %233 = vector.shape_cast %232 : vector<16x128xf32> to vector<1x16x128xf32>
    %cst_97 = arith.constant dense<0.000000e+00> : vector<1xf32>
    %234 = vector.multi_reduction <add>, %233, %cst_97 [1, 2] : vector<1x16x128xf32> to vector<1xf32>
    %235 = vector.shape_cast %234 : vector<1xf32> to vector<1x1x1xf32>
    %236 = vector.extract %235[0, 0, 0] : f32 from vector<1x1x1xf32>
    %cst_98 = arith.constant 0.000000e+00 : f32
    %237 = arith.addf %cst_98, %236 : f32
    %cst_99 = arith.constant dense<0.000000e+00> : vector<128xf32>
    %238 = vector.multi_reduction <add>, %222, %cst_99 [0] : vector<16x128xf32> to vector<128xf32>
    %239 = vector.shape_cast %238 : vector<128xf32> to vector<1x128xf32>
    %240 = arith.addf %201, %239 : vector<1x128xf32>
    %241 = vector.broadcast %237 : f32 to vector<1x128xf32>
    %242 = tpu.concatenate %240, %241 in 0 : vector<1x128xf32>, vector<1x128xf32> -> vector<2x128xf32>
    %c0_100 = arith.constant 0 : index
    %c0_101 = arith.constant 0 : index
    %c0_102 = arith.constant 0 : index
    %243 = vector.load %arg8[%c0_100, %c0_101, %c0_102] : memref<1x2x128xf32, #tpu.memory_space<vmem>>, vector<1x2x128xf32>
    %244 = vector.shape_cast %243 : vector<1x2x128xf32> to vector<2x128xf32>
    %245 = vector.shape_cast %242 : vector<2x128xf32> to vector<1x2x128xf32>
    tpu.vector_store %arg8[%c0_100, %c0_101, %c0_102], %245 {strides = array<i32>} : memref<1x2x128xf32, #tpu.memory_space<vmem>>, vector<1x2x128xf32>,
    %246 = arith.truncf %230 : vector<16x128xf32> to vector<16x128xbf16>
    %c6 = arith.constant 6 : index
    %c0_103 = arith.constant 0 : index
    %c0_104 = arith.constant 0 : index
    %247 = vector.load %arg2[%c6, %c0_103, %c0_104] : memref<13x128x384xbf16, #tpu.memory_space<vmem>>, vector<1x128x384xbf16>
    %248 = vector.shape_cast %247 : vector<1x128x384xbf16> to vector<128x384xbf16>
    %cst_105 = arith.constant dense<0.000000e+00> : vector<16x384xf32>
    %249 = tpu.matmul %246, %248, %cst_105 {dimension_numbers = #tpu.dot_dimension_numbers<[1], [0], [0], [1], [0, 0, 1, 1], [], []>} : vector<16x128xbf16>, vector<128x384xbf16>, vector<16x384xf32> -> vector<16x384xf32>
    %250 = vector.extract_strided_slice %249 {offsets = [0, 0], sizes = [16, 128], strides = [1, 1]} : vector<16x384xf32> to vector<16x128xf32>
    %c1_i32_106 = arith.constant 1 : i32
    %251 = tpu.dynamic_rotate %250 by %c1_i32_106 dim 0 : vector<16x128xf32>, i32 -> vector<16x128xf32>
    %cst_107 = arith.constant 0.000000e+00 : f32
    %252 = vector.shape_cast %18 : vector<16x1xi1> to vector<16x1xi1>
    %253 = vector.broadcast %252 : vector<16x1xi1> to vector<16x128xi1>
    %254 = vector.broadcast %cst_107 : f32 to vector<16x128xf32>
    %255 = arith.select %253, %254, %251 : vector<16x128xi1>, vector<16x128xf32>
    %256 = vector.extract_strided_slice %249 {offsets = [0, 256], sizes = [16, 128], strides = [1, 1]} : vector<16x384xf32> to vector<16x128xf32>
    %c15_i32_108 = arith.constant 15 : i32
    %257 = tpu.dynamic_rotate %256 by %c15_i32_108 dim 0 : vector<16x128xf32>, i32 -> vector<16x128xf32>
    %cst_109 = arith.constant 0.000000e+00 : f32
    %258 = vector.shape_cast %36 : vector<16x1xi1> to vector<16x1xi1>
    %259 = vector.broadcast %258 : vector<16x1xi1> to vector<16x128xi1>
    %260 = vector.broadcast %cst_109 : f32 to vector<16x128xf32>
    %261 = arith.select %259, %260, %257 : vector<16x128xi1>, vector<16x128xf32>
    %262 = vector.extract_strided_slice %249 {offsets = [0, 128], sizes = [16, 128], strides = [1, 1]} : vector<16x384xf32> to vector<16x128xf32>
    %263 = arith.addf %255, %262 : vector<16x128xf32>
    %264 = arith.addf %263, %261 : vector<16x128xf32>
    %c6_110 = arith.constant 6 : index
    %c0_111 = arith.constant 0 : index
    %c0_112 = arith.constant 0 : index
    %265 = vector.load %arg3[%c6_110, %c0_111, %c0_112] : memref<13x1x128xf32, #tpu.memory_space<vmem>>, vector<1x1x128xf32>
    %266 = vector.shape_cast %265 : vector<1x1x128xf32> to vector<1x128xf32>
    %267 = vector.broadcast %266 : vector<1x128xf32> to vector<16x128xf32>
    %268 = arith.addf %264, %267 : vector<16x128xf32>
    %cst_113 = arith.constant 0.000000e+00 : f32
    %269 = vector.broadcast %cst_113 : f32 to vector<16x128xf32>
    %270 = arith.cmpf oge, %268, %269 : vector<16x128xf32>
    %cst_114 = arith.constant 2.000000e-01 : f32
    %271 = vector.broadcast %cst_114 : f32 to vector<16x128xf32>
    %272 = arith.mulf %271, %268 : vector<16x128xf32>
    %273 = arith.select %270, %268, %272 : vector<16x128xi1>, vector<16x128xf32>
    %274 = arith.truncf %273 : vector<16x128xf32> to vector<16x128xbf16>
    %c7 = arith.constant 7 : index
    %c0_115 = arith.constant 0 : index
    %c0_116 = arith.constant 0 : index
    %275 = vector.load %arg2[%c7, %c0_115, %c0_116] : memref<13x128x384xbf16, #tpu.memory_space<vmem>>, vector<1x128x384xbf16>
    %276 = vector.shape_cast %275 : vector<1x128x384xbf16> to vector<128x384xbf16>
    %cst_117 = arith.constant dense<0.000000e+00> : vector<16x384xf32>
    %277 = tpu.matmul %274, %276, %cst_117 {dimension_numbers = #tpu.dot_dimension_numbers<[1], [0], [0], [1], [0, 0, 1, 1], [], []>} : vector<16x128xbf16>, vector<128x384xbf16>, vector<16x384xf32> -> vector<16x384xf32>
    %278 = vector.extract_strided_slice %277 {offsets = [0, 0], sizes = [16, 128], strides = [1, 1]} : vector<16x384xf32> to vector<16x128xf32>
    %c1_i32_118 = arith.constant 1 : i32
    %279 = tpu.dynamic_rotate %278 by %c1_i32_118 dim 0 : vector<16x128xf32>, i32 -> vector<16x128xf32>
    %cst_119 = arith.constant 0.000000e+00 : f32
    %280 = vector.shape_cast %18 : vector<16x1xi1> to vector<16x1xi1>
    %281 = vector.broadcast %280 : vector<16x1xi1> to vector<16x128xi1>
    %282 = vector.broadcast %cst_119 : f32 to vector<16x128xf32>
    %283 = arith.select %281, %282, %279 : vector<16x128xi1>, vector<16x128xf32>
    %284 = vector.extract_strided_slice %277 {offsets = [0, 256], sizes = [16, 128], strides = [1, 1]} : vector<16x384xf32> to vector<16x128xf32>
    %c15_i32_120 = arith.constant 15 : i32
    %285 = tpu.dynamic_rotate %284 by %c15_i32_120 dim 0 : vector<16x128xf32>, i32 -> vector<16x128xf32>
    %cst_121 = arith.constant 0.000000e+00 : f32
    %286 = vector.shape_cast %36 : vector<16x1xi1> to vector<16x1xi1>
    %287 = vector.broadcast %286 : vector<16x1xi1> to vector<16x128xi1>
    %288 = vector.broadcast %cst_121 : f32 to vector<16x128xf32>
    %289 = arith.select %287, %288, %285 : vector<16x128xi1>, vector<16x128xf32>
    %290 = vector.extract_strided_slice %277 {offsets = [0, 128], sizes = [16, 128], strides = [1, 1]} : vector<16x384xf32> to vector<16x128xf32>
    %291 = arith.addf %283, %290 : vector<16x128xf32>
    %292 = arith.addf %291, %289 : vector<16x128xf32>
    %c7_122 = arith.constant 7 : index
    %c0_123 = arith.constant 0 : index
    %c0_124 = arith.constant 0 : index
    %293 = vector.load %arg3[%c7_122, %c0_123, %c0_124] : memref<13x1x128xf32, #tpu.memory_space<vmem>>, vector<1x1x128xf32>
    %294 = vector.shape_cast %293 : vector<1x1x128xf32> to vector<1x128xf32>
    %295 = vector.broadcast %294 : vector<1x128xf32> to vector<16x128xf32>
    %296 = arith.addf %292, %295 : vector<16x128xf32>
    %297 = arith.addf %230, %296 : vector<16x128xf32>
    %298 = arith.truncf %297 : vector<16x128xf32> to vector<16x128xbf16>
    %c8 = arith.constant 8 : index
    %c0_125 = arith.constant 0 : index
    %c0_126 = arith.constant 0 : index
    %299 = vector.load %arg2[%c8, %c0_125, %c0_126] : memref<13x128x384xbf16, #tpu.memory_space<vmem>>, vector<1x128x384xbf16>
    %300 = vector.shape_cast %299 : vector<1x128x384xbf16> to vector<128x384xbf16>
    %cst_127 = arith.constant dense<0.000000e+00> : vector<16x384xf32>
    %301 = tpu.matmul %298, %300, %cst_127 {dimension_numbers = #tpu.dot_dimension_numbers<[1], [0], [0], [1], [0, 0, 1, 1], [], []>} : vector<16x128xbf16>, vector<128x384xbf16>, vector<16x384xf32> -> vector<16x384xf32>
    %302 = vector.extract_strided_slice %301 {offsets = [0, 0], sizes = [16, 128], strides = [1, 1]} : vector<16x384xf32> to vector<16x128xf32>
    %c1_i32_128 = arith.constant 1 : i32
    %303 = tpu.dynamic_rotate %302 by %c1_i32_128 dim 0 : vector<16x128xf32>, i32 -> vector<16x128xf32>
    %cst_129 = arith.constant 0.000000e+00 : f32
    %304 = vector.shape_cast %18 : vector<16x1xi1> to vector<16x1xi1>
    %305 = vector.broadcast %304 : vector<16x1xi1> to vector<16x128xi1>
    %306 = vector.broadcast %cst_129 : f32 to vector<16x128xf32>
    %307 = arith.select %305, %306, %303 : vector<16x128xi1>, vector<16x128xf32>
    %308 = vector.extract_strided_slice %301 {offsets = [0, 256], sizes = [16, 128], strides = [1, 1]} : vector<16x384xf32> to vector<16x128xf32>
    %c15_i32_130 = arith.constant 15 : i32
    %309 = tpu.dynamic_rotate %308 by %c15_i32_130 dim 0 : vector<16x128xf32>, i32 -> vector<16x128xf32>
    %cst_131 = arith.constant 0.000000e+00 : f32
    %310 = vector.shape_cast %36 : vector<16x1xi1> to vector<16x1xi1>
    %311 = vector.broadcast %310 : vector<16x1xi1> to vector<16x128xi1>
    %312 = vector.broadcast %cst_131 : f32 to vector<16x128xf32>
    %313 = arith.select %311, %312, %309 : vector<16x128xi1>, vector<16x128xf32>
    %314 = vector.extract_strided_slice %301 {offsets = [0, 128], sizes = [16, 128], strides = [1, 1]} : vector<16x384xf32> to vector<16x128xf32>
    %315 = arith.addf %307, %314 : vector<16x128xf32>
    %316 = arith.addf %315, %313 : vector<16x128xf32>
    %c8_132 = arith.constant 8 : index
    %c0_133 = arith.constant 0 : index
    %c0_134 = arith.constant 0 : index
    %317 = vector.load %arg3[%c8_132, %c0_133, %c0_134] : memref<13x1x128xf32, #tpu.memory_space<vmem>>, vector<1x1x128xf32>
    %318 = vector.shape_cast %317 : vector<1x1x128xf32> to vector<1x128xf32>
    %319 = vector.broadcast %318 : vector<1x128xf32> to vector<16x128xf32>
    %320 = arith.addf %316, %319 : vector<16x128xf32>
    %cst_135 = arith.constant 0.000000e+00 : f32
    %321 = vector.broadcast %cst_135 : f32 to vector<16x128xf32>
    %322 = arith.cmpf oge, %320, %321 : vector<16x128xf32>
    %cst_136 = arith.constant 2.000000e-01 : f32
    %323 = vector.broadcast %cst_136 : f32 to vector<16x128xf32>
    %324 = arith.mulf %323, %320 : vector<16x128xf32>
    %325 = arith.select %322, %320, %324 : vector<16x128xi1>, vector<16x128xf32>
    %326 = arith.truncf %325 : vector<16x128xf32> to vector<16x128xbf16>
    %c9 = arith.constant 9 : index
    %c0_137 = arith.constant 0 : index
    %c0_138 = arith.constant 0 : index
    %327 = vector.load %arg2[%c9, %c0_137, %c0_138] : memref<13x128x384xbf16, #tpu.memory_space<vmem>>, vector<1x128x384xbf16>
    %328 = vector.shape_cast %327 : vector<1x128x384xbf16> to vector<128x384xbf16>
    %cst_139 = arith.constant dense<0.000000e+00> : vector<16x384xf32>
    %329 = tpu.matmul %326, %328, %cst_139 {dimension_numbers = #tpu.dot_dimension_numbers<[1], [0], [0], [1], [0, 0, 1, 1], [], []>} : vector<16x128xbf16>, vector<128x384xbf16>, vector<16x384xf32> -> vector<16x384xf32>
    %330 = vector.extract_strided_slice %329 {offsets = [0, 0], sizes = [16, 128], strides = [1, 1]} : vector<16x384xf32> to vector<16x128xf32>
    %c1_i32_140 = arith.constant 1 : i32
    %331 = tpu.dynamic_rotate %330 by %c1_i32_140 dim 0 : vector<16x128xf32>, i32 -> vector<16x128xf32>
    %cst_141 = arith.constant 0.000000e+00 : f32
    %332 = vector.shape_cast %18 : vector<16x1xi1> to vector<16x1xi1>
    %333 = vector.broadcast %332 : vector<16x1xi1> to vector<16x128xi1>
    %334 = vector.broadcast %cst_141 : f32 to vector<16x128xf32>
    %335 = arith.select %333, %334, %331 : vector<16x128xi1>, vector<16x128xf32>
    %336 = vector.extract_strided_slice %329 {offsets = [0, 256], sizes = [16, 128], strides = [1, 1]} : vector<16x384xf32> to vector<16x128xf32>
    %c15_i32_142 = arith.constant 15 : i32
    %337 = tpu.dynamic_rotate %336 by %c15_i32_142 dim 0 : vector<16x128xf32>, i32 -> vector<16x128xf32>
    %cst_143 = arith.constant 0.000000e+00 : f32
    %338 = vector.shape_cast %36 : vector<16x1xi1> to vector<16x1xi1>
    %339 = vector.broadcast %338 : vector<16x1xi1> to vector<16x128xi1>
    %340 = vector.broadcast %cst_143 : f32 to vector<16x128xf32>
    %341 = arith.select %339, %340, %337 : vector<16x128xi1>, vector<16x128xf32>
    %342 = vector.extract_strided_slice %329 {offsets = [0, 128], sizes = [16, 128], strides = [1, 1]} : vector<16x384xf32> to vector<16x128xf32>
    %343 = arith.addf %335, %342 : vector<16x128xf32>
    %344 = arith.addf %343, %341 : vector<16x128xf32>
    %c9_144 = arith.constant 9 : index
    %c0_145 = arith.constant 0 : index
    %c0_146 = arith.constant 0 : index
    %345 = vector.load %arg3[%c9_144, %c0_145, %c0_146] : memref<13x1x128xf32, #tpu.memory_space<vmem>>, vector<1x1x128xf32>
    %346 = vector.shape_cast %345 : vector<1x1x128xf32> to vector<1x128xf32>
    %347 = vector.broadcast %346 : vector<1x128xf32> to vector<16x128xf32>
    %348 = arith.addf %344, %347 : vector<16x128xf32>
    %349 = arith.addf %297, %348 : vector<16x128xf32>
    %350 = arith.truncf %349 : vector<16x128xf32> to vector<16x128xbf16>
    %c10 = arith.constant 10 : index
    %c0_147 = arith.constant 0 : index
    %c0_148 = arith.constant 0 : index
    %351 = vector.load %arg2[%c10, %c0_147, %c0_148] : memref<13x128x384xbf16, #tpu.memory_space<vmem>>, vector<1x128x384xbf16>
    %352 = vector.shape_cast %351 : vector<1x128x384xbf16> to vector<128x384xbf16>
    %cst_149 = arith.constant dense<0.000000e+00> : vector<16x384xf32>
    %353 = tpu.matmul %350, %352, %cst_149 {dimension_numbers = #tpu.dot_dimension_numbers<[1], [0], [0], [1], [0, 0, 1, 1], [], []>} : vector<16x128xbf16>, vector<128x384xbf16>, vector<16x384xf32> -> vector<16x384xf32>
    %354 = vector.extract_strided_slice %353 {offsets = [0, 0], sizes = [16, 128], strides = [1, 1]} : vector<16x384xf32> to vector<16x128xf32>
    %c1_i32_150 = arith.constant 1 : i32
    %355 = tpu.dynamic_rotate %354 by %c1_i32_150 dim 0 : vector<16x128xf32>, i32 -> vector<16x128xf32>
    %cst_151 = arith.constant 0.000000e+00 : f32
    %356 = vector.shape_cast %18 : vector<16x1xi1> to vector<16x1xi1>
    %357 = vector.broadcast %356 : vector<16x1xi1> to vector<16x128xi1>
    %358 = vector.broadcast %cst_151 : f32 to vector<16x128xf32>
    %359 = arith.select %357, %358, %355 : vector<16x128xi1>, vector<16x128xf32>
    %360 = vector.extract_strided_slice %353 {offsets = [0, 256], sizes = [16, 128], strides = [1, 1]} : vector<16x384xf32> to vector<16x128xf32>
    %c15_i32_152 = arith.constant 15 : i32
    %361 = tpu.dynamic_rotate %360 by %c15_i32_152 dim 0 : vector<16x128xf32>, i32 -> vector<16x128xf32>
    %cst_153 = arith.constant 0.000000e+00 : f32
    %362 = vector.shape_cast %36 : vector<16x1xi1> to vector<16x1xi1>
    %363 = vector.broadcast %362 : vector<16x1xi1> to vector<16x128xi1>
    %364 = vector.broadcast %cst_153 : f32 to vector<16x128xf32>
    %365 = arith.select %363, %364, %361 : vector<16x128xi1>, vector<16x128xf32>
    %366 = vector.extract_strided_slice %353 {offsets = [0, 128], sizes = [16, 128], strides = [1, 1]} : vector<16x384xf32> to vector<16x128xf32>
    %367 = arith.addf %359, %366 : vector<16x128xf32>
    %368 = arith.addf %367, %365 : vector<16x128xf32>
    %c10_154 = arith.constant 10 : index
    %c0_155 = arith.constant 0 : index
    %c0_156 = arith.constant 0 : index
    %369 = vector.load %arg3[%c10_154, %c0_155, %c0_156] : memref<13x1x128xf32, #tpu.memory_space<vmem>>, vector<1x1x128xf32>
    %370 = vector.shape_cast %369 : vector<1x1x128xf32> to vector<1x128xf32>
    %371 = vector.broadcast %370 : vector<1x128xf32> to vector<16x128xf32>
    %372 = arith.addf %368, %371 : vector<16x128xf32>
    %cst_157 = arith.constant 0.000000e+00 : f32
    %373 = vector.broadcast %cst_157 : f32 to vector<16x128xf32>
    %374 = arith.cmpf oge, %372, %373 : vector<16x128xf32>
    %cst_158 = arith.constant 2.000000e-01 : f32
    %375 = vector.broadcast %cst_158 : f32 to vector<16x128xf32>
    %376 = arith.mulf %375, %372 : vector<16x128xf32>
    %377 = arith.select %374, %372, %376 : vector<16x128xi1>, vector<16x128xf32>
    %378 = arith.truncf %377 : vector<16x128xf32> to vector<16x128xbf16>
    %c11 = arith.constant 11 : index
    %c0_159 = arith.constant 0 : index
    %c0_160 = arith.constant 0 : index
    %379 = vector.load %arg2[%c11, %c0_159, %c0_160] : memref<13x128x384xbf16, #tpu.memory_space<vmem>>, vector<1x128x384xbf16>
    %380 = vector.shape_cast %379 : vector<1x128x384xbf16> to vector<128x384xbf16>
    %cst_161 = arith.constant dense<0.000000e+00> : vector<16x384xf32>
    %381 = tpu.matmul %378, %380, %cst_161 {dimension_numbers = #tpu.dot_dimension_numbers<[1], [0], [0], [1], [0, 0, 1, 1], [], []>} : vector<16x128xbf16>, vector<128x384xbf16>, vector<16x384xf32> -> vector<16x384xf32>
    %382 = vector.extract_strided_slice %381 {offsets = [0, 0], sizes = [16, 128], strides = [1, 1]} : vector<16x384xf32> to vector<16x128xf32>
    %c1_i32_162 = arith.constant 1 : i32
    %383 = tpu.dynamic_rotate %382 by %c1_i32_162 dim 0 : vector<16x128xf32>, i32 -> vector<16x128xf32>
    %cst_163 = arith.constant 0.000000e+00 : f32
    %384 = vector.shape_cast %18 : vector<16x1xi1> to vector<16x1xi1>
    %385 = vector.broadcast %384 : vector<16x1xi1> to vector<16x128xi1>
    %386 = vector.broadcast %cst_163 : f32 to vector<16x128xf32>
    %387 = arith.select %385, %386, %383 : vector<16x128xi1>, vector<16x128xf32>
    %388 = vector.extract_strided_slice %381 {offsets = [0, 256], sizes = [16, 128], strides = [1, 1]} : vector<16x384xf32> to vector<16x128xf32>
    %c15_i32_164 = arith.constant 15 : i32
    %389 = tpu.dynamic_rotate %388 by %c15_i32_164 dim 0 : vector<16x128xf32>, i32 -> vector<16x128xf32>
    %cst_165 = arith.constant 0.000000e+00 : f32
    %390 = vector.shape_cast %36 : vector<16x1xi1> to vector<16x1xi1>
    %391 = vector.broadcast %390 : vector<16x1xi1> to vector<16x128xi1>
    %392 = vector.broadcast %cst_165 : f32 to vector<16x128xf32>
    %393 = arith.select %391, %392, %389 : vector<16x128xi1>, vector<16x128xf32>
    %394 = vector.extract_strided_slice %381 {offsets = [0, 128], sizes = [16, 128], strides = [1, 1]} : vector<16x384xf32> to vector<16x128xf32>
    %395 = arith.addf %387, %394 : vector<16x128xf32>
    %396 = arith.addf %395, %393 : vector<16x128xf32>
    %c11_166 = arith.constant 11 : index
    %c0_167 = arith.constant 0 : index
    %c0_168 = arith.constant 0 : index
    %397 = vector.load %arg3[%c11_166, %c0_167, %c0_168] : memref<13x1x128xf32, #tpu.memory_space<vmem>>, vector<1x1x128xf32>
    %398 = vector.shape_cast %397 : vector<1x1x128xf32> to vector<1x128xf32>
    %399 = vector.broadcast %398 : vector<1x128xf32> to vector<16x128xf32>
    %400 = arith.addf %396, %399 : vector<16x128xf32>
    %cst_169 = arith.constant 0.000000e+00 : f32
    %401 = vector.broadcast %cst_169 : f32 to vector<16x128xf32>
    %402 = arith.cmpf oge, %400, %401 : vector<16x128xf32>
    %cst_170 = arith.constant 2.000000e-01 : f32
    %403 = vector.broadcast %cst_170 : f32 to vector<16x128xf32>
    %404 = arith.mulf %403, %400 : vector<16x128xf32>
    %405 = arith.select %402, %400, %404 : vector<16x128xi1>, vector<16x128xf32>
    %406 = arith.truncf %405 : vector<16x128xf32> to vector<16x128xbf16>
    %c12 = arith.constant 12 : index
    %c0_171 = arith.constant 0 : index
    %c0_172 = arith.constant 0 : index
    %407 = vector.load %arg2[%c12, %c0_171, %c0_172] : memref<13x128x384xbf16, #tpu.memory_space<vmem>>, vector<1x128x384xbf16>
    %408 = vector.shape_cast %407 : vector<1x128x384xbf16> to vector<128x384xbf16>
    %cst_173 = arith.constant dense<0.000000e+00> : vector<16x384xf32>
    %409 = tpu.matmul %406, %408, %cst_173 {dimension_numbers = #tpu.dot_dimension_numbers<[1], [0], [0], [1], [0, 0, 1, 1], [], []>} : vector<16x128xbf16>, vector<128x384xbf16>, vector<16x384xf32> -> vector<16x384xf32>
    %410 = vector.extract_strided_slice %409 {offsets = [0, 0], sizes = [16, 128], strides = [1, 1]} : vector<16x384xf32> to vector<16x128xf32>
    %c1_i32_174 = arith.constant 1 : i32
    %411 = tpu.dynamic_rotate %410 by %c1_i32_174 dim 0 : vector<16x128xf32>, i32 -> vector<16x128xf32>
    %cst_175 = arith.constant 0.000000e+00 : f32
    %412 = vector.shape_cast %18 : vector<16x1xi1> to vector<16x1xi1>
    %413 = vector.broadcast %412 : vector<16x1xi1> to vector<16x128xi1>
    %414 = vector.broadcast %cst_175 : f32 to vector<16x128xf32>
    %415 = arith.select %413, %414, %411 : vector<16x128xi1>, vector<16x128xf32>
    %416 = vector.extract_strided_slice %409 {offsets = [0, 256], sizes = [16, 128], strides = [1, 1]} : vector<16x384xf32> to vector<16x128xf32>
    %c15_i32_176 = arith.constant 15 : i32
    %417 = tpu.dynamic_rotate %416 by %c15_i32_176 dim 0 : vector<16x128xf32>, i32 -> vector<16x128xf32>
    %cst_177 = arith.constant 0.000000e+00 : f32
    %418 = vector.shape_cast %36 : vector<16x1xi1> to vector<16x1xi1>
    %419 = vector.broadcast %418 : vector<16x1xi1> to vector<16x128xi1>
    %420 = vector.broadcast %cst_177 : f32 to vector<16x128xf32>
    %421 = arith.select %419, %420, %417 : vector<16x128xi1>, vector<16x128xf32>
    %422 = vector.extract_strided_slice %409 {offsets = [0, 128], sizes = [16, 128], strides = [1, 1]} : vector<16x384xf32> to vector<16x128xf32>
    %423 = arith.addf %415, %422 : vector<16x128xf32>
    %424 = arith.addf %423, %421 : vector<16x128xf32>
    %c12_178 = arith.constant 12 : index
    %c0_179 = arith.constant 0 : index
    %c0_180 = arith.constant 0 : index
    %425 = vector.load %arg3[%c12_178, %c0_179, %c0_180] : memref<13x1x128xf32, #tpu.memory_space<vmem>>, vector<1x1x128xf32>
    %426 = vector.shape_cast %425 : vector<1x1x128xf32> to vector<1x128xf32>
    %427 = vector.broadcast %426 : vector<1x128xf32> to vector<16x128xf32>
    %428 = arith.addf %424, %427 : vector<16x128xf32>
    %c16_i32 = arith.constant 16 : i32
    %429 = tpu.dynamic_rotate %230 by %c16_i32 dim 1 : vector<16x128xf32>, i32 -> vector<16x128xf32>
    %430 = arith.addf %428, %429 : vector<16x128xf32>
    %431 = vector.shape_cast %430 : vector<16x128xf32> to vector<2x8x128xf32>
    %c0_181 = arith.constant 0 : index
    %c0_182 = arith.constant 0 : index
    %c0_183 = arith.constant 0 : index
    %432 = vector.load %arg7[%c0_181, %c0_182, %c0_183] : memref<2x8x128xf32, #tpu.memory_space<vmem>>, vector<2x8x128xf32>
    tpu.vector_store %arg7[%c0_181, %c0_182, %c0_183], %431 {strides = array<i32>} : memref<2x8x128xf32, #tpu.memory_space<vmem>>, vector<2x8x128xf32>,
    return
  }
  func.func @transform_0(%arg0: i32) -> (i32, i32, i32) {
    %c0_i32 = arith.constant 0 : i32
    %c0_i32_0 = arith.constant 0 : i32
    %c0_i32_1 = arith.constant 0 : i32
    return %arg0, %c0_i32, %c0_i32_0 : i32, i32, i32
  }
  func.func @transform_1(%arg0: i32) -> (i32, i32, i32) {
    %c0_i32 = arith.constant 0 : i32
    %c0_i32_0 = arith.constant 0 : i32
    %c0_i32_1 = arith.constant 0 : i32
    %c0_i32_2 = arith.constant 0 : i32
    return %c0_i32, %c0_i32_0, %c0_i32_1 : i32, i32, i32
  }
  func.func @transform_2(%arg0: i32) -> (i32, i32, i32) {
    %c0_i32 = arith.constant 0 : i32
    %c0_i32_0 = arith.constant 0 : i32
    %c0_i32_1 = arith.constant 0 : i32
    %c0_i32_2 = arith.constant 0 : i32
    return %c0_i32, %c0_i32_0, %c0_i32_1 : i32, i32, i32
  }
  func.func @transform_3(%arg0: i32) -> (i32, i32, i32) {
    %c0_i32 = arith.constant 0 : i32
    %c0_i32_0 = arith.constant 0 : i32
    %c0_i32_1 = arith.constant 0 : i32
    %c0_i32_2 = arith.constant 0 : i32
    return %c0_i32, %c0_i32_0, %c0_i32_1 : i32, i32, i32
  }
  func.func @transform_4(%arg0: i32) -> (i32, i32) {
    %c0_i32 = arith.constant 0 : i32
    %c0_i32_0 = arith.constant 0 : i32
    %c0_i32_1 = arith.constant 0 : i32
    return %c0_i32, %c0_i32_0 : i32, i32
  }
  func.func @transform_5(%arg0: i32) -> (i32, i32) {
    %c0_i32 = arith.constant 0 : i32
    %c0_i32_0 = arith.constant 0 : i32
    %c0_i32_1 = arith.constant 0 : i32
    return %c0_i32, %c0_i32_0 : i32, i32
  }
  func.func @transform_6(%arg0: i32) -> (i32, i32, i32) {
    %c0_i32 = arith.constant 0 : i32
    %c0_i32_0 = arith.constant 0 : i32
    %c0_i32_1 = arith.constant 0 : i32
    return %arg0, %c0_i32, %c0_i32_0 : i32, i32, i32
  }
  func.func @transform_7(%arg0: i32) -> (i32, i32, i32) {
    %c0_i32 = arith.constant 0 : i32
    %c0_i32_0 = arith.constant 0 : i32
    %c0_i32_1 = arith.constant 0 : i32
    return %arg0, %c0_i32, %c0_i32_0 : i32, i32, i32
  }
}

</mosaic_0001>

<bundles_post_ra>
// kernel: vqvae_forward.1
= control target key start
LH: loop header
LB: loop body
LE: loop exit
PB: predicated region body
PF: predicated region fallthrough
CT: control target
= control target key end

     0   :  { %13 = vsyncpa [#allocation3], 0  ;;  %s6140_s0 = inlined_call_operand.hbm [shape: f32[2,8,16], index: 0, kind: input, shape index: {}]   ;;  %s6141_s1 = inlined_call_operand.hbm [shape: bf16[13,128,384], index: 1, kind: input, shape index: {}]   ;;  %s6142_s2 = inlined_call_operand.hbm [shape: f32[13,1,128], index: 2, kind: input, shape index: {}]   ;;  %s6143_s3 = inlined_call_operand.hbm [shape: bf16[2,128,128], index: 3, kind: input, shape index: {}]   ;;  %s6144_s4 = inlined_call_operand.hbm [shape: bf16[128,128], index: 4, kind: input, shape index: {}]   ;;  %s6145_s5 = inlined_call_operand.hbm [shape: f32[1,128], index: 5, kind: input, shape index: {}]   ;;  %s6146_s6 = inlined_call_operand.vmem [shape: f32[2,8,128], index: 6, kind: output, shape index: {0}]   ;;  %s6147_s7 = inlined_call_operand.vmem [shape: f32[1,2,128], index: 7, kind: output, shape index: {1}]  }
   0x1   :  { %14 = vsyncpa [#allocation5], 0 }
   0x2   :  { %15 = vsyncpa [#allocation8], 0 }
   0x3   :  { %16 = vsyncpa [#allocation11], 0  ;;  %s5576_s24 = smov [#allocation4]  }
   0x4   :  { %s34_s25 = sshll.u32 %s5576_s24, 4  ;;  %s35_s25 = int_to_ptr.vmem [resolvable:$true] %s34_s25 }
   0x5   :  { %s5456_s26 = scalar_lea.vmem %s35_s25, 39936  ;;  %p5461_p1 = scmp.lt.s32.totalorder %s35_s25, %s35_s25 }
   0x6   :  { %p5457_p0 = scmp.ne.s32.totalorder %s35_s25, %s5456_s26  ;;  %p5462_p2 = scmp.lt.s32.totalorder %s5456_s26, %s5456_s26 }
   0x8   :  { %p5463_p3 = por %p5462_p2, %p5461_p1 }
   0xa   :  { %p5464_p4 = pnand %p5463_p3, %p5457_p0 }
   0xc   :  { %5467 = shalt.err (!%p5464_p4)
}
   0xd   :  { %s5577_s27 = smov 192   ;;  %s5578_s28 = smov 12  }
   0xe   :  { %40 = dma.hbm_to_vmem [thread:$0]  %s6141_s1, 39936, %s35_s25, [#allocation5], %s5577_s27, %s5577_s27, %s5578_s28  }
   0xf   :  { %s5579_s8 = smov [#allocation7]  }
  0x10   :  { %s58_s9 = sshll.u32 %s5579_s8, 4  ;;  %s59_s9 = int_to_ptr.vmem [resolvable:$true] %s58_s9 }
  0x11   :  { %s5476_s10 = scalar_lea.vmem %s59_s9, 2048  ;;  %p5481_p6 = scmp.lt.s32.totalorder %s59_s9, %s59_s9 }
  0x12   :  { %p5477_p5 = scmp.ne.s32.totalorder %s59_s9, %s5476_s10  ;;  %p5482_p7 = scmp.lt.s32.totalorder %s5476_s10, %s5476_s10 }
  0x14   :  { %p5483_p8 = por %p5482_p7, %p5481_p6 }
  0x16   :  { %p5484_p9 = pnand %p5483_p8, %p5477_p5 }
  0x18   :  { %5487 = shalt.err (!%p5484_p9)
}
  0x19   :  { %s5580_s11 = smov 64   ;;  %s5581_s12 = smov 4  }
  0x1a   :  { %64 = dma.hbm_to_vmem [thread:$0]  %s6143_s3, 2048, %s59_s9, [#allocation8], %s5580_s11, %s5580_s11, %s5581_s12  }
  0x1b   :  { %s5582_s1 = smov [#allocation2]  }
  0x1c   :  { %s22_s15 = sshll.u32 %s5582_s1, 4  ;;  %s23_s15 = int_to_ptr.vmem [resolvable:$true] %s22_s15 }
  0x1d   :  { %s5496_s16 = scalar_lea.vmem %s23_s15, 256  ;;  %p5501_p11 = scmp.lt.s32.totalorder %s23_s15, %s23_s15 }
  0x1e   :  { %p5497_p10 = scmp.ne.s32.totalorder %s23_s15, %s5496_s16  ;;  %p5502_p12 = scmp.lt.s32.totalorder %s5496_s16, %s5496_s16 }
  0x20   :  { %p5503_p13 = por %p5502_p12, %p5501_p11 }
  0x22   :  { %p5504_p0 = pnand %p5503_p13, %p5497_p10 }
  0x24   :  { %5507 = shalt.err (!%p5504_p0)
}
  0x25   :  { %s5583_s17 = smov 128   ;;  %s5584_s18 = smov 8  }
  0x26   :  { %28 = dma.hbm_to_vmem [thread:$0]  %s6140_s0, 256, %s23_s15, [#allocation3], %s5583_s17, %s5583_s17, %s5584_s18  }
  0x27   :  { %s5585_s21 = smov [#allocation6]  }
  0x28   :  { %s46_s22 = sshll.u32 %s5585_s21, 4  ;;  %s47_s22 = int_to_ptr.vmem [resolvable:$true] %s46_s22 }
  0x29   :  { %s5516_s3 = scalar_lea.vmem %s47_s22, 208  ;;  %s5520_s23 = scalar_lea.vmem %s47_s22, 224 }
  0x2a   :  { %p5517_p1 = scmp.ne.s32.totalorder %s47_s22, %s5516_s3  ;;  %p5521_p2 = scmp.lt.s32.totalorder %s47_s22, %s47_s22 }
  0x2b   :  { %p5522_p3 = scmp.lt.s32.totalorder %s5520_s23, %s5516_s3 }
  0x2d   :  { %p5523_p4 = por %p5522_p3, %p5521_p2 }
  0x2f   :  { %p5524_p5 = pnand %p5523_p4, %p5517_p1 }
  0x31   :  { %5527 = shalt.err (!%p5524_p5)
}
  0x32   :  { %s5586_s24 = smov 16   ;;  %s5587_s25 = smov 1  }
  0x33   :  { %52 = dma.hbm_to_vmem [thread:$0]  %s6142_s2, 208, %s47_s22, [#allocation5], %s5586_s24, %s5586_s24, %s5587_s25  }
  0x34   :  { %s5588_s0 = smov [#allocation9]   ;;  %s5589_s29 = smov [#allocation10]  }
  0x35   :  { %s70_s28 = sshll.u32 %s5588_s0, 4  ;;  %s83_s30 = sshll.u32 %s5589_s29, 4  ;;  %s71_s28 = int_to_ptr.vmem [resolvable:$true] %s70_s28  ;;  %s84_s30 = int_to_ptr.vmem [resolvable:$true] %s83_s30 }
  0x36   :  { %s5536_s8 = scalar_lea.vmem %s71_s28, 1024  ;;  %p5541_p7 = scmp.lt.s32.totalorder %s71_s28, %s71_s28 }
  0x37   :  { %p5537_p6 = scmp.ne.s32.totalorder %s71_s28, %s5536_s8  ;;  %p5542_p8 = scmp.lt.s32.totalorder %s5536_s8, %s5536_s8 }
  0x39   :  { %p5543_p9 = por %p5542_p8, %p5541_p7 }
  0x3b   :  { %p5544_p10 = pnand %p5543_p9, %p5537_p6 }
  0x3d   :  { %5547 = shalt.err (!%p5544_p10)
}
  0x3e   :  { %76 = dma.hbm_to_vmem [thread:$0]  %s6144_s4, 1024, %s71_s28, [#allocation8], %s5580_s11, %s5580_s11, %s5581_s12  }
  0x3f   :  { %s5556_s2 = scalar_lea.vmem %s84_s30, 16  ;;  %s5560_s13 = scalar_lea.vmem %s84_s30, 32 }
  0x40   :  { %p5557_p11 = scmp.ne.s32.totalorder %s84_s30, %s5556_s2  ;;  %p5561_p12 = scmp.lt.s32.totalorder %s84_s30, %s84_s30 }
  0x41   :  { %p5562_p13 = scmp.lt.s32.totalorder %s5560_s13, %s5556_s2 }
  0x43   :  { %p5563_p0 = por %p5562_p13, %p5561_p12 }
  0x45   :  { %p5564_p1 = pnand %p5563_p0, %p5557_p11 }
  0x47   :  { %5567 = shalt.err (!%p5564_p1)
}
  0x48   :  { %86 = dma.hbm_to_vmem [thread:$0]  %s6145_s5, 16, %s84_s30, [#allocation11]  }
  0x49   :  { %5568 = dma.done.wait [#allocation3], 256  }
  0x4a   :  { %5569 = vsyncadd [#allocation3], 4294967040 }
  0x4b   :  { %5570 = dma.done.wait [#allocation5], 40144  }
  0x4c   :  { %5571 = vsyncadd [#allocation5], 4294927152 }
  0x4d   :  { %5572 = dma.done.wait [#allocation8], 3072  }
  0x4e   :  { %5573 = vsyncadd [#allocation8], 4294964224 }
  0x4f   :  { %5574 = dma.done.wait [#allocation11], 16  }
  0x50   :  { %5575 = vsyncadd [#allocation11], 4294967280  ;;  %v5590_v0 = vmov 0.0   ;;  %vm5591_vm0 = vmmov 0   ;;  %v5592_v1 = vmov 0   ;;  %vm139_vm1 = vcmask 130048  }
  0x51   :  { %4668 = vmatprep.subr.bf16.mxu1 %v5590_v0  ;;  %4684 = vmatprep.mubr.msk.bf16.mxu1 %vm5591_vm0, %v5590_v0  ;;  %v5008_v2 = vld [vmem:[#allocation4 + $0xac] ss:$12 sps:$4 sm:$0xff]   ;;  %v5010_v3 = vld [vmem:[#allocation4 + $0xb0] ss:$12 sps:$4 sm:$0xff]   ;;  %v5011_v4 = vld [vmem:[#allocation4 + $0xa8] ss:$12 sps:$4 sm:$0xff]   ;;  %v106_v55 = vlaneseq }
  0x52   :  { %335 = vmatprep.mubr.bf16.mxu0 %v5592_v1  ;;  %303 = vmatprep.subr.bf16.mxu0 %v5008_v2  ;;  %v5012_v5 = vld [vmem:[#allocation4 + $0x94] ss:$12 sps:$4 sm:$0xff]   ;;  %v5014_v6 = vld [vmem:[#allocation4 + $0x98] ss:$12 sps:$4 sm:$0xff]   ;;  %v5015_v7 = vld [vmem:[#allocation4 + $0x90] ss:$12 sps:$4 sm:$0xff]  }
  0x53   :  { %4669 = vmatpush3.bf16.msra.mxu1 %v5010_v3  ;;  %304 = vmatpush1.bf16.msra.mxu0 %v5011_v4  ;;  %v5016_v8 = vld [vmem:[#allocation4 + $0x7c] ss:$12 sps:$4 sm:$0xff]   ;;  %v5018_v9 = vld [vmem:[#allocation4 + $0x80] ss:$12 sps:$4 sm:$0xff]   ;;  %v5019_v10 = vld [vmem:[#allocation4 + $0x78] ss:$12 sps:$4 sm:$0xff]  }
  0x54   :  { %4670 = vmatprep.subr.bf16.mxu1 %v5590_v0  ;;  %305 = vmatprep.subr.bf16.mxu0 %v5012_v5  ;;  %v5020_v11 = vld [vmem:[#allocation4 + $0x64] ss:$12 sps:$4 sm:$0xff]   ;;  %v5022_v12 = vld [vmem:[#allocation4 + $0x68] ss:$12 sps:$4 sm:$0xff]   ;;  %v5023_v13 = vld [vmem:[#allocation4 + $0x60] ss:$12 sps:$4 sm:$0xff]  }
  0x55   :  { %v5024_v14 = vld [vmem:[#allocation4 + $0x4c] ss:$12 sps:$4 sm:$0xff]   ;;  %v5026_v15 = vld [vmem:[#allocation4 + $0x50] ss:$12 sps:$4 sm:$0xff]   ;;  %v5027_v16 = vld [vmem:[#allocation4 + $0x48] ss:$12 sps:$4 sm:$0xff]  }
  0x56   :  { %v5028_v17 = vld [vmem:[#allocation4 + $0x34] ss:$12 sps:$4 sm:$0xff]   ;;  %v5030_v18 = vld [vmem:[#allocation4 + $0x38] ss:$12 sps:$4 sm:$0xff]   ;;  %v5031_v19 = vld [vmem:[#allocation4 + $0x30] ss:$12 sps:$4 sm:$0xff]  }
  0x57   :  { %4671 = vmatpush3.bf16.msra.mxu1 %v5014_v6  ;;  %306 = vmatpush1.bf16.msra.mxu0 %v5015_v7  ;;  %v5032_v20 = vld [vmem:[#allocation4 + $0x1c] ss:$12 sps:$4 sm:$0xff]   ;;  %v5034_v21 = vld [vmem:[#allocation4 + $0x20] ss:$12 sps:$4 sm:$0xff]   ;;  %v5035_v22 = vld [vmem:[#allocation4 + $0x18] ss:$12 sps:$4 sm:$0xff]  }
  0x58   :  { %4672 = vmatprep.subr.bf16.mxu1 %v5590_v0  ;;  %307 = vmatprep.subr.bf16.mxu0 %v5016_v8  ;;  %vm5669_vm2 = vmpackc.low %vm139_vm1, %vm139_vm1  ;;  %v5036_v24 = vld [vmem:[#allocation4 + $0x4] ss:$12 sps:$4 sm:$0xff]   ;;  %v5038_v25 = vld [vmem:[#allocation4 + $0x8] ss:$12 sps:$4 sm:$0xff]   ;;  %v5692_v56 = vshrl.u32 %v106_v55, 7 }
  0x59   :  { %v137_v26 = vld [vmem:[#allocation2] sm:$0xff]  ;;  %v5039_v27 = vld [vmem:[#allocation4] ss:$12 sps:$4 sm:$0xff]   ;;  %v138_v28 = vld [vmem:[#allocation2 + $0x8] sm:$0xff] }
  0x5a   :  { %v5042_v29 = vld [vmem:[#allocation4 + $0x16c] ss:$12 sps:$4 sm:$0xff]   ;;  %v5043_v30 = vld [vmem:[#allocation4 + $0x170] ss:$12 sps:$4 sm:$0xff]   ;;  %v4187_v31 = vpack.c.bf16 %v138_v28, %v137_v26  ;;  %v5040_v32 = vld [vmem:[#allocation4 + $0x168] ss:$12 sps:$4 sm:$0xff]  }
  0x5b   :  { %4673 = vmatpush3.bf16.msra.mxu1 %v5018_v9  ;;  %308 = vmatpush1.bf16.msra.mxu0 %v5019_v10  ;;  %v5046_v33 = vld [vmem:[#allocation4 + $0x154] ss:$12 sps:$4 sm:$0xff]   ;;  %v5047_v34 = vld [vmem:[#allocation4 + $0x158] ss:$12 sps:$4 sm:$0xff]   ;;  %v5044_v35 = vld [vmem:[#allocation4 + $0x150] ss:$12 sps:$4 sm:$0xff]  }
  0x5c   :  { %4674 = vmatprep.subr.bf16.mxu1 %v5590_v0  ;;  %309 = vmatprep.subr.bf16.mxu0 %v5020_v11  ;;  %v5050_v36 = vld [vmem:[#allocation4 + $0x13c] ss:$12 sps:$4 sm:$0xff]   ;;  %v5051_v37 = vld [vmem:[#allocation4 + $0x140] ss:$12 sps:$4 sm:$0xff]   ;;  %v5048_v38 = vld [vmem:[#allocation4 + $0x138] ss:$12 sps:$4 sm:$0xff]  }
  0x5d   :  { %v5054_v39 = vld [vmem:[#allocation4 + $0x124] ss:$12 sps:$4 sm:$0xff]   ;;  %v5052_v40 = vld [vmem:[#allocation4 + $0x120] ss:$12 sps:$4 sm:$0xff]   ;;  %v5055_v41 = vld [vmem:[#allocation4 + $0x128] ss:$12 sps:$4 sm:$0xff]  }
  0x5e   :  { %v5058_v42 = vld [vmem:[#allocation4 + $0x10c] ss:$12 sps:$4 sm:$0xff]   ;;  %v5056_v43 = vld [vmem:[#allocation4 + $0x108] ss:$12 sps:$4 sm:$0xff]   ;;  %v5059_v44 = vld [vmem:[#allocation4 + $0x110] ss:$12 sps:$4 sm:$0xff]  }
  0x5f   :  { %4675 = vmatpush3.bf16.msra.mxu1 %v5022_v12  ;;  %310 = vmatpush1.bf16.msra.mxu0 %v5023_v13  ;;  %v5062_v45 = vld [vmem:[#allocation4 + $0xf4] ss:$12 sps:$4 sm:$0xff]   ;;  %v5060_v46 = vld [vmem:[#allocation4 + $0xf0] ss:$12 sps:$4 sm:$0xff]   ;;  %v5063_v47 = vld [vmem:[#allocation4 + $0xf8] ss:$12 sps:$4 sm:$0xff]  }
  0x60   :  { %4676 = vmatprep.subr.bf16.mxu1 %v5590_v0  ;;  %311 = vmatprep.subr.bf16.mxu0 %v5024_v14  ;;  %v5066_v48 = vld [vmem:[#allocation4 + $0xdc] ss:$12 sps:$4 sm:$0xff]   ;;  %v5064_v49 = vld [vmem:[#allocation4 + $0xd8] ss:$12 sps:$4 sm:$0xff]   ;;  %v5067_v50 = vld [vmem:[#allocation4 + $0xe0] ss:$12 sps:$4 sm:$0xff]  }
  0x61   :  { %v5070_v51 = vld [vmem:[#allocation4 + $0xc4] ss:$12 sps:$4 sm:$0xff]   ;;  %v5068_v52 = vld [vmem:[#allocation4 + $0xc0] ss:$12 sps:$4 sm:$0xff]   ;;  %v5071_v53 = vld [vmem:[#allocation4 + $0xc8] ss:$12 sps:$4 sm:$0xff]  }
  0x62   :  { %v5074_v54 = vld [vmem:[#allocation4 + $0x22c] ss:$12 sps:$4 sm:$0xff]   ;;  %v108_v57 = vadd.s32 8, %v5692_v56  ;;  %v113_v61 = vand.u32 7, %v5692_v56  ;;  %vm389_vm3 = vcmp.lt.s32.totalorder %v5692_v56, 1  ;;  %vm400_vm4 = vcmp.lt.s32.totalorder %v5692_v56, 7 }
  0x63   :  { %4677 = vmatpush3.bf16.msra.mxu1 %v5026_v15  ;;  %312 = vmatpush1.bf16.msra.mxu0 %v5027_v16 }
  0x64   :  { %4678 = vmatprep.subr.bf16.mxu1 %v5590_v0  ;;  %313 = vmatprep.subr.bf16.mxu0 %v5028_v17  ;;  %v120_v62 = vand.u32 7, %v108_v57  ;;  %vm5698_vm5 = vcmp.eq.s32.totalorder %v113_v61, 0  ;;  %vm5706_vm7 = vcmp.eq.s32.totalorder %v113_v61, 7  ;;  %v5100_v57 = vld [vmem:[#allocation4 + $0x180] ss:$12 sps:$4 sm:$0xff]  }
  0x66   :  { %vm5702_vm6 = vcmp.eq.s32.totalorder %v120_v62, 0  ;;  %vm5710_vm8 = vcmp.eq.s32.totalorder %v120_v62, 7 }
  0x67   :  { %4679 = vmatpush3.bf16.msra.mxu1 %v5030_v18  ;;  %314 = vmatpush1.bf16.msra.mxu0 %v5031_v19 }
  0x68   :  { %4680 = vmatprep.subr.bf16.mxu1 %v5590_v0  ;;  %315 = vmatprep.subr.bf16.mxu0 %v5032_v20 }
  0x6b   :  { %4681 = vmatpush3.bf16.msra.mxu1 %v5034_v21  ;;  %316 = vmatpush1.bf16.msra.mxu0 %v5035_v22 }
  0x6c   :  { %4682 = vmatprep.subr.bf16.mxu1 %v5590_v0  ;;  %317 = vmatprep.subr.bf16.mxu0 %v5036_v24  ;;  %v4192_v24 = vld [vmem:[#allocation6] ss:$0 sm:$0xff] }
  0x6f   :  { %4683 = vmatpush3.bf16.msra.mxu1 %v5038_v25  ;;  %318 = vmatpush1.bf16.msra.mxu0 %v5039_v27 }
  0x70   :  { %4688 = vmatprep.subr.bf16.mxu1 %v5590_v0  ;;  %590 = vmatprep.subr.bf16.mxu0 %v5042_v29 }
  0x72   :  { %4685 = vmatmul.mubr.msk.bf16.vlgmr.msra.gmra.mxu1 %vm5669_vm2, %v4187_v31  ;;  %4188 = vmatmul.mubr.msk.bf16.vlgmr.msra.gmra.mxu0 %vm5669_vm2, %v4187_v31 }
  0x73   :  { %4689 = vmatpush3.bf16.msra.mxu1 %v5043_v30  ;;  %591 = vmatpush1.bf16.msra.mxu0 %v5040_v32 }
  0x74   :  { %4690 = vmatprep.subr.bf16.mxu1 %v5590_v0  ;;  %592 = vmatprep.subr.bf16.mxu0 %v5046_v33  ;;  %v5072_v33 = vld [vmem:[#allocation4 + $0x228] ss:$12 sps:$4 sm:$0xff]  }
  0x75   :  { %622 = vmatprep.mubr.bf16.mxu0 %v5592_v1  ;;  %4704 = vmatprep.mubr.msk.bf16.mxu1 %vm5591_vm0, %v5590_v0 }
  0x77   :  { %4691 = vmatpush3.bf16.msra.mxu1 %v5047_v34  ;;  %593 = vmatpush1.bf16.msra.mxu0 %v5044_v35  ;;  %v5075_v34 = vld [vmem:[#allocation4 + $0x230] ss:$12 sps:$4 sm:$0xff]  }
  0x78   :  { %4692 = vmatprep.subr.bf16.mxu1 %v5590_v0  ;;  %594 = vmatprep.subr.bf16.mxu0 %v5050_v36  ;;  %v5078_v36 = vld [vmem:[#allocation4 + $0x214] ss:$12 sps:$4 sm:$0xff]  }
  0x7b   :  { %4693 = vmatpush3.bf16.msra.mxu1 %v5051_v37  ;;  %595 = vmatpush1.bf16.msra.mxu0 %v5048_v38  ;;  %v5076_v37 = vld [vmem:[#allocation4 + $0x210] ss:$12 sps:$4 sm:$0xff]   ;;  %v5079_v38 = vld [vmem:[#allocation4 + $0x218] ss:$12 sps:$4 sm:$0xff]  }
  0x7c   :  { %4694 = vmatprep.subr.bf16.mxu1 %v5590_v0  ;;  %596 = vmatprep.subr.bf16.mxu0 %v5054_v39  ;;  %v5082_v39 = vld [vmem:[#allocation4 + $0x1fc] ss:$12 sps:$4 sm:$0xff]  }
  0x7f   :  { %597 = vmatpush1.bf16.msra.mxu0 %v5052_v40  ;;  %4695 = vmatpush3.bf16.msra.mxu1 %v5055_v41  ;;  %v5080_v40 = vld [vmem:[#allocation4 + $0x1f8] ss:$12 sps:$4 sm:$0xff]   ;;  %v5083_v41 = vld [vmem:[#allocation4 + $0x200] ss:$12 sps:$4 sm:$0xff]  }
  0x80   :  { %4696 = vmatprep.subr.bf16.mxu1 %v5590_v0  ;;  %598 = vmatprep.subr.bf16.mxu0 %v5058_v42  ;;  %v5086_v42 = vld [vmem:[#allocation4 + $0x1e4] ss:$12 sps:$4 sm:$0xff]  }
  0x83   :  { %599 = vmatpush1.bf16.msra.mxu0 %v5056_v43  ;;  %4697 = vmatpush3.bf16.msra.mxu1 %v5059_v44  ;;  %v5084_v43 = vld [vmem:[#allocation4 + $0x1e0] ss:$12 sps:$4 sm:$0xff]   ;;  %v5087_v44 = vld [vmem:[#allocation4 + $0x1e8] ss:$12 sps:$4 sm:$0xff]  }
  0x84   :  { %4698 = vmatprep.subr.bf16.mxu1 %v5590_v0  ;;  %600 = vmatprep.subr.bf16.mxu0 %v5062_v45  ;;  %v5090_v45 = vld [vmem:[#allocation4 + $0x1cc] ss:$12 sps:$4 sm:$0xff]  }
  0x87   :  { %601 = vmatpush1.bf16.msra.mxu0 %v5060_v46  ;;  %4699 = vmatpush3.bf16.msra.mxu1 %v5063_v47  ;;  %v5088_v46 = vld [vmem:[#allocation4 + $0x1c8] ss:$12 sps:$4 sm:$0xff]   ;;  %v5091_v47 = vld [vmem:[#allocation4 + $0x1d0] ss:$12 sps:$4 sm:$0xff]  }
  0x88   :  { %4700 = vmatprep.subr.bf16.mxu1 %v5590_v0  ;;  %602 = vmatprep.subr.bf16.mxu0 %v5066_v48  ;;  %v5094_v48 = vld [vmem:[#allocation4 + $0x1b4] ss:$12 sps:$4 sm:$0xff]  }
  0x8b   :  { %603 = vmatpush1.bf16.msra.mxu0 %v5064_v49  ;;  %4701 = vmatpush3.bf16.msra.mxu1 %v5067_v50  ;;  %v5092_v49 = vld [vmem:[#allocation4 + $0x1b0] ss:$12 sps:$4 sm:$0xff]   ;;  %v5095_v50 = vld [vmem:[#allocation4 + $0x1b8] ss:$12 sps:$4 sm:$0xff]  }
  0x8c   :  { %4702 = vmatprep.subr.bf16.mxu1 %v5590_v0  ;;  %604 = vmatprep.subr.bf16.mxu0 %v5070_v51  ;;  %v5098_v51 = vld [vmem:[#allocation4 + $0x19c] ss:$12 sps:$4 sm:$0xff]  }
  0x8f   :  { %605 = vmatpush1.bf16.msra.mxu0 %v5068_v52  ;;  %4703 = vmatpush3.bf16.msra.mxu1 %v5071_v53  ;;  %v5096_v52 = vld [vmem:[#allocation4 + $0x198] ss:$12 sps:$4 sm:$0xff]   ;;  %v5099_v53 = vld [vmem:[#allocation4 + $0x1a0] ss:$12 sps:$4 sm:$0xff]  }
  0x90   :  { %4708 = vmatprep.subr.bf16.mxu1 %v5590_v0  ;;  %868 = vmatprep.subr.bf16.mxu0 %v5074_v54  ;;  %v5102_v54 = vld [vmem:[#allocation4 + $0x184] ss:$12 sps:$4 sm:$0xff]  }
 0x132   :  { %v380_v58 = vpop.f32.mrf.mxu1  ;;  %v337_v59 = vpop.f32.mrf.mxu0 }
 0x133   :  { %v398_v2 = vrot.slane %v380_v58, 1  ;;  %v387_v6 = vrot.slane %v337_v59, 7  ;;  %v5103_v58 = vld [vmem:[#allocation4 + $0x188] ss:$12 sps:$4 sm:$0xff]   ;;  %v5106_v59 = vld [vmem:[#allocation4 + $0x2ec] ss:$12 sps:$4 sm:$0xff]  }
 0x134   :  { %v4686_v60 = vpop.f32.mrf.mxu1  ;;  %v339_v63 = vpop.f32.mrf.mxu0 }
 0x136   :  { %v383_v3 = vpop.f32.mrf.mxu1  ;;  %v341_v5 = vpop.f32.mrf.mxu0 }
 0x137   :  { %v399_v4 = vrot.slane %v383_v3, 1  ;;  %v388_v8 = vrot.slane %v341_v5, 7 }
 0x138   :  { %v4687_v9 = vpop.f32.mrf.mxu1  ;;  %v343_v18 = vpop.f32.mrf.mxu0 }
 0x139   :  { %v401_v13 = vsel %vm400_vm4, %v398_v2, %v399_v4  ;;  %v391_v14 = vsel %vm389_vm3, %v388_v8, %v387_v6  ;;  %v390_v15 = vsel %vm389_vm3, %v387_v6, %v388_v8  ;;  %v402_v16 = vsel %vm400_vm4, %v399_v4, %v398_v2 }
 0x13a   :  { %v396_v17 = vsel %vm5698_vm5, 0.0, %v391_v14  ;;  %v397_v19 = vsel %vm5702_vm6, 0.0, %v390_v15  ;;  %v407_v22 = vsel %vm5706_vm7, 0.0, %v401_v13  ;;  %v408_v23 = vsel %vm5710_vm8, 0.0, %v402_v16 }
 0x13b   :  { %v409_v20 = vadd.f32 %v396_v17, %v339_v63  ;;  %v410_v21 = vadd.f32 %v397_v19, %v343_v18 }
 0x13d   :  { %v411_v25 = vadd.f32 %v409_v20, %v407_v22  ;;  %v412_v26 = vadd.f32 %v410_v21, %v408_v23 }
 0x13f   :  { %v420_v27 = vadd.f32 %v4192_v24, %v411_v25  ;;  %v421_v28 = vadd.f32 %v4192_v24, %v412_v26  ;;  %v4217_v24 = vld [vmem:[#allocation6 + $0x1] ss:$0 sm:$0xff] }
 0x141   :  { %vm423_vm9 = vcmp.ge.f32.partialorder %v421_v28, 0.0  ;;  %v424_v29 = vmul.f32 0.2, %v420_v27  ;;  %v425_v30 = vmul.f32 0.2, %v421_v28  ;;  %vm422_vm10 = vcmp.ge.f32.partialorder %v420_v27, 0.0 }
 0x143   :  { %v5730_v31 = vsel %vm422_vm10, %v420_v27, %v424_v29  ;;  %v5732_v32 = vsel %vm423_vm9, %v421_v28, %v425_v30 }
 0x144   :  { %v428_v35 = vpack.c.bf16 %v5732_v32, %v5730_v31 }
 0x146   :  { %623 = vmatmul.mubr.bf16.vlgmr.msra.gmra.mxu0 %v428_v35  ;;  %4705 = vmatmul.mubr.bf16.vlgmr.msra.gmra.mxu1 %v428_v35  ;;  %v5104_v35 = vld [vmem:[#allocation4 + $0x2e8] ss:$12 sps:$4 sm:$0xff]  }
 0x147   :  { %869 = vmatpush1.bf16.msra.mxu0 %v5072_v33  ;;  %4709 = vmatpush3.bf16.msra.mxu1 %v5075_v34 }
 0x148   :  { %870 = vmatprep.subr.bf16.mxu0 %v5078_v36  ;;  %4710 = vmatprep.subr.bf16.mxu1 %v5590_v0  ;;  %v5107_v36 = vld [vmem:[#allocation4 + $0x2f0] ss:$12 sps:$4 sm:$0xff]  }
 0x149   :  { %900 = vmatprep.mubr.bf16.mxu0 %v5592_v1  ;;  %4724 = vmatprep.mubr.msk.bf16.mxu1 %vm5591_vm0, %v5590_v0 }
 0x14b   :  { %871 = vmatpush1.bf16.msra.mxu0 %v5076_v37  ;;  %4711 = vmatpush3.bf16.msra.mxu1 %v5079_v38  ;;  %v5110_v38 = vld [vmem:[#allocation4 + $0x2d4] ss:$12 sps:$4 sm:$0xff]  }
 0x14c   :  { %872 = vmatprep.subr.bf16.mxu0 %v5082_v39  ;;  %4712 = vmatprep.subr.bf16.mxu1 %v5590_v0  ;;  %v5108_v39 = vld [vmem:[#allocation4 + $0x2d0] ss:$12 sps:$4 sm:$0xff]  }
 0x14f   :  { %873 = vmatpush1.bf16.msra.mxu0 %v5080_v40  ;;  %4713 = vmatpush3.bf16.msra.mxu1 %v5083_v41  ;;  %v5111_v40 = vld [vmem:[#allocation4 + $0x2d8] ss:$12 sps:$4 sm:$0xff]   ;;  %v5114_v41 = vld [vmem:[#allocation4 + $0x2bc] ss:$12 sps:$4 sm:$0xff]  }
 0x150   :  { %4714 = vmatprep.subr.bf16.mxu1 %v5590_v0  ;;  %874 = vmatprep.subr.bf16.mxu0 %v5086_v42  ;;  %v5112_v42 = vld [vmem:[#allocation4 + $0x2b8] ss:$12 sps:$4 sm:$0xff]  }
 0x153   :  { %875 = vmatpush1.bf16.msra.mxu0 %v5084_v43  ;;  %4715 = vmatpush3.bf16.msra.mxu1 %v5087_v44  ;;  %v5115_v43 = vld [vmem:[#allocation4 + $0x2c0] ss:$12 sps:$4 sm:$0xff]   ;;  %v5118_v44 = vld [vmem:[#allocation4 + $0x2a4] ss:$12 sps:$4 sm:$0xff]  }
 0x154   :  { %4716 = vmatprep.subr.bf16.mxu1 %v5590_v0  ;;  %876 = vmatprep.subr.bf16.mxu0 %v5090_v45  ;;  %v5116_v45 = vld [vmem:[#allocation4 + $0x2a0] ss:$12 sps:$4 sm:$0xff]  }
 0x157   :  { %877 = vmatpush1.bf16.msra.mxu0 %v5088_v46  ;;  %4717 = vmatpush3.bf16.msra.mxu1 %v5091_v47  ;;  %v5119_v46 = vld [vmem:[#allocation4 + $0x2a8] ss:$12 sps:$4 sm:$0xff]   ;;  %v5122_v47 = vld [vmem:[#allocation4 + $0x28c] ss:$12 sps:$4 sm:$0xff]  }
 0x158   :  { %4718 = vmatprep.subr.bf16.mxu1 %v5590_v0  ;;  %878 = vmatprep.subr.bf16.mxu0 %v5094_v48  ;;  %v5120_v48 = vld [vmem:[#allocation4 + $0x288] ss:$12 sps:$4 sm:$0xff]  }
 0x15b   :  { %879 = vmatpush1.bf16.msra.mxu0 %v5092_v49  ;;  %4719 = vmatpush3.bf16.msra.mxu1 %v5095_v50  ;;  %v5123_v49 = vld [vmem:[#allocation4 + $0x290] ss:$12 sps:$4 sm:$0xff]   ;;  %v5126_v50 = vld [vmem:[#allocation4 + $0x274] ss:$12 sps:$4 sm:$0xff]  }
 0x15c   :  { %4720 = vmatprep.subr.bf16.mxu1 %v5590_v0  ;;  %880 = vmatprep.subr.bf16.mxu0 %v5098_v51  ;;  %v5124_v51 = vld [vmem:[#allocation4 + $0x270] ss:$12 sps:$4 sm:$0xff]  }
 0x15f   :  { %881 = vmatpush1.bf16.msra.mxu0 %v5096_v52  ;;  %4721 = vmatpush3.bf16.msra.mxu1 %v5099_v53  ;;  %v5127_v52 = vld [vmem:[#allocation4 + $0x278] ss:$12 sps:$4 sm:$0xff]   ;;  %v5130_v53 = vld [vmem:[#allocation4 + $0x25c] ss:$12 sps:$4 sm:$0xff]  }
 0x160   :  { %4722 = vmatprep.subr.bf16.mxu1 %v5590_v0  ;;  %882 = vmatprep.subr.bf16.mxu0 %v5102_v54  ;;  %v5128_v54 = vld [vmem:[#allocation4 + $0x258] ss:$12 sps:$4 sm:$0xff]  }
 0x163   :  { %883 = vmatpush1.bf16.msra.mxu0 %v5100_v57  ;;  %4723 = vmatpush3.bf16.msra.mxu1 %v5103_v58  ;;  %v5131_v57 = vld [vmem:[#allocation4 + $0x260] ss:$12 sps:$4 sm:$0xff]   ;;  %v5134_v58 = vld [vmem:[#allocation4 + $0x244] ss:$12 sps:$4 sm:$0xff]  }
 0x164   :  { %4728 = vmatprep.subr.bf16.mxu1 %v5590_v0  ;;  %1142 = vmatprep.subr.bf16.mxu0 %v5106_v59  ;;  %v5132_v59 = vld [vmem:[#allocation4 + $0x240] ss:$12 sps:$4 sm:$0xff]  }
 0x206   :  { %v624_v60 = vpop.f32.mrf.mxu0  ;;  %v667_v61 = vpop.f32.mrf.mxu1 }
 0x207   :  { %v674_v4 = vrot.slane %v624_v60, 7  ;;  %v680_v5 = vrot.slane %v667_v61, 1  ;;  %v5135_v60 = vld [vmem:[#allocation4 + $0x248] ss:$12 sps:$4 sm:$0xff]   ;;  %v5138_v61 = vld [vmem:[#allocation4 + $0x3ac] ss:$12 sps:$4 sm:$0xff]  }
 0x208   :  { %v626_v62 = vpop.f32.mrf.mxu0  ;;  %v4706_v63 = vpop.f32.mrf.mxu1 }
 0x20a   :  { %v628_v2 = vpop.f32.mrf.mxu0  ;;  %v670_v3 = vpop.f32.mrf.mxu1 }
 0x20b   :  { %v675_v6 = vrot.slane %v628_v2, 7  ;;  %v681_v8 = vrot.slane %v670_v3, 1 }
 0x20c   :  { %v4707_v9 = vpop.f32.mrf.mxu1  ;;  %v630_v18 = vpop.f32.mrf.mxu0 }
 0x20d   :  { %v677_v13 = vsel %vm389_vm3, %v675_v6, %v674_v4  ;;  %v682_v14 = vsel %vm400_vm4, %v680_v5, %v681_v8  ;;  %v676_v15 = vsel %vm389_vm3, %v674_v4, %v675_v6  ;;  %v683_v16 = vsel %vm400_vm4, %v681_v8, %v680_v5 }
 0x20e   :  { %v678_v17 = vsel %vm5698_vm5, 0.0, %v677_v13  ;;  %v679_v19 = vsel %vm5702_vm6, 0.0, %v676_v15  ;;  %v684_v22 = vsel %vm5706_vm7, 0.0, %v682_v14  ;;  %v685_v23 = vsel %vm5710_vm8, 0.0, %v683_v16 }
 0x20f   :  { %v686_v20 = vadd.f32 %v678_v17, %v626_v62  ;;  %v687_v21 = vadd.f32 %v679_v19, %v630_v18 }
 0x211   :  { %v688_v25 = vadd.f32 %v686_v20, %v684_v22  ;;  %v689_v26 = vadd.f32 %v687_v21, %v685_v23 }
 0x213   :  { %v698_v27 = vadd.f32 %v4217_v24, %v688_v25  ;;  %v699_v28 = vadd.f32 %v4217_v24, %v689_v26  ;;  %v4242_v26 = vld [vmem:[#allocation6 + $0x2] ss:$0 sm:$0xff] }
 0x215   :  { %vm701_vm11 = vcmp.ge.f32.partialorder %v699_v28, 0.0  ;;  %v702_v29 = vmul.f32 0.2, %v698_v27  ;;  %v703_v30 = vmul.f32 0.2, %v699_v28  ;;  %vm700_vm12 = vcmp.ge.f32.partialorder %v698_v27, 0.0 }
 0x217   :  { %v704_v33 = vsel %vm700_vm12, %v698_v27, %v702_v29  ;;  %v705_v34 = vsel %vm701_vm11, %v699_v28, %v703_v30 }
 0x218   :  { %v706_v37 = vpack.c.bf16 %v705_v34, %v704_v33 }
 0x21a   :  { %901 = vmatmul.mubr.bf16.vlgmr.msra.gmra.mxu0 %v706_v37  ;;  %4725 = vmatmul.mubr.bf16.vlgmr.msra.gmra.mxu1 %v706_v37 }
 0x21b   :  { %1143 = vmatpush1.bf16.msra.mxu0 %v5104_v35  ;;  %4729 = vmatpush3.bf16.msra.mxu1 %v5107_v36  ;;  %v5136_v35 = vld [vmem:[#allocation4 + $0x3a8] ss:$12 sps:$4 sm:$0xff]   ;;  %v5139_v36 = vld [vmem:[#allocation4 + $0x3b0] ss:$12 sps:$4 sm:$0xff]  }
 0x21c   :  { %1144 = vmatprep.subr.bf16.mxu0 %v5110_v38  ;;  %4730 = vmatprep.subr.bf16.mxu1 %v5590_v0  ;;  %v5142_v38 = vld [vmem:[#allocation4 + $0x394] ss:$12 sps:$4 sm:$0xff]  }
 0x21d   :  { %1174 = vmatprep.mubr.bf16.mxu0 %v5592_v1  ;;  %4744 = vmatprep.mubr.msk.bf16.mxu1 %vm5591_vm0, %v5590_v0 }
 0x21f   :  { %1145 = vmatpush1.bf16.msra.mxu0 %v5108_v39  ;;  %4731 = vmatpush3.bf16.msra.mxu1 %v5111_v40  ;;  %v5140_v39 = vld [vmem:[#allocation4 + $0x390] ss:$12 sps:$4 sm:$0xff]   ;;  %v5143_v40 = vld [vmem:[#allocation4 + $0x398] ss:$12 sps:$4 sm:$0xff]  }
 0x220   :  { %1146 = vmatprep.subr.bf16.mxu0 %v5114_v41  ;;  %4732 = vmatprep.subr.bf16.mxu1 %v5590_v0  ;;  %v5146_v41 = vld [vmem:[#allocation4 + $0x37c] ss:$12 sps:$4 sm:$0xff]  }
 0x223   :  { %1147 = vmatpush1.bf16.msra.mxu0 %v5112_v42  ;;  %4733 = vmatpush3.bf16.msra.mxu1 %v5115_v43  ;;  %v5150_v42 = vld [vmem:[#allocation4 + $0x364] ss:$12 sps:$4 sm:$0xff]   ;;  %v5148_v43 = vld [vmem:[#allocation4 + $0x360] ss:$12 sps:$4 sm:$0xff]  }
 0x224   :  { %1148 = vmatprep.subr.bf16.mxu0 %v5118_v44  ;;  %4734 = vmatprep.subr.bf16.mxu1 %v5590_v0  ;;  %v5151_v44 = vld [vmem:[#allocation4 + $0x368] ss:$12 sps:$4 sm:$0xff]  }
 0x227   :  { %1149 = vmatpush1.bf16.msra.mxu0 %v5116_v45  ;;  %4735 = vmatpush3.bf16.msra.mxu1 %v5119_v46  ;;  %v5154_v45 = vld [vmem:[#allocation4 + $0x34c] ss:$12 sps:$4 sm:$0xff]   ;;  %v5152_v46 = vld [vmem:[#allocation4 + $0x348] ss:$12 sps:$4 sm:$0xff]  }
 0x228   :  { %4736 = vmatprep.subr.bf16.mxu1 %v5590_v0  ;;  %1150 = vmatprep.subr.bf16.mxu0 %v5122_v47  ;;  %v5155_v47 = vld [vmem:[#allocation4 + $0x350] ss:$12 sps:$4 sm:$0xff]  }
 0x22b   :  { %1151 = vmatpush1.bf16.msra.mxu0 %v5120_v48  ;;  %4737 = vmatpush3.bf16.msra.mxu1 %v5123_v49  ;;  %v5158_v48 = vld [vmem:[#allocation4 + $0x334] ss:$12 sps:$4 sm:$0xff]   ;;  %v5156_v49 = vld [vmem:[#allocation4 + $0x330] ss:$12 sps:$4 sm:$0xff]  }
 0x22c   :  { %4738 = vmatprep.subr.bf16.mxu1 %v5590_v0  ;;  %1152 = vmatprep.subr.bf16.mxu0 %v5126_v50  ;;  %v5159_v50 = vld [vmem:[#allocation4 + $0x338] ss:$12 sps:$4 sm:$0xff]  }
 0x22f   :  { %1153 = vmatpush1.bf16.msra.mxu0 %v5124_v51  ;;  %4739 = vmatpush3.bf16.msra.mxu1 %v5127_v52  ;;  %v5162_v51 = vld [vmem:[#allocation4 + $0x31c] ss:$12 sps:$4 sm:$0xff]   ;;  %v5160_v52 = vld [vmem:[#allocation4 + $0x318] ss:$12 sps:$4 sm:$0xff]  }
 0x230   :  { %4740 = vmatprep.subr.bf16.mxu1 %v5590_v0  ;;  %1154 = vmatprep.subr.bf16.mxu0 %v5130_v53  ;;  %v5163_v53 = vld [vmem:[#allocation4 + $0x320] ss:$12 sps:$4 sm:$0xff]  }
 0x233   :  { %1155 = vmatpush1.bf16.msra.mxu0 %v5128_v54  ;;  %4741 = vmatpush3.bf16.msra.mxu1 %v5131_v57  ;;  %v5166_v54 = vld [vmem:[#allocation4 + $0x304] ss:$12 sps:$4 sm:$0xff]   ;;  %v5164_v57 = vld [vmem:[#allocation4 + $0x300] ss:$12 sps:$4 sm:$0xff]  }
 0x234   :  { %4742 = vmatprep.subr.bf16.mxu1 %v5590_v0  ;;  %1156 = vmatprep.subr.bf16.mxu0 %v5134_v58  ;;  %v5167_v58 = vld [vmem:[#allocation4 + $0x308] ss:$12 sps:$4 sm:$0xff]  }
 0x237   :  { %1157 = vmatpush1.bf16.msra.mxu0 %v5132_v59  ;;  %4743 = vmatpush3.bf16.msra.mxu1 %v5135_v60  ;;  %v5170_v59 = vld [vmem:[#allocation4 + $0x46c] ss:$12 sps:$4 sm:$0xff]  }
 0x238   :  { %4748 = vmatprep.subr.bf16.mxu1 %v5590_v0  ;;  %1420 = vmatprep.subr.bf16.mxu0 %v5138_v61 }
 0x2da   :  { %v902_v62 = vpop.f32.mrf.mxu0  ;;  %v945_v63 = vpop.f32.mrf.mxu1 }
 0x2db   :  { %v952_v6 = vrot.slane %v902_v62, 7  ;;  %v958_v8 = vrot.slane %v945_v63, 1 }
 0x2dc   :  { %v904_v2 = vpop.f32.mrf.mxu0  ;;  %v4726_v3 = vpop.f32.mrf.mxu1 }
 0x2de   :  { %v906_v4 = vpop.f32.mrf.mxu0  ;;  %v948_v5 = vpop.f32.mrf.mxu1 }
 0x2df   :  { %v953_v9 = vrot.slane %v906_v4, 7  ;;  %v959_v13 = vrot.slane %v948_v5, 1 }
 0x2e0   :  { %v4727_v14 = vpop.f32.mrf.mxu1  ;;  %v908_v20 = vpop.f32.mrf.mxu0 }
 0x2e1   :  { %v955_v15 = vsel %vm389_vm3, %v953_v9, %v952_v6  ;;  %v960_v16 = vsel %vm400_vm4, %v958_v8, %v959_v13  ;;  %v954_v17 = vsel %vm389_vm3, %v952_v6, %v953_v9  ;;  %v961_v18 = vsel %vm400_vm4, %v959_v13, %v958_v8 }
 0x2e2   :  { %v956_v19 = vsel %vm5698_vm5, 0.0, %v955_v15  ;;  %v957_v21 = vsel %vm5702_vm6, 0.0, %v954_v17  ;;  %v962_v24 = vsel %vm5706_vm7, 0.0, %v960_v16  ;;  %v963_v25 = vsel %vm5710_vm8, 0.0, %v961_v18 }
 0x2e3   :  { %v964_v22 = vadd.f32 %v956_v19, %v904_v2  ;;  %v965_v23 = vadd.f32 %v957_v21, %v908_v20 }
 0x2e5   :  { %v966_v27 = vadd.f32 %v964_v22, %v962_v24  ;;  %v967_v28 = vadd.f32 %v965_v23, %v963_v25  ;;  %v4267_v24 = vld [vmem:[#allocation6 + $0x3] ss:$0 sm:$0xff] }
 0x2e7   :  { %v976_v29 = vadd.f32 %v4242_v26, %v966_v27  ;;  %v977_v30 = vadd.f32 %v4242_v26, %v967_v28 }
 0x2e9   :  { %v978_v33 = vadd.f32 %v976_v29, %v5730_v31  ;;  %v979_v34 = vadd.f32 %v977_v30, %v5732_v32  ;;  %v5144_v31 = vld [vmem:[#allocation4 + $0x378] ss:$12 sps:$4 sm:$0xff]   ;;  %v5147_v32 = vld [vmem:[#allocation4 + $0x380] ss:$12 sps:$4 sm:$0xff]  }
 0x2eb   :  { %v980_v37 = vpack.c.bf16 %v979_v34, %v978_v33 }
 0x2ed   :  { %1175 = vmatmul.mubr.bf16.vlgmr.msra.gmra.mxu0 %v980_v37  ;;  %4745 = vmatmul.mubr.bf16.vlgmr.msra.gmra.mxu1 %v980_v37 }
 0x2ee   :  { %1421 = vmatpush1.bf16.msra.mxu0 %v5136_v35  ;;  %4749 = vmatpush3.bf16.msra.mxu1 %v5139_v36  ;;  %v5168_v35 = vld [vmem:[#allocation4 + $0x468] ss:$12 sps:$4 sm:$0xff]   ;;  %v5171_v36 = vld [vmem:[#allocation4 + $0x470] ss:$12 sps:$4 sm:$0xff]  }
 0x2ef   :  { %1422 = vmatprep.subr.bf16.mxu0 %v5142_v38  ;;  %4750 = vmatprep.subr.bf16.mxu1 %v5590_v0  ;;  %v5174_v38 = vld [vmem:[#allocation4 + $0x454] ss:$12 sps:$4 sm:$0xff]  }
 0x2f0   :  { %1452 = vmatprep.mubr.bf16.mxu0 %v5592_v1  ;;  %4764 = vmatprep.mubr.msk.bf16.mxu1 %vm5591_vm0, %v5590_v0 }
 0x2f2   :  { %1423 = vmatpush1.bf16.msra.mxu0 %v5140_v39  ;;  %4751 = vmatpush3.bf16.msra.mxu1 %v5143_v40  ;;  %v5172_v39 = vld [vmem:[#allocation4 + $0x450] ss:$12 sps:$4 sm:$0xff]   ;;  %v5175_v40 = vld [vmem:[#allocation4 + $0x458] ss:$12 sps:$4 sm:$0xff]  }
 0x2f3   :  { %1424 = vmatprep.subr.bf16.mxu0 %v5146_v41  ;;  %4752 = vmatprep.subr.bf16.mxu1 %v5590_v0  ;;  %v5178_v41 = vld [vmem:[#allocation4 + $0x43c] ss:$12 sps:$4 sm:$0xff]  }
 0x2f6   :  { %1425 = vmatpush1.bf16.msra.mxu0 %v5144_v31  ;;  %4753 = vmatpush3.bf16.msra.mxu1 %v5147_v32  ;;  %v5176_v31 = vld [vmem:[#allocation4 + $0x438] ss:$12 sps:$4 sm:$0xff]   ;;  %v5179_v32 = vld [vmem:[#allocation4 + $0x440] ss:$12 sps:$4 sm:$0xff]  }
 0x2f7   :  { %4754 = vmatprep.subr.bf16.mxu1 %v5590_v0  ;;  %1426 = vmatprep.subr.bf16.mxu0 %v5150_v42  ;;  %v5182_v42 = vld [vmem:[#allocation4 + $0x424] ss:$12 sps:$4 sm:$0xff]  }
 0x2fa   :  { %1427 = vmatpush1.bf16.msra.mxu0 %v5148_v43  ;;  %4755 = vmatpush3.bf16.msra.mxu1 %v5151_v44  ;;  %v5180_v43 = vld [vmem:[#allocation4 + $0x420] ss:$12 sps:$4 sm:$0xff]   ;;  %v5183_v44 = vld [vmem:[#allocation4 + $0x428] ss:$12 sps:$4 sm:$0xff]  }
 0x2fb   :  { %4756 = vmatprep.subr.bf16.mxu1 %v5590_v0  ;;  %1428 = vmatprep.subr.bf16.mxu0 %v5154_v45  ;;  %v5186_v45 = vld [vmem:[#allocation4 + $0x40c] ss:$12 sps:$4 sm:$0xff]  }
 0x2fe   :  { %1429 = vmatpush1.bf16.msra.mxu0 %v5152_v46  ;;  %4757 = vmatpush3.bf16.msra.mxu1 %v5155_v47  ;;  %v5184_v46 = vld [vmem:[#allocation4 + $0x408] ss:$12 sps:$4 sm:$0xff]   ;;  %v5187_v47 = vld [vmem:[#allocation4 + $0x410] ss:$12 sps:$4 sm:$0xff]  }
 0x2ff   :  { %4758 = vmatprep.subr.bf16.mxu1 %v5590_v0  ;;  %1430 = vmatprep.subr.bf16.mxu0 %v5158_v48  ;;  %v5190_v48 = vld [vmem:[#allocation4 + $0x3f4] ss:$12 sps:$4 sm:$0xff]  }
 0x302   :  { %1431 = vmatpush1.bf16.msra.mxu0 %v5156_v49  ;;  %4759 = vmatpush3.bf16.msra.mxu1 %v5159_v50  ;;  %v5188_v49 = vld [vmem:[#allocation4 + $0x3f0] ss:$12 sps:$4 sm:$0xff]   ;;  %v5191_v50 = vld [vmem:[#allocation4 + $0x3f8] ss:$12 sps:$4 sm:$0xff]  }
 0x303   :  { %4760 = vmatprep.subr.bf16.mxu1 %v5590_v0  ;;  %1432 = vmatprep.subr.bf16.mxu0 %v5162_v51  ;;  %v5194_v51 = vld [vmem:[#allocation4 + $0x3dc] ss:$12 sps:$4 sm:$0xff]  }
 0x306   :  { %1433 = vmatpush1.bf16.msra.mxu0 %v5160_v52  ;;  %4761 = vmatpush3.bf16.msra.mxu1 %v5163_v53  ;;  %v5192_v52 = vld [vmem:[#allocation4 + $0x3d8] ss:$12 sps:$4 sm:$0xff]   ;;  %v5195_v53 = vld [vmem:[#allocation4 + $0x3e0] ss:$12 sps:$4 sm:$0xff]  }
 0x307   :  { %4762 = vmatprep.subr.bf16.mxu1 %v5590_v0  ;;  %1434 = vmatprep.subr.bf16.mxu0 %v5166_v54  ;;  %v5198_v54 = vld [vmem:[#allocation4 + $0x3c4] ss:$12 sps:$4 sm:$0xff]  }
 0x30a   :  { %1435 = vmatpush1.bf16.msra.mxu0 %v5164_v57  ;;  %4763 = vmatpush3.bf16.msra.mxu1 %v5167_v58  ;;  %v5196_v57 = vld [vmem:[#allocation4 + $0x3c0] ss:$12 sps:$4 sm:$0xff]   ;;  %v5199_v58 = vld [vmem:[#allocation4 + $0x3c8] ss:$12 sps:$4 sm:$0xff]  }
 0x30b   :  { %4768 = vmatprep.subr.bf16.mxu1 %v5590_v0  ;;  %1698 = vmatprep.subr.bf16.mxu0 %v5170_v59 }
 0x3ad   :  { %v1176_v60 = vpop.f32.mrf.mxu0  ;;  %v1219_v61 = vpop.f32.mrf.mxu1 }
 0x3ae   :  { %v1226_v4 = vrot.slane %v1176_v60, 7  ;;  %v1232_v5 = vrot.slane %v1219_v61, 1 }
 0x3af   :  { %v1178_v62 = vpop.f32.mrf.mxu0  ;;  %v4746_v63 = vpop.f32.mrf.mxu1 }
 0x3b1   :  { %v1180_v2 = vpop.f32.mrf.mxu0  ;;  %v1222_v3 = vpop.f32.mrf.mxu1 }
 0x3b2   :  { %v1227_v6 = vrot.slane %v1180_v2, 7  ;;  %v1233_v8 = vrot.slane %v1222_v3, 1 }
 0x3b3   :  { %v4747_v9 = vpop.f32.mrf.mxu1  ;;  %v1182_v18 = vpop.f32.mrf.mxu0 }
 0x3b4   :  { %v1229_v13 = vsel %vm389_vm3, %v1227_v6, %v1226_v4  ;;  %v1234_v14 = vsel %vm400_vm4, %v1232_v5, %v1233_v8  ;;  %v1228_v15 = vsel %vm389_vm3, %v1226_v4, %v1227_v6  ;;  %v1235_v16 = vsel %vm400_vm4, %v1233_v8, %v1232_v5 }
 0x3b5   :  { %v1230_v17 = vsel %vm5698_vm5, 0.0, %v1229_v13  ;;  %v1231_v19 = vsel %vm5702_vm6, 0.0, %v1228_v15  ;;  %v1236_v22 = vsel %vm5706_vm7, 0.0, %v1234_v14  ;;  %v1237_v23 = vsel %vm5710_vm8, 0.0, %v1235_v16 }
 0x3b6   :  { %v1238_v20 = vadd.f32 %v1230_v17, %v1178_v62  ;;  %v1239_v21 = vadd.f32 %v1231_v19, %v1182_v18 }
 0x3b8   :  { %v1240_v25 = vadd.f32 %v1238_v20, %v1236_v22  ;;  %v1241_v26 = vadd.f32 %v1239_v21, %v1237_v23  ;;  %v4292_v23 = vld [vmem:[#allocation6 + $0x4] ss:$0 sm:$0xff] }
 0x3ba   :  { %v1250_v27 = vadd.f32 %v4267_v24, %v1240_v25  ;;  %v1251_v28 = vadd.f32 %v4267_v24, %v1241_v26 }
 0x3bc   :  { %vm1253_vm13 = vcmp.ge.f32.partialorder %v1251_v28, 0.0  ;;  %v1254_v29 = vmul.f32 0.2, %v1250_v27  ;;  %v1255_v30 = vmul.f32 0.2, %v1251_v28  ;;  %vm1252_vm14 = vcmp.ge.f32.partialorder %v1250_v27, 0.0 }
 0x3be   :  { %v5819_v33 = vsel %vm1252_vm14, %v1250_v27, %v1254_v29  ;;  %v5821_v34 = vsel %vm1253_vm13, %v1251_v28, %v1255_v30 }
 0x3bf   :  { %v1258_v37 = vpack.c.bf16 %v5821_v34, %v5819_v33 }
 0x3c1   :  { %1453 = vmatmul.mubr.bf16.vlgmr.msra.gmra.mxu0 %v1258_v37  ;;  %4765 = vmatmul.mubr.bf16.vlgmr.msra.gmra.mxu1 %v1258_v37 }
 0x3c2   :  { %1699 = vmatpush1.bf16.msra.mxu0 %v5168_v35  ;;  %4769 = vmatpush3.bf16.msra.mxu1 %v5171_v36  ;;  %v5200_v36 = vld [vmem:[#allocation9 + $0x38] sm:$0xff]  }
 0x3c3   :  { %1700 = vmatprep.subr.bf16.mxu0 %v5174_v38  ;;  %4770 = vmatprep.subr.bf16.mxu1 %v5590_v0  ;;  %v5201_v38 = vld [vmem:[#allocation9 + $0x30] sm:$0xff]  }
 0x3c4   :  { %1730 = vmatprep.mubr.bf16.mxu0 %v5592_v1  ;;  %4784 = vmatprep.mubr.msk.bf16.mxu1 %vm5591_vm0, %v5590_v0 }
 0x3c6   :  { %1701 = vmatpush1.bf16.msra.mxu0 %v5172_v39  ;;  %4771 = vmatpush3.bf16.msra.mxu1 %v5175_v40  ;;  %v5202_v39 = vld [vmem:[#allocation9 + $0x28] sm:$0xff]   ;;  %v5203_v40 = vld [vmem:[#allocation9 + $0x20] sm:$0xff]  }
 0x3c7   :  { %1702 = vmatprep.subr.bf16.mxu0 %v5178_v41  ;;  %4772 = vmatprep.subr.bf16.mxu1 %v5590_v0  ;;  %v5204_v41 = vld [vmem:[#allocation9 + $0x18] sm:$0xff]  }
 0x3ca   :  { %1703 = vmatpush1.bf16.msra.mxu0 %v5176_v31  ;;  %4773 = vmatpush3.bf16.msra.mxu1 %v5179_v32  ;;  %v5205_v31 = vld [vmem:[#allocation9 + $0x10] sm:$0xff]   ;;  %v5206_v32 = vld [vmem:[#allocation9 + $0x8] sm:$0xff]  }
 0x3cb   :  { %4774 = vmatprep.subr.bf16.mxu1 %v5590_v0  ;;  %1704 = vmatprep.subr.bf16.mxu0 %v5182_v42  ;;  %v5207_v42 = vld [vmem:[#allocation9] sm:$0xff]  }
 0x3ce   :  { %1705 = vmatpush1.bf16.msra.mxu0 %v5180_v43  ;;  %4775 = vmatpush3.bf16.msra.mxu1 %v5183_v44 }
 0x3cf   :  { %4776 = vmatprep.subr.bf16.mxu1 %v5590_v0  ;;  %1706 = vmatprep.subr.bf16.mxu0 %v5186_v45 }
 0x3d2   :  { %1707 = vmatpush1.bf16.msra.mxu0 %v5184_v46  ;;  %4777 = vmatpush3.bf16.msra.mxu1 %v5187_v47 }
 0x3d3   :  { %4778 = vmatprep.subr.bf16.mxu1 %v5590_v0  ;;  %1708 = vmatprep.subr.bf16.mxu0 %v5190_v48 }
 0x3d6   :  { %1709 = vmatpush1.bf16.msra.mxu0 %v5188_v49  ;;  %4779 = vmatpush3.bf16.msra.mxu1 %v5191_v50 }
 0x3d7   :  { %4780 = vmatprep.subr.bf16.mxu1 %v5590_v0  ;;  %1710 = vmatprep.subr.bf16.mxu0 %v5194_v51 }
 0x3da   :  { %1711 = vmatpush1.bf16.msra.mxu0 %v5192_v52  ;;  %4781 = vmatpush3.bf16.msra.mxu1 %v5195_v53 }
 0x3db   :  { %4782 = vmatprep.subr.bf16.mxu1 %v5590_v0  ;;  %1712 = vmatprep.subr.bf16.mxu0 %v5198_v54 }
 0x3de   :  { %1713 = vmatpush1.bf16.msra.mxu0 %v5196_v57  ;;  %4783 = vmatpush3.bf16.msra.mxu1 %v5199_v58 }
 0x3df   :  { %4788 = vmatprep.subr.bf16.mxu0 %v5590_v0  ;;  %4808 = vmatprep.subr.bf16.mxu1 %v5590_v0 }
 0x481   :  { %v1454_v59 = vpop.f32.mrf.mxu0  ;;  %v1497_v60 = vpop.f32.mrf.mxu1 }
 0x482   :  { %v1504_v3 = vrot.slane %v1454_v59, 7  ;;  %v1510_v4 = vrot.slane %v1497_v60, 1 }
 0x483   :  { %v1456_v61 = vpop.f32.mrf.mxu0  ;;  %v4766_v62 = vpop.f32.mrf.mxu1 }
 0x485   :  { %v1458_v63 = vpop.f32.mrf.mxu0  ;;  %v1500_v2 = vpop.f32.mrf.mxu1 }
 0x486   :  { %v1505_v5 = vrot.slane %v1458_v63, 7  ;;  %v1511_v6 = vrot.slane %v1500_v2, 1 }
 0x487   :  { %v4767_v8 = vpop.f32.mrf.mxu1  ;;  %v1460_v17 = vpop.f32.mrf.mxu0 }
 0x488   :  { %v1507_v9 = vsel %vm389_vm3, %v1505_v5, %v1504_v3  ;;  %v1512_v13 = vsel %vm400_vm4, %v1510_v4, %v1511_v6  ;;  %v1506_v14 = vsel %vm389_vm3, %v1504_v3, %v1505_v5  ;;  %v1513_v15 = vsel %vm400_vm4, %v1511_v6, %v1510_v4  ;;  %v4317_v5 = vld [vmem:[#allocation6 + $0x5] ss:$0 sm:$0xff] }
 0x489   :  { %v1508_v16 = vsel %vm5698_vm5, 0.0, %v1507_v9  ;;  %v1509_v18 = vsel %vm5702_vm6, 0.0, %v1506_v14  ;;  %v1514_v21 = vsel %vm5706_vm7, 0.0, %v1512_v13  ;;  %v1515_v22 = vsel %vm5710_vm8, 0.0, %v1513_v15 }
 0x48a   :  { %v1516_v19 = vadd.f32 %v1508_v16, %v1456_v61  ;;  %v1517_v20 = vadd.f32 %v1509_v18, %v1460_v17  ;;  %v4326_v18 = vld [vmem:[#allocation10] ss:$0 sm:$0xff] }
 0x48c   :  { %v1518_v24 = vadd.f32 %v1516_v19, %v1514_v21  ;;  %v1519_v25 = vadd.f32 %v1517_v20, %v1515_v22 }
 0x48e   :  { %v1528_v26 = vadd.f32 %v4292_v23, %v1518_v24  ;;  %v1529_v27 = vadd.f32 %v4292_v23, %v1519_v25 }
 0x490   :  { %vm1531_vm15 = vcmp.ge.f32.partialorder %v1529_v27, 0.0  ;;  %v1532_v28 = vmul.f32 0.2, %v1528_v26  ;;  %v1533_v29 = vmul.f32 0.2, %v1529_v27  ;;  %vm1530_vm1 = vcmp.ge.f32.partialorder %v1528_v26, 0.0 }
 0x492   :  { %v1534_v30 = vsel %vm1530_vm1, %v1528_v26, %v1532_v28  ;;  %v1535_v35 = vsel %vm1531_vm15, %v1529_v27, %v1533_v29  ;;  %vm2207_vm15 = vcmask 1040384  }
 0x493   :  { %v1536_v37 = vpack.c.bf16 %v1535_v35, %v1534_v30 }
 0x495   :  { %1731 = vmatmul.mubr.bf16.vlgmr.msra.gmra.mxu0 %v1536_v37  ;;  %4785 = vmatmul.mubr.bf16.vlgmr.msra.gmra.mxu1 %v1536_v37  ;;  %v5208_v37 = vld [vmem:[#allocation7 + $0x78] sm:$0xff]  }
 0x496   :  { %4789 = vmatpush3.bf16.msra.mxu0 %v5200_v36  ;;  %4804 = vmatprep.mubr.msk.bf16.mxu0 %vm5591_vm0, %v5590_v0 }
 0x497   :  { %4790 = vmatprep.subr.bf16.mxu0 %v5590_v0  ;;  %4824 = vmatprep.mubr.msk.bf16.mxu1 %vm5591_vm0, %v5590_v0 }
 0x498   :  { %4809 = vmatpush3.bf16.msra.mxu1 %v5208_v37  ;;  %v5247_v37 = vld [vmem:[#allocation4 + $0x4b8] ss:$12 sps:$4 sm:$0xff]  }
 0x499   :  { %4810 = vmatprep.subr.bf16.mxu1 %v5590_v0 }
 0x49a   :  { %4791 = vmatpush3.bf16.msra.mxu0 %v5201_v38  ;;  %v5209_v38 = vld [vmem:[#allocation7 + $0x38] sm:$0xff]  }
 0x49b   :  { %4792 = vmatprep.subr.bf16.mxu0 %v5590_v0 }
 0x49e   :  { %4793 = vmatpush3.bf16.msra.mxu0 %v5202_v39  ;;  %v5211_v39 = vld [vmem:[#allocation7 + $0x30] sm:$0xff]  }
 0x49f   :  { %4794 = vmatprep.subr.bf16.mxu0 %v5590_v0 }
 0x4a2   :  { %4795 = vmatpush3.bf16.msra.mxu0 %v5203_v40  ;;  %v5212_v40 = vld [vmem:[#allocation7 + $0x68] sm:$0xff]  }
 0x4a3   :  { %4796 = vmatprep.subr.bf16.mxu0 %v5590_v0 }
 0x4a6   :  { %4797 = vmatpush3.bf16.msra.mxu0 %v5204_v41  ;;  %v5213_v41 = vld [vmem:[#allocation7 + $0x28] sm:$0xff]  }
 0x4a7   :  { %4798 = vmatprep.subr.bf16.mxu0 %v5590_v0 }
 0x4aa   :  { %4799 = vmatpush3.bf16.msra.mxu0 %v5205_v31  ;;  %v5214_v31 = vld [vmem:[#allocation7 + $0x60] sm:$0xff]  }
 0x4ab   :  { %4800 = vmatprep.subr.bf16.mxu0 %v5590_v0 }
 0x4ae   :  { %4801 = vmatpush3.bf16.msra.mxu0 %v5206_v32  ;;  %v5215_v32 = vld [vmem:[#allocation7 + $0x20] sm:$0xff]  }
 0x4af   :  { %4802 = vmatprep.subr.bf16.mxu0 %v5590_v0 }
 0x4b2   :  { %4803 = vmatpush3.bf16.msra.mxu0 %v5207_v42  ;;  %v5216_v42 = vld [vmem:[#allocation7 + $0x58] sm:$0xff]  }
 0x4b3   :  { %4828 = vmatprep.subr.bf16.mxu0 %v5590_v0 }
 0x555   :  { %v1732_v43 = vpop.f32.mrf.mxu0  ;;  %v1775_v44 = vpop.f32.mrf.mxu1 }
 0x556   :  { %v1782_v49 = vrot.slane %v1732_v43, 7  ;;  %v1788_v50 = vrot.slane %v1775_v44, 1  ;;  %v5217_v43 = vld [vmem:[#allocation7 + $0x18] sm:$0xff]   ;;  %v5218_v44 = vld [vmem:[#allocation7 + $0x50] sm:$0xff]  }
 0x557   :  { %v1734_v45 = vpop.f32.mrf.mxu0  ;;  %v4786_v46 = vpop.f32.mrf.mxu1 }
 0x559   :  { %v1736_v47 = vpop.f32.mrf.mxu0  ;;  %v1778_v48 = vpop.f32.mrf.mxu1 }
 0x55a   :  { %v1783_v51 = vrot.slane %v1736_v47, 7  ;;  %v1789_v52 = vrot.slane %v1778_v48, 1 }
 0x55b   :  { %v4787_v53 = vpop.f32.mrf.mxu1  ;;  %v1738_v61 = vpop.f32.mrf.mxu0 }
 0x55c   :  { %v1785_v54 = vsel %vm389_vm3, %v1783_v51, %v1782_v49  ;;  %v1790_v57 = vsel %vm400_vm4, %v1788_v50, %v1789_v52  ;;  %v1784_v58 = vsel %vm389_vm3, %v1782_v49, %v1783_v51  ;;  %v1791_v59 = vsel %vm400_vm4, %v1789_v52, %v1788_v50 }
 0x55d   :  { %v1786_v60 = vsel %vm5698_vm5, 0.0, %v1785_v54  ;;  %v1787_v62 = vsel %vm5702_vm6, 0.0, %v1784_v58  ;;  %v1792_v3 = vsel %vm5706_vm7, 0.0, %v1790_v57  ;;  %v1793_v4 = vsel %vm5710_vm8, 0.0, %v1791_v59  ;;  %v5220_v54 = vld [vmem:[#allocation7 + $0x48] sm:$0xff]   ;;  %v5222_v58 = vld [vmem:[#allocation7 + $0x40] sm:$0xff]  }
 0x55e   :  { %v1794_v63 = vadd.f32 %v1786_v60, %v1734_v45  ;;  %v1795_v2 = vadd.f32 %v1787_v62, %v1738_v61  ;;  %v5219_v45 = vld [vmem:[#allocation7 + $0x10] sm:$0xff]   ;;  %v5221_v57 = vld [vmem:[#allocation7 + $0x8] sm:$0xff]   ;;  %v5223_v59 = vld [vmem:[#allocation7] sm:$0xff]  }
 0x55f   :  { %v5226_v60 = vld [vmem:[#allocation4 + $0x52c] ss:$12 sps:$4 sm:$0xff]  }
 0x560   :  { %v1796_v6 = vadd.f32 %v1794_v63, %v1792_v3  ;;  %v1797_v8 = vadd.f32 %v1795_v2, %v1793_v4 }
 0x562   :  { %v1806_v9 = vadd.f32 %v4317_v5, %v1796_v6  ;;  %v1807_v13 = vadd.f32 %v4317_v5, %v1797_v8 }
 0x564   :  { %v5882_v14 = vadd.f32 %v1806_v9, %v5819_v33  ;;  %v5885_v15 = vadd.f32 %v1807_v13, %v5821_v34  ;;  %v5892_v34 = vand.u32 127, %v106_v55  ;;  %v5210_v55 = vld [vmem:[#allocation7 + $0x70] sm:$0xff]   ;;  %v5224_v13 = vld [vmem:[#allocation4 + $0x528] ss:$12 sps:$4 sm:$0xff]  }
 0x565   :  { %4811 = vmatpush3.bf16.msra.mxu1 %v5210_v55  ;;  %v5248_v55 = vld [vmem:[#allocation4 + $0x498] ss:$12 sps:$4 sm:$0xff]  }
 0x566   :  { %v1810_v16 = vpack.c.bf16 %v5885_v15, %v5882_v14  ;;  %4812 = vmatprep.subr.bf16.mxu1 %v5590_v0 }
 0x568   :  { %4805 = vmatmul.mubr.bf16.vlgmr.msra.gmra.mxu0 %v1810_v16  ;;  %v5227_v16 = vld [vmem:[#allocation4 + $0x530] ss:$12 sps:$4 sm:$0xff]  }
 0x569   :  { %4844 = vmatprep.mubr.msk.bf16.mxu0 %vm5591_vm0, %v5590_v0  ;;  %4829 = vmatpush3.bf16.msra.mxu0 %v5209_v38  ;;  %v5250_v38 = vld [vmem:[#allocation4 + $0x49c] ss:$12 sps:$4 sm:$0xff]  }
 0x56a   :  { %4830 = vmatprep.subr.bf16.mxu0 %v5590_v0  ;;  %4813 = vmatpush3.bf16.msra.mxu1 %v5212_v40  ;;  %v5254_v40 = vld [vmem:[#allocation4 + $0x484] ss:$12 sps:$4 sm:$0xff]  }
 0x56b   :  { %4814 = vmatprep.subr.bf16.mxu1 %v5590_v0 }
 0x56d   :  { %4831 = vmatpush3.bf16.msra.mxu0 %v5211_v39  ;;  %v5251_v39 = vld [vmem:[#allocation4 + $0x4a0] ss:$12 sps:$4 sm:$0xff]  }
 0x56e   :  { %4832 = vmatprep.subr.bf16.mxu0 %v5590_v0  ;;  %4815 = vmatpush3.bf16.msra.mxu1 %v5214_v31  ;;  %v5255_v31 = vld [vmem:[#allocation4 + $0x488] ss:$12 sps:$4 sm:$0xff]  }
 0x56f   :  { %4816 = vmatprep.subr.bf16.mxu1 %v5590_v0 }
 0x571   :  { %4833 = vmatpush3.bf16.msra.mxu0 %v5213_v41  ;;  %v5252_v41 = vld [vmem:[#allocation4 + $0x480] ss:$12 sps:$4 sm:$0xff]  }
 0x572   :  { %4834 = vmatprep.subr.bf16.mxu0 %v5590_v0  ;;  %4817 = vmatpush3.bf16.msra.mxu1 %v5216_v42 }
 0x573   :  { %4818 = vmatprep.subr.bf16.mxu1 %v5590_v0 }
 0x575   :  { %4835 = vmatpush3.bf16.msra.mxu0 %v5215_v32 }
 0x576   :  { %4836 = vmatprep.subr.bf16.mxu0 %v5590_v0  ;;  %4819 = vmatpush3.bf16.msra.mxu1 %v5218_v44 }
 0x577   :  { %4820 = vmatprep.subr.bf16.mxu1 %v5590_v0 }
 0x579   :  { %4837 = vmatpush3.bf16.msra.mxu0 %v5217_v43 }
 0x57a   :  { %4838 = vmatprep.subr.bf16.mxu0 %v5590_v0  ;;  %4821 = vmatpush3.bf16.msra.mxu1 %v5220_v54 }
 0x57b   :  { %4822 = vmatprep.subr.bf16.mxu1 %v5590_v0 }
 0x57d   :  { %4839 = vmatpush3.bf16.msra.mxu0 %v5219_v45 }
 0x57e   :  { %4840 = vmatprep.subr.bf16.mxu0 %v5590_v0  ;;  %4823 = vmatpush3.bf16.msra.mxu1 %v5222_v58 }
 0x57f   :  { %2372 = vmatprep.subr.bf16.mxu1 %v5226_v60  ;;  %v5259_v60 = vld [vmem:[#allocation4 + $0x5f0] ss:$12 sps:$4 sm:$0xff]  }
 0x581   :  { %4841 = vmatpush3.bf16.msra.mxu0 %v5221_v57 }
 0x582   :  { %4842 = vmatprep.subr.bf16.mxu0 %v5590_v0 }
 0x585   :  { %4843 = vmatpush3.bf16.msra.mxu0 %v5223_v59  ;;  %v5258_v59 = vld [vmem:[#allocation4 + $0x5ec] ss:$12 sps:$4 sm:$0xff]  }
 0x586   :  { %4848 = vmatprep.subr.bf16.mxu0 %v5590_v0 }
 0x628   :  { %v1909_v17 = vpop.f32.mrf.mxu0 }
 0x629   :  { %v1917_v19 = vmul.f32 2.0, %v1909_v17  ;;  %v5230_v17 = vld [vmem:[#allocation4 + $0x514] ss:$12 sps:$4 sm:$0xff]  }
 0x62a   :  { %v4806_v20 = vpop.f32.mrf.mxu0 }
 0x62b   :  { %v1925_v21 = vsub.f32 %v4326_v18, %v1917_v19 }
 0x62c   :  { %v1912_v22 = vpop.f32.mrf.mxu0 }
 0x62d   :  { %v1918_v23 = vmul.f32 2.0, %v1912_v22  ;;  %1929 = vmin.xlane.f32.xlu0 %v1925_v21  ;;  %v5228_v22 = vld [vmem:[#allocation4 + $0x510] ss:$12 sps:$4 sm:$0xff]  }
 0x62e   :  { %v4807_v33 = vpop.f32.mrf.mxu0 }
 0x62f   :  { %v1926_v24 = vsub.f32 %v4326_v18, %v1918_v23  ;;  %v5231_v23 = vld [vmem:[#allocation4 + $0x518] ss:$12 sps:$4 sm:$0xff]   ;;  %v5234_v33 = vld [vmem:[#allocation4 + $0x4fc] ss:$12 sps:$4 sm:$0xff]  }
 0x631   :  { %1931 = vmin.xlane.f32.xlu0 %v1926_v24 }
 0x6b6   :  { %v1930_v25 = vpop.xlane.xlu0 %1929 }
 0x6b7   :  { %vm1933_vm2 = vcmp.eq.f32.partialorder %v1925_v21, %v1930_v25  ;;  %v5593_v21 = vmov 1.0|1.0   ;;  %v5238_v25 = vld [vmem:[#allocation4 + $0x4e4] ss:$12 sps:$4 sm:$0xff]  }
 0x6b8   :  { %v1935_v26 = vsel %vm1933_vm2, %v5892_v34, 128 }
 0x6b9   :  { %v1938_v27 = vshra.s32 %v1935_v26, 16  ;;  %v1937_v46 = vand.u32 65535, %v1935_v26  ;;  %v5236_v26 = vld [vmem:[#allocation4 + $0x4e0] ss:$12 sps:$4 sm:$0xff]  }
 0x6ba   :  { %v1932_v28 = vpop.xlane.xlu0 %1931 }
 0x6bb   :  { %vm1934_vm9 = vcmp.eq.f32.partialorder %v1926_v24, %v1932_v28  ;;  %v1940_v29 = vcvt.s32.f32 %v1938_v27  ;;  %v1939_v49 = vcvt.s32.f32 %v1937_v46  ;;  %v5232_v24 = vld [vmem:[#allocation4 + $0x4f8] ss:$12 sps:$4 sm:$0xff]   ;;  %v5239_v27 = vld [vmem:[#allocation4 + $0x4e8] ss:$12 sps:$4 sm:$0xff]  }
 0x6bc   :  { %v1936_v30 = vsel %vm1934_vm9, %v5892_v34, 128  ;;  %v5242_v28 = vld [vmem:[#allocation4 + $0x4cc] ss:$12 sps:$4 sm:$0xff]  }
 0x6bd   :  { %1941 = vmin.xlane.f32.xlu1 %v1940_v29  ;;  %v1952_v35 = vshra.s32 %v1936_v30, 16  ;;  %v1951_v47 = vand.u32 65535, %v1936_v30  ;;  %v5243_v30 = vld [vmem:[#allocation4 + $0x4d0] ss:$12 sps:$4 sm:$0xff]  }
 0x6bf   :  { %v1954_v36 = vcvt.s32.f32 %v1952_v35  ;;  %v1953_v52 = vcvt.s32.f32 %v1951_v47  ;;  %v5246_v35 = vld [vmem:[#allocation4 + $0x4b4] ss:$12 sps:$4 sm:$0xff]  }
 0x6c1   :  { %1955 = vmin.xlane.f32.xlu1 %v1954_v36 }
 0x746   :  { %v1942_v48 = vpop.xlane.xlu1 %1941 }
 0x747   :  { %vm1943_vm10 = vcmp.eq.f32.partialorder %v1940_v29, %v1942_v48  ;;  %v1948_v61 = vcvt.f32.s32 %v1942_v48  ;;  %v5240_v29 = vld [vmem:[#allocation4 + $0x4c8] ss:$12 sps:$4 sm:$0xff]  }
 0x748   :  { %v1944_v50 = vsel %vm1943_vm10, %v1939_v49, inf }
 0x749   :  { %1945 = vmin.xlane.f32.xlu0 %v1944_v50  ;;  %v1949_v63 = vshll.u32 %v1948_v61, 16  ;;  %v5262_v61 = vld [vmem:[#allocation4 + $0x5d4] ss:$12 sps:$4 sm:$0xff]  }
 0x74a   :  { %v1956_v51 = vpop.xlane.xlu1 %1955 }
 0x74b   :  { %vm1957_vm11 = vcmp.eq.f32.partialorder %v1954_v36, %v1956_v51  ;;  %v1962_v2 = vcvt.f32.s32 %v1956_v51  ;;  %v5244_v36 = vld [vmem:[#allocation4 + $0x4b0] ss:$12 sps:$4 sm:$0xff]  }
 0x74c   :  { %v1958_v53 = vsel %vm1957_vm11, %v1953_v52, inf }
 0x74d   :  { %1959 = vmin.xlane.f32.xlu1 %v1958_v53  ;;  %v1963_v6 = vshll.u32 %v1962_v2, 16  ;;  %v5267_v2 = vld [vmem:[#allocation4 + $0x5c0] ss:$12 sps:$4 sm:$0xff]  }
 0x7d2   :  { %v1946_v62 = vpop.xlane.xlu0 %1945 }
 0x7d3   :  { %v1947_v3 = vcvt.f32.s32 %v1946_v62  ;;  %v5260_v62 = vld [vmem:[#allocation4 + $0x5d0] ss:$12 sps:$4 sm:$0xff]  }
 0x7d5   :  { %v1950_v4 = vadd.s32 %v1949_v63, %v1947_v3  ;;  %v5266_v63 = vld [vmem:[#allocation4 + $0x5bc] ss:$12 sps:$4 sm:$0xff]   ;;  %v5264_v3 = vld [vmem:[#allocation4 + $0x5b8] ss:$12 sps:$4 sm:$0xff]  }
 0x7d6   :  { %v1960_v5 = vpop.xlane.xlu1 %1959 }
 0x7d7   :  { %v1961_v8 = vcvt.f32.s32 %v1960_v5  ;;  %vm1965_vm12 = vcmp.eq.s32.totalorder %v5892_v34, %v1950_v4  ;;  %v5270_v4 = vld [vmem:[#allocation4 + $0x5a4] ss:$12 sps:$4 sm:$0xff]   ;;  %v5268_v5 = vld [vmem:[#allocation4 + $0x5a0] ss:$12 sps:$4 sm:$0xff]  }
 0x7d8   :  { %v4327_v18 = vsel %vm1965_vm12, 1.0, %v5590_v0 }
 0x7d9   :  { %v1964_v9 = vadd.s32 %v1963_v6, %v1961_v8  ;;  %v5271_v6 = vld [vmem:[#allocation4 + $0x5a8] ss:$12 sps:$4 sm:$0xff]   ;;  %v5274_v8 = vld [vmem:[#allocation4 + $0x58c] ss:$12 sps:$4 sm:$0xff]  }
 0x7db   :  { %vm1966_vm13 = vcmp.eq.s32.totalorder %v5892_v34, %v1964_v9  ;;  %v5235_v34 = vld [vmem:[#allocation4 + $0x500] ss:$12 sps:$4 sm:$0xff]   ;;  %v5272_v9 = vld [vmem:[#allocation4 + $0x588] ss:$12 sps:$4 sm:$0xff]  }
 0x7dc   :  { %v4328_v19 = vsel %vm1966_vm13, 1.0, %v5590_v0  ;;  %vm4337_vm14 = vmpackc.low %vm1966_vm13, %vm1965_vm12 }
 0x7dd   :  { %v5915_v20 = vadd.f32 %v4328_v19, %v4327_v18  ;;  %4825 = vmatmul.mubr.msk.bf16.vlgmr.msra.gmra.mxu1 %vm4337_vm14, %v5593_v21  ;;  %4845 = vmatmul.mubr.msk.bf16.vlgmr.msra.gmra.mxu0 %vm4337_vm14, %v5593_v21  ;;  %v5279_v18 = vld [vmem:[#allocation4 + $0x578] ss:$12 sps:$4 sm:$0xff]   ;;  %v5282_v19 = vld [vmem:[#allocation4 + $0x55c] ss:$12 sps:$4 sm:$0xff]  }
 0x7de   :  { %2373 = vmatpush1.bf16.msra.mxu1 %v5224_v13  ;;  %4849 = vmatpush3.bf16.msra.mxu0 %v5227_v16  ;;  %v5275_v13 = vld [vmem:[#allocation4 + $0x590] ss:$12 sps:$4 sm:$0xff]   ;;  %v5278_v16 = vld [vmem:[#allocation4 + $0x574] ss:$12 sps:$4 sm:$0xff]   ;;  %v5280_v21 = vld [vmem:[#allocation4 + $0x558] ss:$12 sps:$4 sm:$0xff]  }
 0x7df   :  { %2374 = vmatprep.subr.bf16.mxu1 %v5230_v17  ;;  %4850 = vmatprep.subr.bf16.mxu0 %v5590_v0  ;;  %v5276_v17 = vld [vmem:[#allocation4 + $0x570] ss:$12 sps:$4 sm:$0xff]  }
 0x7e0   :  { %2404 = vmatprep.mubr.bf16.mxu1 %v5592_v1  ;;  %4864 = vmatprep.mubr.msk.bf16.mxu0 %vm5591_vm0, %v5590_v0 }
 0x7e2   :  { %2375 = vmatpush1.bf16.msra.mxu1 %v5228_v22  ;;  %4851 = vmatpush3.bf16.msra.mxu0 %v5231_v23  ;;  %v5283_v22 = vld [vmem:[#allocation4 + $0x560] ss:$12 sps:$4 sm:$0xff]   ;;  %v5286_v23 = vld [vmem:[#allocation4 + $0x544] ss:$12 sps:$4 sm:$0xff]  }
 0x7e3   :  { %2376 = vmatprep.subr.bf16.mxu1 %v5234_v33  ;;  %4852 = vmatprep.subr.bf16.mxu0 %v5590_v0  ;;  %v5284_v33 = vld [vmem:[#allocation4 + $0x540] ss:$12 sps:$4 sm:$0xff]  }
 0x7e6   :  { %2377 = vmatpush1.bf16.msra.mxu1 %v5232_v24  ;;  %4853 = vmatpush3.bf16.msra.mxu0 %v5235_v34  ;;  %v5287_v24 = vld [vmem:[#allocation4 + $0x548] ss:$12 sps:$4 sm:$0xff]   ;;  %v5290_v34 = vld [vmem:[#allocation4 + $0x6ac] ss:$12 sps:$4 sm:$0xff]  }
 0x7e7   :  { %2378 = vmatprep.subr.bf16.mxu1 %v5238_v25  ;;  %4854 = vmatprep.subr.bf16.mxu0 %v5590_v0 }
 0x7ea   :  { %2379 = vmatpush1.bf16.msra.mxu1 %v5236_v26  ;;  %4855 = vmatpush3.bf16.msra.mxu0 %v5239_v27 }
 0x7eb   :  { %2380 = vmatprep.subr.bf16.mxu1 %v5242_v28  ;;  %4856 = vmatprep.subr.bf16.mxu0 %v5590_v0 }
 0x7ee   :  { %2381 = vmatpush1.bf16.msra.mxu1 %v5240_v29  ;;  %4857 = vmatpush3.bf16.msra.mxu0 %v5243_v30 }
 0x7ef   :  { %2382 = vmatprep.subr.bf16.mxu1 %v5246_v35  ;;  %4858 = vmatprep.subr.bf16.mxu0 %v5590_v0 }
 0x7f2   :  { %2383 = vmatpush1.bf16.msra.mxu1 %v5244_v36  ;;  %4859 = vmatpush3.bf16.msra.mxu0 %v5247_v37  ;;  %v2199_v36 = vrot.slane %v5915_v20, 4 }
 0x7f3   :  { %4860 = vmatprep.subr.bf16.mxu0 %v5590_v0  ;;  %2384 = vmatprep.subr.bf16.mxu1 %v5250_v38 }
 0x7f4   :  { %v2200_v37 = vadd.f32 %v2199_v36, %v5915_v20  ;;  %v5308_v36 = vld [vmem:[#allocation4 + $0x630] ss:$12 sps:$4 sm:$0xff]  }
 0x7f6   :  { %2385 = vmatpush1.bf16.msra.mxu1 %v5248_v55  ;;  %4861 = vmatpush3.bf16.msra.mxu0 %v5251_v39  ;;  %v2201_v38 = vrot.slane %v2200_v37, 2 }
 0x7f7   :  { %4862 = vmatprep.subr.bf16.mxu0 %v5590_v0  ;;  %2386 = vmatprep.subr.bf16.mxu1 %v5254_v40 }
 0x7fa   :  { %2387 = vmatpush1.bf16.msra.mxu1 %v5252_v41  ;;  %4863 = vmatpush3.bf16.msra.mxu0 %v5255_v31  ;;  %v2202_v31 = vadd.f32 %v2201_v38, %v2200_v37  ;;  %v5311_v37 = vld [vmem:[#allocation4 + $0x638] ss:$12 sps:$4 sm:$0xff]   ;;  %v5314_v38 = vld [vmem:[#allocation4 + $0x61c] ss:$12 sps:$4 sm:$0xff]  }
 0x7fb   :  { %4868 = vmatprep.subr.bf16.mxu0 %v5590_v0  ;;  %2650 = vmatprep.subr.bf16.mxu1 %v5258_v59 }
 0x89d   :  { %v2087_v32 = vpop.f32.mrf.mxu1  ;;  %v2176_v42 = vpop.f32.mrf.mxu0 }
 0x89e   :  { %v5928_v43 = vadd.f32 %v2176_v42, %v2087_v32 }
 0x89f   :  { %v4826_v44 = vpop.f32.mrf.mxu1  ;;  %v4846_v45 = vpop.f32.mrf.mxu0 }
 0x8a0   :  { %4142 = vrot.lane.b32.xlu1 %v5928_v43, %s5586_s24  ;;  %v2183_v49 = vsub.f32 %v5928_v43, %v5882_v14  ;;  %v5256_v14 = vld [vmem:[#allocation4 + $0x5e8] ss:$12 sps:$4 sm:$0xff]  }
 0x8a1   :  { %v2090_v46 = vpop.f32.mrf.mxu1  ;;  %v2179_v47 = vpop.f32.mrf.mxu0 }
 0x8a2   :  { %v5932_v48 = vadd.f32 %v2179_v47, %v2090_v46  ;;  %v2185_v54 = vmul.f32 %v2183_v49, %v2183_v49 }
 0x8a3   :  { %v4827_v50 = vpop.f32.mrf.mxu1  ;;  %v4847_v51 = vpop.f32.mrf.mxu0 }
 0x8a4   :  { %v2210_v52 = vpack.c.bf16 %v5932_v48, %v5928_v43  ;;  %v2184_v53 = vsub.f32 %v5932_v48, %v5885_v15  ;;  %v5263_v15 = vld [vmem:[#allocation4 + $0x5d8] ss:$12 sps:$4 sm:$0xff]   ;;  %v2203_v50 = vrot.slane %v2202_v31, 1 }
 0x8a6   :  { %2405 = vmatmul.mubr.bf16.vlgmr.msra.gmra.mxu1 %v2210_v52  ;;  %4865 = vmatmul.mubr.bf16.vlgmr.msra.gmra.mxu0 %v2210_v52  ;;  %v2186_v57 = vmul.f32 %v2184_v53, %v2184_v53 }
 0x8a7   :  { %2682 = vmatprep.mubr.bf16.mxu1 %v5592_v1  ;;  %4884 = vmatprep.mubr.msk.bf16.mxu0 %vm5591_vm0, %v5590_v0 }
 0x8a8   :  { %v2187_v58 = vadd.f32 %v2186_v57, %v2185_v54  ;;  %4869 = vmatpush3.bf16.msra.mxu0 %v5259_v60  ;;  %2651 = vmatpush1.bf16.msra.mxu1 %v5256_v14 }
 0x8a9   :  { %4870 = vmatprep.subr.bf16.mxu0 %v5590_v0  ;;  %2652 = vmatprep.subr.bf16.mxu1 %v5262_v61 }
 0x8aa   :  { %2188 = vadd.xlane.f32.xlu0 %v2187_v58 }
 0x8ac   :  { %4871 = vmatpush3.bf16.msra.mxu0 %v5263_v15  ;;  %2653 = vmatpush1.bf16.msra.mxu1 %v5260_v62  ;;  %v4373_v15 = vld [vmem:[#allocation6 + $0x6] ss:$0 sm:$0xff] }
 0x8ad   :  { %4872 = vmatprep.subr.bf16.mxu0 %v5590_v0  ;;  %2654 = vmatprep.subr.bf16.mxu1 %v5266_v63 }
 0x8b0   :  { %4873 = vmatpush3.bf16.msra.mxu0 %v5267_v2  ;;  %2655 = vmatpush1.bf16.msra.mxu1 %v5264_v3  ;;  %v2204_v2 = vadd.f32 %v2203_v50, %v2202_v31  ;;  %v5319_v31 = vld [vmem:[#allocation4 + $0x608] ss:$12 sps:$4 sm:$0xff]  }
 0x8b1   :  { %4874 = vmatprep.subr.bf16.mxu0 %v5590_v0  ;;  %2656 = vmatprep.subr.bf16.mxu1 %v5270_v4 }
 0x8b4   :  { %2657 = vmatpush1.bf16.msra.mxu1 %v5268_v5  ;;  %4875 = vmatpush3.bf16.msra.mxu0 %v5271_v6 }
 0x8b5   :  { %4876 = vmatprep.subr.bf16.mxu0 %v5590_v0  ;;  %2658 = vmatprep.subr.bf16.mxu1 %v5274_v8 }
 0x8b8   :  { %2659 = vmatpush1.bf16.msra.mxu1 %v5272_v9  ;;  %4877 = vmatpush3.bf16.msra.mxu0 %v5275_v13 }
 0x8b9   :  { %4878 = vmatprep.subr.bf16.mxu0 %v5590_v0  ;;  %2660 = vmatprep.subr.bf16.mxu1 %v5278_v16 }
 0x8bc   :  { %2661 = vmatpush1.bf16.msra.mxu1 %v5276_v17  ;;  %4879 = vmatpush3.bf16.msra.mxu0 %v5279_v18  ;;  %v5288_v17 = vld [vmem:[#allocation4 + $0x6a8] ss:$12 sps:$4 sm:$0xff]   ;;  %v5291_v18 = vld [vmem:[#allocation4 + $0x6b0] ss:$12 sps:$4 sm:$0xff]  }
 0x8bd   :  { %4880 = vmatprep.subr.bf16.mxu0 %v5590_v0  ;;  %2662 = vmatprep.subr.bf16.mxu1 %v5282_v19 }
 0x8c0   :  { %4144 = vrot.lane.b32.xlu0 %v5932_v48, %s5586_s24  ;;  %2663 = vmatpush1.bf16.msra.mxu1 %v5280_v21  ;;  %v5294_v21 = vld [vmem:[#allocation4 + $0x694] ss:$12 sps:$4 sm:$0xff]  }
 0x8c1   :  { %4881 = vmatpush3.bf16.msra.mxu0 %v5283_v22  ;;  %2664 = vmatprep.subr.bf16.mxu1 %v5286_v23  ;;  %v5292_v22 = vld [vmem:[#allocation4 + $0x690] ss:$12 sps:$4 sm:$0xff]   ;;  %v5295_v23 = vld [vmem:[#allocation4 + $0x698] ss:$12 sps:$4 sm:$0xff]  }
 0x8c2   :  { %4882 = vmatprep.subr.bf16.mxu0 %v5590_v0 }
 0x8c4   :  { %2665 = vmatpush1.bf16.msra.mxu1 %v5284_v33  ;;  %v5298_v33 = vld [vmem:[#allocation4 + $0x67c] ss:$12 sps:$4 sm:$0xff]  }
 0x8c5   :  { %4883 = vmatpush3.bf16.msra.mxu0 %v5287_v24  ;;  %2924 = vmatprep.subr.bf16.mxu1 %v5290_v34  ;;  %v5296_v24 = vld [vmem:[#allocation4 + $0x678] ss:$12 sps:$4 sm:$0xff]   ;;  %v5299_v34 = vld [vmem:[#allocation4 + $0x680] ss:$12 sps:$4 sm:$0xff]  }
 0x8c6   :  { %4888 = vmatprep.subr.bf16.mxu0 %v5590_v0 }
 0x933   :  { %v2189_v25 = vpop.xlane.xlu0 %2188 }
 0x934   :  { %v2190_v26 = vrot.slane %v2189_v25, 4 }
 0x936   :  { %v2191_v27 = vadd.f32 %v2190_v26, %v2189_v25  ;;  %v5302_v25 = vld [vmem:[#allocation4 + $0x664] ss:$12 sps:$4 sm:$0xff]   ;;  %v5300_v26 = vld [vmem:[#allocation4 + $0x660] ss:$12 sps:$4 sm:$0xff]  }
 0x937   :  { %v4145_v7 = vpop.permute.xlu0 %4144 }
 0x938   :  { %v2192_v28 = vrot.slane %v2191_v27, 2 }
 0x93a   :  { %v2193_v29 = vadd.f32 %v2192_v28, %v2191_v27  ;;  %v5303_v27 = vld [vmem:[#allocation4 + $0x668] ss:$12 sps:$4 sm:$0xff]   ;;  %v5306_v28 = vld [vmem:[#allocation4 + $0x64c] ss:$12 sps:$4 sm:$0xff]  }
 0x93c   :  { %v2194_v30 = vrot.slane %v2193_v29, 1 }
 0x93e   :  { %v2195_v35 = vadd.f32 %v2194_v30, %v2193_v29  ;;  %v5304_v29 = vld [vmem:[#allocation4 + $0x648] ss:$12 sps:$4 sm:$0xff]   ;;  %v5307_v30 = vld [vmem:[#allocation4 + $0x650] ss:$12 sps:$4 sm:$0xff]  }
 0x940   :  { %4988 = vpush %v2195_v35  ;;  %v5310_v35 = vld [vmem:[#allocation4 + $0x634] ss:$12 sps:$4 sm:$0xff]  }
 0x966   :  { %v2406_v55 = vpop.f32.mrf.mxu1  ;;  %v2449_v39 = vpop.f32.mrf.mxu0 }
 0x967   :  { %v2456_v44 = vrot.slane %v2406_v55, 7  ;;  %v2462_v45 = vrot.slane %v2449_v39, 1  ;;  %v5312_v55 = vld [vmem:[#allocation4 + $0x618] ss:$12 sps:$4 sm:$0xff]   ;;  %v5315_v39 = vld [vmem:[#allocation4 + $0x620] ss:$12 sps:$4 sm:$0xff]  }
 0x968   :  { %v2408_v40 = vpop.f32.mrf.mxu1  ;;  %v4866_v41 = vpop.f32.mrf.mxu0 }
 0x969   :  { %v5316_v41 = vld [vmem:[#allocation4 + $0x600] ss:$12 sps:$4 sm:$0xff]  }
 0x96a   :  { %v2410_v32 = vpop.f32.mrf.mxu1  ;;  %v2452_v42 = vpop.f32.mrf.mxu0 }
 0x96b   :  { %v2457_v46 = vrot.slane %v2410_v32, 7  ;;  %v2463_v47 = vrot.slane %v2452_v42, 1  ;;  %v5322_v32 = vld [vmem:[#allocation4 + $0x76c] ss:$12 sps:$4 sm:$0xff]  }
 0x96c   :  { %v4867_v49 = vpop.f32.mrf.mxu0  ;;  %v2412_v57 = vpop.f32.mrf.mxu1 }
 0x96d   :  { %v2459_v51 = vsel %vm389_vm3, %v2457_v46, %v2456_v44  ;;  %v2464_v20 = vsel %vm400_vm4, %v2462_v45, %v2463_v47  ;;  %v2458_v52 = vsel %vm389_vm3, %v2456_v44, %v2457_v46  ;;  %v2465_v53 = vsel %vm400_vm4, %v2463_v47, %v2462_v45 }
 0x96e   :  { %v2460_v54 = vsel %vm5698_vm5, 0.0, %v2459_v51  ;;  %v2461_v58 = vsel %vm5702_vm6, 0.0, %v2458_v52  ;;  %v2466_v60 = vsel %vm5706_vm7, 0.0, %v2464_v20  ;;  %v2467_v61 = vsel %vm5710_vm8, 0.0, %v2465_v53 }
 0x96f   :  { %v2468_v14 = vadd.f32 %v2460_v54, %v2408_v40  ;;  %v2469_v59 = vadd.f32 %v2461_v58, %v2412_v57  ;;  %v5318_v40 = vld [vmem:[#allocation4 + $0x604] ss:$12 sps:$4 sm:$0xff]  }
 0x971   :  { %v2470_v62 = vadd.f32 %v2468_v14, %v2466_v60  ;;  %v2471_v63 = vadd.f32 %v2469_v59, %v2467_v61  ;;  %s4989_s4 = spop %4988 }
 0x972   :  { %v2206_v3 = vstv %s4989_s4 }
 0x973   :  { %v2480_v4 = vadd.f32 %v4373_v15, %v2470_v62  ;;  %v2481_v5 = vadd.f32 %v4373_v15, %v2471_v63  ;;  %v2208_v6 = vsel %vm2207_vm15, %v2204_v2, %v2206_v3  ;;  %v4398_v3 = vld [vmem:[#allocation6 + $0x7] ss:$0 sm:$0xff] }
 0x974   :  { %2209 = vst [vmem:[%s6147_s7] sm:$0x3] %v2208_v6 }
 0x975   :  { %vm2483_vm1 = vcmp.ge.f32.partialorder %v2481_v5, 0.0  ;;  %v2484_v8 = vmul.f32 0.2, %v2480_v4  ;;  %v2485_v9 = vmul.f32 0.2, %v2481_v5  ;;  %vm2482_vm2 = vcmp.ge.f32.partialorder %v2480_v4, 0.0 }
 0x977   :  { %v2486_v13 = vsel %vm2482_vm2, %v2480_v4, %v2484_v8  ;;  %v2487_v16 = vsel %vm2483_vm1, %v2481_v5, %v2485_v9 }
 0x978   :  { %v2488_v19 = vpack.c.bf16 %v2487_v16, %v2486_v13  ;;  %v5320_v16 = vld [vmem:[#allocation4 + $0x768] ss:$12 sps:$4 sm:$0xff]  }
 0x97a   :  { %2683 = vmatmul.mubr.bf16.vlgmr.msra.gmra.mxu1 %v2488_v19  ;;  %4885 = vmatmul.mubr.bf16.vlgmr.msra.gmra.mxu0 %v2488_v19  ;;  %v5326_v19 = vld [vmem:[#allocation4 + $0x754] ss:$12 sps:$4 sm:$0xff]  }
 0x97b   :  { %2925 = vmatpush1.bf16.msra.mxu1 %v5288_v17  ;;  %4889 = vmatpush3.bf16.msra.mxu0 %v5291_v18  ;;  %v5323_v17 = vld [vmem:[#allocation4 + $0x770] ss:$12 sps:$4 sm:$0xff]  }
 0x97c   :  { %2926 = vmatprep.subr.bf16.mxu1 %v5294_v21  ;;  %4890 = vmatprep.subr.bf16.mxu0 %v5590_v0  ;;  %v5324_v21 = vld [vmem:[#allocation4 + $0x750] ss:$12 sps:$4 sm:$0xff]  }
 0x97d   :  { %2956 = vmatprep.mubr.bf16.mxu1 %v5592_v1  ;;  %4904 = vmatprep.mubr.msk.bf16.mxu0 %vm5591_vm0, %v5590_v0 }
 0x97f   :  { %2927 = vmatpush1.bf16.msra.mxu1 %v5292_v22  ;;  %4891 = vmatpush3.bf16.msra.mxu0 %v5295_v23  ;;  %v5327_v22 = vld [vmem:[#allocation4 + $0x758] ss:$12 sps:$4 sm:$0xff]   ;;  %v5331_v23 = vld [vmem:[#allocation4 + $0x740] ss:$12 sps:$4 sm:$0xff]  }
 0x980   :  { %2928 = vmatprep.subr.bf16.mxu1 %v5298_v33  ;;  %4892 = vmatprep.subr.bf16.mxu0 %v5590_v0  ;;  %v5334_v33 = vld [vmem:[#allocation4 + $0x724] ss:$12 sps:$4 sm:$0xff]  }
 0x983   :  { %2929 = vmatpush1.bf16.msra.mxu1 %v5296_v24  ;;  %4893 = vmatpush3.bf16.msra.mxu0 %v5299_v34  ;;  %v5332_v24 = vld [vmem:[#allocation4 + $0x720] ss:$12 sps:$4 sm:$0xff]   ;;  %v5335_v34 = vld [vmem:[#allocation4 + $0x728] ss:$12 sps:$4 sm:$0xff]  }
 0x984   :  { %2930 = vmatprep.subr.bf16.mxu1 %v5302_v25  ;;  %4894 = vmatprep.subr.bf16.mxu0 %v5590_v0  ;;  %v5338_v25 = vld [vmem:[#allocation4 + $0x70c] ss:$12 sps:$4 sm:$0xff]  }
 0x987   :  { %2931 = vmatpush1.bf16.msra.mxu1 %v5300_v26  ;;  %4895 = vmatpush3.bf16.msra.mxu0 %v5303_v27  ;;  %v5336_v26 = vld [vmem:[#allocation4 + $0x708] ss:$12 sps:$4 sm:$0xff]   ;;  %v5339_v27 = vld [vmem:[#allocation4 + $0x710] ss:$12 sps:$4 sm:$0xff]  }
 0x988   :  { %4896 = vmatprep.subr.bf16.mxu0 %v5590_v0  ;;  %2932 = vmatprep.subr.bf16.mxu1 %v5306_v28  ;;  %v5342_v28 = vld [vmem:[#allocation4 + $0x6f4] ss:$12 sps:$4 sm:$0xff]  }
 0x98b   :  { %2933 = vmatpush1.bf16.msra.mxu1 %v5304_v29  ;;  %4897 = vmatpush3.bf16.msra.mxu0 %v5307_v30  ;;  %v5340_v29 = vld [vmem:[#allocation4 + $0x6f0] ss:$12 sps:$4 sm:$0xff]   ;;  %v5343_v30 = vld [vmem:[#allocation4 + $0x6f8] ss:$12 sps:$4 sm:$0xff]  }
 0x98c   :  { %4898 = vmatprep.subr.bf16.mxu0 %v5590_v0  ;;  %2934 = vmatprep.subr.bf16.mxu1 %v5310_v35  ;;  %v5346_v35 = vld [vmem:[#allocation4 + $0x6dc] ss:$12 sps:$4 sm:$0xff]  }
 0x98f   :  { %2935 = vmatpush1.bf16.msra.mxu1 %v5308_v36  ;;  %4899 = vmatpush3.bf16.msra.mxu0 %v5311_v37  ;;  %v5344_v36 = vld [vmem:[#allocation4 + $0x6d8] ss:$12 sps:$4 sm:$0xff]   ;;  %v5347_v37 = vld [vmem:[#allocation4 + $0x6e0] ss:$12 sps:$4 sm:$0xff]  }
 0x990   :  { %4900 = vmatprep.subr.bf16.mxu0 %v5590_v0  ;;  %2936 = vmatprep.subr.bf16.mxu1 %v5314_v38  ;;  %v5350_v38 = vld [vmem:[#allocation4 + $0x6c4] ss:$12 sps:$4 sm:$0xff]  }
 0x993   :  { %2937 = vmatpush1.bf16.msra.mxu1 %v5312_v55  ;;  %4901 = vmatpush3.bf16.msra.mxu0 %v5315_v39  ;;  %v5348_v55 = vld [vmem:[#allocation4 + $0x6c0] ss:$12 sps:$4 sm:$0xff]   ;;  %v5351_v39 = vld [vmem:[#allocation4 + $0x6c8] ss:$12 sps:$4 sm:$0xff]  }
 0x994   :  { %4902 = vmatprep.subr.bf16.mxu0 %v5590_v0  ;;  %2938 = vmatprep.subr.bf16.mxu1 %v5318_v40  ;;  %v5354_v40 = vld [vmem:[#allocation4 + $0x82c] ss:$12 sps:$4 sm:$0xff]  }
 0x997   :  { %2939 = vmatpush1.bf16.msra.mxu1 %v5316_v41  ;;  %4903 = vmatpush3.bf16.msra.mxu0 %v5319_v31 }
 0x998   :  { %4908 = vmatprep.subr.bf16.mxu0 %v5590_v0  ;;  %3202 = vmatprep.subr.bf16.mxu1 %v5322_v32 }
 0xa3a   :  { %v2684_v42 = vpop.f32.mrf.mxu1  ;;  %v2727_v44 = vpop.f32.mrf.mxu0 }
 0xa3b   :  { %v2734_v50 = vrot.slane %v2684_v42, 7  ;;  %v2740_v51 = vrot.slane %v2727_v44, 1 }
 0xa3c   :  { %v2686_v45 = vpop.f32.mrf.mxu1  ;;  %v4886_v46 = vpop.f32.mrf.mxu0 }
 0xa3e   :  { %v2688_v47 = vpop.f32.mrf.mxu1  ;;  %v2730_v49 = vpop.f32.mrf.mxu0 }
 0xa3f   :  { %v2735_v20 = vrot.slane %v2688_v47, 7  ;;  %v2741_v52 = vrot.slane %v2730_v49, 1 }
 0xa40   :  { %v4887_v53 = vpop.f32.mrf.mxu0  ;;  %v2690_v60 = vpop.f32.mrf.mxu1 }
 0xa41   :  { %v2737_v54 = vsel %vm389_vm3, %v2735_v20, %v2734_v50  ;;  %v2742_v57 = vsel %vm400_vm4, %v2740_v51, %v2741_v52  ;;  %v2736_v58 = vsel %vm389_vm3, %v2734_v50, %v2735_v20  ;;  %v2743_v14 = vsel %vm400_vm4, %v2741_v52, %v2740_v51 }
 0xa42   :  { %v2738_v59 = vsel %vm5698_vm5, 0.0, %v2737_v54  ;;  %v2739_v61 = vsel %vm5702_vm6, 0.0, %v2736_v58  ;;  %v2744_v63 = vsel %vm5706_vm7, 0.0, %v2742_v57  ;;  %v2745_v2 = vsel %vm5710_vm8, 0.0, %v2743_v14 }
 0xa43   :  { %v2746_v15 = vadd.f32 %v2738_v59, %v2686_v45  ;;  %v2747_v62 = vadd.f32 %v2739_v61, %v2690_v60 }
 0xa45   :  { %v2748_v4 = vadd.f32 %v2746_v15, %v2744_v63  ;;  %v2749_v5 = vadd.f32 %v2747_v62, %v2745_v2  ;;  %v4423_v62 = vld [vmem:[#allocation6 + $0x8] ss:$0 sm:$0xff] }
 0xa47   :  { %v2758_v6 = vadd.f32 %v4398_v3, %v2748_v4  ;;  %v2759_v8 = vadd.f32 %v4398_v3, %v2749_v5 }
 0xa49   :  { %v6002_v9 = vadd.f32 %v2758_v6, %v5928_v43  ;;  %v6005_v13 = vadd.f32 %v2759_v8, %v5932_v48  ;;  %v5330_v43 = vld [vmem:[#allocation4 + $0x73c] ss:$12 sps:$4 sm:$0xff]   ;;  %v5328_v48 = vld [vmem:[#allocation4 + $0x738] ss:$12 sps:$4 sm:$0xff]  }
 0xa4b   :  { %v2762_v18 = vpack.c.bf16 %v6005_v13, %v6002_v9 }
 0xa4d   :  { %2957 = vmatmul.mubr.bf16.vlgmr.msra.gmra.mxu1 %v2762_v18  ;;  %4905 = vmatmul.mubr.bf16.vlgmr.msra.gmra.mxu0 %v2762_v18  ;;  %v5355_v18 = vld [vmem:[#allocation4 + $0x830] ss:$12 sps:$4 sm:$0xff]  }
 0xa4e   :  { %3203 = vmatpush1.bf16.msra.mxu1 %v5320_v16  ;;  %4909 = vmatpush3.bf16.msra.mxu0 %v5323_v17  ;;  %v5352_v17 = vld [vmem:[#allocation4 + $0x828] ss:$12 sps:$4 sm:$0xff]  }
 0xa4f   :  { %3204 = vmatprep.subr.bf16.mxu1 %v5326_v19  ;;  %4910 = vmatprep.subr.bf16.mxu0 %v5590_v0 }
 0xa50   :  { %3234 = vmatprep.mubr.bf16.mxu1 %v5592_v1  ;;  %4924 = vmatprep.mubr.msk.bf16.mxu0 %vm5591_vm0, %v5590_v0 }
 0xa52   :  { %3205 = vmatpush1.bf16.msra.mxu1 %v5324_v21  ;;  %4911 = vmatpush3.bf16.msra.mxu0 %v5327_v22  ;;  %v5358_v21 = vld [vmem:[#allocation4 + $0x814] ss:$12 sps:$4 sm:$0xff]   ;;  %v5356_v22 = vld [vmem:[#allocation4 + $0x810] ss:$12 sps:$4 sm:$0xff]  }
 0xa53   :  { %3206 = vmatprep.subr.bf16.mxu1 %v5330_v43  ;;  %4912 = vmatprep.subr.bf16.mxu0 %v5590_v0  ;;  %v5359_v43 = vld [vmem:[#allocation4 + $0x818] ss:$12 sps:$4 sm:$0xff]  }
 0xa56   :  { %3207 = vmatpush1.bf16.msra.mxu1 %v5328_v48  ;;  %4913 = vmatpush3.bf16.msra.mxu0 %v5331_v23  ;;  %v5362_v48 = vld [vmem:[#allocation4 + $0x7fc] ss:$12 sps:$4 sm:$0xff]   ;;  %v5360_v23 = vld [vmem:[#allocation4 + $0x7f8] ss:$12 sps:$4 sm:$0xff]  }
 0xa57   :  { %4914 = vmatprep.subr.bf16.mxu0 %v5590_v0  ;;  %3208 = vmatprep.subr.bf16.mxu1 %v5334_v33  ;;  %v5363_v33 = vld [vmem:[#allocation4 + $0x800] ss:$12 sps:$4 sm:$0xff]  }
 0xa5a   :  { %3209 = vmatpush1.bf16.msra.mxu1 %v5332_v24  ;;  %4915 = vmatpush3.bf16.msra.mxu0 %v5335_v34  ;;  %v5366_v24 = vld [vmem:[#allocation4 + $0x7e4] ss:$12 sps:$4 sm:$0xff]   ;;  %v5364_v34 = vld [vmem:[#allocation4 + $0x7e0] ss:$12 sps:$4 sm:$0xff]  }
 0xa5b   :  { %4916 = vmatprep.subr.bf16.mxu0 %v5590_v0  ;;  %3210 = vmatprep.subr.bf16.mxu1 %v5338_v25  ;;  %v5367_v25 = vld [vmem:[#allocation4 + $0x7e8] ss:$12 sps:$4 sm:$0xff]  }
 0xa5e   :  { %3211 = vmatpush1.bf16.msra.mxu1 %v5336_v26  ;;  %4917 = vmatpush3.bf16.msra.mxu0 %v5339_v27  ;;  %v5370_v26 = vld [vmem:[#allocation4 + $0x7cc] ss:$12 sps:$4 sm:$0xff]   ;;  %v5368_v27 = vld [vmem:[#allocation4 + $0x7c8] ss:$12 sps:$4 sm:$0xff]  }
 0xa5f   :  { %4918 = vmatprep.subr.bf16.mxu0 %v5590_v0  ;;  %3212 = vmatprep.subr.bf16.mxu1 %v5342_v28  ;;  %v5371_v28 = vld [vmem:[#allocation4 + $0x7d0] ss:$12 sps:$4 sm:$0xff]  }
 0xa62   :  { %3213 = vmatpush1.bf16.msra.mxu1 %v5340_v29  ;;  %4919 = vmatpush3.bf16.msra.mxu0 %v5343_v30  ;;  %v5374_v29 = vld [vmem:[#allocation4 + $0x7b4] ss:$12 sps:$4 sm:$0xff]   ;;  %v5372_v30 = vld [vmem:[#allocation4 + $0x7b0] ss:$12 sps:$4 sm:$0xff]  }
 0xa63   :  { %4920 = vmatprep.subr.bf16.mxu0 %v5590_v0  ;;  %3214 = vmatprep.subr.bf16.mxu1 %v5346_v35  ;;  %v5375_v35 = vld [vmem:[#allocation4 + $0x7b8] ss:$12 sps:$4 sm:$0xff]  }
 0xa66   :  { %3215 = vmatpush1.bf16.msra.mxu1 %v5344_v36  ;;  %4921 = vmatpush3.bf16.msra.mxu0 %v5347_v37  ;;  %v5378_v36 = vld [vmem:[#allocation4 + $0x79c] ss:$12 sps:$4 sm:$0xff]   ;;  %v5376_v37 = vld [vmem:[#allocation4 + $0x798] ss:$12 sps:$4 sm:$0xff]  }
 0xa67   :  { %4922 = vmatprep.subr.bf16.mxu0 %v5590_v0  ;;  %3216 = vmatprep.subr.bf16.mxu1 %v5350_v38  ;;  %v5379_v38 = vld [vmem:[#allocation4 + $0x7a0] ss:$12 sps:$4 sm:$0xff]  }
 0xa6a   :  { %3217 = vmatpush1.bf16.msra.mxu1 %v5348_v55  ;;  %4923 = vmatpush3.bf16.msra.mxu0 %v5351_v39  ;;  %v5382_v55 = vld [vmem:[#allocation4 + $0x784] ss:$12 sps:$4 sm:$0xff]   ;;  %v5380_v39 = vld [vmem:[#allocation4 + $0x780] ss:$12 sps:$4 sm:$0xff]  }
 0xa6b   :  { %4928 = vmatprep.subr.bf16.mxu0 %v5590_v0  ;;  %3476 = vmatprep.subr.bf16.mxu1 %v5354_v40  ;;  %v5383_v40 = vld [vmem:[#allocation4 + $0x788] ss:$12 sps:$4 sm:$0xff]  }
 0xb0d   :  { %v2958_v41 = vpop.f32.mrf.mxu1  ;;  %v3001_v31 = vpop.f32.mrf.mxu0 }
 0xb0e   :  { %v3008_v46 = vrot.slane %v2958_v41, 7  ;;  %v3014_v47 = vrot.slane %v3001_v31, 1  ;;  %v5386_v41 = vld [vmem:[#allocation4 + $0x8ec] ss:$12 sps:$4 sm:$0xff]  }
 0xb0f   :  { %v2960_v32 = vpop.f32.mrf.mxu1  ;;  %v4906_v42 = vpop.f32.mrf.mxu0 }
 0xb11   :  { %v2962_v44 = vpop.f32.mrf.mxu1  ;;  %v3004_v45 = vpop.f32.mrf.mxu0 }
 0xb12   :  { %v3009_v49 = vrot.slane %v2962_v44, 7  ;;  %v3015_v50 = vrot.slane %v3004_v45, 1 }
 0xb13   :  { %v4907_v51 = vpop.f32.mrf.mxu0  ;;  %v2964_v58 = vpop.f32.mrf.mxu1 }
 0xb14   :  { %v3011_v20 = vsel %vm389_vm3, %v3009_v49, %v3008_v46  ;;  %v3016_v52 = vsel %vm400_vm4, %v3014_v47, %v3015_v50  ;;  %v3010_v53 = vsel %vm389_vm3, %v3008_v46, %v3009_v49  ;;  %v3017_v54 = vsel %vm400_vm4, %v3015_v50, %v3014_v47 }
 0xb15   :  { %v3012_v57 = vsel %vm5698_vm5, 0.0, %v3011_v20  ;;  %v3013_v14 = vsel %vm5702_vm6, 0.0, %v3010_v53  ;;  %v3018_v61 = vsel %vm5706_vm7, 0.0, %v3016_v52  ;;  %v3019_v15 = vsel %vm5710_vm8, 0.0, %v3017_v54 }
 0xb16   :  { %v3020_v59 = vadd.f32 %v3012_v57, %v2960_v32  ;;  %v3021_v60 = vadd.f32 %v3013_v14, %v2964_v58 }
 0xb18   :  { %v3022_v63 = vadd.f32 %v3020_v59, %v3018_v61  ;;  %v3023_v2 = vadd.f32 %v3021_v60, %v3019_v15 }
 0xb1a   :  { %v3032_v3 = vadd.f32 %v4423_v62, %v3022_v63  ;;  %v3033_v4 = vadd.f32 %v4423_v62, %v3023_v2  ;;  %v4448_v63 = vld [vmem:[#allocation6 + $0x9] ss:$0 sm:$0xff] }
 0xb1c   :  { %vm3035_vm9 = vcmp.ge.f32.partialorder %v3033_v4, 0.0  ;;  %v3036_v5 = vmul.f32 0.2, %v3032_v3  ;;  %v3037_v6 = vmul.f32 0.2, %v3033_v4  ;;  %vm3034_vm10 = vcmp.ge.f32.partialorder %v3032_v3, 0.0 }
 0xb1e   :  { %v3038_v8 = vsel %vm3034_vm10, %v3032_v3, %v3036_v5  ;;  %v3039_v16 = vsel %vm3035_vm9, %v3033_v4, %v3037_v6 }
 0xb1f   :  { %v3040_v19 = vpack.c.bf16 %v3039_v16, %v3038_v8  ;;  %v5384_v16 = vld [vmem:[#allocation4 + $0x8e8] ss:$12 sps:$4 sm:$0xff]  }
 0xb21   :  { %3235 = vmatmul.mubr.bf16.vlgmr.msra.gmra.mxu1 %v3040_v19  ;;  %4925 = vmatmul.mubr.bf16.vlgmr.msra.gmra.mxu0 %v3040_v19  ;;  %v5390_v19 = vld [vmem:[#allocation4 + $0x8d4] ss:$12 sps:$4 sm:$0xff]  }
 0xb22   :  { %3477 = vmatpush1.bf16.msra.mxu1 %v5352_v17  ;;  %4929 = vmatpush3.bf16.msra.mxu0 %v5355_v18  ;;  %v5387_v17 = vld [vmem:[#allocation4 + $0x8f0] ss:$12 sps:$4 sm:$0xff]  }
 0xb23   :  { %3478 = vmatprep.subr.bf16.mxu1 %v5358_v21  ;;  %4930 = vmatprep.subr.bf16.mxu0 %v5590_v0  ;;  %v5388_v21 = vld [vmem:[#allocation4 + $0x8d0] ss:$12 sps:$4 sm:$0xff]  }
 0xb24   :  { %3508 = vmatprep.mubr.bf16.mxu1 %v5592_v1  ;;  %4944 = vmatprep.mubr.msk.bf16.mxu0 %vm5591_vm0, %v5590_v0 }
 0xb26   :  { %3479 = vmatpush1.bf16.msra.mxu1 %v5356_v22  ;;  %4931 = vmatpush3.bf16.msra.mxu0 %v5359_v43  ;;  %v5391_v22 = vld [vmem:[#allocation4 + $0x8d8] ss:$12 sps:$4 sm:$0xff]   ;;  %v5394_v43 = vld [vmem:[#allocation4 + $0x8bc] ss:$12 sps:$4 sm:$0xff]  }
 0xb27   :  { %3480 = vmatprep.subr.bf16.mxu1 %v5362_v48  ;;  %4932 = vmatprep.subr.bf16.mxu0 %v5590_v0  ;;  %v5398_v48 = vld [vmem:[#allocation4 + $0x8a4] ss:$12 sps:$4 sm:$0xff]  }
 0xb2a   :  { %3481 = vmatpush1.bf16.msra.mxu1 %v5360_v23  ;;  %4933 = vmatpush3.bf16.msra.mxu0 %v5363_v33  ;;  %v5396_v23 = vld [vmem:[#allocation4 + $0x8a0] ss:$12 sps:$4 sm:$0xff]   ;;  %v5399_v33 = vld [vmem:[#allocation4 + $0x8a8] ss:$12 sps:$4 sm:$0xff]  }
 0xb2b   :  { %3482 = vmatprep.subr.bf16.mxu1 %v5366_v24  ;;  %4934 = vmatprep.subr.bf16.mxu0 %v5590_v0  ;;  %v5402_v24 = vld [vmem:[#allocation4 + $0x88c] ss:$12 sps:$4 sm:$0xff]  }
 0xb2e   :  { %3483 = vmatpush1.bf16.msra.mxu1 %v5364_v34  ;;  %4935 = vmatpush3.bf16.msra.mxu0 %v5367_v25  ;;  %v5400_v34 = vld [vmem:[#allocation4 + $0x888] ss:$12 sps:$4 sm:$0xff]   ;;  %v5403_v25 = vld [vmem:[#allocation4 + $0x890] ss:$12 sps:$4 sm:$0xff]  }
 0xb2f   :  { %4936 = vmatprep.subr.bf16.mxu0 %v5590_v0  ;;  %3484 = vmatprep.subr.bf16.mxu1 %v5370_v26  ;;  %v5406_v26 = vld [vmem:[#allocation4 + $0x874] ss:$12 sps:$4 sm:$0xff]  }
 0xb32   :  { %3485 = vmatpush1.bf16.msra.mxu1 %v5368_v27  ;;  %4937 = vmatpush3.bf16.msra.mxu0 %v5371_v28  ;;  %v5404_v27 = vld [vmem:[#allocation4 + $0x870] ss:$12 sps:$4 sm:$0xff]   ;;  %v5407_v28 = vld [vmem:[#allocation4 + $0x878] ss:$12 sps:$4 sm:$0xff]  }
 0xb33   :  { %4938 = vmatprep.subr.bf16.mxu0 %v5590_v0  ;;  %3486 = vmatprep.subr.bf16.mxu1 %v5374_v29  ;;  %v5410_v29 = vld [vmem:[#allocation4 + $0x85c] ss:$12 sps:$4 sm:$0xff]  }
 0xb36   :  { %3487 = vmatpush1.bf16.msra.mxu1 %v5372_v30  ;;  %4939 = vmatpush3.bf16.msra.mxu0 %v5375_v35  ;;  %v5408_v30 = vld [vmem:[#allocation4 + $0x858] ss:$12 sps:$4 sm:$0xff]   ;;  %v5411_v35 = vld [vmem:[#allocation4 + $0x860] ss:$12 sps:$4 sm:$0xff]  }
 0xb37   :  { %4940 = vmatprep.subr.bf16.mxu0 %v5590_v0  ;;  %3488 = vmatprep.subr.bf16.mxu1 %v5378_v36  ;;  %v5414_v36 = vld [vmem:[#allocation4 + $0x844] ss:$12 sps:$4 sm:$0xff]  }
 0xb3a   :  { %3489 = vmatpush1.bf16.msra.mxu1 %v5376_v37  ;;  %4941 = vmatpush3.bf16.msra.mxu0 %v5379_v38  ;;  %v5412_v37 = vld [vmem:[#allocation4 + $0x840] ss:$12 sps:$4 sm:$0xff]   ;;  %v5415_v38 = vld [vmem:[#allocation4 + $0x848] ss:$12 sps:$4 sm:$0xff]  }
 0xb3b   :  { %4942 = vmatprep.subr.bf16.mxu0 %v5590_v0  ;;  %3490 = vmatprep.subr.bf16.mxu1 %v5382_v55  ;;  %v5418_v55 = vld [vmem:[#allocation4 + $0x9ac] ss:$12 sps:$4 sm:$0xff]  }
 0xb3e   :  { %3491 = vmatpush1.bf16.msra.mxu1 %v5380_v39  ;;  %4943 = vmatpush3.bf16.msra.mxu0 %v5383_v40 }
 0xb3f   :  { %4948 = vmatprep.subr.bf16.mxu0 %v5590_v0  ;;  %3754 = vmatprep.subr.bf16.mxu1 %v5386_v41 }
 0xbe1   :  { %v3236_v31 = vpop.f32.mrf.mxu1  ;;  %v3279_v32 = vpop.f32.mrf.mxu0 }
 0xbe2   :  { %v3286_v47 = vrot.slane %v3236_v31, 7  ;;  %v3292_v49 = vrot.slane %v3279_v32, 1 }
 0xbe3   :  { %v3238_v42 = vpop.f32.mrf.mxu1  ;;  %v4926_v44 = vpop.f32.mrf.mxu0 }
 0xbe5   :  { %v3240_v45 = vpop.f32.mrf.mxu1  ;;  %v3282_v46 = vpop.f32.mrf.mxu0 }
 0xbe6   :  { %v3287_v50 = vrot.slane %v3240_v45, 7  ;;  %v3293_v51 = vrot.slane %v3282_v46, 1 }
 0xbe7   :  { %v4927_v20 = vpop.f32.mrf.mxu0  ;;  %v3242_v14 = vpop.f32.mrf.mxu1 }
 0xbe8   :  { %v3289_v52 = vsel %vm389_vm3, %v3287_v50, %v3286_v47  ;;  %v3294_v53 = vsel %vm400_vm4, %v3292_v49, %v3293_v51  ;;  %v3288_v54 = vsel %vm389_vm3, %v3286_v47, %v3287_v50  ;;  %v3295_v57 = vsel %vm400_vm4, %v3293_v51, %v3292_v49 }
 0xbe9   :  { %v3290_v58 = vsel %vm5698_vm5, 0.0, %v3289_v52  ;;  %v3291_v59 = vsel %vm5702_vm6, 0.0, %v3288_v54  ;;  %v3296_v15 = vsel %vm5706_vm7, 0.0, %v3294_v53  ;;  %v3297_v62 = vsel %vm5710_vm8, 0.0, %v3295_v57 }
 0xbea   :  { %v3298_v60 = vadd.f32 %v3290_v58, %v3238_v42  ;;  %v3299_v61 = vadd.f32 %v3291_v59, %v3242_v14 }
 0xbec   :  { %v3300_v2 = vadd.f32 %v3298_v60, %v3296_v15  ;;  %v3301_v3 = vadd.f32 %v3299_v61, %v3297_v62  ;;  %v4473_v61 = vld [vmem:[#allocation6 + $0xa] ss:$0 sm:$0xff] }
 0xbee   :  { %v3310_v4 = vadd.f32 %v4448_v63, %v3300_v2  ;;  %v3311_v5 = vadd.f32 %v4448_v63, %v3301_v3 }
 0xbf0   :  { %v3312_v6 = vadd.f32 %v3310_v4, %v6002_v9  ;;  %v3313_v8 = vadd.f32 %v3311_v5, %v6005_v13  ;;  %v5392_v9 = vld [vmem:[#allocation4 + $0x8b8] ss:$12 sps:$4 sm:$0xff]   ;;  %v5395_v13 = vld [vmem:[#allocation4 + $0x8c0] ss:$12 sps:$4 sm:$0xff]  }
 0xbf2   :  { %v3314_v18 = vpack.c.bf16 %v3313_v8, %v3312_v6  ;;  %v5416_v8 = vld [vmem:[#allocation4 + $0x9a8] ss:$12 sps:$4 sm:$0xff]  }
 0xbf4   :  { %3509 = vmatmul.mubr.bf16.vlgmr.msra.gmra.mxu1 %v3314_v18  ;;  %4945 = vmatmul.mubr.bf16.vlgmr.msra.gmra.mxu0 %v3314_v18  ;;  %v5422_v18 = vld [vmem:[#allocation4 + $0x994] ss:$12 sps:$4 sm:$0xff]  }
 0xbf5   :  { %3755 = vmatpush1.bf16.msra.mxu1 %v5384_v16  ;;  %4949 = vmatpush3.bf16.msra.mxu0 %v5387_v17  ;;  %v5419_v16 = vld [vmem:[#allocation4 + $0x9b0] ss:$12 sps:$4 sm:$0xff]  }
 0xbf6   :  { %3756 = vmatprep.subr.bf16.mxu1 %v5390_v19  ;;  %4950 = vmatprep.subr.bf16.mxu0 %v5590_v0  ;;  %v5420_v19 = vld [vmem:[#allocation4 + $0x990] ss:$12 sps:$4 sm:$0xff]  }
 0xbf7   :  { %3786 = vmatprep.mubr.bf16.mxu1 %v5592_v1  ;;  %4964 = vmatprep.mubr.msk.bf16.mxu0 %vm5591_vm0, %v5590_v0 }
 0xbf9   :  { %3757 = vmatpush1.bf16.msra.mxu1 %v5388_v21  ;;  %4951 = vmatpush3.bf16.msra.mxu0 %v5391_v22  ;;  %v5423_v21 = vld [vmem:[#allocation4 + $0x998] ss:$12 sps:$4 sm:$0xff]   ;;  %v5426_v22 = vld [vmem:[#allocation4 + $0x97c] ss:$12 sps:$4 sm:$0xff]  }
 0xbfa   :  { %3758 = vmatprep.subr.bf16.mxu1 %v5394_v43  ;;  %4952 = vmatprep.subr.bf16.mxu0 %v5590_v0  ;;  %v5424_v43 = vld [vmem:[#allocation4 + $0x978] ss:$12 sps:$4 sm:$0xff]  }
 0xbfd   :  { %3759 = vmatpush1.bf16.msra.mxu1 %v5392_v9  ;;  %4953 = vmatpush3.bf16.msra.mxu0 %v5395_v13  ;;  %v5427_v9 = vld [vmem:[#allocation4 + $0x980] ss:$12 sps:$4 sm:$0xff]   ;;  %v5430_v13 = vld [vmem:[#allocation4 + $0x964] ss:$12 sps:$4 sm:$0xff]  }
 0xbfe   :  { %4954 = vmatprep.subr.bf16.mxu0 %v5590_v0  ;;  %3760 = vmatprep.subr.bf16.mxu1 %v5398_v48  ;;  %v5428_v48 = vld [vmem:[#allocation4 + $0x960] ss:$12 sps:$4 sm:$0xff]  }
 0xc01   :  { %3761 = vmatpush1.bf16.msra.mxu1 %v5396_v23  ;;  %4955 = vmatpush3.bf16.msra.mxu0 %v5399_v33  ;;  %v5431_v23 = vld [vmem:[#allocation4 + $0x968] ss:$12 sps:$4 sm:$0xff]  }
 0xc02   :  { %4956 = vmatprep.subr.bf16.mxu0 %v5590_v0  ;;  %3762 = vmatprep.subr.bf16.mxu1 %v5402_v24  ;;  %v5432_v33 = vld [vmem:[#allocation4 + $0x948] ss:$12 sps:$4 sm:$0xff]   ;;  %v5435_v24 = vld [vmem:[#allocation4 + $0x950] ss:$12 sps:$4 sm:$0xff]  }
 0xc05   :  { %3763 = vmatpush1.bf16.msra.mxu1 %v5400_v34  ;;  %4957 = vmatpush3.bf16.msra.mxu0 %v5403_v25  ;;  %v5438_v34 = vld [vmem:[#allocation4 + $0x934] ss:$12 sps:$4 sm:$0xff]   ;;  %v5436_v25 = vld [vmem:[#allocation4 + $0x930] ss:$12 sps:$4 sm:$0xff]  }
 0xc06   :  { %4958 = vmatprep.subr.bf16.mxu0 %v5590_v0  ;;  %3764 = vmatprep.subr.bf16.mxu1 %v5406_v26  ;;  %v5439_v26 = vld [vmem:[#allocation4 + $0x938] ss:$12 sps:$4 sm:$0xff]  }
 0xc09   :  { %3765 = vmatpush1.bf16.msra.mxu1 %v5404_v27  ;;  %4959 = vmatpush3.bf16.msra.mxu0 %v5407_v28  ;;  %v5442_v27 = vld [vmem:[#allocation4 + $0x91c] ss:$12 sps:$4 sm:$0xff]   ;;  %v5440_v28 = vld [vmem:[#allocation4 + $0x918] ss:$12 sps:$4 sm:$0xff]  }
 0xc0a   :  { %4960 = vmatprep.subr.bf16.mxu0 %v5590_v0  ;;  %3766 = vmatprep.subr.bf16.mxu1 %v5410_v29  ;;  %v5443_v29 = vld [vmem:[#allocation4 + $0x920] ss:$12 sps:$4 sm:$0xff]  }
 0xc0d   :  { %3767 = vmatpush1.bf16.msra.mxu1 %v5408_v30  ;;  %4961 = vmatpush3.bf16.msra.mxu0 %v5411_v35  ;;  %v5446_v30 = vld [vmem:[#allocation4 + $0x904] ss:$12 sps:$4 sm:$0xff]   ;;  %v5444_v35 = vld [vmem:[#allocation4 + $0x900] ss:$12 sps:$4 sm:$0xff]  }
 0xc0e   :  { %4962 = vmatprep.subr.bf16.mxu0 %v5590_v0  ;;  %3768 = vmatprep.subr.bf16.mxu1 %v5414_v36  ;;  %v5447_v36 = vld [vmem:[#allocation4 + $0x908] ss:$12 sps:$4 sm:$0xff]  }
 0xc11   :  { %3769 = vmatpush1.bf16.msra.mxu1 %v5412_v37  ;;  %4963 = vmatpush3.bf16.msra.mxu0 %v5415_v38 }
 0xc12   :  { %4968 = vmatprep.subr.bf16.mxu0 %v5590_v0  ;;  %4032 = vmatprep.subr.bf16.mxu1 %v5418_v55 }
 0xcb4   :  { %v3510_v39 = vpop.f32.mrf.mxu1  ;;  %v3553_v40 = vpop.f32.mrf.mxu0 }
 0xcb5   :  { %v3560_v44 = vrot.slane %v3510_v39, 7  ;;  %v3566_v45 = vrot.slane %v3553_v40, 1 }
 0xcb6   :  { %v3512_v41 = vpop.f32.mrf.mxu1  ;;  %v4946_v31 = vpop.f32.mrf.mxu0 }
 0xcb8   :  { %v3514_v32 = vpop.f32.mrf.mxu1  ;;  %v3556_v42 = vpop.f32.mrf.mxu0 }
 0xcb9   :  { %v3561_v46 = vrot.slane %v3514_v32, 7  ;;  %v3567_v47 = vrot.slane %v3556_v42, 1 }
 0xcba   :  { %v4947_v49 = vpop.f32.mrf.mxu0  ;;  %v3516_v54 = vpop.f32.mrf.mxu1 }
 0xcbb   :  { %v3563_v50 = vsel %vm389_vm3, %v3561_v46, %v3560_v44  ;;  %v3568_v51 = vsel %vm400_vm4, %v3566_v45, %v3567_v47  ;;  %v3562_v20 = vsel %vm389_vm3, %v3560_v44, %v3561_v46  ;;  %v3569_v52 = vsel %vm400_vm4, %v3567_v47, %v3566_v45 }
 0xcbc   :  { %v3564_v53 = vsel %vm5698_vm5, 0.0, %v3563_v50  ;;  %v3565_v57 = vsel %vm5702_vm6, 0.0, %v3562_v20  ;;  %v3570_v59 = vsel %vm5706_vm7, 0.0, %v3568_v51  ;;  %v3571_v60 = vsel %vm5710_vm8, 0.0, %v3569_v52 }
 0xcbd   :  { %v3572_v58 = vadd.f32 %v3564_v53, %v3512_v41  ;;  %v3573_v14 = vadd.f32 %v3565_v57, %v3516_v54 }
 0xcbf   :  { %v3574_v15 = vadd.f32 %v3572_v58, %v3570_v59  ;;  %v3575_v62 = vadd.f32 %v3573_v14, %v3571_v60  ;;  %v4498_v58 = vld [vmem:[#allocation6 + $0xb] ss:$0 sm:$0xff] }
 0xcc1   :  { %v3584_v63 = vadd.f32 %v4473_v61, %v3574_v15  ;;  %v3585_v2 = vadd.f32 %v4473_v61, %v3575_v62 }
 0xcc3   :  { %vm3587_vm11 = vcmp.ge.f32.partialorder %v3585_v2, 0.0  ;;  %v3588_v3 = vmul.f32 0.2, %v3584_v63  ;;  %v3589_v4 = vmul.f32 0.2, %v3585_v2  ;;  %vm3586_vm12 = vcmp.ge.f32.partialorder %v3584_v63, 0.0 }
 0xcc5   :  { %v3590_v5 = vsel %vm3586_vm12, %v3584_v63, %v3588_v3  ;;  %v3591_v6 = vsel %vm3587_vm11, %v3585_v2, %v3589_v4 }
 0xcc6   :  { %v3592_v17 = vpack.c.bf16 %v3591_v6, %v3590_v5 }
 0xcc8   :  { %3787 = vmatmul.mubr.bf16.vlgmr.msra.gmra.mxu1 %v3592_v17  ;;  %4965 = vmatmul.mubr.bf16.vlgmr.msra.gmra.mxu0 %v3592_v17 }
 0xcc9   :  { %4033 = vmatpush1.bf16.msra.mxu1 %v5416_v8  ;;  %4969 = vmatpush3.bf16.msra.mxu0 %v5419_v16 }
 0xcca   :  { %4034 = vmatprep.subr.bf16.mxu1 %v5422_v18  ;;  %4970 = vmatprep.subr.bf16.mxu0 %v5590_v0 }
 0xccb   :  { %4064 = vmatprep.mubr.bf16.mxu1 %v5592_v1  ;;  %4984 = vmatprep.mubr.msk.bf16.mxu0 %vm5591_vm0, %v5590_v0  ;;  %v5434_v1 = vld [vmem:[#allocation4 + $0x94c] ss:$12 sps:$4 sm:$0xff]  }
 0xccd   :  { %4035 = vmatpush1.bf16.msra.mxu1 %v5420_v19  ;;  %4971 = vmatpush3.bf16.msra.mxu0 %v5423_v21 }
 0xcce   :  { %4036 = vmatprep.subr.bf16.mxu1 %v5426_v22  ;;  %4972 = vmatprep.subr.bf16.mxu0 %v5590_v0 }
 0xcd1   :  { %4037 = vmatpush1.bf16.msra.mxu1 %v5424_v43  ;;  %4973 = vmatpush3.bf16.msra.mxu0 %v5427_v9 }
 0xcd2   :  { %4974 = vmatprep.subr.bf16.mxu0 %v5590_v0  ;;  %4038 = vmatprep.subr.bf16.mxu1 %v5430_v13 }
 0xcd5   :  { %4039 = vmatpush1.bf16.msra.mxu1 %v5428_v48  ;;  %4975 = vmatpush3.bf16.msra.mxu0 %v5431_v23 }
 0xcd6   :  { %4976 = vmatprep.subr.bf16.mxu0 %v5590_v0  ;;  %4040 = vmatprep.subr.bf16.mxu1 %v5434_v1 }
 0xcd9   :  { %4041 = vmatpush1.bf16.msra.mxu1 %v5432_v33  ;;  %4977 = vmatpush3.bf16.msra.mxu0 %v5435_v24 }
 0xcda   :  { %4978 = vmatprep.subr.bf16.mxu0 %v5590_v0  ;;  %4042 = vmatprep.subr.bf16.mxu1 %v5438_v34 }
 0xcdd   :  { %4043 = vmatpush1.bf16.msra.mxu1 %v5436_v25  ;;  %4979 = vmatpush3.bf16.msra.mxu0 %v5439_v26 }
 0xcde   :  { %4980 = vmatprep.subr.bf16.mxu0 %v5590_v0  ;;  %4044 = vmatprep.subr.bf16.mxu1 %v5442_v27 }
 0xce1   :  { %4045 = vmatpush1.bf16.msra.mxu1 %v5440_v28  ;;  %4981 = vmatpush3.bf16.msra.mxu0 %v5443_v29  ;;  %v4523_v28 = vld [vmem:[#allocation6 + $0xc] ss:$0 sm:$0xff] }
 0xce2   :  { %4982 = vmatprep.subr.bf16.mxu0 %v5590_v0  ;;  %4046 = vmatprep.subr.bf16.mxu1 %v5446_v30 }
 0xce5   :  { %4047 = vmatpush1.bf16.msra.mxu1 %v5444_v35  ;;  %4983 = vmatpush3.bf16.msra.mxu0 %v5447_v36  ;;  %v4143_v36 = vpop.permute.xlu1 %4142 }
 0xd88   :  { %v3788_v37 = vpop.f32.mrf.mxu1  ;;  %v3831_v38 = vpop.f32.mrf.mxu0 }
 0xd89   :  { %v3838_v31 = vrot.slane %v3788_v37, 7  ;;  %v3844_v32 = vrot.slane %v3831_v38, 1 }
 0xd8a   :  { %v3790_v55 = vpop.f32.mrf.mxu1  ;;  %v4966_v39 = vpop.f32.mrf.mxu0 }
 0xd8c   :  { %v3792_v40 = vpop.f32.mrf.mxu1  ;;  %v3834_v41 = vpop.f32.mrf.mxu0 }
 0xd8d   :  { %v3839_v42 = vrot.slane %v3792_v40, 7  ;;  %v3845_v44 = vrot.slane %v3834_v41, 1 }
 0xd8e   :  { %v4967_v45 = vpop.f32.mrf.mxu0  ;;  %v3794_v51 = vpop.f32.mrf.mxu1 }
 0xd8f   :  { %v3841_v46 = vsel %vm389_vm3, %v3839_v42, %v3838_v31  ;;  %v3846_v0 = vsel %vm400_vm4, %v3844_v32, %v3845_v44  ;;  %v3840_v47 = vsel %vm389_vm3, %v3838_v31, %v3839_v42  ;;  %v3847_v49 = vsel %vm400_vm4, %v3845_v44, %v3844_v32 }
 0xd90   :  { %v3842_v50 = vsel %vm5698_vm5, 0.0, %v3841_v46  ;;  %v3843_v20 = vsel %vm5702_vm6, 0.0, %v3840_v47  ;;  %v3848_v54 = vsel %vm5706_vm7, 0.0, %v3846_v0  ;;  %v3849_v57 = vsel %vm5710_vm8, 0.0, %v3847_v49 }
 0xd91   :  { %v3850_v52 = vadd.f32 %v3842_v50, %v3790_v55  ;;  %v3851_v53 = vadd.f32 %v3843_v20, %v3794_v51 }
 0xd93   :  { %v3852_v14 = vadd.f32 %v3850_v52, %v3848_v54  ;;  %v3853_v59 = vadd.f32 %v3851_v53, %v3849_v57 }
 0xd95   :  { %v3862_v60 = vadd.f32 %v4498_v58, %v3852_v14  ;;  %v3863_v61 = vadd.f32 %v4498_v58, %v3853_v59 }
 0xd97   :  { %vm3865_vm0 = vcmp.ge.f32.partialorder %v3863_v61, 0.0  ;;  %v3866_v15 = vmul.f32 0.2, %v3862_v60  ;;  %v3867_v62 = vmul.f32 0.2, %v3863_v61  ;;  %vm3864_vm13 = vcmp.ge.f32.partialorder %v3862_v60, 0.0 }
 0xd99   :  { %v3868_v63 = vsel %vm3864_vm13, %v3862_v60, %v3866_v15  ;;  %v3869_v2 = vsel %vm3865_vm0, %v3863_v61, %v3867_v62 }
 0xd9a   :  { %v3870_v3 = vpack.c.bf16 %v3869_v2, %v3868_v63 }
 0xd9c   :  { %4065 = vmatmul.mubr.bf16.vlgmr.msra.gmra.mxu1 %v3870_v3  ;;  %4985 = vmatmul.mubr.bf16.vlgmr.msra.gmra.mxu0 %v3870_v3 }
 0xe5c   :  { %v4066_v4 = vpop.f32.mrf.mxu1  ;;  %v4109_v5 = vpop.f32.mrf.mxu0 }
 0xe5d   :  { %v4116_v18 = vrot.slane %v4066_v4, 7  ;;  %v4122_v19 = vrot.slane %v4109_v5, 1 }
 0xe5e   :  { %v4068_v6 = vpop.f32.mrf.mxu1  ;;  %v4986_v8 = vpop.f32.mrf.mxu0 }
 0xe60   :  { %v4070_v16 = vpop.f32.mrf.mxu1  ;;  %v4112_v17 = vpop.f32.mrf.mxu0 }
 0xe61   :  { %v4117_v21 = vrot.slane %v4070_v16, 7  ;;  %v4123_v22 = vrot.slane %v4112_v17, 1 }
 0xe62   :  { %v4987_v43 = vpop.f32.mrf.mxu0  ;;  %v4072_v33 = vpop.f32.mrf.mxu1 }
 0xe63   :  { %v4119_v9 = vsel %vm389_vm3, %v4117_v21, %v4116_v18  ;;  %v4124_v13 = vsel %vm400_vm4, %v4122_v19, %v4123_v22  ;;  %v4118_v48 = vsel %vm389_vm3, %v4116_v18, %v4117_v21  ;;  %v4125_v23 = vsel %vm400_vm4, %v4123_v22, %v4122_v19 }
 0xe64   :  { %v4120_v1 = vsel %vm5698_vm5, 0.0, %v4119_v9  ;;  %v4121_v24 = vsel %vm5702_vm6, 0.0, %v4118_v48  ;;  %v4126_v26 = vsel %vm5706_vm7, 0.0, %v4124_v13  ;;  %v4127_v27 = vsel %vm5710_vm8, 0.0, %v4125_v23 }
 0xe65   :  { %v4128_v34 = vadd.f32 %v4120_v1, %v4068_v6  ;;  %v4129_v25 = vadd.f32 %v4121_v24, %v4072_v33 }
 0xe67   :  { %v4130_v29 = vadd.f32 %v4128_v34, %v4126_v26  ;;  %v4131_v30 = vadd.f32 %v4129_v25, %v4127_v27 }
 0xe69   :  { %v4140_v56 = vadd.f32 %v4523_v28, %v4130_v29  ;;  %v4141_v35 = vadd.f32 %v4523_v28, %v4131_v30 }
 0xe6b   :  { %v4146_v37 = vadd.f32 %v4143_v36, %v4140_v56  ;;  %v4147_v38 = vadd.f32 %v4145_v7, %v4141_v35 }
 0xe6d   :  { %4148 = vst [vmem:[%s6146_s6] sm:$0xff] %v4146_v37  ;;  %4149 = vst [vmem:[%s6146_s6 + $0x8] sm:$0xff] %v4147_v38 }
 0xe6e   :  { %4158 = vsyncpa [#allocation3], 1 }
 0xe6f   :  { %4159 = vsyncpa [#allocation5], 1 }
 0xe70   :  { %4160 = vsyncpa [#allocation8], 1 }
 0xe71   :  { %4161 = vsyncpa [#allocation11], 1 }

// kernel: vqvae_forward.1
= control target key start
LH: loop header
LB: loop body
LE: loop exit
PB: predicated region body
PF: predicated region fallthrough
CT: control target
= control target key end

     0   :  { %13 = vsyncpa [#allocation3], 0  ;;  %s6140_s0 = inlined_call_operand.hbm [shape: f32[2,8,16], index: 0, kind: input, shape index: {}]   ;;  %s6141_s1 = inlined_call_operand.hbm [shape: bf16[13,128,384], index: 1, kind: input, shape index: {}]   ;;  %s6142_s2 = inlined_call_operand.hbm [shape: f32[13,1,128], index: 2, kind: input, shape index: {}]   ;;  %s6143_s3 = inlined_call_operand.hbm [shape: bf16[2,128,128], index: 3, kind: input, shape index: {}]   ;;  %s6144_s4 = inlined_call_operand.hbm [shape: bf16[128,128], index: 4, kind: input, shape index: {}]   ;;  %s6145_s5 = inlined_call_operand.hbm [shape: f32[1,128], index: 5, kind: input, shape index: {}]   ;;  %s6146_s6 = inlined_call_operand.vmem [shape: f32[2,8,128], index: 6, kind: output, shape index: {0}]   ;;  %s6147_s7 = inlined_call_operand.vmem [shape: f32[1,2,128], index: 7, kind: output, shape index: {1}]  }
   0x1   :  { %14 = vsyncpa [#allocation5], 0 }
   0x2   :  { %15 = vsyncpa [#allocation8], 0 }
   0x3   :  { %16 = vsyncpa [#allocation11], 0  ;;  %s5576_s24 = smov [#allocation4]  }
   0x4   :  { %s34_s25 = sshll.u32 %s5576_s24, 4  ;;  %s35_s25 = int_to_ptr.vmem [resolvable:$true] %s34_s25 }
   0x5   :  { %s5456_s26 = scalar_lea.vmem %s35_s25, 39936  ;;  %p5461_p1 = scmp.lt.s32.totalorder %s35_s25, %s35_s25 }
   0x6   :  { %p5457_p0 = scmp.ne.s32.totalorder %s35_s25, %s5456_s26  ;;  %p5462_p2 = scmp.lt.s32.totalorder %s5456_s26, %s5456_s26 }
   0x8   :  { %p5463_p3 = por %p5462_p2, %p5461_p1 }
   0xa   :  { %p5464_p4 = pnand %p5463_p3, %p5457_p0 }
   0xc   :  { %5467 = shalt.err (!%p5464_p4)
}
   0xd   :  { %s5577_s27 = smov 192   ;;  %s5578_s28 = smov 12  }
   0xe   :  { %40 = dma.hbm_to_vmem [thread:$0]  %s6141_s1, 39936, %s35_s25, [#allocation5], %s5577_s27, %s5577_s27, %s5578_s28  }
   0xf   :  { %s5579_s8 = smov [#allocation7]  }
  0x10   :  { %s58_s9 = sshll.u32 %s5579_s8, 4  ;;  %s59_s9 = int_to_ptr.vmem [resolvable:$true] %s58_s9 }
  0x11   :  { %s5476_s10 = scalar_lea.vmem %s59_s9, 2048  ;;  %p5481_p6 = scmp.lt.s32.totalorder %s59_s9, %s59_s9 }
  0x12   :  { %p5477_p5 = scmp.ne.s32.totalorder %s59_s9, %s5476_s10  ;;  %p5482_p7 = scmp.lt.s32.totalorder %s5476_s10, %s5476_s10 }
  0x14   :  { %p5483_p8 = por %p5482_p7, %p5481_p6 }
  0x16   :  { %p5484_p9 = pnand %p5483_p8, %p5477_p5 }
  0x18   :  { %5487 = shalt.err (!%p5484_p9)
}
  0x19   :  { %s5580_s11 = smov 64   ;;  %s5581_s12 = smov 4  }
  0x1a   :  { %64 = dma.hbm_to_vmem [thread:$0]  %s6143_s3, 2048, %s59_s9, [#allocation8], %s5580_s11, %s5580_s11, %s5581_s12  }
  0x1b   :  { %s5582_s1 = smov [#allocation2]  }
  0x1c   :  { %s22_s15 = sshll.u32 %s5582_s1, 4  ;;  %s23_s15 = int_to_ptr.vmem [resolvable:$true] %s22_s15 }
  0x1d   :  { %s5496_s16 = scalar_lea.vmem %s23_s15, 256  ;;  %p5501_p11 = scmp.lt.s32.totalorder %s23_s15, %s23_s15 }
  0x1e   :  { %p5497_p10 = scmp.ne.s32.totalorder %s23_s15, %s5496_s16  ;;  %p5502_p12 = scmp.lt.s32.totalorder %s5496_s16, %s5496_s16 }
  0x20   :  { %p5503_p13 = por %p5502_p12, %p5501_p11 }
  0x22   :  { %p5504_p0 = pnand %p5503_p13, %p5497_p10 }
  0x24   :  { %5507 = shalt.err (!%p5504_p0)
}
  0x25   :  { %s5583_s17 = smov 128   ;;  %s5584_s18 = smov 8  }
  0x26   :  { %28 = dma.hbm_to_vmem [thread:$0]  %s6140_s0, 256, %s23_s15, [#allocation3], %s5583_s17, %s5583_s17, %s5584_s18  }
  0x27   :  { %s5585_s21 = smov [#allocation6]  }
  0x28   :  { %s46_s22 = sshll.u32 %s5585_s21, 4  ;;  %s47_s22 = int_to_ptr.vmem [resolvable:$true] %s46_s22 }
  0x29   :  { %s5516_s3 = scalar_lea.vmem %s47_s22, 208  ;;  %s5520_s23 = scalar_lea.vmem %s47_s22, 224 }
  0x2a   :  { %p5517_p1 = scmp.ne.s32.totalorder %s47_s22, %s5516_s3  ;;  %p5521_p2 = scmp.lt.s32.totalorder %s47_s22, %s47_s22 }
  0x2b   :  { %p5522_p3 = scmp.lt.s32.totalorder %s5520_s23, %s5516_s3 }
  0x2d   :  { %p5523_p4 = por %p5522_p3, %p5521_p2 }
  0x2f   :  { %p5524_p5 = pnand %p5523_p4, %p5517_p1 }
  0x31   :  { %5527 = shalt.err (!%p5524_p5)
}
  0x32   :  { %s5586_s24 = smov 16   ;;  %s5587_s25 = smov 1  }
  0x33   :  { %52 = dma.hbm_to_vmem [thread:$0]  %s6142_s2, 208, %s47_s22, [#allocation5], %s5586_s24, %s5586_s24, %s5587_s25  }
  0x34   :  { %s5588_s0 = smov [#allocation9]   ;;  %s5589_s29 = smov [#allocation10]  }
  0x35   :  { %s70_s28 = sshll.u32 %s5588_s0, 4  ;;  %s83_s30 = sshll.u32 %s5589_s29, 4  ;;  %s71_s28 = int_to_ptr.vmem [resolvable:$true] %s70_s28  ;;  %s84_s30 = int_to_ptr.vmem [resolvable:$true] %s83_s30 }
  0x36   :  { %s5536_s8 = scalar_lea.vmem %s71_s28, 1024  ;;  %p5541_p7 = scmp.lt.s32.totalorder %s71_s28, %s71_s28 }
  0x37   :  { %p5537_p6 = scmp.ne.s32.totalorder %s71_s28, %s5536_s8  ;;  %p5542_p8 = scmp.lt.s32.totalorder %s5536_s8, %s5536_s8 }
  0x39   :  { %p5543_p9 = por %p5542_p8, %p5541_p7 }
  0x3b   :  { %p5544_p10 = pnand %p5543_p9, %p5537_p6 }
  0x3d   :  { %5547 = shalt.err (!%p5544_p10)
}
  0x3e   :  { %76 = dma.hbm_to_vmem [thread:$0]  %s6144_s4, 1024, %s71_s28, [#allocation8], %s5580_s11, %s5580_s11, %s5581_s12  }
  0x3f   :  { %s5556_s2 = scalar_lea.vmem %s84_s30, 16  ;;  %s5560_s13 = scalar_lea.vmem %s84_s30, 32 }
  0x40   :  { %p5557_p11 = scmp.ne.s32.totalorder %s84_s30, %s5556_s2  ;;  %p5561_p12 = scmp.lt.s32.totalorder %s84_s30, %s84_s30 }
  0x41   :  { %p5562_p13 = scmp.lt.s32.totalorder %s5560_s13, %s5556_s2 }
  0x43   :  { %p5563_p0 = por %p5562_p13, %p5561_p12 }
  0x45   :  { %p5564_p1 = pnand %p5563_p0, %p5557_p11 }
  0x47   :  { %5567 = shalt.err (!%p5564_p1)
}
  0x48   :  { %86 = dma.hbm_to_vmem [thread:$0]  %s6145_s5, 16, %s84_s30, [#allocation11]  }
  0x49   :  { %5568 = dma.done.wait [#allocation3], 256  }
  0x4a   :  { %5569 = vsyncadd [#allocation3], 4294967040 }
  0x4b   :  { %5570 = dma.done.wait [#allocation5], 40144  }
  0x4c   :  { %5571 = vsyncadd [#allocation5], 4294927152 }
  0x4d   :  { %5572 = dma.done.wait [#allocation8], 3072  }
  0x4e   :  { %5573 = vsyncadd [#allocation8], 4294964224 }
  0x4f   :  { %5574 = dma.done.wait [#allocation11], 16  }
  0x50   :  { %5575 = vsyncadd [#allocation11], 4294967280  ;;  %v5590_v0 = vmov 0.0   ;;  %vm5591_vm0 = vmmov 0   ;;  %v5592_v1 = vmov 0   ;;  %vm139_vm1 = vcmask 130048  }
  0x51   :  { %4668 = vmatprep.subr.bf16.mxu1 %v5590_v0  ;;  %4684 = vmatprep.mubr.msk.bf16.mxu1 %vm5591_vm0, %v5590_v0  ;;  %v5008_v2 = vld [vmem:[#allocation4 + $0xac] ss:$12 sps:$4 sm:$0xff]   ;;  %v5010_v3 = vld [vmem:[#allocation4 + $0xb0] ss:$12 sps:$4 sm:$0xff]   ;;  %v5011_v4 = vld [vmem:[#allocation4 + $0xa8] ss:$12 sps:$4 sm:$0xff]   ;;  %v106_v55 = vlaneseq }
  0x52   :  { %335 = vmatprep.mubr.bf16.mxu0 %v5592_v1  ;;  %303 = vmatprep.subr.bf16.mxu0 %v5008_v2  ;;  %v5012_v5 = vld [vmem:[#allocation4 + $0x94] ss:$12 sps:$4 sm:$0xff]   ;;  %v5014_v6 = vld [vmem:[#allocation4 + $0x98] ss:$12 sps:$4 sm:$0xff]   ;;  %v5015_v7 = vld [vmem:[#allocation4 + $0x90] ss:$12 sps:$4 sm:$0xff]  }
  0x53   :  { %4669 = vmatpush3.bf16.msra.mxu1 %v5010_v3  ;;  %304 = vmatpush1.bf16.msra.mxu0 %v5011_v4  ;;  %v5016_v8 = vld [vmem:[#allocation4 + $0x7c] ss:$12 sps:$4 sm:$0xff]   ;;  %v5018_v9 = vld [vmem:[#allocation4 + $0x80] ss:$12 sps:$4 sm:$0xff]   ;;  %v5019_v10 = vld [vmem:[#allocation4 + $0x78] ss:$12 sps:$4 sm:$0xff]  }
  0x54   :  { %4670 = vmatprep.subr.bf16.mxu1 %v5590_v0  ;;  %305 = vmatprep.subr.bf16.mxu0 %v5012_v5  ;;  %v5020_v11 = vld [vmem:[#allocation4 + $0x64] ss:$12 sps:$4 sm:$0xff]   ;;  %v5022_v12 = vld [vmem:[#allocation4 + $0x68] ss:$12 sps:$4 sm:$0xff]   ;;  %v5023_v13 = vld [vmem:[#allocation4 + $0x60] ss:$12 sps:$4 sm:$0xff]  }
  0x55   :  { %v5024_v14 = vld [vmem:[#allocation4 + $0x4c] ss:$12 sps:$4 sm:$0xff]   ;;  %v5026_v15 = vld [vmem:[#allocation4 + $0x50] ss:$12 sps:$4 sm:$0xff]   ;;  %v5027_v16 = vld [vmem:[#allocation4 + $0x48] ss:$12 sps:$4 sm:$0xff]  }
  0x56   :  { %v5028_v17 = vld [vmem:[#allocation4 + $0x34] ss:$12 sps:$4 sm:$0xff]   ;;  %v5030_v18 = vld [vmem:[#allocation4 + $0x38] ss:$12 sps:$4 sm:$0xff]   ;;  %v5031_v19 = vld [vmem:[#allocation4 + $0x30] ss:$12 sps:$4 sm:$0xff]  }
  0x57   :  { %4671 = vmatpush3.bf16.msra.mxu1 %v5014_v6  ;;  %306 = vmatpush1.bf16.msra.mxu0 %v5015_v7  ;;  %v5032_v20 = vld [vmem:[#allocation4 + $0x1c] ss:$12 sps:$4 sm:$0xff]   ;;  %v5034_v21 = vld [vmem:[#allocation4 + $0x20] ss:$12 sps:$4 sm:$0xff]   ;;  %v5035_v22 = vld [vmem:[#allocation4 + $0x18] ss:$12 sps:$4 sm:$0xff]  }
  0x58   :  { %4672 = vmatprep.subr.bf16.mxu1 %v5590_v0  ;;  %307 = vmatprep.subr.bf16.mxu0 %v5016_v8  ;;  %vm5669_vm2 = vmpackc.low %vm139_vm1, %vm139_vm1  ;;  %v5036_v24 = vld [vmem:[#allocation4 + $0x4] ss:$12 sps:$4 sm:$0xff]   ;;  %v5038_v25 = vld [vmem:[#allocation4 + $0x8] ss:$12 sps:$4 sm:$0xff]   ;;  %v5692_v56 = vshrl.u32 %v106_v55, 7 }
  0x59   :  { %v137_v26 = vld [vmem:[#allocation2] sm:$0xff]  ;;  %v5039_v27 = vld [vmem:[#allocation4] ss:$12 sps:$4 sm:$0xff]   ;;  %v138_v28 = vld [vmem:[#allocation2 + $0x8] sm:$0xff] }
  0x5a   :  { %v5042_v29 = vld [vmem:[#allocation4 + $0x16c] ss:$12 sps:$4 sm:$0xff]   ;;  %v5043_v30 = vld [vmem:[#allocation4 + $0x170] ss:$12 sps:$4 sm:$0xff]   ;;  %v4187_v31 = vpack.c.bf16 %v138_v28, %v137_v26  ;;  %v5040_v32 = vld [vmem:[#allocation4 + $0x168] ss:$12 sps:$4 sm:$0xff]  }
  0x5b   :  { %4673 = vmatpush3.bf16.msra.mxu1 %v5018_v9  ;;  %308 = vmatpush1.bf16.msra.mxu0 %v5019_v10  ;;  %v5046_v33 = vld [vmem:[#allocation4 + $0x154] ss:$12 sps:$4 sm:$0xff]   ;;  %v5047_v34 = vld [vmem:[#allocation4 + $0x158] ss:$12 sps:$4 sm:$0xff]   ;;  %v5044_v35 = vld [vmem:[#allocation4 + $0x150] ss:$12 sps:$4 sm:$0xff]  }
  0x5c   :  { %4674 = vmatprep.subr.bf16.mxu1 %v5590_v0  ;;  %309 = vmatprep.subr.bf16.mxu0 %v5020_v11  ;;  %v5050_v36 = vld [vmem:[#allocation4 + $0x13c] ss:$12 sps:$4 sm:$0xff]   ;;  %v5051_v37 = vld [vmem:[#allocation4 + $0x140] ss:$12 sps:$4 sm:$0xff]   ;;  %v5048_v38 = vld [vmem:[#allocation4 + $0x138] ss:$12 sps:$4 sm:$0xff]  }
  0x5d   :  { %v5054_v39 = vld [vmem:[#allocation4 + $0x124] ss:$12 sps:$4 sm:$0xff]   ;;  %v5052_v40 = vld [vmem:[#allocation4 + $0x120] ss:$12 sps:$4 sm:$0xff]   ;;  %v5055_v41 = vld [vmem:[#allocation4 + $0x128] ss:$12 sps:$4 sm:$0xff]  }
  0x5e   :  { %v5058_v42 = vld [vmem:[#allocation4 + $0x10c] ss:$12 sps:$4 sm:$0xff]   ;;  %v5056_v43 = vld [vmem:[#allocation4 + $0x108] ss:$12 sps:$4 sm:$0xff]   ;;  %v5059_v44 = vld [vmem:[#allocation4 + $0x110] ss:$12 sps:$4 sm:$0xff]  }
  0x5f   :  { %4675 = vmatpush3.bf16.msra.mxu1 %v5022_v12  ;;  %310 = vmatpush1.bf16.msra.mxu0 %v5023_v13  ;;  %v5062_v45 = vld [vmem:[#allocation4 + $0xf4] ss:$12 sps:$4 sm:$0xff]   ;;  %v5060_v46 = vld [vmem:[#allocation4 + $0xf0] ss:$12 sps:$4 sm:$0xff]   ;;  %v5063_v47 = vld [vmem:[#allocation4 + $0xf8] ss:$12 sps:$4 sm:$0xff]  }
  0x60   :  { %4676 = vmatprep.subr.bf16.mxu1 %v5590_v0  ;;  %311 = vmatprep.subr.bf16.mxu0 %v5024_v14  ;;  %v5066_v48 = vld [vmem:[#allocation4 + $0xdc] ss:$12 sps:$4 sm:$0xff]   ;;  %v5064_v49 = vld [vmem:[#allocation4 + $0xd8] ss:$12 sps:$4 sm:$0xff]   ;;  %v5067_v50 = vld [vmem:[#allocation4 + $0xe0] ss:$12 sps:$4 sm:$0xff]  }
  0x61   :  { %v5070_v51 = vld [vmem:[#allocation4 + $0xc4] ss:$12 sps:$4 sm:$0xff]   ;;  %v5068_v52 = vld [vmem:[#allocation4 + $0xc0] ss:$12 sps:$4 sm:$0xff]   ;;  %v5071_v53 = vld [vmem:[#allocation4 + $0xc8] ss:$12 sps:$4 sm:$0xff]  }
  0x62   :  { %v5074_v54 = vld [vmem:[#allocation4 + $0x22c] ss:$12 sps:$4 sm:$0xff]   ;;  %v108_v57 = vadd.s32 8, %v5692_v56  ;;  %v113_v61 = vand.u32 7, %v5692_v56  ;;  %vm389_vm3 = vcmp.lt.s32.totalorder %v5692_v56, 1  ;;  %vm400_vm4 = vcmp.lt.s32.totalorder %v5692_v56, 7 }
  0x63   :  { %4677 = vmatpush3.bf16.msra.mxu1 %v5026_v15  ;;  %312 = vmatpush1.bf16.msra.mxu0 %v5027_v16 }
  0x64   :  { %4678 = vmatprep.subr.bf16.mxu1 %v5590_v0  ;;  %313 = vmatprep.subr.bf16.mxu0 %v5028_v17  ;;  %v120_v62 = vand.u32 7, %v108_v57  ;;  %vm5698_vm5 = vcmp.eq.s32.totalorder %v113_v61, 0  ;;  %vm5706_vm7 = vcmp.eq.s32.totalorder %v113_v61, 7  ;;  %v5100_v57 = vld [vmem:[#allocation4 + $0x180] ss:$12 sps:$4 sm:$0xff]  }
  0x66   :  { %vm5702_vm6 = vcmp.eq.s32.totalorder %v120_v62, 0  ;;  %vm5710_vm8 = vcmp.eq.s32.totalorder %v120_v62, 7 }
  0x67   :  { %4679 = vmatpush3.bf16.msra.mxu1 %v5030_v18  ;;  %314 = vmatpush1.bf16.msra.mxu0 %v5031_v19 }
  0x68   :  { %4680 = vmatprep.subr.bf16.mxu1 %v5590_v0  ;;  %315 = vmatprep.subr.bf16.mxu0 %v5032_v20 }
  0x6b   :  { %4681 = vmatpush3.bf16.msra.mxu1 %v5034_v21  ;;  %316 = vmatpush1.bf16.msra.mxu0 %v5035_v22 }
  0x6c   :  { %4682 = vmatprep.subr.bf16.mxu1 %v5590_v0  ;;  %317 = vmatprep.subr.bf16.mxu0 %v5036_v24  ;;  %v4192_v24 = vld [vmem:[#allocation6] ss:$0 sm:$0xff] }
  0x6f   :  { %4683 = vmatpush3.bf16.msra.mxu1 %v5038_v25  ;;  %318 = vmatpush1.bf16.msra.mxu0 %v5039_v27 }
  0x70   :  { %4688 = vmatprep.subr.bf16.mxu1 %v5590_v0  ;;  %590 = vmatprep.subr.bf16.mxu0 %v5042_v29 }
  0x72   :  { %4685 = vmatmul.mubr.msk.bf16.vlgmr.msra.gmra.mxu1 %vm5669_vm2, %v4187_v31  ;;  %4188 = vmatmul.mubr.msk.bf16.vlgmr.msra.gmra.mxu0 %vm5669_vm2, %v4187_v31 }
  0x73   :  { %4689 = vmatpush3.bf16.msra.mxu1 %v5043_v30  ;;  %591 = vmatpush1.bf16.msra.mxu0 %v5040_v32 }
  0x74   :  { %4690 = vmatprep.subr.bf16.mxu1 %v5590_v0  ;;  %592 = vmatprep.subr.bf16.mxu0 %v5046_v33  ;;  %v5072_v33 = vld [vmem:[#allocation4 + $0x228] ss:$12 sps:$4 sm:$0xff]  }
  0x75   :  { %622 = vmatprep.mubr.bf16.mxu0 %v5592_v1  ;;  %4704 = vmatprep.mubr.msk.bf16.mxu1 %vm5591_vm0, %v5590_v0 }
  0x77   :  { %4691 = vmatpush3.bf16.msra.mxu1 %v5047_v34  ;;  %593 = vmatpush1.bf16.msra.mxu0 %v5044_v35  ;;  %v5075_v34 = vld [vmem:[#allocation4 + $0x230] ss:$12 sps:$4 sm:$0xff]  }
  0x78   :  { %4692 = vmatprep.subr.bf16.mxu1 %v5590_v0  ;;  %594 = vmatprep.subr.bf16.mxu0 %v5050_v36  ;;  %v5078_v36 = vld [vmem:[#allocation4 + $0x214] ss:$12 sps:$4 sm:$0xff]  }
  0x7b   :  { %4693 = vmatpush3.bf16.msra.mxu1 %v5051_v37  ;;  %595 = vmatpush1.bf16.msra.mxu0 %v5048_v38  ;;  %v5076_v37 = vld [vmem:[#allocation4 + $0x210] ss:$12 sps:$4 sm:$0xff]   ;;  %v5079_v38 = vld [vmem:[#allocation4 + $0x218] ss:$12 sps:$4 sm:$0xff]  }
  0x7c   :  { %4694 = vmatprep.subr.bf16.mxu1 %v5590_v0  ;;  %596 = vmatprep.subr.bf16.mxu0 %v5054_v39  ;;  %v5082_v39 = vld [vmem:[#allocation4 + $0x1fc] ss:$12 sps:$4 sm:$0xff]  }
  0x7f   :  { %597 = vmatpush1.bf16.msra.mxu0 %v5052_v40  ;;  %4695 = vmatpush3.bf16.msra.mxu1 %v5055_v41  ;;  %v5080_v40 = vld [vmem:[#allocation4 + $0x1f8] ss:$12 sps:$4 sm:$0xff]   ;;  %v5083_v41 = vld [vmem:[#allocation4 + $0x200] ss:$12 sps:$4 sm:$0xff]  }
  0x80   :  { %4696 = vmatprep.subr.bf16.mxu1 %v5590_v0  ;;  %598 = vmatprep.subr.bf16.mxu0 %v5058_v42  ;;  %v5086_v42 = vld [vmem:[#allocation4 + $0x1e4] ss:$12 sps:$4 sm:$0xff]  }
  0x83   :  { %599 = vmatpush1.bf16.msra.mxu0 %v5056_v43  ;;  %4697 = vmatpush3.bf16.msra.mxu1 %v5059_v44  ;;  %v5084_v43 = vld [vmem:[#allocation4 + $0x1e0] ss:$12 sps:$4 sm:$0xff]   ;;  %v5087_v44 = vld [vmem:[#allocation4 + $0x1e8] ss:$12 sps:$4 sm:$0xff]  }
  0x84   :  { %4698 = vmatprep.subr.bf16.mxu1 %v5590_v0  ;;  %600 = vmatprep.subr.bf16.mxu0 %v5062_v45  ;;  %v5090_v45 = vld [vmem:[#allocation4 + $0x1cc] ss:$12 sps:$4 sm:$0xff]  }
  0x87   :  { %601 = vmatpush1.bf16.msra.mxu0 %v5060_v46  ;;  %4699 = vmatpush3.bf16.msra.mxu1 %v5063_v47  ;;  %v5088_v46 = vld [vmem:[#allocation4 + $0x1c8] ss:$12 sps:$4 sm:$0xff]   ;;  %v5091_v47 = vld [vmem:[#allocation4 + $0x1d0] ss:$12 sps:$4 sm:$0xff]  }
  0x88   :  { %4700 = vmatprep.subr.bf16.mxu1 %v5590_v0  ;;  %602 = vmatprep.subr.bf16.mxu0 %v5066_v48  ;;  %v5094_v48 = vld [vmem:[#allocation4 + $0x1b4] ss:$12 sps:$4 sm:$0xff]  }
  0x8b   :  { %603 = vmatpush1.bf16.msra.mxu0 %v5064_v49  ;;  %4701 = vmatpush3.bf16.msra.mxu1 %v5067_v50  ;;  %v5092_v49 = vld [vmem:[#allocation4 + $0x1b0] ss:$12 sps:$4 sm:$0xff]   ;;  %v5095_v50 = vld [vmem:[#allocation4 + $0x1b8] ss:$12 sps:$4 sm:$0xff]  }
  0x8c   :  { %4702 = vmatprep.subr.bf16.mxu1 %v5590_v0  ;;  %604 = vmatprep.subr.bf16.mxu0 %v5070_v51  ;;  %v5098_v51 = vld [vmem:[#allocation4 + $0x19c] ss:$12 sps:$4 sm:$0xff]  }
  0x8f   :  { %605 = vmatpush1.bf16.msra.mxu0 %v5068_v52  ;;  %4703 = vmatpush3.bf16.msra.mxu1 %v5071_v53  ;;  %v5096_v52 = vld [vmem:[#allocation4 + $0x198] ss:$12 sps:$4 sm:$0xff]   ;;  %v5099_v53 = vld [vmem:[#allocation4 + $0x1a0] ss:$12 sps:$4 sm:$0xff]  }
  0x90   :  { %4708 = vmatprep.subr.bf16.mxu1 %v5590_v0  ;;  %868 = vmatprep.subr.bf16.mxu0 %v5074_v54  ;;  %v5102_v54 = vld [vmem:[#allocation4 + $0x184] ss:$12 sps:$4 sm:$0xff]  }
 0x132   :  { %v380_v58 = vpop.f32.mrf.mxu1  ;;  %v337_v59 = vpop.f32.mrf.mxu0 }
 0x133   :  { %v398_v2 = vrot.slane %v380_v58, 1  ;;  %v387_v6 = vrot.slane %v337_v59, 7  ;;  %v5103_v58 = vld [vmem:[#allocation4 + $0x188] ss:$12 sps:$4 sm:$0xff]   ;;  %v5106_v59 = vld [vmem:[#allocation4 + $0x2ec] ss:$12 sps:$4 sm:$0xff]  }
 0x134   :  { %v4686_v60 = vpop.f32.mrf.mxu1  ;;  %v339_v63 = vpop.f32.mrf.mxu0 }
 0x136   :  { %v383_v3 = vpop.f32.mrf.mxu1  ;;  %v341_v5 = vpop.f32.mrf.mxu0 }
 0x137   :  { %v399_v4 = vrot.slane %v383_v3, 1  ;;  %v388_v8 = vrot.slane %v341_v5, 7 }
 0x138   :  { %v4687_v9 = vpop.f32.mrf.mxu1  ;;  %v343_v18 = vpop.f32.mrf.mxu0 }
 0x139   :  { %v401_v13 = vsel %vm400_vm4, %v398_v2, %v399_v4  ;;  %v391_v14 = vsel %vm389_vm3, %v388_v8, %v387_v6  ;;  %v390_v15 = vsel %vm389_vm3, %v387_v6, %v388_v8  ;;  %v402_v16 = vsel %vm400_vm4, %v399_v4, %v398_v2 }
 0x13a   :  { %v396_v17 = vsel %vm5698_vm5, 0.0, %v391_v14  ;;  %v397_v19 = vsel %vm5702_vm6, 0.0, %v390_v15  ;;  %v407_v22 = vsel %vm5706_vm7, 0.0, %v401_v13  ;;  %v408_v23 = vsel %vm5710_vm8, 0.0, %v402_v16 }
 0x13b   :  { %v409_v20 = vadd.f32 %v396_v17, %v339_v63  ;;  %v410_v21 = vadd.f32 %v397_v19, %v343_v18 }
 0x13d   :  { %v411_v25 = vadd.f32 %v409_v20, %v407_v22  ;;  %v412_v26 = vadd.f32 %v410_v21, %v408_v23 }
 0x13f   :  { %v420_v27 = vadd.f32 %v4192_v24, %v411_v25  ;;  %v421_v28 = vadd.f32 %v4192_v24, %v412_v26  ;;  %v4217_v24 = vld [vmem:[#allocation6 + $0x1] ss:$0 sm:$0xff] }
 0x141   :  { %vm423_vm9 = vcmp.ge.f32.partialorder %v421_v28, 0.0  ;;  %v424_v29 = vmul.f32 0.2, %v420_v27  ;;  %v425_v30 = vmul.f32 0.2, %v421_v28  ;;  %vm422_vm10 = vcmp.ge.f32.partialorder %v420_v27, 0.0 }
 0x143   :  { %v5730_v31 = vsel %vm422_vm10, %v420_v27, %v424_v29  ;;  %v5732_v32 = vsel %vm423_vm9, %v421_v28, %v425_v30 }
 0x144   :  { %v428_v35 = vpack.c.bf16 %v5732_v32, %v5730_v31 }
 0x146   :  { %623 = vmatmul.mubr.bf16.vlgmr.msra.gmra.mxu0 %v428_v35  ;;  %4705 = vmatmul.mubr.bf16.vlgmr.msra.gmra.mxu1 %v428_v35  ;;  %v5104_v35 = vld [vmem:[#allocation4 + $0x2e8] ss:$12 sps:$4 sm:$0xff]  }
 0x147   :  { %869 = vmatpush1.bf16.msra.mxu0 %v5072_v33  ;;  %4709 = vmatpush3.bf16.msra.mxu1 %v5075_v34 }
 0x148   :  { %870 = vmatprep.subr.bf16.mxu0 %v5078_v36  ;;  %4710 = vmatprep.subr.bf16.mxu1 %v5590_v0  ;;  %v5107_v36 = vld [vmem:[#allocation4 + $0x2f0] ss:$12 sps:$4 sm:$0xff]  }
 0x149   :  { %900 = vmatprep.mubr.bf16.mxu0 %v5592_v1  ;;  %4724 = vmatprep.mubr.msk.bf16.mxu1 %vm5591_vm0, %v5590_v0 }
 0x14b   :  { %871 = vmatpush1.bf16.msra.mxu0 %v5076_v37  ;;  %4711 = vmatpush3.bf16.msra.mxu1 %v5079_v38  ;;  %v5110_v38 = vld [vmem:[#allocation4 + $0x2d4] ss:$12 sps:$4 sm:$0xff]  }
 0x14c   :  { %872 = vmatprep.subr.bf16.mxu0 %v5082_v39  ;;  %4712 = vmatprep.subr.bf16.mxu1 %v5590_v0  ;;  %v5108_v39 = vld [vmem:[#allocation4 + $0x2d0] ss:$12 sps:$4 sm:$0xff]  }
 0x14f   :  { %873 = vmatpush1.bf16.msra.mxu0 %v5080_v40  ;;  %4713 = vmatpush3.bf16.msra.mxu1 %v5083_v41  ;;  %v5111_v40 = vld [vmem:[#allocation4 + $0x2d8] ss:$12 sps:$4 sm:$0xff]   ;;  %v5114_v41 = vld [vmem:[#allocation4 + $0x2bc] ss:$12 sps:$4 sm:$0xff]  }
 0x150   :  { %4714 = vmatprep.subr.bf16.mxu1 %v5590_v0  ;;  %874 = vmatprep.subr.bf16.mxu0 %v5086_v42  ;;  %v5112_v42 = vld [vmem:[#allocation4 + $0x2b8] ss:$12 sps:$4 sm:$0xff]  }
 0x153   :  { %875 = vmatpush1.bf16.msra.mxu0 %v5084_v43  ;;  %4715 = vmatpush3.bf16.msra.mxu1 %v5087_v44  ;;  %v5115_v43 = vld [vmem:[#allocation4 + $0x2c0] ss:$12 sps:$4 sm:$0xff]   ;;  %v5118_v44 = vld [vmem:[#allocation4 + $0x2a4] ss:$12 sps:$4 sm:$0xff]  }
 0x154   :  { %4716 = vmatprep.subr.bf16.mxu1 %v5590_v0  ;;  %876 = vmatprep.subr.bf16.mxu0 %v5090_v45  ;;  %v5116_v45 = vld [vmem:[#allocation4 + $0x2a0] ss:$12 sps:$4 sm:$0xff]  }
 0x157   :  { %877 = vmatpush1.bf16.msra.mxu0 %v5088_v46  ;;  %4717 = vmatpush3.bf16.msra.mxu1 %v5091_v47  ;;  %v5119_v46 = vld [vmem:[#allocation4 + $0x2a8] ss:$12 sps:$4 sm:$0xff]   ;;  %v5122_v47 = vld [vmem:[#allocation4 + $0x28c] ss:$12 sps:$4 sm:$0xff]  }
 0x158   :  { %4718 = vmatprep.subr.bf16.mxu1 %v5590_v0  ;;  %878 = vmatprep.subr.bf16.mxu0 %v5094_v48  ;;  %v5120_v48 = vld [vmem:[#allocation4 + $0x288] ss:$12 sps:$4 sm:$0xff]  }
 0x15b   :  { %879 = vmatpush1.bf16.msra.mxu0 %v5092_v49  ;;  %4719 = vmatpush3.bf16.msra.mxu1 %v5095_v50  ;;  %v5123_v49 = vld [vmem:[#allocation4 + $0x290] ss:$12 sps:$4 sm:$0xff]   ;;  %v5126_v50 = vld [vmem:[#allocation4 + $0x274] ss:$12 sps:$4 sm:$0xff]  }
 0x15c   :  { %4720 = vmatprep.subr.bf16.mxu1 %v5590_v0  ;;  %880 = vmatprep.subr.bf16.mxu0 %v5098_v51  ;;  %v5124_v51 = vld [vmem:[#allocation4 + $0x270] ss:$12 sps:$4 sm:$0xff]  }
 0x15f   :  { %881 = vmatpush1.bf16.msra.mxu0 %v5096_v52  ;;  %4721 = vmatpush3.bf16.msra.mxu1 %v5099_v53  ;;  %v5127_v52 = vld [vmem:[#allocation4 + $0x278] ss:$12 sps:$4 sm:$0xff]   ;;  %v5130_v53 = vld [vmem:[#allocation4 + $0x25c] ss:$12 sps:$4 sm:$0xff]  }
 0x160   :  { %4722 = vmatprep.subr.bf16.mxu1 %v5590_v0  ;;  %882 = vmatprep.subr.bf16.mxu0 %v5102_v54  ;;  %v5128_v54 = vld [vmem:[#allocation4 + $0x258] ss:$12 sps:$4 sm:$0xff]  }
 0x163   :  { %883 = vmatpush1.bf16.msra.mxu0 %v5100_v57  ;;  %4723 = vmatpush3.bf16.msra.mxu1 %v5103_v58  ;;  %v5131_v57 = vld [vmem:[#allocation4 + $0x260] ss:$12 sps:$4 sm:$0xff]   ;;  %v5134_v58 = vld [vmem:[#allocation4 + $0x244] ss:$12 sps:$4 sm:$0xff]  }
 0x164   :  { %4728 = vmatprep.subr.bf16.mxu1 %v5590_v0  ;;  %1142 = vmatprep.subr.bf16.mxu0 %v5106_v59  ;;  %v5132_v59 = vld [vmem:[#allocation4 + $0x240] ss:$12 sps:$4 sm:$0xff]  }
 0x206   :  { %v624_v60 = vpop.f32.mrf.mxu0  ;;  %v667_v61 = vpop.f32.mrf.mxu1 }
 0x207   :  { %v674_v4 = vrot.slane %v624_v60, 7  ;;  %v680_v5 = vrot.slane %v667_v61, 1  ;;  %v5135_v60 = vld [vmem:[#allocation4 + $0x248] ss:$12 sps:$4 sm:$0xff]   ;;  %v5138_v61 = vld [vmem:[#allocation4 + $0x3ac] ss:$12 sps:$4 sm:$0xff]  }
 0x208   :  { %v626_v62 = vpop.f32.mrf.mxu0  ;;  %v4706_v63 = vpop.f32.mrf.mxu1 }
 0x20a   :  { %v628_v2 = vpop.f32.mrf.mxu0  ;;  %v670_v3 = vpop.f32.mrf.mxu1 }
 0x20b   :  { %v675_v6 = vrot.slane %v628_v2, 7  ;;  %v681_v8 = vrot.slane %v670_v3, 1 }
 0x20c   :  { %v4707_v9 = vpop.f32.mrf.mxu1  ;;  %v630_v18 = vpop.f32.mrf.mxu0 }
 0x20d   :  { %v677_v13 = vsel %vm389_vm3, %v675_v6, %v674_v4  ;;  %v682_v14 = vsel %vm400_vm4, %v680_v5, %v681_v8  ;;  %v676_v15 = vsel %vm389_vm3, %v674_v4, %v675_v6  ;;  %v683_v16 = vsel %vm400_vm4, %v681_v8, %v680_v5 }
 0x20e   :  { %v678_v17 = vsel %vm5698_vm5, 0.0, %v677_v13  ;;  %v679_v19 = vsel %vm5702_vm6, 0.0, %v676_v15  ;;  %v684_v22 = vsel %vm5706_vm7, 0.0, %v682_v14  ;;  %v685_v23 = vsel %vm5710_vm8, 0.0, %v683_v16 }
 0x20f   :  { %v686_v20 = vadd.f32 %v678_v17, %v626_v62  ;;  %v687_v21 = vadd.f32 %v679_v19, %v630_v18 }
 0x211   :  { %v688_v25 = vadd.f32 %v686_v20, %v684_v22  ;;  %v689_v26 = vadd.f32 %v687_v21, %v685_v23 }
 0x213   :  { %v698_v27 = vadd.f32 %v4217_v24, %v688_v25  ;;  %v699_v28 = vadd.f32 %v4217_v24, %v689_v26  ;;  %v4242_v26 = vld [vmem:[#allocation6 + $0x2] ss:$0 sm:$0xff] }
 0x215   :  { %vm701_vm11 = vcmp.ge.f32.partialorder %v699_v28, 0.0  ;;  %v702_v29 = vmul.f32 0.2, %v698_v27  ;;  %v703_v30 = vmul.f32 0.2, %v699_v28  ;;  %vm700_vm12 = vcmp.ge.f32.partialorder %v698_v27, 0.0 }
 0x217   :  { %v704_v33 = vsel %vm700_vm12, %v698_v27, %v702_v29  ;;  %v705_v34 = vsel %vm701_vm11, %v699_v28, %v703_v30 }
 0x218   :  { %v706_v37 = vpack.c.bf16 %v705_v34, %v704_v33 }
 0x21a   :  { %901 = vmatmul.mubr.bf16.vlgmr.msra.gmra.mxu0 %v706_v37  ;;  %4725 = vmatmul.mubr.bf16.vlgmr.msra.gmra.mxu1 %v706_v37 }
 0x21b   :  { %1143 = vmatpush1.bf16.msra.mxu0 %v5104_v35  ;;  %4729 = vmatpush3.bf16.msra.mxu1 %v5107_v36  ;;  %v5136_v35 = vld [vmem:[#allocation4 + $0x3a8] ss:$12 sps:$4 sm:$0xff]   ;;  %v5139_v36 = vld [vmem:[#allocation4 + $0x3b0] ss:$12 sps:$4 sm:$0xff]  }
 0x21c   :  { %1144 = vmatprep.subr.bf16.mxu0 %v5110_v38  ;;  %4730 = vmatprep.subr.bf16.mxu1 %v5590_v0  ;;  %v5142_v38 = vld [vmem:[#allocation4 + $0x394] ss:$12 sps:$4 sm:$0xff]  }
 0x21d   :  { %1174 = vmatprep.mubr.bf16.mxu0 %v5592_v1  ;;  %4744 = vmatprep.mubr.msk.bf16.mxu1 %vm5591_vm0, %v5590_v0 }
 0x21f   :  { %1145 = vmatpush1.bf16.msra.mxu0 %v5108_v39  ;;  %4731 = vmatpush3.bf16.msra.mxu1 %v5111_v40  ;;  %v5140_v39 = vld [vmem:[#allocation4 + $0x390] ss:$12 sps:$4 sm:$0xff]   ;;  %v5143_v40 = vld [vmem:[#allocation4 + $0x398] ss:$12 sps:$4 sm:$0xff]  }
 0x220   :  { %1146 = vmatprep.subr.bf16.mxu0 %v5114_v41  ;;  %4732 = vmatprep.subr.bf16.mxu1 %v5590_v0  ;;  %v5146_v41 = vld [vmem:[#allocation4 + $0x37c] ss:$12 sps:$4 sm:$0xff]  }
 0x223   :  { %1147 = vmatpush1.bf16.msra.mxu0 %v5112_v42  ;;  %4733 = vmatpush3.bf16.msra.mxu1 %v5115_v43  ;;  %v5150_v42 = vld [vmem:[#allocation4 + $0x364] ss:$12 sps:$4 sm:$0xff]   ;;  %v5148_v43 = vld [vmem:[#allocation4 + $0x360] ss:$12 sps:$4 sm:$0xff]  }
 0x224   :  { %1148 = vmatprep.subr.bf16.mxu0 %v5118_v44  ;;  %4734 = vmatprep.subr.bf16.mxu1 %v5590_v0  ;;  %v5151_v44 = vld [vmem:[#allocation4 + $0x368] ss:$12 sps:$4 sm:$0xff]  }
 0x227   :  { %1149 = vmatpush1.bf16.msra.mxu0 %v5116_v45  ;;  %4735 = vmatpush3.bf16.msra.mxu1 %v5119_v46  ;;  %v5154_v45 = vld [vmem:[#allocation4 + $0x34c] ss:$12 sps:$4 sm:$0xff]   ;;  %v5152_v46 = vld [vmem:[#allocation4 + $0x348] ss:$12 sps:$4 sm:$0xff]  }
 0x228   :  { %4736 = vmatprep.subr.bf16.mxu1 %v5590_v0  ;;  %1150 = vmatprep.subr.bf16.mxu0 %v5122_v47  ;;  %v5155_v47 = vld [vmem:[#allocation4 + $0x350] ss:$12 sps:$4 sm:$0xff]  }
 0x22b   :  { %1151 = vmatpush1.bf16.msra.mxu0 %v5120_v48  ;;  %4737 = vmatpush3.bf16.msra.mxu1 %v5123_v49  ;;  %v5158_v48 = vld [vmem:[#allocation4 + $0x334] ss:$12 sps:$4 sm:$0xff]   ;;  %v5156_v49 = vld [vmem:[#allocation4 + $0x330] ss:$12 sps:$4 sm:$0xff]  }
 0x22c   :  { %4738 = vmatprep.subr.bf16.mxu1 %v5590_v0  ;;  %1152 = vmatprep.subr.bf16.mxu0 %v5126_v50  ;;  %v5159_v50 = vld [vmem:[#allocation4 + $0x338] ss:$12 sps:$4 sm:$0xff]  }
 0x22f   :  { %1153 = vmatpush1.bf16.msra.mxu0 %v5124_v51  ;;  %4739 = vmatpush3.bf16.msra.mxu1 %v5127_v52  ;;  %v5162_v51 = vld [vmem:[#allocation4 + $0x31c] ss:$12 sps:$4 sm:$0xff]   ;;  %v5160_v52 = vld [vmem:[#allocation4 + $0x318] ss:$12 sps:$4 sm:$0xff]  }
 0x230   :  { %4740 = vmatprep.subr.bf16.mxu1 %v5590_v0  ;;  %1154 = vmatprep.subr.bf16.mxu0 %v5130_v53  ;;  %v5163_v53 = vld [vmem:[#allocation4 + $0x320] ss:$12 sps:$4 sm:$0xff]  }
 0x233   :  { %1155 = vmatpush1.bf16.msra.mxu0 %v5128_v54  ;;  %4741 = vmatpush3.bf16.msra.mxu1 %v5131_v57  ;;  %v5166_v54 = vld [vmem:[#allocation4 + $0x304] ss:$12 sps:$4 sm:$0xff]   ;;  %v5164_v57 = vld [vmem:[#allocation4 + $0x300] ss:$12 sps:$4 sm:$0xff]  }
 0x234   :  { %4742 = vmatprep.subr.bf16.mxu1 %v5590_v0  ;;  %1156 = vmatprep.subr.bf16.mxu0 %v5134_v58  ;;  %v5167_v58 = vld [vmem:[#allocation4 + $0x308] ss:$12 sps:$4 sm:$0xff]  }
 0x237   :  { %1157 = vmatpush1.bf16.msra.mxu0 %v5132_v59  ;;  %4743 = vmatpush3.bf16.msra.mxu1 %v5135_v60  ;;  %v5170_v59 = vld [vmem:[#allocation4 + $0x46c] ss:$12 sps:$4 sm:$0xff]  }
 0x238   :  { %4748 = vmatprep.subr.bf16.mxu1 %v5590_v0  ;;  %1420 = vmatprep.subr.bf16.mxu0 %v5138_v61 }
 0x2da   :  { %v902_v62 = vpop.f32.mrf.mxu0  ;;  %v945_v63 = vpop.f32.mrf.mxu1 }
 0x2db   :  { %v952_v6 = vrot.slane %v902_v62, 7  ;;  %v958_v8 = vrot.slane %v945_v63, 1 }
 0x2dc   :  { %v904_v2 = vpop.f32.mrf.mxu0  ;;  %v4726_v3 = vpop.f32.mrf.mxu1 }
 0x2de   :  { %v906_v4 = vpop.f32.mrf.mxu0  ;;  %v948_v5 = vpop.f32.mrf.mxu1 }
 0x2df   :  { %v953_v9 = vrot.slane %v906_v4, 7  ;;  %v959_v13 = vrot.slane %v948_v5, 1 }
 0x2e0   :  { %v4727_v14 = vpop.f32.mrf.mxu1  ;;  %v908_v20 = vpop.f32.mrf.mxu0 }
 0x2e1   :  { %v955_v15 = vsel %vm389_vm3, %v953_v9, %v952_v6  ;;  %v960_v16 = vsel %vm400_vm4, %v958_v8, %v959_v13  ;;  %v954_v17 = vsel %vm389_vm3, %v952_v6, %v953_v9  ;;  %v961_v18 = vsel %vm400_vm4, %v959_v13, %v958_v8 }
 0x2e2   :  { %v956_v19 = vsel %vm5698_vm5, 0.0, %v955_v15  ;;  %v957_v21 = vsel %vm5702_vm6, 0.0, %v954_v17  ;;  %v962_v24 = vsel %vm5706_vm7, 0.0, %v960_v16  ;;  %v963_v25 = vsel %vm5710_vm8, 0.0, %v961_v18 }
 0x2e3   :  { %v964_v22 = vadd.f32 %v956_v19, %v904_v2  ;;  %v965_v23 = vadd.f32 %v957_v21, %v908_v20 }
 0x2e5   :  { %v966_v27 = vadd.f32 %v964_v22, %v962_v24  ;;  %v967_v28 = vadd.f32 %v965_v23, %v963_v25  ;;  %v4267_v24 = vld [vmem:[#allocation6 + $0x3] ss:$0 sm:$0xff] }
 0x2e7   :  { %v976_v29 = vadd.f32 %v4242_v26, %v966_v27  ;;  %v977_v30 = vadd.f32 %v4242_v26, %v967_v28 }
 0x2e9   :  { %v978_v33 = vadd.f32 %v976_v29, %v5730_v31  ;;  %v979_v34 = vadd.f32 %v977_v30, %v5732_v32  ;;  %v5144_v31 = vld [vmem:[#allocation4 + $0x378] ss:$12 sps:$4 sm:$0xff]   ;;  %v5147_v32 = vld [vmem:[#allocation4 + $0x380] ss:$12 sps:$4 sm:$0xff]  }
 0x2eb   :  { %v980_v37 = vpack.c.bf16 %v979_v34, %v978_v33 }
 0x2ed   :  { %1175 = vmatmul.mubr.bf16.vlgmr.msra.gmra.mxu0 %v980_v37  ;;  %4745 = vmatmul.mubr.bf16.vlgmr.msra.gmra.mxu1 %v980_v37 }
 0x2ee   :  { %1421 = vmatpush1.bf16.msra.mxu0 %v5136_v35  ;;  %4749 = vmatpush3.bf16.msra.mxu1 %v5139_v36  ;;  %v5168_v35 = vld [vmem:[#allocation4 + $0x468] ss:$12 sps:$4 sm:$0xff]   ;;  %v5171_v36 = vld [vmem:[#allocation4 + $0x470] ss:$12 sps:$4 sm:$0xff]  }
 0x2ef   :  { %1422 = vmatprep.subr.bf16.mxu0 %v5142_v38  ;;  %4750 = vmatprep.subr.bf16.mxu1 %v5590_v0  ;;  %v5174_v38 = vld [vmem:[#allocation4 + $0x454] ss:$12 sps:$4 sm:$0xff]  }
 0x2f0   :  { %1452 = vmatprep.mubr.bf16.mxu0 %v5592_v1  ;;  %4764 = vmatprep.mubr.msk.bf16.mxu1 %vm5591_vm0, %v5590_v0 }
 0x2f2   :  { %1423 = vmatpush1.bf16.msra.mxu0 %v5140_v39  ;;  %4751 = vmatpush3.bf16.msra.mxu1 %v5143_v40  ;;  %v5172_v39 = vld [vmem:[#allocation4 + $0x450] ss:$12 sps:$4 sm:$0xff]   ;;  %v5175_v40 = vld [vmem:[#allocation4 + $0x458] ss:$12 sps:$4 sm:$0xff]  }
 0x2f3   :  { %1424 = vmatprep.subr.bf16.mxu0 %v5146_v41  ;;  %4752 = vmatprep.subr.bf16.mxu1 %v5590_v0  ;;  %v5178_v41 = vld [vmem:[#allocation4 + $0x43c] ss:$12 sps:$4 sm:$0xff]  }
 0x2f6   :  { %1425 = vmatpush1.bf16.msra.mxu0 %v5144_v31  ;;  %4753 = vmatpush3.bf16.msra.mxu1 %v5147_v32  ;;  %v5176_v31 = vld [vmem:[#allocation4 + $0x438] ss:$12 sps:$4 sm:$0xff]   ;;  %v5179_v32 = vld [vmem:[#allocation4 + $0x440] ss:$12 sps:$4 sm:$0xff]  }
 0x2f7   :  { %4754 = vmatprep.subr.bf16.mxu1 %v5590_v0  ;;  %1426 = vmatprep.subr.bf16.mxu0 %v5150_v42  ;;  %v5182_v42 = vld [vmem:[#allocation4 + $0x424] ss:$12 sps:$4 sm:$0xff]  }
 0x2fa   :  { %1427 = vmatpush1.bf16.msra.mxu0 %v5148_v43  ;;  %4755 = vmatpush3.bf16.msra.mxu1 %v5151_v44  ;;  %v5180_v43 = vld [vmem:[#allocation4 + $0x420] ss:$12 sps:$4 sm:$0xff]   ;;  %v5183_v44 = vld [vmem:[#allocation4 + $0x428] ss:$12 sps:$4 sm:$0xff]  }
 0x2fb   :  { %4756 = vmatprep.subr.bf16.mxu1 %v5590_v0  ;;  %1428 = vmatprep.subr.bf16.mxu0 %v5154_v45  ;;  %v5186_v45 = vld [vmem:[#allocation4 + $0x40c] ss:$12 sps:$4 sm:$0xff]  }
 0x2fe   :  { %1429 = vmatpush1.bf16.msra.mxu0 %v5152_v46  ;;  %4757 = vmatpush3.bf16.msra.mxu1 %v5155_v47  ;;  %v5184_v46 = vld [vmem:[#allocation4 + $0x408] ss:$12 sps:$4 sm:$0xff]   ;;  %v5187_v47 = vld [vmem:[#allocation4 + $0x410] ss:$12 sps:$4 sm:$0xff]  }
 0x2ff   :  { %4758 = vmatprep.subr.bf16.mxu1 %v5590_v0  ;;  %1430 = vmatprep.subr.bf16.mxu0 %v5158_v48  ;;  %v5190_v48 = vld [vmem:[#allocation4 + $0x3f4] ss:$12 sps:$4 sm:$0xff]  }
 0x302   :  { %1431 = vmatpush1.bf16.msra.mxu0 %v5156_v49  ;;  %4759 = vmatpush3.bf16.msra.mxu1 %v5159_v50  ;;  %v5188_v49 = vld [vmem:[#allocation4 + $0x3f0] ss:$12 sps:$4 sm:$0xff]   ;;  %v5191_v50 = vld [vmem:[#allocation4 + $0x3f8] ss:$12 sps:$4 sm:$0xff]  }
 0x303   :  { %4760 = vmatprep.subr.bf16.mxu1 %v5590_v0  ;;  %1432 = vmatprep.subr.bf16.mxu0 %v5162_v51  ;;  %v5194_v51 = vld [vmem:[#allocation4 + $0x3dc] ss:$12 sps:$4 sm:$0xff]  }
 0x306   :  { %1433 = vmatpush1.bf16.msra.mxu0 %v5160_v52  ;;  %4761 = vmatpush3.bf16.msra.mxu1 %v5163_v53  ;;  %v5192_v52 = vld [vmem:[#allocation4 + $0x3d8] ss:$12 sps:$4 sm:$0xff]   ;;  %v5195_v53 = vld [vmem:[#allocation4 + $0x3e0] ss:$12 sps:$4 sm:$0xff]  }
 0x307   :  { %4762 = vmatprep.subr.bf16.mxu1 %v5590_v0  ;;  %1434 = vmatprep.subr.bf16.mxu0 %v5166_v54  ;;  %v5198_v54 = vld [vmem:[#allocation4 + $0x3c4] ss:$12 sps:$4 sm:$0xff]  }
 0x30a   :  { %1435 = vmatpush1.bf16.msra.mxu0 %v5164_v57  ;;  %4763 = vmatpush3.bf16.msra.mxu1 %v5167_v58  ;;  %v5196_v57 = vld [vmem:[#allocation4 + $0x3c0] ss:$12 sps:$4 sm:$0xff]   ;;  %v5199_v58 = vld [vmem:[#allocation4 + $0x3c8] ss:$12 sps:$4 sm:$0xff]  }
 0x30b   :  { %4768 = vmatprep.subr.bf16.mxu1 %v5590_v0  ;;  %1698 = vmatprep.subr.bf16.mxu0 %v5170_v59 }
 0x3ad   :  { %v1176_v60 = vpop.f32.mrf.mxu0  ;;  %v1219_v61 = vpop.f32.mrf.mxu1 }
 0x3ae   :  { %v1226_v4 = vrot.slane %v1176_v60, 7  ;;  %v1232_v5 = vrot.slane %v1219_v61, 1 }
 0x3af   :  { %v1178_v62 = vpop.f32.mrf.mxu0  ;;  %v4746_v63 = vpop.f32.mrf.mxu1 }
 0x3b1   :  { %v1180_v2 = vpop.f32.mrf.mxu0  ;;  %v1222_v3 = vpop.f32.mrf.mxu1 }
 0x3b2   :  { %v1227_v6 = vrot.slane %v1180_v2, 7  ;;  %v1233_v8 = vrot.slane %v1222_v3, 1 }
 0x3b3   :  { %v4747_v9 = vpop.f32.mrf.mxu1  ;;  %v1182_v18 = vpop.f32.mrf.mxu0 }
 0x3b4   :  { %v1229_v13 = vsel %vm389_vm3, %v1227_v6, %v1226_v4  ;;  %v1234_v14 = vsel %vm400_vm4, %v1232_v5, %v1233_v8  ;;  %v1228_v15 = vsel %vm389_vm3, %v1226_v4, %v1227_v6  ;;  %v1235_v16 = vsel %vm400_vm4, %v1233_v8, %v1232_v5 }
 0x3b5   :  { %v1230_v17 = vsel %vm5698_vm5, 0.0, %v1229_v13  ;;  %v1231_v19 = vsel %vm5702_vm6, 0.0, %v1228_v15  ;;  %v1236_v22 = vsel %vm5706_vm7, 0.0, %v1234_v14  ;;  %v1237_v23 = vsel %vm5710_vm8, 0.0, %v1235_v16 }
 0x3b6   :  { %v1238_v20 = vadd.f32 %v1230_v17, %v1178_v62  ;;  %v1239_v21 = vadd.f32 %v1231_v19, %v1182_v18 }
 0x3b8   :  { %v1240_v25 = vadd.f32 %v1238_v20, %v1236_v22  ;;  %v1241_v26 = vadd.f32 %v1239_v21, %v1237_v23  ;;  %v4292_v23 = vld [vmem:[#allocation6 + $0x4] ss:$0 sm:$0xff] }
 0x3ba   :  { %v1250_v27 = vadd.f32 %v4267_v24, %v1240_v25  ;;  %v1251_v28 = vadd.f32 %v4267_v24, %v1241_v26 }
 0x3bc   :  { %vm1253_vm13 = vcmp.ge.f32.partialorder %v1251_v28, 0.0  ;;  %v1254_v29 = vmul.f32 0.2, %v1250_v27  ;;  %v1255_v30 = vmul.f32 0.2, %v1251_v28  ;;  %vm1252_vm14 = vcmp.ge.f32.partialorder %v1250_v27, 0.0 }
 0x3be   :  { %v5819_v33 = vsel %vm1252_vm14, %v1250_v27, %v1254_v29  ;;  %v5821_v34 = vsel %vm1253_vm13, %v1251_v28, %v1255_v30 }
 0x3bf   :  { %v1258_v37 = vpack.c.bf16 %v5821_v34, %v5819_v33 }
 0x3c1   :  { %1453 = vmatmul.mubr.bf16.vlgmr.msra.gmra.mxu0 %v1258_v37  ;;  %4765 = vmatmul.mubr.bf16.vlgmr.msra.gmra.mxu1 %v1258_v37 }
 0x3c2   :  { %1699 = vmatpush1.bf16.msra.mxu0 %v5168_v35  ;;  %4769 = vmatpush3.bf16.msra.mxu1 %v5171_v36  ;;  %v5200_v36 = vld [vmem:[#allocation9 + $0x38] sm:$0xff]  }
 0x3c3   :  { %1700 = vmatprep.subr.bf16.mxu0 %v5174_v38  ;;  %4770 = vmatprep.subr.bf16.mxu1 %v5590_v0  ;;  %v5201_v38 = vld [vmem:[#allocation9 + $0x30] sm:$0xff]  }
 0x3c4   :  { %1730 = vmatprep.mubr.bf16.mxu0 %v5592_v1  ;;  %4784 = vmatprep.mubr.msk.bf16.mxu1 %vm5591_vm0, %v5590_v0 }
 0x3c6   :  { %1701 = vmatpush1.bf16.msra.mxu0 %v5172_v39  ;;  %4771 = vmatpush3.bf16.msra.mxu1 %v5175_v40  ;;  %v5202_v39 = vld [vmem:[#allocation9 + $0x28] sm:$0xff]   ;;  %v5203_v40 = vld [vmem:[#allocation9 + $0x20] sm:$0xff]  }
 0x3c7   :  { %1702 = vmatprep.subr.bf16.mxu0 %v5178_v41  ;;  %4772 = vmatprep.subr.bf16.mxu1 %v5590_v0  ;;  %v5204_v41 = vld [vmem:[#allocation9 + $0x18] sm:$0xff]  }
 0x3ca   :  { %1703 = vmatpush1.bf16.msra.mxu0 %v5176_v31  ;;  %4773 = vmatpush3.bf16.msra.mxu1 %v5179_v32  ;;  %v5205_v31 = vld [vmem:[#allocation9 + $0x10] sm:$0xff]   ;;  %v5206_v32 = vld [vmem:[#allocation9 + $0x8] sm:$0xff]  }
 0x3cb   :  { %4774 = vmatprep.subr.bf16.mxu1 %v5590_v0  ;;  %1704 = vmatprep.subr.bf16.mxu0 %v5182_v42  ;;  %v5207_v42 = vld [vmem:[#allocation9] sm:$0xff]  }
 0x3ce   :  { %1705 = vmatpush1.bf16.msra.mxu0 %v5180_v43  ;;  %4775 = vmatpush3.bf16.msra.mxu1 %v5183_v44 }
 0x3cf   :  { %4776 = vmatprep.subr.bf16.mxu1 %v5590_v0  ;;  %1706 = vmatprep.subr.bf16.mxu0 %v5186_v45 }
 0x3d2   :  { %1707 = vmatpush1.bf16.msra.mxu0 %v5184_v46  ;;  %4777 = vmatpush3.bf16.msra.mxu1 %v5187_v47 }
 0x3d3   :  { %4778 = vmatprep.subr.bf16.mxu1 %v5590_v0  ;;  %1708 = vmatprep.subr.bf16.mxu0 %v5190_v48 }
 0x3d6   :  { %1709 = vmatpush1.bf16.msra.mxu0 %v5188_v49  ;;  %4779 = vmatpush3.bf16.msra.mxu1 %v5191_v50 }
 0x3d7   :  { %4780 = vmatprep.subr.bf16.mxu1 %v5590_v0  ;;  %1710 = vmatprep.subr.bf16.mxu0 %v5194_v51 }
 0x3da   :  { %1711 = vmatpush1.bf16.msra.mxu0 %v5192_v52  ;;  %4781 = vmatpush3.bf16.msra.mxu1 %v5195_v53 }
 0x3db   :  { %4782 = vmatprep.subr.bf16.mxu1 %v5590_v0  ;;  %1712 = vmatprep.subr.bf16.mxu0 %v5198_v54 }
 0x3de   :  { %1713 = vmatpush1.bf16.msra.mxu0 %v5196_v57  ;;  %4783 = vmatpush3.bf16.msra.mxu1 %v5199_v58 }
 0x3df   :  { %4788 = vmatprep.subr.bf16.mxu0 %v5590_v0  ;;  %4808 = vmatprep.subr.bf16.mxu1 %v5590_v0 }
 0x481   :  { %v1454_v59 = vpop.f32.mrf.mxu0  ;;  %v1497_v60 = vpop.f32.mrf.mxu1 }
 0x482   :  { %v1504_v3 = vrot.slane %v1454_v59, 7  ;;  %v1510_v4 = vrot.slane %v1497_v60, 1 }
 0x483   :  { %v1456_v61 = vpop.f32.mrf.mxu0  ;;  %v4766_v62 = vpop.f32.mrf.mxu1 }
 0x485   :  { %v1458_v63 = vpop.f32.mrf.mxu0  ;;  %v1500_v2 = vpop.f32.mrf.mxu1 }
 0x486   :  { %v1505_v5 = vrot.slane %v1458_v63, 7  ;;  %v1511_v6 = vrot.slane %v1500_v2, 1 }
 0x487   :  { %v4767_v8 = vpop.f32.mrf.mxu1  ;;  %v1460_v17 = vpop.f32.mrf.mxu0 }
 0x488   :  { %v1507_v9 = vsel %vm389_vm3, %v1505_v5, %v1504_v3  ;;  %v1512_v13 = vsel %vm400_vm4, %v1510_v4, %v1511_v6  ;;  %v1506_v14 = vsel %vm389_vm3, %v1504_v3, %v1505_v5  ;;  %v1513_v15 = vsel %vm400_vm4, %v1511_v6, %v1510_v4  ;;  %v4317_v5 = vld [vmem:[#allocation6 + $0x5] ss:$0 sm:$0xff] }
 0x489   :  { %v1508_v16 = vsel %vm5698_vm5, 0.0, %v1507_v9  ;;  %v1509_v18 = vsel %vm5702_vm6, 0.0, %v1506_v14  ;;  %v1514_v21 = vsel %vm5706_vm7, 0.0, %v1512_v13  ;;  %v1515_v22 = vsel %vm5710_vm8, 0.0, %v1513_v15 }
 0x48a   :  { %v1516_v19 = vadd.f32 %v1508_v16, %v1456_v61  ;;  %v1517_v20 = vadd.f32 %v1509_v18, %v1460_v17  ;;  %v4326_v18 = vld [vmem:[#allocation10] ss:$0 sm:$0xff] }
 0x48c   :  { %v1518_v24 = vadd.f32 %v1516_v19, %v1514_v21  ;;  %v1519_v25 = vadd.f32 %v1517_v20, %v1515_v22 }
 0x48e   :  { %v1528_v26 = vadd.f32 %v4292_v23, %v1518_v24  ;;  %v1529_v27 = vadd.f32 %v4292_v23, %v1519_v25 }
 0x490   :  { %vm1531_vm15 = vcmp.ge.f32.partialorder %v1529_v27, 0.0  ;;  %v1532_v28 = vmul.f32 0.2, %v1528_v26  ;;  %v1533_v29 = vmul.f32 0.2, %v1529_v27  ;;  %vm1530_vm1 = vcmp.ge.f32.partialorder %v1528_v26, 0.0 }
 0x492   :  { %v1534_v30 = vsel %vm1530_vm1, %v1528_v26, %v1532_v28  ;;  %v1535_v35 = vsel %vm1531_vm15, %v1529_v27, %v1533_v29  ;;  %vm2207_vm15 = vcmask 1040384  }
 0x493   :  { %v1536_v37 = vpack.c.bf16 %v1535_v35, %v1534_v30 }
 0x495   :  { %1731 = vmatmul.mubr.bf16.vlgmr.msra.gmra.mxu0 %v1536_v37  ;;  %4785 = vmatmul.mubr.bf16.vlgmr.msra.gmra.mxu1 %v1536_v37  ;;  %v5208_v37 = vld [vmem:[#allocation7 + $0x78] sm:$0xff]  }
 0x496   :  { %4789 = vmatpush3.bf16.msra.mxu0 %v5200_v36  ;;  %4804 = vmatprep.mubr.msk.bf16.mxu0 %vm5591_vm0, %v5590_v0 }
 0x497   :  { %4790 = vmatprep.subr.bf16.mxu0 %v5590_v0  ;;  %4824 = vmatprep.mubr.msk.bf16.mxu1 %vm5591_vm0, %v5590_v0 }
 0x498   :  { %4809 = vmatpush3.bf16.msra.mxu1 %v5208_v37  ;;  %v5247_v37 = vld [vmem:[#allocation4 + $0x4b8] ss:$12 sps:$4 sm:$0xff]  }
 0x499   :  { %4810 = vmatprep.subr.bf16.mxu1 %v5590_v0 }
 0x49a   :  { %4791 = vmatpush3.bf16.msra.mxu0 %v5201_v38  ;;  %v5209_v38 = vld [vmem:[#allocation7 + $0x38] sm:$0xff]  }
 0x49b   :  { %4792 = vmatprep.subr.bf16.mxu0 %v5590_v0 }
 0x49e   :  { %4793 = vmatpush3.bf16.msra.mxu0 %v5202_v39  ;;  %v5211_v39 = vld [vmem:[#allocation7 + $0x30] sm:$0xff]  }
 0x49f   :  { %4794 = vmatprep.subr.bf16.mxu0 %v5590_v0 }
 0x4a2   :  { %4795 = vmatpush3.bf16.msra.mxu0 %v5203_v40  ;;  %v5212_v40 = vld [vmem:[#allocation7 + $0x68] sm:$0xff]  }
 0x4a3   :  { %4796 = vmatprep.subr.bf16.mxu0 %v5590_v0 }
 0x4a6   :  { %4797 = vmatpush3.bf16.msra.mxu0 %v5204_v41  ;;  %v5213_v41 = vld [vmem:[#allocation7 + $0x28] sm:$0xff]  }
 0x4a7   :  { %4798 = vmatprep.subr.bf16.mxu0 %v5590_v0 }
 0x4aa   :  { %4799 = vmatpush3.bf16.msra.mxu0 %v5205_v31  ;;  %v5214_v31 = vld [vmem:[#allocation7 + $0x60] sm:$0xff]  }
 0x4ab   :  { %4800 = vmatprep.subr.bf16.mxu0 %v5590_v0 }
 0x4ae   :  { %4801 = vmatpush3.bf16.msra.mxu0 %v5206_v32  ;;  %v5215_v32 = vld [vmem:[#allocation7 + $0x20] sm:$0xff]  }
 0x4af   :  { %4802 = vmatprep.subr.bf16.mxu0 %v5590_v0 }
 0x4b2   :  { %4803 = vmatpush3.bf16.msra.mxu0 %v5207_v42  ;;  %v5216_v42 = vld [vmem:[#allocation7 + $0x58] sm:$0xff]  }
 0x4b3   :  { %4828 = vmatprep.subr.bf16.mxu0 %v5590_v0 }
 0x555   :  { %v1732_v43 = vpop.f32.mrf.mxu0  ;;  %v1775_v44 = vpop.f32.mrf.mxu1 }
 0x556   :  { %v1782_v49 = vrot.slane %v1732_v43, 7  ;;  %v1788_v50 = vrot.slane %v1775_v44, 1  ;;  %v5217_v43 = vld [vmem:[#allocation7 + $0x18] sm:$0xff]   ;;  %v5218_v44 = vld [vmem:[#allocation7 + $0x50] sm:$0xff]  }
 0x557   :  { %v1734_v45 = vpop.f32.mrf.mxu0  ;;  %v4786_v46 = vpop.f32.mrf.mxu1 }
 0x559   :  { %v1736_v47 = vpop.f32.mrf.mxu0  ;;  %v1778_v48 = vpop.f32.mrf.mxu1 }
 0x55a   :  { %v1783_v51 = vrot.slane %v1736_v47, 7  ;;  %v1789_v52 = vrot.slane %v1778_v48, 1 }
 0x55b   :  { %v4787_v53 = vpop.f32.mrf.mxu1  ;;  %v1738_v61 = vpop.f32.mrf.mxu0 }
 0x55c   :  { %v1785_v54 = vsel %vm389_vm3, %v1783_v51, %v1782_v49  ;;  %v1790_v57 = vsel %vm400_vm4, %v1788_v50, %v1789_v52  ;;  %v1784_v58 = vsel %vm389_vm3, %v1782_v49, %v1783_v51  ;;  %v1791_v59 = vsel %vm400_vm4, %v1789_v52, %v1788_v50 }
 0x55d   :  { %v1786_v60 = vsel %vm5698_vm5, 0.0, %v1785_v54  ;;  %v1787_v62 = vsel %vm5702_vm6, 0.0, %v1784_v58  ;;  %v1792_v3 = vsel %vm5706_vm7, 0.0, %v1790_v57  ;;  %v1793_v4 = vsel %vm5710_vm8, 0.0, %v1791_v59  ;;  %v5220_v54 = vld [vmem:[#allocation7 + $0x48] sm:$0xff]   ;;  %v5222_v58 = vld [vmem:[#allocation7 + $0x40] sm:$0xff]  }
 0x55e   :  { %v1794_v63 = vadd.f32 %v1786_v60, %v1734_v45  ;;  %v1795_v2 = vadd.f32 %v1787_v62, %v1738_v61  ;;  %v5219_v45 = vld [vmem:[#allocation7 + $0x10] sm:$0xff]   ;;  %v5221_v57 = vld [vmem:[#allocation7 + $0x8] sm:$0xff]   ;;  %v5223_v59 = vld [vmem:[#allocation7] sm:$0xff]  }
 0x55f   :  { %v5226_v60 = vld [vmem:[#allocation4 + $0x52c] ss:$12 sps:$4 sm:$0xff]  }
 0x560   :  { %v1796_v6 = vadd.f32 %v1794_v63, %v1792_v3  ;;  %v1797_v8 = vadd.f32 %v1795_v2, %v1793_v4 }
 0x562   :  { %v1806_v9 = vadd.f32 %v4317_v5, %v1796_v6  ;;  %v1807_v13 = vadd.f32 %v4317_v5, %v1797_v8 }
 0x564   :  { %v5882_v14 = vadd.f32 %v1806_v9, %v5819_v33  ;;  %v5885_v15 = vadd.f32 %v1807_v13, %v5821_v34  ;;  %v5892_v34 = vand.u32 127, %v106_v55  ;;  %v5210_v55 = vld [vmem:[#allocation7 + $0x70] sm:$0xff]   ;;  %v5224_v13 = vld [vmem:[#allocation4 + $0x528] ss:$12 sps:$4 sm:$0xff]  }
 0x565   :  { %4811 = vmatpush3.bf16.msra.mxu1 %v5210_v55  ;;  %v5248_v55 = vld [vmem:[#allocation4 + $0x498] ss:$12 sps:$4 sm:$0xff]  }
 0x566   :  { %v1810_v16 = vpack.c.bf16 %v5885_v15, %v5882_v14  ;;  %4812 = vmatprep.subr.bf16.mxu1 %v5590_v0 }
 0x568   :  { %4805 = vmatmul.mubr.bf16.vlgmr.msra.gmra.mxu0 %v1810_v16  ;;  %v5227_v16 = vld [vmem:[#allocation4 + $0x530] ss:$12 sps:$4 sm:$0xff]  }
 0x569   :  { %4844 = vmatprep.mubr.msk.bf16.mxu0 %vm5591_vm0, %v5590_v0  ;;  %4829 = vmatpush3.bf16.msra.mxu0 %v5209_v38  ;;  %v5250_v38 = vld [vmem:[#allocation4 + $0x49c] ss:$12 sps:$4 sm:$0xff]  }
 0x56a   :  { %4830 = vmatprep.subr.bf16.mxu0 %v5590_v0  ;;  %4813 = vmatpush3.bf16.msra.mxu1 %v5212_v40  ;;  %v5254_v40 = vld [vmem:[#allocation4 + $0x484] ss:$12 sps:$4 sm:$0xff]  }
 0x56b   :  { %4814 = vmatprep.subr.bf16.mxu1 %v5590_v0 }
 0x56d   :  { %4831 = vmatpush3.bf16.msra.mxu0 %v5211_v39  ;;  %v5251_v39 = vld [vmem:[#allocation4 + $0x4a0] ss:$12 sps:$4 sm:$0xff]  }
 0x56e   :  { %4832 = vmatprep.subr.bf16.mxu0 %v5590_v0  ;;  %4815 = vmatpush3.bf16.msra.mxu1 %v5214_v31  ;;  %v5255_v31 = vld [vmem:[#allocation4 + $0x488] ss:$12 sps:$4 sm:$0xff]  }
 0x56f   :  { %4816 = vmatprep.subr.bf16.mxu1 %v5590_v0 }
 0x571   :  { %4833 = vmatpush3.bf16.msra.mxu0 %v5213_v41  ;;  %v5252_v41 = vld [vmem:[#allocation4 + $0x480] ss:$12 sps:$4 sm:$0xff]  }
 0x572   :  { %4834 = vmatprep.subr.bf16.mxu0 %v5590_v0  ;;  %4817 = vmatpush3.bf16.msra.mxu1 %v5216_v42 }
 0x573   :  { %4818 = vmatprep.subr.bf16.mxu1 %v5590_v0 }
 0x575   :  { %4835 = vmatpush3.bf16.msra.mxu0 %v5215_v32 }
 0x576   :  { %4836 = vmatprep.subr.bf16.mxu0 %v5590_v0  ;;  %4819 = vmatpush3.bf16.msra.mxu1 %v5218_v44 }
 0x577   :  { %4820 = vmatprep.subr.bf16.mxu1 %v5590_v0 }
 0x579   :  { %4837 = vmatpush3.bf16.msra.mxu0 %v5217_v43 }
 0x57a   :  { %4838 = vmatprep.subr.bf16.mxu0 %v5590_v0  ;;  %4821 = vmatpush3.bf16.msra.mxu1 %v5220_v54 }
 0x57b   :  { %4822 = vmatprep.subr.bf16.mxu1 %v5590_v0 }
 0x57d   :  { %4839 = vmatpush3.bf16.msra.mxu0 %v5219_v45 }
 0x57e   :  { %4840 = vmatprep.subr.bf16.mxu0 %v5590_v0  ;;  %4823 = vmatpush3.bf16.msra.mxu1 %v5222_v58 }
 0x57f   :  { %2372 = vmatprep.subr.bf16.mxu1 %v5226_v60  ;;  %v5259_v60 = vld [vmem:[#allocation4 + $0x5f0] ss:$12 sps:$4 sm:$0xff]  }
 0x581   :  { %4841 = vmatpush3.bf16.msra.mxu0 %v5221_v57 }
 0x582   :  { %4842 = vmatprep.subr.bf16.mxu0 %v5590_v0 }
 0x585   :  { %4843 = vmatpush3.bf16.msra.mxu0 %v5223_v59  ;;  %v5258_v59 = vld [vmem:[#allocation4 + $0x5ec] ss:$12 sps:$4 sm:$0xff]  }
 0x586   :  { %4848 = vmatprep.subr.bf16.mxu0 %v5590_v0 }
 0x628   :  { %v1909_v17 = vpop.f32.mrf.mxu0 }
 0x629   :  { %v1917_v19 = vmul.f32 2.0, %v1909_v17  ;;  %v5230_v17 = vld [vmem:[#allocation4 + $0x514] ss:$12 sps:$4 sm:$0xff]  }
 0x62a   :  { %v4806_v20 = vpop.f32.mrf.mxu0 }
 0x62b   :  { %v1925_v21 = vsub.f32 %v4326_v18, %v1917_v19 }
 0x62c   :  { %v1912_v22 = vpop.f32.mrf.mxu0 }
 0x62d   :  { %v1918_v23 = vmul.f32 2.0, %v1912_v22  ;;  %1929 = vmin.xlane.f32.xlu0 %v1925_v21  ;;  %v5228_v22 = vld [vmem:[#allocation4 + $0x510] ss:$12 sps:$4 sm:$0xff]  }
 0x62e   :  { %v4807_v33 = vpop.f32.mrf.mxu0 }
 0x62f   :  { %v1926_v24 = vsub.f32 %v4326_v18, %v1918_v23  ;;  %v5231_v23 = vld [vmem:[#allocation4 + $0x518] ss:$12 sps:$4 sm:$0xff]   ;;  %v5234_v33 = vld [vmem:[#allocation4 + $0x4fc] ss:$12 sps:$4 sm:$0xff]  }
 0x631   :  { %1931 = vmin.xlane.f32.xlu0 %v1926_v24 }
 0x6b6   :  { %v1930_v25 = vpop.xlane.xlu0 %1929 }
 0x6b7   :  { %vm1933_vm2 = vcmp.eq.f32.partialorder %v1925_v21, %v1930_v25  ;;  %v5593_v21 = vmov 1.0|1.0   ;;  %v5238_v25 = vld [vmem:[#allocation4 + $0x4e4] ss:$12 sps:$4 sm:$0xff]  }
 0x6b8   :  { %v1935_v26 = vsel %vm1933_vm2, %v5892_v34, 128 }
 0x6b9   :  { %v1938_v27 = vshra.s32 %v1935_v26, 16  ;;  %v1937_v46 = vand.u32 65535, %v1935_v26  ;;  %v5236_v26 = vld [vmem:[#allocation4 + $0x4e0] ss:$12 sps:$4 sm:$0xff]  }
 0x6ba   :  { %v1932_v28 = vpop.xlane.xlu0 %1931 }
 0x6bb   :  { %vm1934_vm9 = vcmp.eq.f32.partialorder %v1926_v24, %v1932_v28  ;;  %v1940_v29 = vcvt.s32.f32 %v1938_v27  ;;  %v1939_v49 = vcvt.s32.f32 %v1937_v46  ;;  %v5232_v24 = vld [vmem:[#allocation4 + $0x4f8] ss:$12 sps:$4 sm:$0xff]   ;;  %v5239_v27 = vld [vmem:[#allocation4 + $0x4e8] ss:$12 sps:$4 sm:$0xff]  }
 0x6bc   :  { %v1936_v30 = vsel %vm1934_vm9, %v5892_v34, 128  ;;  %v5242_v28 = vld [vmem:[#allocation4 + $0x4cc] ss:$12 sps:$4 sm:$0xff]  }
 0x6bd   :  { %1941 = vmin.xlane.f32.xlu1 %v1940_v29  ;;  %v1952_v35 = vshra.s32 %v1936_v30, 16  ;;  %v1951_v47 = vand.u32 65535, %v1936_v30  ;;  %v5243_v30 = vld [vmem:[#allocation4 + $0x4d0] ss:$12 sps:$4 sm:$0xff]  }
 0x6bf   :  { %v1954_v36 = vcvt.s32.f32 %v1952_v35  ;;  %v1953_v52 = vcvt.s32.f32 %v1951_v47  ;;  %v5246_v35 = vld [vmem:[#allocation4 + $0x4b4] ss:$12 sps:$4 sm:$0xff]  }
 0x6c1   :  { %1955 = vmin.xlane.f32.xlu1 %v1954_v36 }
 0x746   :  { %v1942_v48 = vpop.xlane.xlu1 %1941 }
 0x747   :  { %vm1943_vm10 = vcmp.eq.f32.partialorder %v1940_v29, %v1942_v48  ;;  %v1948_v61 = vcvt.f32.s32 %v1942_v48  ;;  %v5240_v29 = vld [vmem:[#allocation4 + $0x4c8] ss:$12 sps:$4 sm:$0xff]  }
 0x748   :  { %v1944_v50 = vsel %vm1943_vm10, %v1939_v49, inf }
 0x749   :  { %1945 = vmin.xlane.f32.xlu0 %v1944_v50  ;;  %v1949_v63 = vshll.u32 %v1948_v61, 16  ;;  %v5262_v61 = vld [vmem:[#allocation4 + $0x5d4] ss:$12 sps:$4 sm:$0xff]  }
 0x74a   :  { %v1956_v51 = vpop.xlane.xlu1 %1955 }
 0x74b   :  { %vm1957_vm11 = vcmp.eq.f32.partialorder %v1954_v36, %v1956_v51  ;;  %v1962_v2 = vcvt.f32.s32 %v1956_v51  ;;  %v5244_v36 = vld [vmem:[#allocation4 + $0x4b0] ss:$12 sps:$4 sm:$0xff]  }
 0x74c   :  { %v1958_v53 = vsel %vm1957_vm11, %v1953_v52, inf }
 0x74d   :  { %1959 = vmin.xlane.f32.xlu1 %v1958_v53  ;;  %v1963_v6 = vshll.u32 %v1962_v2, 16  ;;  %v5267_v2 = vld [vmem:[#allocation4 + $0x5c0] ss:$12 sps:$4 sm:$0xff]  }
 0x7d2   :  { %v1946_v62 = vpop.xlane.xlu0 %1945 }
 0x7d3   :  { %v1947_v3 = vcvt.f32.s32 %v1946_v62  ;;  %v5260_v62 = vld [vmem:[#allocation4 + $0x5d0] ss:$12 sps:$4 sm:$0xff]  }
 0x7d5   :  { %v1950_v4 = vadd.s32 %v1949_v63, %v1947_v3  ;;  %v5266_v63 = vld [vmem:[#allocation4 + $0x5bc] ss:$12 sps:$4 sm:$0xff]   ;;  %v5264_v3 = vld [vmem:[#allocation4 + $0x5b8] ss:$12 sps:$4 sm:$0xff]  }
 0x7d6   :  { %v1960_v5 = vpop.xlane.xlu1 %1959 }
 0x7d7   :  { %v1961_v8 = vcvt.f32.s32 %v1960_v5  ;;  %vm1965_vm12 = vcmp.eq.s32.totalorder %v5892_v34, %v1950_v4  ;;  %v5270_v4 = vld [vmem:[#allocation4 + $0x5a4] ss:$12 sps:$4 sm:$0xff]   ;;  %v5268_v5 = vld [vmem:[#allocation4 + $0x5a0] ss:$12 sps:$4 sm:$0xff]  }
 0x7d8   :  { %v4327_v18 = vsel %vm1965_vm12, 1.0, %v5590_v0 }
 0x7d9   :  { %v1964_v9 = vadd.s32 %v1963_v6, %v1961_v8  ;;  %v5271_v6 = vld [vmem:[#allocation4 + $0x5a8] ss:$12 sps:$4 sm:$0xff]   ;;  %v5274_v8 = vld [vmem:[#allocation4 + $0x58c] ss:$12 sps:$4 sm:$0xff]  }
 0x7db   :  { %vm1966_vm13 = vcmp.eq.s32.totalorder %v5892_v34, %v1964_v9  ;;  %v5235_v34 = vld [vmem:[#allocation4 + $0x500] ss:$12 sps:$4 sm:$0xff]   ;;  %v5272_v9 = vld [vmem:[#allocation4 + $0x588] ss:$12 sps:$4 sm:$0xff]  }
 0x7dc   :  { %v4328_v19 = vsel %vm1966_vm13, 1.0, %v5590_v0  ;;  %vm4337_vm14 = vmpackc.low %vm1966_vm13, %vm1965_vm12 }
 0x7dd   :  { %v5915_v20 = vadd.f32 %v4328_v19, %v4327_v18  ;;  %4825 = vmatmul.mubr.msk.bf16.vlgmr.msra.gmra.mxu1 %vm4337_vm14, %v5593_v21  ;;  %4845 = vmatmul.mubr.msk.bf16.vlgmr.msra.gmra.mxu0 %vm4337_vm14, %v5593_v21  ;;  %v5279_v18 = vld [vmem:[#allocation4 + $0x578] ss:$12 sps:$4 sm:$0xff]   ;;  %v5282_v19 = vld [vmem:[#allocation4 + $0x55c] ss:$12 sps:$4 sm:$0xff]  }
 0x7de   :  { %2373 = vmatpush1.bf16.msra.mxu1 %v5224_v13  ;;  %4849 = vmatpush3.bf16.msra.mxu0 %v5227_v16  ;;  %v5275_v13 = vld [vmem:[#allocation4 + $0x590] ss:$12 sps:$4 sm:$0xff]   ;;  %v5278_v16 = vld [vmem:[#allocation4 + $0x574] ss:$12 sps:$4 sm:$0xff]   ;;  %v5280_v21 = vld [vmem:[#allocation4 + $0x558] ss:$12 sps:$4 sm:$0xff]  }
 0x7df   :  { %2374 = vmatprep.subr.bf16.mxu1 %v5230_v17  ;;  %4850 = vmatprep.subr.bf16.mxu0 %v5590_v0  ;;  %v5276_v17 = vld [vmem:[#allocation4 + $0x570] ss:$12 sps:$4 sm:$0xff]  }
 0x7e0   :  { %2404 = vmatprep.mubr.bf16.mxu1 %v5592_v1  ;;  %4864 = vmatprep.mubr.msk.bf16.mxu0 %vm5591_vm0, %v5590_v0 }
 0x7e2   :  { %2375 = vmatpush1.bf16.msra.mxu1 %v5228_v22  ;;  %4851 = vmatpush3.bf16.msra.mxu0 %v5231_v23  ;;  %v5283_v22 = vld [vmem:[#allocation4 + $0x560] ss:$12 sps:$4 sm:$0xff]   ;;  %v5286_v23 = vld [vmem:[#allocation4 + $0x544] ss:$12 sps:$4 sm:$0xff]  }
 0x7e3   :  { %2376 = vmatprep.subr.bf16.mxu1 %v5234_v33  ;;  %4852 = vmatprep.subr.bf16.mxu0 %v5590_v0  ;;  %v5284_v33 = vld [vmem:[#allocation4 + $0x540] ss:$12 sps:$4 sm:$0xff]  }
 0x7e6   :  { %2377 = vmatpush1.bf16.msra.mxu1 %v5232_v24  ;;  %4853 = vmatpush3.bf16.msra.mxu0 %v5235_v34  ;;  %v5287_v24 = vld [vmem:[#allocation4 + $0x548] ss:$12 sps:$4 sm:$0xff]   ;;  %v5290_v34 = vld [vmem:[#allocation4 + $0x6ac] ss:$12 sps:$4 sm:$0xff]  }
 0x7e7   :  { %2378 = vmatprep.subr.bf16.mxu1 %v5238_v25  ;;  %4854 = vmatprep.subr.bf16.mxu0 %v5590_v0 }
 0x7ea   :  { %2379 = vmatpush1.bf16.msra.mxu1 %v5236_v26  ;;  %4855 = vmatpush3.bf16.msra.mxu0 %v5239_v27 }
 0x7eb   :  { %2380 = vmatprep.subr.bf16.mxu1 %v5242_v28  ;;  %4856 = vmatprep.subr.bf16.mxu0 %v5590_v0 }
 0x7ee   :  { %2381 = vmatpush1.bf16.msra.mxu1 %v5240_v29  ;;  %4857 = vmatpush3.bf16.msra.mxu0 %v5243_v30 }
 0x7ef   :  { %2382 = vmatprep.subr.bf16.mxu1 %v5246_v35  ;;  %4858 = vmatprep.subr.bf16.mxu0 %v5590_v0 }
 0x7f2   :  { %2383 = vmatpush1.bf16.msra.mxu1 %v5244_v36  ;;  %4859 = vmatpush3.bf16.msra.mxu0 %v5247_v37  ;;  %v2199_v36 = vrot.slane %v5915_v20, 4 }
 0x7f3   :  { %4860 = vmatprep.subr.bf16.mxu0 %v5590_v0  ;;  %2384 = vmatprep.subr.bf16.mxu1 %v5250_v38 }
 0x7f4   :  { %v2200_v37 = vadd.f32 %v2199_v36, %v5915_v20  ;;  %v5308_v36 = vld [vmem:[#allocation4 + $0x630] ss:$12 sps:$4 sm:$0xff]  }
 0x7f6   :  { %2385 = vmatpush1.bf16.msra.mxu1 %v5248_v55  ;;  %4861 = vmatpush3.bf16.msra.mxu0 %v5251_v39  ;;  %v2201_v38 = vrot.slane %v2200_v37, 2 }
 0x7f7   :  { %4862 = vmatprep.subr.bf16.mxu0 %v5590_v0  ;;  %2386 = vmatprep.subr.bf16.mxu1 %v5254_v40 }
 0x7fa   :  { %2387 = vmatpush1.bf16.msra.mxu1 %v5252_v41  ;;  %4863 = vmatpush3.bf16.msra.mxu0 %v5255_v31  ;;  %v2202_v31 = vadd.f32 %v2201_v38, %v2200_v37  ;;  %v5311_v37 = vld [vmem:[#allocation4 + $0x638] ss:$12 sps:$4 sm:$0xff]   ;;  %v5314_v38 = vld [vmem:[#allocation4 + $0x61c] ss:$12 sps:$4 sm:$0xff]  }
 0x7fb   :  { %4868 = vmatprep.subr.bf16.mxu0 %v5590_v0  ;;  %2650 = vmatprep.subr.bf16.mxu1 %v5258_v59 }
 0x89d   :  { %v2087_v32 = vpop.f32.mrf.mxu1  ;;  %v2176_v42 = vpop.f32.mrf.mxu0 }
 0x89e   :  { %v5928_v43 = vadd.f32 %v2176_v42, %v2087_v32 }
 0x89f   :  { %v4826_v44 = vpop.f32.mrf.mxu1  ;;  %v4846_v45 = vpop.f32.mrf.mxu0 }
 0x8a0   :  { %4142 = vrot.lane.b32.xlu1 %v5928_v43, %s5586_s24  ;;  %v2183_v49 = vsub.f32 %v5928_v43, %v5882_v14  ;;  %v5256_v14 = vld [vmem:[#allocation4 + $0x5e8] ss:$12 sps:$4 sm:$0xff]  }
 0x8a1   :  { %v2090_v46 = vpop.f32.mrf.mxu1  ;;  %v2179_v47 = vpop.f32.mrf.mxu0 }
 0x8a2   :  { %v5932_v48 = vadd.f32 %v2179_v47, %v2090_v46  ;;  %v2185_v54 = vmul.f32 %v2183_v49, %v2183_v49 }
 0x8a3   :  { %v4827_v50 = vpop.f32.mrf.mxu1  ;;  %v4847_v51 = vpop.f32.mrf.mxu0 }
 0x8a4   :  { %v2210_v52 = vpack.c.bf16 %v5932_v48, %v5928_v43  ;;  %v2184_v53 = vsub.f32 %v5932_v48, %v5885_v15  ;;  %v5263_v15 = vld [vmem:[#allocation4 + $0x5d8] ss:$12 sps:$4 sm:$0xff]   ;;  %v2203_v50 = vrot.slane %v2202_v31, 1 }
 0x8a6   :  { %2405 = vmatmul.mubr.bf16.vlgmr.msra.gmra.mxu1 %v2210_v52  ;;  %4865 = vmatmul.mubr.bf16.vlgmr.msra.gmra.mxu0 %v2210_v52  ;;  %v2186_v57 = vmul.f32 %v2184_v53, %v2184_v53 }
 0x8a7   :  { %2682 = vmatprep.mubr.bf16.mxu1 %v5592_v1  ;;  %4884 = vmatprep.mubr.msk.bf16.mxu0 %vm5591_vm0, %v5590_v0 }
 0x8a8   :  { %v2187_v58 = vadd.f32 %v2186_v57, %v2185_v54  ;;  %4869 = vmatpush3.bf16.msra.mxu0 %v5259_v60  ;;  %2651 = vmatpush1.bf16.msra.mxu1 %v5256_v14 }
 0x8a9   :  { %4870 = vmatprep.subr.bf16.mxu0 %v5590_v0  ;;  %2652 = vmatprep.subr.bf16.mxu1 %v5262_v61 }
 0x8aa   :  { %2188 = vadd.xlane.f32.xlu0 %v2187_v58 }
 0x8ac   :  { %4871 = vmatpush3.bf16.msra.mxu0 %v5263_v15  ;;  %2653 = vmatpush1.bf16.msra.mxu1 %v5260_v62  ;;  %v4373_v15 = vld [vmem:[#allocation6 + $0x6] ss:$0 sm:$0xff] }
 0x8ad   :  { %4872 = vmatprep.subr.bf16.mxu0 %v5590_v0  ;;  %2654 = vmatprep.subr.bf16.mxu1 %v5266_v63 }
 0x8b0   :  { %4873 = vmatpush3.bf16.msra.mxu0 %v5267_v2  ;;  %2655 = vmatpush1.bf16.msra.mxu1 %v5264_v3  ;;  %v2204_v2 = vadd.f32 %v2203_v50, %v2202_v31  ;;  %v5319_v31 = vld [vmem:[#allocation4 + $0x608] ss:$12 sps:$4 sm:$0xff]  }
 0x8b1   :  { %4874 = vmatprep.subr.bf16.mxu0 %v5590_v0  ;;  %2656 = vmatprep.subr.bf16.mxu1 %v5270_v4 }
 0x8b4   :  { %2657 = vmatpush1.bf16.msra.mxu1 %v5268_v5  ;;  %4875 = vmatpush3.bf16.msra.mxu0 %v5271_v6 }
 0x8b5   :  { %4876 = vmatprep.subr.bf16.mxu0 %v5590_v0  ;;  %2658 = vmatprep.subr.bf16.mxu1 %v5274_v8 }
 0x8b8   :  { %2659 = vmatpush1.bf16.msra.mxu1 %v5272_v9  ;;  %4877 = vmatpush3.bf16.msra.mxu0 %v5275_v13 }
 0x8b9   :  { %4878 = vmatprep.subr.bf16.mxu0 %v5590_v0  ;;  %2660 = vmatprep.subr.bf16.mxu1 %v5278_v16 }
 0x8bc   :  { %2661 = vmatpush1.bf16.msra.mxu1 %v5276_v17  ;;  %4879 = vmatpush3.bf16.msra.mxu0 %v5279_v18  ;;  %v5288_v17 = vld [vmem:[#allocation4 + $0x6a8] ss:$12 sps:$4 sm:$0xff]   ;;  %v5291_v18 = vld [vmem:[#allocation4 + $0x6b0] ss:$12 sps:$4 sm:$0xff]  }
 0x8bd   :  { %4880 = vmatprep.subr.bf16.mxu0 %v5590_v0  ;;  %2662 = vmatprep.subr.bf16.mxu1 %v5282_v19 }
 0x8c0   :  { %4144 = vrot.lane.b32.xlu0 %v5932_v48, %s5586_s24  ;;  %2663 = vmatpush1.bf16.msra.mxu1 %v5280_v21  ;;  %v5294_v21 = vld [vmem:[#allocation4 + $0x694] ss:$12 sps:$4 sm:$0xff]  }
 0x8c1   :  { %4881 = vmatpush3.bf16.msra.mxu0 %v5283_v22  ;;  %2664 = vmatprep.subr.bf16.mxu1 %v5286_v23  ;;  %v5292_v22 = vld [vmem:[#allocation4 + $0x690] ss:$12 sps:$4 sm:$0xff]   ;;  %v5295_v23 = vld [vmem:[#allocation4 + $0x698] ss:$12 sps:$4 sm:$0xff]  }
 0x8c2   :  { %4882 = vmatprep.subr.bf16.mxu0 %v5590_v0 }
 0x8c4   :  { %2665 = vmatpush1.bf16.msra.mxu1 %v5284_v33  ;;  %v5298_v33 = vld [vmem:[#allocation4 + $0x67c] ss:$12 sps:$4 sm:$0xff]  }
 0x8c5   :  { %4883 = vmatpush3.bf16.msra.mxu0 %v5287_v24  ;;  %2924 = vmatprep.subr.bf16.mxu1 %v5290_v34  ;;  %v5296_v24 = vld [vmem:[#allocation4 + $0x678] ss:$12 sps:$4 sm:$0xff]   ;;  %v5299_v34 = vld [vmem:[#allocation4 + $0x680] ss:$12 sps:$4 sm:$0xff]  }
 0x8c6   :  { %4888 = vmatprep.subr.bf16.mxu0 %v5590_v0 }
 0x933   :  { %v2189_v25 = vpop.xlane.xlu0 %2188 }
 0x934   :  { %v2190_v26 = vrot.slane %v2189_v25, 4 }
 0x936   :  { %v2191_v27 = vadd.f32 %v2190_v26, %v2189_v25  ;;  %v5302_v25 = vld [vmem:[#allocation4 + $0x664] ss:$12 sps:$4 sm:$0xff]   ;;  %v5300_v26 = vld [vmem:[#allocation4 + $0x660] ss:$12 sps:$4 sm:$0xff]  }
 0x937   :  { %v4145_v7 = vpop.permute.xlu0 %4144 }
 0x938   :  { %v2192_v28 = vrot.slane %v2191_v27, 2 }
 0x93a   :  { %v2193_v29 = vadd.f32 %v2192_v28, %v2191_v27  ;;  %v5303_v27 = vld [vmem:[#allocation4 + $0x668] ss:$12 sps:$4 sm:$0xff]   ;;  %v5306_v28 = vld [vmem:[#allocation4 + $0x64c] ss:$12 sps:$4 sm:$0xff]  }
 0x93c   :  { %v2194_v30 = vrot.slane %v2193_v29, 1 }
 0x93e   :  { %v2195_v35 = vadd.f32 %v2194_v30, %v2193_v29  ;;  %v5304_v29 = vld [vmem:[#allocation4 + $0x648] ss:$12 sps:$4 sm:$0xff]   ;;  %v5307_v30 = vld [vmem:[#allocation4 + $0x650] ss:$12 sps:$4 sm:$0xff]  }
 0x940   :  { %4988 = vpush %v2195_v35  ;;  %v5310_v35 = vld [vmem:[#allocation4 + $0x634] ss:$12 sps:$4 sm:$0xff]  }
 0x966   :  { %v2406_v55 = vpop.f32.mrf.mxu1  ;;  %v2449_v39 = vpop.f32.mrf.mxu0 }
 0x967   :  { %v2456_v44 = vrot.slane %v2406_v55, 7  ;;  %v2462_v45 = vrot.slane %v2449_v39, 1  ;;  %v5312_v55 = vld [vmem:[#allocation4 + $0x618] ss:$12 sps:$4 sm:$0xff]   ;;  %v5315_v39 = vld [vmem:[#allocation4 + $0x620] ss:$12 sps:$4 sm:$0xff]  }
 0x968   :  { %v2408_v40 = vpop.f32.mrf.mxu1  ;;  %v4866_v41 = vpop.f32.mrf.mxu0 }
 0x969   :  { %v5316_v41 = vld [vmem:[#allocation4 + $0x600] ss:$12 sps:$4 sm:$0xff]  }
 0x96a   :  { %v2410_v32 = vpop.f32.mrf.mxu1  ;;  %v2452_v42 = vpop.f32.mrf.mxu0 }
 0x96b   :  { %v2457_v46 = vrot.slane %v2410_v32, 7  ;;  %v2463_v47 = vrot.slane %v2452_v42, 1  ;;  %v5322_v32 = vld [vmem:[#allocation4 + $0x76c] ss:$12 sps:$4 sm:$0xff]  }
 0x96c   :  { %v4867_v49 = vpop.f32.mrf.mxu0  ;;  %v2412_v57 = vpop.f32.mrf.mxu1 }
 0x96d   :  { %v2459_v51 = vsel %vm389_vm3, %v2457_v46, %v2456_v44  ;;  %v2464_v20 = vsel %vm400_vm4, %v2462_v45, %v2463_v47  ;;  %v2458_v52 = vsel %vm389_vm3, %v2456_v44, %v2457_v46  ;;  %v2465_v53 = vsel %vm400_vm4, %v2463_v47, %v2462_v45 }
 0x96e   :  { %v2460_v54 = vsel %vm5698_vm5, 0.0, %v2459_v51  ;;  %v2461_v58 = vsel %vm5702_vm6, 0.0, %v2458_v52  ;;  %v2466_v60 = vsel %vm5706_vm7, 0.0, %v2464_v20  ;;  %v2467_v61 = vsel %vm5710_vm8, 0.0, %v2465_v53 }
 0x96f   :  { %v2468_v14 = vadd.f32 %v2460_v54, %v2408_v40  ;;  %v2469_v59 = vadd.f32 %v2461_v58, %v2412_v57  ;;  %v5318_v40 = vld [vmem:[#allocation4 + $0x604] ss:$12 sps:$4 sm:$0xff]  }
 0x971   :  { %v2470_v62 = vadd.f32 %v2468_v14, %v2466_v60  ;;  %v2471_v63 = vadd.f32 %v2469_v59, %v2467_v61  ;;  %s4989_s4 = spop %4988 }
 0x972   :  { %v2206_v3 = vstv %s4989_s4 }
 0x973   :  { %v2480_v4 = vadd.f32 %v4373_v15, %v2470_v62  ;;  %v2481_v5 = vadd.f32 %v4373_v15, %v2471_v63  ;;  %v2208_v6 = vsel %vm2207_vm15, %v2204_v2, %v2206_v3  ;;  %v4398_v3 = vld [vmem:[#allocation6 + $0x7] ss:$0 sm:$0xff] }
 0x974   :  { %2209 = vst [vmem:[%s6147_s7] sm:$0x3] %v2208_v6 }
 0x975   :  { %vm2483_vm1 = vcmp.ge.f32.partialorder %v2481_v5, 0.0  ;;  %v2484_v8 = vmul.f32 0.2, %v2480_v4  ;;  %v2485_v9 = vmul.f32 0.2, %v2481_v5  ;;  %vm2482_vm2 = vcmp.ge.f32.partialorder %v2480_v4, 0.0 }
 0x977   :  { %v2486_v13 = vsel %vm2482_vm2, %v2480_v4, %v2484_v8  ;;  %v2487_v16 = vsel %vm2483_vm1, %v2481_v5, %v2485_v9 }
 0x978   :  { %v2488_v19 = vpack.c.bf16 %v2487_v16, %v2486_v13  ;;  %v5320_v16 = vld [vmem:[#allocation4 + $0x768] ss:$12 sps:$4 sm:$0xff]  }
 0x97a   :  { %2683 = vmatmul.mubr.bf16.vlgmr.msra.gmra.mxu1 %v2488_v19  ;;  %4885 = vmatmul.mubr.bf16.vlgmr.msra.gmra.mxu0 %v2488_v19  ;;  %v5326_v19 = vld [vmem:[#allocation4 + $0x754] ss:$12 sps:$4 sm:$0xff]  }
 0x97b   :  { %2925 = vmatpush1.bf16.msra.mxu1 %v5288_v17  ;;  %4889 = vmatpush3.bf16.msra.mxu0 %v5291_v18  ;;  %v5323_v17 = vld [vmem:[#allocation4 + $0x770] ss:$12 sps:$4 sm:$0xff]  }
 0x97c   :  { %2926 = vmatprep.subr.bf16.mxu1 %v5294_v21  ;;  %4890 = vmatprep.subr.bf16.mxu0 %v5590_v0  ;;  %v5324_v21 = vld [vmem:[#allocation4 + $0x750] ss:$12 sps:$4 sm:$0xff]  }
 0x97d   :  { %2956 = vmatprep.mubr.bf16.mxu1 %v5592_v1  ;;  %4904 = vmatprep.mubr.msk.bf16.mxu0 %vm5591_vm0, %v5590_v0 }
 0x97f   :  { %2927 = vmatpush1.bf16.msra.mxu1 %v5292_v22  ;;  %4891 = vmatpush3.bf16.msra.mxu0 %v5295_v23  ;;  %v5327_v22 = vld [vmem:[#allocation4 + $0x758] ss:$12 sps:$4 sm:$0xff]   ;;  %v5331_v23 = vld [vmem:[#allocation4 + $0x740] ss:$12 sps:$4 sm:$0xff]  }
 0x980   :  { %2928 = vmatprep.subr.bf16.mxu1 %v5298_v33  ;;  %4892 = vmatprep.subr.bf16.mxu0 %v5590_v0  ;;  %v5334_v33 = vld [vmem:[#allocation4 + $0x724] ss:$12 sps:$4 sm:$0xff]  }
 0x983   :  { %2929 = vmatpush1.bf16.msra.mxu1 %v5296_v24  ;;  %4893 = vmatpush3.bf16.msra.mxu0 %v5299_v34  ;;  %v5332_v24 = vld [vmem:[#allocation4 + $0x720] ss:$12 sps:$4 sm:$0xff]   ;;  %v5335_v34 = vld [vmem:[#allocation4 + $0x728] ss:$12 sps:$4 sm:$0xff]  }
 0x984   :  { %2930 = vmatprep.subr.bf16.mxu1 %v5302_v25  ;;  %4894 = vmatprep.subr.bf16.mxu0 %v5590_v0  ;;  %v5338_v25 = vld [vmem:[#allocation4 + $0x70c] ss:$12 sps:$4 sm:$0xff]  }
 0x987   :  { %2931 = vmatpush1.bf16.msra.mxu1 %v5300_v26  ;;  %4895 = vmatpush3.bf16.msra.mxu0 %v5303_v27  ;;  %v5336_v26 = vld [vmem:[#allocation4 + $0x708] ss:$12 sps:$4 sm:$0xff]   ;;  %v5339_v27 = vld [vmem:[#allocation4 + $0x710] ss:$12 sps:$4 sm:$0xff]  }
 0x988   :  { %4896 = vmatprep.subr.bf16.mxu0 %v5590_v0  ;;  %2932 = vmatprep.subr.bf16.mxu1 %v5306_v28  ;;  %v5342_v28 = vld [vmem:[#allocation4 + $0x6f4] ss:$12 sps:$4 sm:$0xff]  }
 0x98b   :  { %2933 = vmatpush1.bf16.msra.mxu1 %v5304_v29  ;;  %4897 = vmatpush3.bf16.msra.mxu0 %v5307_v30  ;;  %v5340_v29 = vld [vmem:[#allocation4 + $0x6f0] ss:$12 sps:$4 sm:$0xff]   ;;  %v5343_v30 = vld [vmem:[#allocation4 + $0x6f8] ss:$12 sps:$4 sm:$0xff]  }
 0x98c   :  { %4898 = vmatprep.subr.bf16.mxu0 %v5590_v0  ;;  %2934 = vmatprep.subr.bf16.mxu1 %v5310_v35  ;;  %v5346_v35 = vld [vmem:[#allocation4 + $0x6dc] ss:$12 sps:$4 sm:$0xff]  }
 0x98f   :  { %2935 = vmatpush1.bf16.msra.mxu1 %v5308_v36  ;;  %4899 = vmatpush3.bf16.msra.mxu0 %v5311_v37  ;;  %v5344_v36 = vld [vmem:[#allocation4 + $0x6d8] ss:$12 sps:$4 sm:$0xff]   ;;  %v5347_v37 = vld [vmem:[#allocation4 + $0x6e0] ss:$12 sps:$4 sm:$0xff]  }
 0x990   :  { %4900 = vmatprep.subr.bf16.mxu0 %v5590_v0  ;;  %2936 = vmatprep.subr.bf16.mxu1 %v5314_v38  ;;  %v5350_v38 = vld [vmem:[#allocation4 + $0x6c4] ss:$12 sps:$4 sm:$0xff]  }
 0x993   :  { %2937 = vmatpush1.bf16.msra.mxu1 %v5312_v55  ;;  %4901 = vmatpush3.bf16.msra.mxu0 %v5315_v39  ;;  %v5348_v55 = vld [vmem:[#allocation4 + $0x6c0] ss:$12 sps:$4 sm:$0xff]   ;;  %v5351_v39 = vld [vmem:[#allocation4 + $0x6c8] ss:$12 sps:$4 sm:$0xff]  }
 0x994   :  { %4902 = vmatprep.subr.bf16.mxu0 %v5590_v0  ;;  %2938 = vmatprep.subr.bf16.mxu1 %v5318_v40  ;;  %v5354_v40 = vld [vmem:[#allocation4 + $0x82c] ss:$12 sps:$4 sm:$0xff]  }
 0x997   :  { %2939 = vmatpush1.bf16.msra.mxu1 %v5316_v41  ;;  %4903 = vmatpush3.bf16.msra.mxu0 %v5319_v31 }
 0x998   :  { %4908 = vmatprep.subr.bf16.mxu0 %v5590_v0  ;;  %3202 = vmatprep.subr.bf16.mxu1 %v5322_v32 }
 0xa3a   :  { %v2684_v42 = vpop.f32.mrf.mxu1  ;;  %v2727_v44 = vpop.f32.mrf.mxu0 }
 0xa3b   :  { %v2734_v50 = vrot.slane %v2684_v42, 7  ;;  %v2740_v51 = vrot.slane %v2727_v44, 1 }
 0xa3c   :  { %v2686_v45 = vpop.f32.mrf.mxu1  ;;  %v4886_v46 = vpop.f32.mrf.mxu0 }
 0xa3e   :  { %v2688_v47 = vpop.f32.mrf.mxu1  ;;  %v2730_v49 = vpop.f32.mrf.mxu0 }
 0xa3f   :  { %v2735_v20 = vrot.slane %v2688_v47, 7  ;;  %v2741_v52 = vrot.slane %v2730_v49, 1 }
 0xa40   :  { %v4887_v53 = vpop.f32.mrf.mxu0  ;;  %v2690_v60 = vpop.f32.mrf.mxu1 }
 0xa41   :  { %v2737_v54 = vsel %vm389_vm3, %v2735_v20, %v2734_v50  ;;  %v2742_v57 = vsel %vm400_vm4, %v2740_v51, %v2741_v52  ;;  %v2736_v58 = vsel %vm389_vm3, %v2734_v50, %v2735_v20  ;;  %v2743_v14 = vsel %vm400_vm4, %v2741_v52, %v2740_v51 }
 0xa42   :  { %v2738_v59 = vsel %vm5698_vm5, 0.0, %v2737_v54  ;;  %v2739_v61 = vsel %vm5702_vm6, 0.0, %v2736_v58  ;;  %v2744_v63 = vsel %vm5706_vm7, 0.0, %v2742_v57  ;;  %v2745_v2 = vsel %vm5710_vm8, 0.0, %v2743_v14 }
 0xa43   :  { %v2746_v15 = vadd.f32 %v2738_v59, %v2686_v45  ;;  %v2747_v62 = vadd.f32 %v2739_v61, %v2690_v60 }
 0xa45   :  { %v2748_v4 = vadd.f32 %v2746_v15, %v2744_v63  ;;  %v2749_v5 = vadd.f32 %v2747_v62, %v2745_v2  ;;  %v4423_v62 = vld [vmem:[#allocation6 + $0x8] ss:$0 sm:$0xff] }
 0xa47   :  { %v2758_v6 = vadd.f32 %v4398_v3, %v2748_v4  ;;  %v2759_v8 = vadd.f32 %v4398_v3, %v2749_v5 }
 0xa49   :  { %v6002_v9 = vadd.f32 %v2758_v6, %v5928_v43  ;;  %v6005_v13 = vadd.f32 %v2759_v8, %v5932_v48  ;;  %v5330_v43 = vld [vmem:[#allocation4 + $0x73c] ss:$12 sps:$4 sm:$0xff]   ;;  %v5328_v48 = vld [vmem:[#allocation4 + $0x738] ss:$12 sps:$4 sm:$0xff]  }
 0xa4b   :  { %v2762_v18 = vpack.c.bf16 %v6005_v13, %v6002_v9 }
 0xa4d   :  { %2957 = vmatmul.mubr.bf16.vlgmr.msra.gmra.mxu1 %v2762_v18  ;;  %4905 = vmatmul.mubr.bf16.vlgmr.msra.gmra.mxu0 %v2762_v18  ;;  %v5355_v18 = vld [vmem:[#allocation4 + $0x830] ss:$12 sps:$4 sm:$0xff]  }
 0xa4e   :  { %3203 = vmatpush1.bf16.msra.mxu1 %v5320_v16  ;;  %4909 = vmatpush3.bf16.msra.mxu0 %v5323_v17  ;;  %v5352_v17 = vld [vmem:[#allocation4 + $0x828] ss:$12 sps:$4 sm:$0xff]  }
 0xa4f   :  { %3204 = vmatprep.subr.bf16.mxu1 %v5326_v19  ;;  %4910 = vmatprep.subr.bf16.mxu0 %v5590_v0 }
 0xa50   :  { %3234 = vmatprep.mubr.bf16.mxu1 %v5592_v1  ;;  %4924 = vmatprep.mubr.msk.bf16.mxu0 %vm5591_vm0, %v5590_v0 }
 0xa52   :  { %3205 = vmatpush1.bf16.msra.mxu1 %v5324_v21  ;;  %4911 = vmatpush3.bf16.msra.mxu0 %v5327_v22  ;;  %v5358_v21 = vld [vmem:[#allocation4 + $0x814] ss:$12 sps:$4 sm:$0xff]   ;;  %v5356_v22 = vld [vmem:[#allocation4 + $0x810] ss:$12 sps:$4 sm:$0xff]  }
 0xa53   :  { %3206 = vmatprep.subr.bf16.mxu1 %v5330_v43  ;;  %4912 = vmatprep.subr.bf16.mxu0 %v5590_v0  ;;  %v5359_v43 = vld [vmem:[#allocation4 + $0x818] ss:$12 sps:$4 sm:$0xff]  }
 0xa56   :  { %3207 = vmatpush1.bf16.msra.mxu1 %v5328_v48  ;;  %4913 = vmatpush3.bf16.msra.mxu0 %v5331_v23  ;;  %v5362_v48 = vld [vmem:[#allocation4 + $0x7fc] ss:$12 sps:$4 sm:$0xff]   ;;  %v5360_v23 = vld [vmem:[#allocation4 + $0x7f8] ss:$12 sps:$4 sm:$0xff]  }
 0xa57   :  { %4914 = vmatprep.subr.bf16.mxu0 %v5590_v0  ;;  %3208 = vmatprep.subr.bf16.mxu1 %v5334_v33  ;;  %v5363_v33 = vld [vmem:[#allocation4 + $0x800] ss:$12 sps:$4 sm:$0xff]  }
 0xa5a   :  { %3209 = vmatpush1.bf16.msra.mxu1 %v5332_v24  ;;  %4915 = vmatpush3.bf16.msra.mxu0 %v5335_v34  ;;  %v5366_v24 = vld [vmem:[#allocation4 + $0x7e4] ss:$12 sps:$4 sm:$0xff]   ;;  %v5364_v34 = vld [vmem:[#allocation4 + $0x7e0] ss:$12 sps:$4 sm:$0xff]  }
 0xa5b   :  { %4916 = vmatprep.subr.bf16.mxu0 %v5590_v0  ;;  %3210 = vmatprep.subr.bf16.mxu1 %v5338_v25  ;;  %v5367_v25 = vld [vmem:[#allocation4 + $0x7e8] ss:$12 sps:$4 sm:$0xff]  }
 0xa5e   :  { %3211 = vmatpush1.bf16.msra.mxu1 %v5336_v26  ;;  %4917 = vmatpush3.bf16.msra.mxu0 %v5339_v27  ;;  %v5370_v26 = vld [vmem:[#allocation4 + $0x7cc] ss:$12 sps:$4 sm:$0xff]   ;;  %v5368_v27 = vld [vmem:[#allocation4 + $0x7c8] ss:$12 sps:$4 sm:$0xff]  }
 0xa5f   :  { %4918 = vmatprep.subr.bf16.mxu0 %v5590_v0  ;;  %3212 = vmatprep.subr.bf16.mxu1 %v5342_v28  ;;  %v5371_v28 = vld [vmem:[#allocation4 + $0x7d0] ss:$12 sps:$4 sm:$0xff]  }
 0xa62   :  { %3213 = vmatpush1.bf16.msra.mxu1 %v5340_v29  ;;  %4919 = vmatpush3.bf16.msra.mxu0 %v5343_v30  ;;  %v5374_v29 = vld [vmem:[#allocation4 + $0x7b4] ss:$12 sps:$4 sm:$0xff]   ;;  %v5372_v30 = vld [vmem:[#allocation4 + $0x7b0] ss:$12 sps:$4 sm:$0xff]  }
 0xa63   :  { %4920 = vmatprep.subr.bf16.mxu0 %v5590_v0  ;;  %3214 = vmatprep.subr.bf16.mxu1 %v5346_v35  ;;  %v5375_v35 = vld [vmem:[#allocation4 + $0x7b8] ss:$12 sps:$4 sm:$0xff]  }
 0xa66   :  { %3215 = vmatpush1.bf16.msra.mxu1 %v5344_v36  ;;  %4921 = vmatpush3.bf16.msra.mxu0 %v5347_v37  ;;  %v5378_v36 = vld [vmem:[#allocation4 + $0x79c] ss:$12 sps:$4 sm:$0xff]   ;;  %v5376_v37 = vld [vmem:[#allocation4 + $0x798] ss:$12 sps:$4 sm:$0xff]  }
 0xa67   :  { %4922 = vmatprep.subr.bf16.mxu0 %v5590_v0  ;;  %3216 = vmatprep.subr.bf16.mxu1 %v5350_v38  ;;  %v5379_v38 = vld [vmem:[#allocation4 + $0x7a0] ss:$12 sps:$4 sm:$0xff]  }
 0xa6a   :  { %3217 = vmatpush1.bf16.msra.mxu1 %v5348_v55  ;;  %4923 = vmatpush3.bf16.msra.mxu0 %v5351_v39  ;;  %v5382_v55 = vld [vmem:[#allocation4 + $0x784] ss:$12 sps:$4 sm:$0xff]   ;;  %v5380_v39 = vld [vmem:[#allocation4 + $0x780] ss:$12 sps:$4 sm:$0xff]  }
 0xa6b   :  { %4928 = vmatprep.subr.bf16.mxu0 %v5590_v0  ;;  %3476 = vmatprep.subr.bf16.mxu1 %v5354_v40  ;;  %v5383_v40 = vld [vmem:[#allocation4 + $0x788] ss:$12 sps:$4 sm:$0xff]  }
 0xb0d   :  { %v2958_v41 = vpop.f32.mrf.mxu1  ;;  %v3001_v31 = vpop.f32.mrf.mxu0 }
 0xb0e   :  { %v3008_v46 = vrot.slane %v2958_v41, 7  ;;  %v3014_v47 = vrot.slane %v3001_v31, 1  ;;  %v5386_v41 = vld [vmem:[#allocation4 + $0x8ec] ss:$12 sps:$4 sm:$0xff]  }
 0xb0f   :  { %v2960_v32 = vpop.f32.mrf.mxu1  ;;  %v4906_v42 = vpop.f32.mrf.mxu0 }
 0xb11   :  { %v2962_v44 = vpop.f32.mrf.mxu1  ;;  %v3004_v45 = vpop.f32.mrf.mxu0 }
 0xb12   :  { %v3009_v49 = vrot.slane %v2962_v44, 7  ;;  %v3015_v50 = vrot.slane %v3004_v45, 1 }
 0xb13   :  { %v4907_v51 = vpop.f32.mrf.mxu0  ;;  %v2964_v58 = vpop.f32.mrf.mxu1 }
 0xb14   :  { %v3011_v20 = vsel %vm389_vm3, %v3009_v49, %v3008_v46  ;;  %v3016_v52 = vsel %vm400_vm4, %v3014_v47, %v3015_v50  ;;  %v3010_v53 = vsel %vm389_vm3, %v3008_v46, %v3009_v49  ;;  %v3017_v54 = vsel %vm400_vm4, %v3015_v50, %v3014_v47 }
 0xb15   :  { %v3012_v57 = vsel %vm5698_vm5, 0.0, %v3011_v20  ;;  %v3013_v14 = vsel %vm5702_vm6, 0.0, %v3010_v53  ;;  %v3018_v61 = vsel %vm5706_vm7, 0.0, %v3016_v52  ;;  %v3019_v15 = vsel %vm5710_vm8, 0.0, %v3017_v54 }
 0xb16   :  { %v3020_v59 = vadd.f32 %v3012_v57, %v2960_v32  ;;  %v3021_v60 = vadd.f32 %v3013_v14, %v2964_v58 }
 0xb18   :  { %v3022_v63 = vadd.f32 %v3020_v59, %v3018_v61  ;;  %v3023_v2 = vadd.f32 %v3021_v60, %v3019_v15 }
 0xb1a   :  { %v3032_v3 = vadd.f32 %v4423_v62, %v3022_v63  ;;  %v3033_v4 = vadd.f32 %v4423_v62, %v3023_v2  ;;  %v4448_v63 = vld [vmem:[#allocation6 + $0x9] ss:$0 sm:$0xff] }
 0xb1c   :  { %vm3035_vm9 = vcmp.ge.f32.partialorder %v3033_v4, 0.0  ;;  %v3036_v5 = vmul.f32 0.2, %v3032_v3  ;;  %v3037_v6 = vmul.f32 0.2, %v3033_v4  ;;  %vm3034_vm10 = vcmp.ge.f32.partialorder %v3032_v3, 0.0 }
 0xb1e   :  { %v3038_v8 = vsel %vm3034_vm10, %v3032_v3, %v3036_v5  ;;  %v3039_v16 = vsel %vm3035_vm9, %v3033_v4, %v3037_v6 }
 0xb1f   :  { %v3040_v19 = vpack.c.bf16 %v3039_v16, %v3038_v8  ;;  %v5384_v16 = vld [vmem:[#allocation4 + $0x8e8] ss:$12 sps:$4 sm:$0xff]  }
 0xb21   :  { %3235 = vmatmul.mubr.bf16.vlgmr.msra.gmra.mxu1 %v3040_v19  ;;  %4925 = vmatmul.mubr.bf16.vlgmr.msra.gmra.mxu0 %v3040_v19  ;;  %v5390_v19 = vld [vmem:[#allocation4 + $0x8d4] ss:$12 sps:$4 sm:$0xff]  }
 0xb22   :  { %3477 = vmatpush1.bf16.msra.mxu1 %v5352_v17  ;;  %4929 = vmatpush3.bf16.msra.mxu0 %v5355_v18  ;;  %v5387_v17 = vld [vmem:[#allocation4 + $0x8f0] ss:$12 sps:$4 sm:$0xff]  }
 0xb23   :  { %3478 = vmatprep.subr.bf16.mxu1 %v5358_v21  ;;  %4930 = vmatprep.subr.bf16.mxu0 %v5590_v0  ;;  %v5388_v21 = vld [vmem:[#allocation4 + $0x8d0] ss:$12 sps:$4 sm:$0xff]  }
 0xb24   :  { %3508 = vmatprep.mubr.bf16.mxu1 %v5592_v1  ;;  %4944 = vmatprep.mubr.msk.bf16.mxu0 %vm5591_vm0, %v5590_v0 }
 0xb26   :  { %3479 = vmatpush1.bf16.msra.mxu1 %v5356_v22  ;;  %4931 = vmatpush3.bf16.msra.mxu0 %v5359_v43  ;;  %v5391_v22 = vld [vmem:[#allocation4 + $0x8d8] ss:$12 sps:$4 sm:$0xff]   ;;  %v5394_v43 = vld [vmem:[#allocation4 + $0x8bc] ss:$12 sps:$4 sm:$0xff]  }
 0xb27   :  { %3480 = vmatprep.subr.bf16.mxu1 %v5362_v48  ;;  %4932 = vmatprep.subr.bf16.mxu0 %v5590_v0  ;;  %v5398_v48 = vld [vmem:[#allocation4 + $0x8a4] ss:$12 sps:$4 sm:$0xff]  }
 0xb2a   :  { %3481 = vmatpush1.bf16.msra.mxu1 %v5360_v23  ;;  %4933 = vmatpush3.bf16.msra.mxu0 %v5363_v33  ;;  %v5396_v23 = vld [vmem:[#allocation4 + $0x8a0] ss:$12 sps:$4 sm:$0xff]   ;;  %v5399_v33 = vld [vmem:[#allocation4 + $0x8a8] ss:$12 sps:$4 sm:$0xff]  }
 0xb2b   :  { %3482 = vmatprep.subr.bf16.mxu1 %v5366_v24  ;;  %4934 = vmatprep.subr.bf16.mxu0 %v5590_v0  ;;  %v5402_v24 = vld [vmem:[#allocation4 + $0x88c] ss:$12 sps:$4 sm:$0xff]  }
 0xb2e   :  { %3483 = vmatpush1.bf16.msra.mxu1 %v5364_v34  ;;  %4935 = vmatpush3.bf16.msra.mxu0 %v5367_v25  ;;  %v5400_v34 = vld [vmem:[#allocation4 + $0x888] ss:$12 sps:$4 sm:$0xff]   ;;  %v5403_v25 = vld [vmem:[#allocation4 + $0x890] ss:$12 sps:$4 sm:$0xff]  }
 0xb2f   :  { %4936 = vmatprep.subr.bf16.mxu0 %v5590_v0  ;;  %3484 = vmatprep.subr.bf16.mxu1 %v5370_v26  ;;  %v5406_v26 = vld [vmem:[#allocation4 + $0x874] ss:$12 sps:$4 sm:$0xff]  }
 0xb32   :  { %3485 = vmatpush1.bf16.msra.mxu1 %v5368_v27  ;;  %4937 = vmatpush3.bf16.msra.mxu0 %v5371_v28  ;;  %v5404_v27 = vld [vmem:[#allocation4 + $0x870] ss:$12 sps:$4 sm:$0xff]   ;;  %v5407_v28 = vld [vmem:[#allocation4 + $0x878] ss:$12 sps:$4 sm:$0xff]  }
 0xb33   :  { %4938 = vmatprep.subr.bf16.mxu0 %v5590_v0  ;;  %3486 = vmatprep.subr.bf16.mxu1 %v5374_v29  ;;  %v5410_v29 = vld [vmem:[#allocation4 + $0x85c] ss:$12 sps:$4 sm:$0xff]  }
 0xb36   :  { %3487 = vmatpush1.bf16.msra.mxu1 %v5372_v30  ;;  %4939 = vmatpush3.bf16.msra.mxu0 %v5375_v35  ;;  %v5408_v30 = vld [vmem:[#allocation4 + $0x858] ss:$12 sps:$4 sm:$0xff]   ;;  %v5411_v35 = vld [vmem:[#allocation4 + $0x860] ss:$12 sps:$4 sm:$0xff]  }
 0xb37   :  { %4940 = vmatprep.subr.bf16.mxu0 %v5590_v0  ;;  %3488 = vmatprep.subr.bf16.mxu1 %v5378_v36  ;;  %v5414_v36 = vld [vmem:[#allocation4 + $0x844] ss:$12 sps:$4 sm:$0xff]  }
 0xb3a   :  { %3489 = vmatpush1.bf16.msra.mxu1 %v5376_v37  ;;  %4941 = vmatpush3.bf16.msra.mxu0 %v5379_v38  ;;  %v5412_v37 = vld [vmem:[#allocation4 + $0x840] ss:$12 sps:$4 sm:$0xff]   ;;  %v5415_v38 = vld [vmem:[#allocation4 + $0x848] ss:$12 sps:$4 sm:$0xff]  }
 0xb3b   :  { %4942 = vmatprep.subr.bf16.mxu0 %v5590_v0  ;;  %3490 = vmatprep.subr.bf16.mxu1 %v5382_v55  ;;  %v5418_v55 = vld [vmem:[#allocation4 + $0x9ac] ss:$12 sps:$4 sm:$0xff]  }
 0xb3e   :  { %3491 = vmatpush1.bf16.msra.mxu1 %v5380_v39  ;;  %4943 = vmatpush3.bf16.msra.mxu0 %v5383_v40 }
 0xb3f   :  { %4948 = vmatprep.subr.bf16.mxu0 %v5590_v0  ;;  %3754 = vmatprep.subr.bf16.mxu1 %v5386_v41 }
 0xbe1   :  { %v3236_v31 = vpop.f32.mrf.mxu1  ;;  %v3279_v32 = vpop.f32.mrf.mxu0 }
 0xbe2   :  { %v3286_v47 = vrot.slane %v3236_v31, 7  ;;  %v3292_v49 = vrot.slane %v3279_v32, 1 }
 0xbe3   :  { %v3238_v42 = vpop.f32.mrf.mxu1  ;;  %v4926_v44 = vpop.f32.mrf.mxu0 }
 0xbe5   :  { %v3240_v45 = vpop.f32.mrf.mxu1  ;;  %v3282_v46 = vpop.f32.mrf.mxu0 }
 0xbe6   :  { %v3287_v50 = vrot.slane %v3240_v45, 7  ;;  %v3293_v51 = vrot.slane %v3282_v46, 1 }
 0xbe7   :  { %v4927_v20 = vpop.f32.mrf.mxu0  ;;  %v3242_v14 = vpop.f32.mrf.mxu1 }
 0xbe8   :  { %v3289_v52 = vsel %vm389_vm3, %v3287_v50, %v3286_v47  ;;  %v3294_v53 = vsel %vm400_vm4, %v3292_v49, %v3293_v51  ;;  %v3288_v54 = vsel %vm389_vm3, %v3286_v47, %v3287_v50  ;;  %v3295_v57 = vsel %vm400_vm4, %v3293_v51, %v3292_v49 }
 0xbe9   :  { %v3290_v58 = vsel %vm5698_vm5, 0.0, %v3289_v52  ;;  %v3291_v59 = vsel %vm5702_vm6, 0.0, %v3288_v54  ;;  %v3296_v15 = vsel %vm5706_vm7, 0.0, %v3294_v53  ;;  %v3297_v62 = vsel %vm5710_vm8, 0.0, %v3295_v57 }
 0xbea   :  { %v3298_v60 = vadd.f32 %v3290_v58, %v3238_v42  ;;  %v3299_v61 = vadd.f32 %v3291_v59, %v3242_v14 }
 0xbec   :  { %v3300_v2 = vadd.f32 %v3298_v60, %v3296_v15  ;;  %v3301_v3 = vadd.f32 %v3299_v61, %v3297_v62  ;;  %v4473_v61 = vld [vmem:[#allocation6 + $0xa] ss:$0 sm:$0xff] }
 0xbee   :  { %v3310_v4 = vadd.f32 %v4448_v63, %v3300_v2  ;;  %v3311_v5 = vadd.f32 %v4448_v63, %v3301_v3 }
 0xbf0   :  { %v3312_v6 = vadd.f32 %v3310_v4, %v6002_v9  ;;  %v3313_v8 = vadd.f32 %v3311_v5, %v6005_v13  ;;  %v5392_v9 = vld [vmem:[#allocation4 + $0x8b8] ss:$12 sps:$4 sm:$0xff]   ;;  %v5395_v13 = vld [vmem:[#allocation4 + $0x8c0] ss:$12 sps:$4 sm:$0xff]  }
 0xbf2   :  { %v3314_v18 = vpack.c.bf16 %v3313_v8, %v3312_v6  ;;  %v5416_v8 = vld [vmem:[#allocation4 + $0x9a8] ss:$12 sps:$4 sm:$0xff]  }
 0xbf4   :  { %3509 = vmatmul.mubr.bf16.vlgmr.msra.gmra.mxu1 %v3314_v18  ;;  %4945 = vmatmul.mubr.bf16.vlgmr.msra.gmra.mxu0 %v3314_v18  ;;  %v5422_v18 = vld [vmem:[#allocation4 + $0x994] ss:$12 sps:$4 sm:$0xff]  }
 0xbf5   :  { %3755 = vmatpush1.bf16.msra.mxu1 %v5384_v16  ;;  %4949 = vmatpush3.bf16.msra.mxu0 %v5387_v17  ;;  %v5419_v16 = vld [vmem:[#allocation4 + $0x9b0] ss:$12 sps:$4 sm:$0xff]  }
 0xbf6   :  { %3756 = vmatprep.subr.bf16.mxu1 %v5390_v19  ;;  %4950 = vmatprep.subr.bf16.mxu0 %v5590_v0  ;;  %v5420_v19 = vld [vmem:[#allocation4 + $0x990] ss:$12 sps:$4 sm:$0xff]  }
 0xbf7   :  { %3786 = vmatprep.mubr.bf16.mxu1 %v5592_v1  ;;  %4964 = vmatprep.mubr.msk.bf16.mxu0 %vm5591_vm0, %v5590_v0 }
 0xbf9   :  { %3757 = vmatpush1.bf16.msra.mxu1 %v5388_v21  ;;  %4951 = vmatpush3.bf16.msra.mxu0 %v5391_v22  ;;  %v5423_v21 = vld [vmem:[#allocation4 + $0x998] ss:$12 sps:$4 sm:$0xff]   ;;  %v5426_v22 = vld [vmem:[#allocation4 + $0x97c] ss:$12 sps:$4 sm:$0xff]  }
 0xbfa   :  { %3758 = vmatprep.subr.bf16.mxu1 %v5394_v43  ;;  %4952 = vmatprep.subr.bf16.mxu0 %v5590_v0  ;;  %v5424_v43 = vld [vmem:[#allocation4 + $0x978] ss:$12 sps:$4 sm:$0xff]  }
 0xbfd   :  { %3759 = vmatpush1.bf16.msra.mxu1 %v5392_v9  ;;  %4953 = vmatpush3.bf16.msra.mxu0 %v5395_v13  ;;  %v5427_v9 = vld [vmem:[#allocation4 + $0x980] ss:$12 sps:$4 sm:$0xff]   ;;  %v5430_v13 = vld [vmem:[#allocation4 + $0x964] ss:$12 sps:$4 sm:$0xff]  }
 0xbfe   :  { %4954 = vmatprep.subr.bf16.mxu0 %v5590_v0  ;;  %3760 = vmatprep.subr.bf16.mxu1 %v5398_v48  ;;  %v5428_v48 = vld [vmem:[#allocation4 + $0x960] ss:$12 sps:$4 sm:$0xff]  }
 0xc01   :  { %3761 = vmatpush1.bf16.msra.mxu1 %v5396_v23  ;;  %4955 = vmatpush3.bf16.msra.mxu0 %v5399_v33  ;;  %v5431_v23 = vld [vmem:[#allocation4 + $0x968] ss:$12 sps:$4 sm:$0xff]  }
 0xc02   :  { %4956 = vmatprep.subr.bf16.mxu0 %v5590_v0  ;;  %3762 = vmatprep.subr.bf16.mxu1 %v5402_v24  ;;  %v5432_v33 = vld [vmem:[#allocation4 + $0x948] ss:$12 sps:$4 sm:$0xff]   ;;  %v5435_v24 = vld [vmem:[#allocation4 + $0x950] ss:$12 sps:$4 sm:$0xff]  }
 0xc05   :  { %3763 = vmatpush1.bf16.msra.mxu1 %v5400_v34  ;;  %4957 = vmatpush3.bf16.msra.mxu0 %v5403_v25  ;;  %v5438_v34 = vld [vmem:[#allocation4 + $0x934] ss:$12 sps:$4 sm:$0xff]   ;;  %v5436_v25 = vld [vmem:[#allocation4 + $0x930] ss:$12 sps:$4 sm:$0xff]  }
 0xc06   :  { %4958 = vmatprep.subr.bf16.mxu0 %v5590_v0  ;;  %3764 = vmatprep.subr.bf16.mxu1 %v5406_v26  ;;  %v5439_v26 = vld [vmem:[#allocation4 + $0x938] ss:$12 sps:$4 sm:$0xff]  }
 0xc09   :  { %3765 = vmatpush1.bf16.msra.mxu1 %v5404_v27  ;;  %4959 = vmatpush3.bf16.msra.mxu0 %v5407_v28  ;;  %v5442_v27 = vld [vmem:[#allocation4 + $0x91c] ss:$12 sps:$4 sm:$0xff]   ;;  %v5440_v28 = vld [vmem:[#allocation4 + $0x918] ss:$12 sps:$4 sm:$0xff]  }
 0xc0a   :  { %4960 = vmatprep.subr.bf16.mxu0 %v5590_v0  ;;  %3766 = vmatprep.subr.bf16.mxu1 %v5410_v29  ;;  %v5443_v29 = vld [vmem:[#allocation4 + $0x920] ss:$12 sps:$4 sm:$0xff]  }
 0xc0d   :  { %3767 = vmatpush1.bf16.msra.mxu1 %v5408_v30  ;;  %4961 = vmatpush3.bf16.msra.mxu0 %v5411_v35  ;;  %v5446_v30 = vld [vmem:[#allocation4 + $0x904] ss:$12 sps:$4 sm:$0xff]   ;;  %v5444_v35 = vld [vmem:[#allocation4 + $0x900] ss:$12 sps:$4 sm:$0xff]  }
 0xc0e   :  { %4962 = vmatprep.subr.bf16.mxu0 %v5590_v0  ;;  %3768 = vmatprep.subr.bf16.mxu1 %v5414_v36  ;;  %v5447_v36 = vld [vmem:[#allocation4 + $0x908] ss:$12 sps:$4 sm:$0xff]  }
 0xc11   :  { %3769 = vmatpush1.bf16.msra.mxu1 %v5412_v37  ;;  %4963 = vmatpush3.bf16.msra.mxu0 %v5415_v38 }
 0xc12   :  { %4968 = vmatprep.subr.bf16.mxu0 %v5590_v0  ;;  %4032 = vmatprep.subr.bf16.mxu1 %v5418_v55 }
 0xcb4   :  { %v3510_v39 = vpop.f32.mrf.mxu1  ;;  %v3553_v40 = vpop.f32.mrf.mxu0 }
 0xcb5   :  { %v3560_v44 = vrot.slane %v3510_v39, 7  ;;  %v3566_v45 = vrot.slane %v3553_v40, 1 }
 0xcb6   :  { %v3512_v41 = vpop.f32.mrf.mxu1  ;;  %v4946_v31 = vpop.f32.mrf.mxu0 }
 0xcb8   :  { %v3514_v32 = vpop.f32.mrf.mxu1  ;;  %v3556_v42 = vpop.f32.mrf.mxu0 }
 0xcb9   :  { %v3561_v46 = vrot.slane %v3514_v32, 7  ;;  %v3567_v47 = vrot.slane %v3556_v42, 1 }
 0xcba   :  { %v4947_v49 = vpop.f32.mrf.mxu0  ;;  %v3516_v54 = vpop.f32.mrf.mxu1 }
 0xcbb   :  { %v3563_v50 = vsel %vm389_vm3, %v3561_v46, %v3560_v44  ;;  %v3568_v51 = vsel %vm400_vm4, %v3566_v45, %v3567_v47  ;;  %v3562_v20 = vsel %vm389_vm3, %v3560_v44, %v3561_v46  ;;  %v3569_v52 = vsel %vm400_vm4, %v3567_v47, %v3566_v45 }
 0xcbc   :  { %v3564_v53 = vsel %vm5698_vm5, 0.0, %v3563_v50  ;;  %v3565_v57 = vsel %vm5702_vm6, 0.0, %v3562_v20  ;;  %v3570_v59 = vsel %vm5706_vm7, 0.0, %v3568_v51  ;;  %v3571_v60 = vsel %vm5710_vm8, 0.0, %v3569_v52 }
 0xcbd   :  { %v3572_v58 = vadd.f32 %v3564_v53, %v3512_v41  ;;  %v3573_v14 = vadd.f32 %v3565_v57, %v3516_v54 }
 0xcbf   :  { %v3574_v15 = vadd.f32 %v3572_v58, %v3570_v59  ;;  %v3575_v62 = vadd.f32 %v3573_v14, %v3571_v60  ;;  %v4498_v58 = vld [vmem:[#allocation6 + $0xb] ss:$0 sm:$0xff] }
 0xcc1   :  { %v3584_v63 = vadd.f32 %v4473_v61, %v3574_v15  ;;  %v3585_v2 = vadd.f32 %v4473_v61, %v3575_v62 }
 0xcc3   :  { %vm3587_vm11 = vcmp.ge.f32.partialorder %v3585_v2, 0.0  ;;  %v3588_v3 = vmul.f32 0.2, %v3584_v63  ;;  %v3589_v4 = vmul.f32 0.2, %v3585_v2  ;;  %vm3586_vm12 = vcmp.ge.f32.partialorder %v3584_v63, 0.0 }
 0xcc5   :  { %v3590_v5 = vsel %vm3586_vm12, %v3584_v63, %v3588_v3  ;;  %v3591_v6 = vsel %vm3587_vm11, %v3585_v2, %v3589_v4 }
 0xcc6   :  { %v3592_v17 = vpack.c.bf16 %v3591_v6, %v3590_v5 }
 0xcc8   :  { %3787 = vmatmul.mubr.bf16.vlgmr.msra.gmra.mxu1 %v3592_v17  ;;  %4965 = vmatmul.mubr.bf16.vlgmr.msra.gmra.mxu0 %v3592_v17 }
 0xcc9   :  { %4033 = vmatpush1.bf16.msra.mxu1 %v5416_v8  ;;  %4969 = vmatpush3.bf16.msra.mxu0 %v5419_v16 }
 0xcca   :  { %4034 = vmatprep.subr.bf16.mxu1 %v5422_v18  ;;  %4970 = vmatprep.subr.bf16.mxu0 %v5590_v0 }
 0xccb   :  { %4064 = vmatprep.mubr.bf16.mxu1 %v5592_v1  ;;  %4984 = vmatprep.mubr.msk.bf16.mxu0 %vm5591_vm0, %v5590_v0  ;;  %v5434_v1 = vld [vmem:[#allocation4 + $0x94c] ss:$12 sps:$4 sm:$0xff]  }
 0xccd   :  { %4035 = vmatpush1.bf16.msra.mxu1 %v5420_v19  ;;  %4971 = vmatpush3.bf16.msra.mxu0 %v5423_v21 }
 0xcce   :  { %4036 = vmatprep.subr.bf16.mxu1 %v5426_v22  ;;  %4972 = vmatprep.subr.bf16.mxu0 %v5590_v0 }
 0xcd1   :  { %4037 = vmatpush1.bf16.msra.mxu1 %v5424_v43  ;;  %4973 = vmatpush3.bf16.msra.mxu0 %v5427_v9 }
 0xcd2   :  { %4974 = vmatprep.subr.bf16.mxu0 %v5590_v0  ;;  %4038 = vmatprep.subr.bf16.mxu1 %v5430_v13 }
 0xcd5   :  { %4039 = vmatpush1.bf16.msra.mxu1 %v5428_v48  ;;  %4975 = vmatpush3.bf16.msra.mxu0 %v5431_v23 }
 0xcd6   :  { %4976 = vmatprep.subr.bf16.mxu0 %v5590_v0  ;;  %4040 = vmatprep.subr.bf16.mxu1 %v5434_v1 }
 0xcd9   :  { %4041 = vmatpush1.bf16.msra.mxu1 %v5432_v33  ;;  %4977 = vmatpush3.bf16.msra.mxu0 %v5435_v24 }
 0xcda   :  { %4978 = vmatprep.subr.bf16.mxu0 %v5590_v0  ;;  %4042 = vmatprep.subr.bf16.mxu1 %v5438_v34 }
 0xcdd   :  { %4043 = vmatpush1.bf16.msra.mxu1 %v5436_v25  ;;  %4979 = vmatpush3.bf16.msra.mxu0 %v5439_v26 }
 0xcde   :  { %4980 = vmatprep.subr.bf16.mxu0 %v5590_v0  ;;  %4044 = vmatprep.subr.bf16.mxu1 %v5442_v27 }
 0xce1   :  { %4045 = vmatpush1.bf16.msra.mxu1 %v5440_v28  ;;  %4981 = vmatpush3.bf16.msra.mxu0 %v5443_v29  ;;  %v4523_v28 = vld [vmem:[#allocation6 + $0xc] ss:$0 sm:$0xff] }
 0xce2   :  { %4982 = vmatprep.subr.bf16.mxu0 %v5590_v0  ;;  %4046 = vmatprep.subr.bf16.mxu1 %v5446_v30 }
 0xce5   :  { %4047 = vmatpush1.bf16.msra.mxu1 %v5444_v35  ;;  %4983 = vmatpush3.bf16.msra.mxu0 %v5447_v36  ;;  %v4143_v36 = vpop.permute.xlu1 %4142 }
 0xd88   :  { %v3788_v37 = vpop.f32.mrf.mxu1  ;;  %v3831_v38 = vpop.f32.mrf.mxu0 }
 0xd89   :  { %v3838_v31 = vrot.slane %v3788_v37, 7  ;;  %v3844_v32 = vrot.slane %v3831_v38, 1 }
 0xd8a   :  { %v3790_v55 = vpop.f32.mrf.mxu1  ;;  %v4966_v39 = vpop.f32.mrf.mxu0 }
 0xd8c   :  { %v3792_v40 = vpop.f32.mrf.mxu1  ;;  %v3834_v41 = vpop.f32.mrf.mxu0 }
 0xd8d   :  { %v3839_v42 = vrot.slane %v3792_v40, 7  ;;  %v3845_v44 = vrot.slane %v3834_v41, 1 }
 0xd8e   :  { %v4967_v45 = vpop.f32.mrf.mxu0  ;;  %v3794_v51 = vpop.f32.mrf.mxu1 }
 0xd8f   :  { %v3841_v46 = vsel %vm389_vm3, %v3839_v42, %v3838_v31  ;;  %v3846_v0 = vsel %vm400_vm4, %v3844_v32, %v3845_v44  ;;  %v3840_v47 = vsel %vm389_vm3, %v3838_v31, %v3839_v42  ;;  %v3847_v49 = vsel %vm400_vm4, %v3845_v44, %v3844_v32 }
 0xd90   :  { %v3842_v50 = vsel %vm5698_vm5, 0.0, %v3841_v46  ;;  %v3843_v20 = vsel %vm5702_vm6, 0.0, %v3840_v47  ;;  %v3848_v54 = vsel %vm5706_vm7, 0.0, %v3846_v0  ;;  %v3849_v57 = vsel %vm5710_vm8, 0.0, %v3847_v49 }
 0xd91   :  { %v3850_v52 = vadd.f32 %v3842_v50, %v3790_v55  ;;  %v3851_v53 = vadd.f32 %v3843_v20, %v3794_v51 }
 0xd93   :  { %v3852_v14 = vadd.f32 %v3850_v52, %v3848_v54  ;;  %v3853_v59 = vadd.f32 %v3851_v53, %v3849_v57 }
 0xd95   :  { %v3862_v60 = vadd.f32 %v4498_v58, %v3852_v14  ;;  %v3863_v61 = vadd.f32 %v4498_v58, %v3853_v59 }
 0xd97   :  { %vm3865_vm0 = vcmp.ge.f32.partialorder %v3863_v61, 0.0  ;;  %v3866_v15 = vmul.f32 0.2, %v3862_v60  ;;  %v3867_v62 = vmul.f32 0.2, %v3863_v61  ;;  %vm3864_vm13 = vcmp.ge.f32.partialorder %v3862_v60, 0.0 }
 0xd99   :  { %v3868_v63 = vsel %vm3864_vm13, %v3862_v60, %v3866_v15  ;;  %v3869_v2 = vsel %vm3865_vm0, %v3863_v61, %v3867_v62 }
 0xd9a   :  { %v3870_v3 = vpack.c.bf16 %v3869_v2, %v3868_v63 }
 0xd9c   :  { %4065 = vmatmul.mubr.bf16.vlgmr.msra.gmra.mxu1 %v3870_v3  ;;  %4985 = vmatmul.mubr.bf16.vlgmr.msra.gmra.mxu0 %v3870_v3 }
 0xe5c   :  { %v4066_v4 = vpop.f32.mrf.mxu1  ;;  %v4109_v5 = vpop.f32.mrf.mxu0 }
 0xe5d   :  { %v4116_v18 = vrot.slane %v4066_v4, 7  ;;  %v4122_v19 = vrot.slane %v4109_v5, 1 }
 0xe5e   :  { %v4068_v6 = vpop.f32.mrf.mxu1  ;;  %v4986_v8 = vpop.f32.mrf.mxu0 }
 0xe60   :  { %v4070_v16 = vpop.f32.mrf.mxu1  ;;  %v4112_v17 = vpop.f32.mrf.mxu0 }
 0xe61   :  { %v4117_v21 = vrot.slane %v4070_v16, 7  ;;  %v4123_v22 = vrot.slane %v4112_v17, 1 }
 0xe62   :  { %v4987_v43 = vpop.f32.mrf.mxu0  ;;  %v4072_v33 = vpop.f32.mrf.mxu1 }
 0xe63   :  { %v4119_v9 = vsel %vm389_vm3, %v4117_v21, %v4116_v18  ;;  %v4124_v13 = vsel %vm400_vm4, %v4122_v19, %v4123_v22  ;;  %v4118_v48 = vsel %vm389_vm3, %v4116_v18, %v4117_v21  ;;  %v4125_v23 = vsel %vm400_vm4, %v4123_v22, %v4122_v19 }
 0xe64   :  { %v4120_v1 = vsel %vm5698_vm5, 0.0, %v4119_v9  ;;  %v4121_v24 = vsel %vm5702_vm6, 0.0, %v4118_v48  ;;  %v4126_v26 = vsel %vm5706_vm7, 0.0, %v4124_v13  ;;  %v4127_v27 = vsel %vm5710_vm8, 0.0, %v4125_v23 }
 0xe65   :  { %v4128_v34 = vadd.f32 %v4120_v1, %v4068_v6  ;;  %v4129_v25 = vadd.f32 %v4121_v24, %v4072_v33 }
 0xe67   :  { %v4130_v29 = vadd.f32 %v4128_v34, %v4126_v26  ;;  %v4131_v30 = vadd.f32 %v4129_v25, %v4127_v27 }
 0xe69   :  { %v4140_v56 = vadd.f32 %v4523_v28, %v4130_v29  ;;  %v4141_v35 = vadd.f32 %v4523_v28, %v4131_v30 }
 0xe6b   :  { %v4146_v37 = vadd.f32 %v4143_v36, %v4140_v56  ;;  %v4147_v38 = vadd.f32 %v4145_v7, %v4141_v35 }
 0xe6d   :  { %4148 = vst [vmem:[%s6146_s6] sm:$0xff] %v4146_v37  ;;  %4149 = vst [vmem:[%s6146_s6 + $0x8] sm:$0xff] %v4147_v38 }
 0xe6e   :  { %4158 = vsyncpa [#allocation3], 1 }
 0xe6f   :  { %4159 = vsyncpa [#allocation5], 1 }
 0xe70   :  { %4160 = vsyncpa [#allocation8], 1 }
 0xe71   :  { %4161 = vsyncpa [#allocation11], 1 }

</bundles_post_ra>
